<compile_context>
chip_gen: v6e
topology: v6e:2x2x1
jax: 0.10.0
libtpu: 0.0.40
codegen_flags: <defaults>
</compile_context>

<pallas_src>
import functools

import jax
import jax.numpy as jnp
from jax.experimental import pallas as pl
from jax.experimental.pallas import tpu as pltpu

EPS = 1e-5      # nn.BatchNorm2d default eps
LANE = 128      # TPU lane width


def _round_up(x, m):
    return (x + m - 1) // m * m


def _flat_tile(total_rows):
    """Largest convenient row tile for the streaming BN+ReLU pass."""
    for t in (4096, 2048, 1024, 512, 256, 128, 64, 32, 16, 8):
        if total_rows % t == 0:
            return t
    return total_rows


def _conv_stats_kernel(*refs, h, w, cp, coutp, fuse_bn):
    """3x3 same-conv on one image + per-channel BN partial sums.

    Refs (fuse_bn=True inserts sc/sh right after x):
      x_ref  : (1, H*W, CP)        activation tile (fp32 block1 / bf16 block2)
      sc_ref : (1, CP) fp32        previous block's fused BN scale  [fuse only]
      sh_ref : (1, CP) fp32        previous block's fused BN shift  [fuse only]
      w_ref  : (3, 3*CP, COUTP)    bf16 per-kh weights, kw-major along K
      y_ref  : (1, H*W, COUTP)     bf16 un-normalized conv output
      st_ref : (1, 2, COUTP)       fp32 [sum; sum-of-squares] partials
      slab   : ((H+3)*(W+2), CP)   bf16 zero-padded halo slab (VMEM scratch)
    """
    if fuse_bn:
        x_ref, sc_ref, sh_ref, w_ref, y_ref, st_ref, slab = refs
    else:
        x_ref, w_ref, y_ref, st_ref, slab = refs
        sc_ref = sh_ref = None

    wp2 = w + 2
    m = h * wp2                      # matmul M (2 junk columns per image row)

    # Load the tile once; optionally apply the previous block's BN+ReLU (fp32),
    # then a single cast to bf16 (hoisted out of the 9-tap loop).
    x = x_ref[0].astype(jnp.float32)                          # (H*W, CP)
    if fuse_bn:
        x = jnp.maximum(x * sc_ref[...] + sh_ref[...], 0.0)
    xb = x.astype(jnp.bfloat16)

    # Flattened zero-padded slab: padded row r lives at flat rows
    # [r*(W+2), (r+1)*(W+2)); interior pixels sit at columns 1..W.
    slab[...] = jnp.zeros(slab.shape, slab.dtype)
    for r in range(h):
        base = (r + 1) * wp2 + 1
        slab[base:base + w, :] = xb[r * w:(r + 1) * w, :]

    # 3x3 conv = 3 matmuls (one per kh) with K = 3*CP: each tap (kh, kw) is a
    # static row-offset slice of the slab; the 3 kw taps are lane-concatenated.
    acc = jnp.zeros((m, coutp), jnp.float32)
    for kh in range(3):
        off = kh * wp2
        taps = [slab[off + kw: off + kw + m, :] for kw in range(3)]
        xcat = jnp.concatenate(taps, axis=-1)                 # (m, 3*CP) bf16
        acc = acc + jnp.dot(xcat, w_ref[kh],
                            preferred_element_type=jnp.float32)

    # Drop the 2 junk columns of every row; emit bf16 y and fp32 BN partials.
    rows = [acc[hi * wp2: hi * wp2 + w, :] for hi in range(h)]
    yv = jnp.concatenate(rows, axis=0)                        # (H*W, COUTP) f32
    y_ref[0] = yv.astype(y_ref.dtype)
    s = jnp.sum(yv, axis=0, keepdims=True)
    ss = jnp.sum(yv * yv, axis=0, keepdims=True)
    st_ref[0] = jnp.concatenate([s, ss], axis=0)              # (2, COUTP)


def _bn_relu_kernel(y_ref, sc_ref, sh_ref, o_ref):
    """Streaming fused BatchNorm apply + ReLU on large lane-dense flat tiles."""
    y = y_ref[...].astype(jnp.float32)
    o_ref[...] = jnp.maximum(y * sc_ref[...] + sh_ref[...], 0.0)


def _prep_weights(w_oihw, cp, coutp):
    """(Cout, Cin, 3, 3) -> (3, 3*CP, COUTP) bf16, kw-major along the K axis."""
    cout, cin = w_oihw.shape[:2]
    wk = jnp.transpose(w_oihw.astype(jnp.float32), (2, 3, 1, 0))   # (kh,kw,ci,co)
    wk = jnp.pad(wk, ((0, 0), (0, 0), (0, cp - cin), (0, coutp - cout)))
    return wk.reshape(3, 3 * cp, coutp).astype(jnp.bfloat16)


def _conv_block(x_flat, w_oihw, gamma, beta, h, w, in_scale=None, in_shift=None):
    """Conv2d(3x3, pad=1) (+ fused preceding BN+ReLU) and this block's BN stats.

    x_flat: (N, H*W, CP) activations, channels already lane-dense.
    Returns (y_raw bf16 (N, H*W, COUTP), scale (1, COUTP), shift (1, COUTP))
    where scale/shift fold this block's batch statistics with gamma/beta.
    """
    n, hw, cp = x_flat.shape
    cout = w_oihw.shape[0]
    coutp = _round_up(max(cout, LANE), LANE)
    fuse = in_scale is not None

    wk = _prep_weights(w_oihw, cp, coutp)
    wp2 = w + 2
    slab_rows = (h + 3) * wp2          # +1 spare zero row for the last kh/kw taps

    in_specs = [pl.BlockSpec((1, hw, cp), lambda ni: (ni, 0, 0))]
    args = [x_flat]
    if fuse:
        in_specs += [pl.BlockSpec((1, cp), lambda ni: (0, 0)),
                     pl.BlockSpec((1, cp), lambda ni: (0, 0))]
        args += [in_scale, in_shift]
    in_specs.append(pl.BlockSpec((3, 3 * cp, coutp), lambda ni: (0, 0, 0)))
    args.append(wk)

    kern = functools.partial(_conv_stats_kernel, h=h, w=w, cp=cp, coutp=coutp,
                             fuse_bn=fuse)
    y, st = pl.pallas_call(
        kern,
        grid=(n,),
        in_specs=in_specs,
        out_specs=[pl.BlockSpec((1, hw, coutp), lambda ni: (ni, 0, 0)),
                   pl.BlockSpec((1, 2, coutp), lambda ni: (ni, 0, 0))],
        out_shape=(jax.ShapeDtypeStruct((n, hw, coutp), jnp.bfloat16),
                   jax.ShapeDtypeStruct((n, 2, coutp), jnp.float32)),
        scratch_shapes=[pltpu.VMEM((slab_rows, cp), jnp.bfloat16)],
        compiler_params=pltpu.CompilerParams(
            dimension_semantics=("parallel",),
            vmem_limit_bytes=32 * 1024 * 1024),
    )(*args)

    # Tiny BN-stat finalize (training-mode batch stats, biased variance, fp32).
    # NOTE: E[x^2]-E[x]^2 in fp32 is fine at these unit-scale activations; a
    # Welford-style merge would be needed for very large N*H*W / large means.
    m_tot = float(n * hw)
    tot = jnp.sum(st, axis=0)                                  # (2, COUTP)
    mean = tot[0] / m_tot
    var = jnp.maximum(tot[1] / m_tot - mean * mean, 0.0)
    gamma_p = jnp.pad(gamma.astype(jnp.float32), (0, coutp - cout))
    beta_p = jnp.pad(beta.astype(jnp.float32), (0, coutp - cout))
    scale = gamma_p * jax.lax.rsqrt(var + EPS)
    shift = beta_p - mean * scale
    return y, scale.reshape(1, coutp), shift.reshape(1, coutp)


def _bn_relu_apply(y_flat2, scale, shift):
    rows, coutp = y_flat2.shape
    tile = _flat_tile(rows)
    return pl.pallas_call(
        _bn_relu_kernel,
        grid=(rows // tile,),
        in_specs=[pl.BlockSpec((tile, coutp), lambda i: (i, 0)),
                  pl.BlockSpec((1, coutp), lambda i: (0, 0)),
                  pl.BlockSpec((1, coutp), lambda i: (0, 0))],
        out_specs=pl.BlockSpec((tile, coutp), lambda i: (i, 0)),
        out_shape=jax.ShapeDtypeStruct((rows, coutp), jnp.float32),
        compiler_params=pltpu.CompilerParams(
            dimension_semantics=("parallel",),
            vmem_limit_bytes=32 * 1024 * 1024),
    )(y_flat2, scale, shift)


def init_params(key, in_channel, out_channel):
    k1, k2, k3, k4 = jax.random.split(key, 4)
    return dict(
        w1=jax.random.normal(k1, (out_channel, in_channel, 3, 3), jnp.float32) * 0.1,
        b1=jax.random.normal(k2, (out_channel,), jnp.float32) * 0.1,   # parity only
        g1=jnp.ones((out_channel,), jnp.float32),     # BN default weight
        be1=jnp.zeros((out_channel,), jnp.float32),   # BN default bias
        w2=jax.random.normal(k3, (out_channel, out_channel, 3, 3), jnp.float32) * 0.1,
        b2=jax.random.normal(k4, (out_channel,), jnp.float32) * 0.1,   # parity only
        g2=jnp.ones((out_channel,), jnp.float32),
        be2=jnp.zeros((out_channel,), jnp.float32),
    )


@jax.jit
def conv_forward(x_nchw, params):
    """Forward pass of the PyTorch `conv` module. Input/output are NCHW fp32."""
    n, cin, h, w = x_nchw.shape
    cout = params["w1"].shape[0]
    cp = _round_up(max(cin, LANE), LANE)
    coutp = _round_up(max(cout, LANE), LANE)

    # NHWC, lane-dense channels, flat (H*W) spatial rows.
    x = jnp.transpose(x_nchw, (0, 2, 3, 1)).astype(jnp.float32)
    x = jnp.pad(x, ((0, 0), (0, 0), (0, 0), (0, cp - cin)))
    x = x.reshape(n, h * w, cp)

    # NOTE: conv biases b1/b2 are intentionally not applied — a per-channel bias
    # immediately followed by training-mode BatchNorm cancels exactly.
    y1, sc1, sh1 = _conv_block(x, params["w1"], params["g1"], params["be1"], h, w)
    # BN1 + ReLU are applied inside conv2's kernel (fused input path).
    y2, sc2, sh2 = _conv_block(y1, params["w2"], params["g2"], params["be2"], h, w,
                               in_scale=sc1, in_shift=sh1)
    out = _bn_relu_apply(y2.reshape(n * h * w, coutp), sc2, sh2)

    out = out.reshape(n, h, w, coutp)[..., :cout]
    return jnp.transpose(out, (0, 3, 1, 2))


if __name__ == "__main__":
    key = jax.random.PRNGKey(0)
    kx, kp = jax.random.split(key)
    N, CIN, COUT, H, W = 2, 4, 8, 16, 16
    x = jax.random.normal(kx, (N, CIN, H, W), jnp.float32)
    params = init_params(kp, CIN, COUT)

    out = conv_forward(x, params)
    jax.block_until_ready(out)
    assert out.shape == (N, COUT, H, W), out.shape
    assert bool(jnp.all(jnp.isfinite(out)))
    print("KERNEL_OK")
</pallas_src>

<mosaic_0001>
module attributes {stable_mosaic.version = 11 : i64} {
  func.func @_bn_relu_kernel(%arg0: i32, %arg1: memref<512x128xbf16, #tpu.memory_space<vmem>>, %arg2: memref<1x128xf32, #tpu.memory_space<vmem>>, %arg3: memref<1x128xf32, #tpu.memory_space<vmem>>, %arg4: memref<512x128xf32, #tpu.memory_space<vmem>>) attributes {dimension_semantics = [#tpu.dimension_semantics<parallel>], iteration_bounds = array<i64: 1>, scalar_prefetch = 0 : i64, scratch_operands = 0 : i64, tpu.core_type = #tpu.core_type<tc>, window_params = [{transform_indices = @transform_0, window_bounds = array<i64: 512, 128>}, {pipeline_mode = #tpu.pipeline_mode<synchronous>, transform_indices = @transform_1, window_bounds = array<i64: 1, 128>}, {pipeline_mode = #tpu.pipeline_mode<synchronous>, transform_indices = @transform_2, window_bounds = array<i64: 1, 128>}, {transform_indices = @transform_3, window_bounds = array<i64: 512, 128>}]} {
    %c0 = arith.constant 0 : index
    %c0_0 = arith.constant 0 : index
    %0 = vector.load %arg1[%c0, %c0_0] : memref<512x128xbf16, #tpu.memory_space<vmem>>, vector<512x128xbf16>
    %1 = arith.extf %0 : vector<512x128xbf16> to vector<512x128xf32>
    %c0_1 = arith.constant 0 : index
    %c0_2 = arith.constant 0 : index
    %2 = vector.load %arg2[%c0_1, %c0_2] : memref<1x128xf32, #tpu.memory_space<vmem>>, vector<1x128xf32>
    %3 = vector.broadcast %2 : vector<1x128xf32> to vector<512x128xf32>
    %4 = arith.mulf %1, %3 : vector<512x128xf32>
    %c0_3 = arith.constant 0 : index
    %c0_4 = arith.constant 0 : index
    %5 = vector.load %arg3[%c0_3, %c0_4] : memref<1x128xf32, #tpu.memory_space<vmem>>, vector<1x128xf32>
    %6 = vector.broadcast %5 : vector<1x128xf32> to vector<512x128xf32>
    %7 = arith.addf %4, %6 : vector<512x128xf32>
    %cst = arith.constant 0.000000e+00 : f32
    %8 = vector.broadcast %cst : f32 to vector<512x128xf32>
    %9 = arith.maximumf %7, %8 : vector<512x128xf32>
    %c0_5 = arith.constant 0 : index
    %c0_6 = arith.constant 0 : index
    %10 = vector.load %arg4[%c0_5, %c0_6] : memref<512x128xf32, #tpu.memory_space<vmem>>, vector<512x128xf32>
    tpu.vector_store %arg4[%c0_5, %c0_6], %9 {strides = array<i32>} : memref<512x128xf32, #tpu.memory_space<vmem>>, vector<512x128xf32>,
    return
  }
  func.func @transform_0(%arg0: i32) -> (i32, i32) {
    %c0_i32 = arith.constant 0 : i32
    %c0_i32_0 = arith.constant 0 : i32
    return %arg0, %c0_i32 : i32, i32
  }
  func.func @transform_1(%arg0: i32) -> (i32, i32) {
    %c0_i32 = arith.constant 0 : i32
    %c0_i32_0 = arith.constant 0 : i32
    %c0_i32_1 = arith.constant 0 : i32
    return %c0_i32, %c0_i32_0 : i32, i32
  }
  func.func @transform_2(%arg0: i32) -> (i32, i32) {
    %c0_i32 = arith.constant 0 : i32
    %c0_i32_0 = arith.constant 0 : i32
    %c0_i32_1 = arith.constant 0 : i32
    return %c0_i32, %c0_i32_0 : i32, i32
  }
  func.func @transform_3(%arg0: i32) -> (i32, i32) {
    %c0_i32 = arith.constant 0 : i32
    %c0_i32_0 = arith.constant 0 : i32
    return %arg0, %c0_i32 : i32, i32
  }
}

module attributes {stable_mosaic.version = 11 : i64} {
  func.func @_conv_stats_kernel(%arg0: i32, %arg1: memref<1x256x128xf32, #tpu.memory_space<vmem>>, %arg2: memref<3x384x128xbf16, #tpu.memory_space<vmem>>, %arg3: memref<1x256x128xbf16, #tpu.memory_space<vmem>>, %arg4: memref<1x2x128xf32, #tpu.memory_space<vmem>>, %arg5: memref<342x128xbf16, #tpu.memory_space<vmem>>) attributes {dimension_semantics = [#tpu.dimension_semantics<parallel>], iteration_bounds = array<i64: 2>, scalar_prefetch = 0 : i64, scratch_operands = 1 : i64, tpu.core_type = #tpu.core_type<tc>, window_params = [{transform_indices = @transform_0, window_bounds = array<i64: 1, 256, 128>}, {pipeline_mode = #tpu.pipeline_mode<synchronous>, transform_indices = @transform_1, window_bounds = array<i64: 3, 384, 128>}, {transform_indices = @transform_2, window_bounds = array<i64: 1, 256, 128>}, {transform_indices = @transform_3, window_bounds = array<i64: 1, 2, 128>}]} {
    %c0 = arith.constant 0 : index
    %c0_0 = arith.constant 0 : index
    %c0_1 = arith.constant 0 : index
    %0 = vector.load %arg1[%c0, %c0_0, %c0_1] : memref<1x256x128xf32, #tpu.memory_space<vmem>>, vector<1x256x128xf32>
    %1 = vector.shape_cast %0 : vector<1x256x128xf32> to vector<256x128xf32>
    %2 = arith.truncf %1 : vector<256x128xf32> to vector<256x128xbf16>
    %cst = arith.constant 0.000000e+00 : bf16
    %3 = vector.broadcast %cst : bf16 to vector<342x128xbf16>
    %c0_2 = arith.constant 0 : index
    %c0_3 = arith.constant 0 : index
    %4 = vector.load %arg5[%c0_2, %c0_3] : memref<342x128xbf16, #tpu.memory_space<vmem>>, vector<342x128xbf16>
    tpu.vector_store %arg5[%c0_2, %c0_3], %3 {strides = array<i32>} : memref<342x128xbf16, #tpu.memory_space<vmem>>, vector<342x128xbf16>,
    %5 = vector.extract_strided_slice %2 {offsets = [0, 0], sizes = [16, 128], strides = [1, 1]} : vector<256x128xbf16> to vector<16x128xbf16>
    %c19 = arith.constant 19 : index
    %c0_4 = arith.constant 0 : index
    %6 = vector.load %arg5[%c19, %c0_4] : memref<342x128xbf16, #tpu.memory_space<vmem>>, vector<16x128xbf16>
    tpu.vector_store %arg5[%c19, %c0_4], %5 {strides = array<i32>} : memref<342x128xbf16, #tpu.memory_space<vmem>>, vector<16x128xbf16>,
    %7 = vector.extract_strided_slice %2 {offsets = [16, 0], sizes = [16, 128], strides = [1, 1]} : vector<256x128xbf16> to vector<16x128xbf16>
    %c37 = arith.constant 37 : index
    %c0_5 = arith.constant 0 : index
    %8 = vector.load %arg5[%c37, %c0_5] : memref<342x128xbf16, #tpu.memory_space<vmem>>, vector<16x128xbf16>
    tpu.vector_store %arg5[%c37, %c0_5], %7 {strides = array<i32>} : memref<342x128xbf16, #tpu.memory_space<vmem>>, vector<16x128xbf16>,
    %9 = vector.extract_strided_slice %2 {offsets = [32, 0], sizes = [16, 128], strides = [1, 1]} : vector<256x128xbf16> to vector<16x128xbf16>
    %c55 = arith.constant 55 : index
    %c0_6 = arith.constant 0 : index
    %10 = vector.load %arg5[%c55, %c0_6] : memref<342x128xbf16, #tpu.memory_space<vmem>>, vector<16x128xbf16>
    tpu.vector_store %arg5[%c55, %c0_6], %9 {strides = array<i32>} : memref<342x128xbf16, #tpu.memory_space<vmem>>, vector<16x128xbf16>,
    %11 = vector.extract_strided_slice %2 {offsets = [48, 0], sizes = [16, 128], strides = [1, 1]} : vector<256x128xbf16> to vector<16x128xbf16>
    %c73 = arith.constant 73 : index
    %c0_7 = arith.constant 0 : index
    %12 = vector.load %arg5[%c73, %c0_7] : memref<342x128xbf16, #tpu.memory_space<vmem>>, vector<16x128xbf16>
    tpu.vector_store %arg5[%c73, %c0_7], %11 {strides = array<i32>} : memref<342x128xbf16, #tpu.memory_space<vmem>>, vector<16x128xbf16>,
    %13 = vector.extract_strided_slice %2 {offsets = [64, 0], sizes = [16, 128], strides = [1, 1]} : vector<256x128xbf16> to vector<16x128xbf16>
    %c91 = arith.constant 91 : index
    %c0_8 = arith.constant 0 : index
    %14 = vector.load %arg5[%c91, %c0_8] : memref<342x128xbf16, #tpu.memory_space<vmem>>, vector<16x128xbf16>
    tpu.vector_store %arg5[%c91, %c0_8], %13 {strides = array<i32>} : memref<342x128xbf16, #tpu.memory_space<vmem>>, vector<16x128xbf16>,
    %15 = vector.extract_strided_slice %2 {offsets = [80, 0], sizes = [16, 128], strides = [1, 1]} : vector<256x128xbf16> to vector<16x128xbf16>
    %c109 = arith.constant 109 : index
    %c0_9 = arith.constant 0 : index
    %16 = vector.load %arg5[%c109, %c0_9] : memref<342x128xbf16, #tpu.memory_space<vmem>>, vector<16x128xbf16>
    tpu.vector_store %arg5[%c109, %c0_9], %15 {strides = array<i32>} : memref<342x128xbf16, #tpu.memory_space<vmem>>, vector<16x128xbf16>,
    %17 = vector.extract_strided_slice %2 {offsets = [96, 0], sizes = [16, 128], strides = [1, 1]} : vector<256x128xbf16> to vector<16x128xbf16>
    %c127 = arith.constant 127 : index
    %c0_10 = arith.constant 0 : index
    %18 = vector.load %arg5[%c127, %c0_10] : memref<342x128xbf16, #tpu.memory_space<vmem>>, vector<16x128xbf16>
    tpu.vector_store %arg5[%c127, %c0_10], %17 {strides = array<i32>} : memref<342x128xbf16, #tpu.memory_space<vmem>>, vector<16x128xbf16>,
    %19 = vector.extract_strided_slice %2 {offsets = [112, 0], sizes = [16, 128], strides = [1, 1]} : vector<256x128xbf16> to vector<16x128xbf16>
    %c145 = arith.constant 145 : index
    %c0_11 = arith.constant 0 : index
    %20 = vector.load %arg5[%c145, %c0_11] : memref<342x128xbf16, #tpu.memory_space<vmem>>, vector<16x128xbf16>
    tpu.vector_store %arg5[%c145, %c0_11], %19 {strides = array<i32>} : memref<342x128xbf16, #tpu.memory_space<vmem>>, vector<16x128xbf16>,
    %21 = vector.extract_strided_slice %2 {offsets = [128, 0], sizes = [16, 128], strides = [1, 1]} : vector<256x128xbf16> to vector<16x128xbf16>
    %c163 = arith.constant 163 : index
    %c0_12 = arith.constant 0 : index
    %22 = vector.load %arg5[%c163, %c0_12] : memref<342x128xbf16, #tpu.memory_space<vmem>>, vector<16x128xbf16>
    tpu.vector_store %arg5[%c163, %c0_12], %21 {strides = array<i32>} : memref<342x128xbf16, #tpu.memory_space<vmem>>, vector<16x128xbf16>,
    %23 = vector.extract_strided_slice %2 {offsets = [144, 0], sizes = [16, 128], strides = [1, 1]} : vector<256x128xbf16> to vector<16x128xbf16>
    %c181 = arith.constant 181 : index
    %c0_13 = arith.constant 0 : index
    %24 = vector.load %arg5[%c181, %c0_13] : memref<342x128xbf16, #tpu.memory_space<vmem>>, vector<16x128xbf16>
    tpu.vector_store %arg5[%c181, %c0_13], %23 {strides = array<i32>} : memref<342x128xbf16, #tpu.memory_space<vmem>>, vector<16x128xbf16>,
    %25 = vector.extract_strided_slice %2 {offsets = [160, 0], sizes = [16, 128], strides = [1, 1]} : vector<256x128xbf16> to vector<16x128xbf16>
    %c199 = arith.constant 199 : index
    %c0_14 = arith.constant 0 : index
    %26 = vector.load %arg5[%c199, %c0_14] : memref<342x128xbf16, #tpu.memory_space<vmem>>, vector<16x128xbf16>
    tpu.vector_store %arg5[%c199, %c0_14], %25 {strides = array<i32>} : memref<342x128xbf16, #tpu.memory_space<vmem>>, vector<16x128xbf16>,
    %27 = vector.extract_strided_slice %2 {offsets = [176, 0], sizes = [16, 128], strides = [1, 1]} : vector<256x128xbf16> to vector<16x128xbf16>
    %c217 = arith.constant 217 : index
    %c0_15 = arith.constant 0 : index
    %28 = vector.load %arg5[%c217, %c0_15] : memref<342x128xbf16, #tpu.memory_space<vmem>>, vector<16x128xbf16>
    tpu.vector_store %arg5[%c217, %c0_15], %27 {strides = array<i32>} : memref<342x128xbf16, #tpu.memory_space<vmem>>, vector<16x128xbf16>,
    %29 = vector.extract_strided_slice %2 {offsets = [192, 0], sizes = [16, 128], strides = [1, 1]} : vector<256x128xbf16> to vector<16x128xbf16>
    %c235 = arith.constant 235 : index
    %c0_16 = arith.constant 0 : index
    %30 = vector.load %arg5[%c235, %c0_16] : memref<342x128xbf16, #tpu.memory_space<vmem>>, vector<16x128xbf16>
    tpu.vector_store %arg5[%c235, %c0_16], %29 {strides = array<i32>} : memref<342x128xbf16, #tpu.memory_space<vmem>>, vector<16x128xbf16>,
    %31 = vector.extract_strided_slice %2 {offsets = [208, 0], sizes = [16, 128], strides = [1, 1]} : vector<256x128xbf16> to vector<16x128xbf16>
    %c253 = arith.constant 253 : index
    %c0_17 = arith.constant 0 : index
    %32 = vector.load %arg5[%c253, %c0_17] : memref<342x128xbf16, #tpu.memory_space<vmem>>, vector<16x128xbf16>
    tpu.vector_store %arg5[%c253, %c0_17], %31 {strides = array<i32>} : memref<342x128xbf16, #tpu.memory_space<vmem>>, vector<16x128xbf16>,
    %33 = vector.extract_strided_slice %2 {offsets = [224, 0], sizes = [16, 128], strides = [1, 1]} : vector<256x128xbf16> to vector<16x128xbf16>
    %c271 = arith.constant 271 : index
    %c0_18 = arith.constant 0 : index
    %34 = vector.load %arg5[%c271, %c0_18] : memref<342x128xbf16, #tpu.memory_space<vmem>>, vector<16x128xbf16>
    tpu.vector_store %arg5[%c271, %c0_18], %33 {strides = array<i32>} : memref<342x128xbf16, #tpu.memory_space<vmem>>, vector<16x128xbf16>,
    %35 = vector.extract_strided_slice %2 {offsets = [240, 0], sizes = [16, 128], strides = [1, 1]} : vector<256x128xbf16> to vector<16x128xbf16>
    %c289 = arith.constant 289 : index
    %c0_19 = arith.constant 0 : index
    %36 = vector.load %arg5[%c289, %c0_19] : memref<342x128xbf16, #tpu.memory_space<vmem>>, vector<16x128xbf16>
    tpu.vector_store %arg5[%c289, %c0_19], %35 {strides = array<i32>} : memref<342x128xbf16, #tpu.memory_space<vmem>>, vector<16x128xbf16>,
    %cst_20 = arith.constant 0.000000e+00 : f32
    %37 = vector.broadcast %cst_20 : f32 to vector<288x128xf32>
    %c0_21 = arith.constant 0 : index
    %c0_22 = arith.constant 0 : index
    %38 = vector.load %arg5[%c0_21, %c0_22] : memref<342x128xbf16, #tpu.memory_space<vmem>>, vector<288x128xbf16>
    %c1 = arith.constant 1 : index
    %c0_23 = arith.constant 0 : index
    %39 = vector.load %arg5[%c1, %c0_23] : memref<342x128xbf16, #tpu.memory_space<vmem>>, vector<288x128xbf16>
    %c2 = arith.constant 2 : index
    %c0_24 = arith.constant 0 : index
    %40 = vector.load %arg5[%c2, %c0_24] : memref<342x128xbf16, #tpu.memory_space<vmem>>, vector<288x128xbf16>
    %41 = tpu.concatenate %38, %39, %40 in 1 : vector<288x128xbf16>, vector<288x128xbf16>, vector<288x128xbf16> -> vector<288x384xbf16>
    %c0_25 = arith.constant 0 : index
    %c0_26 = arith.constant 0 : index
    %c0_27 = arith.constant 0 : index
    %42 = vector.load %arg2[%c0_25, %c0_26, %c0_27] : memref<3x384x128xbf16, #tpu.memory_space<vmem>>, vector<1x384x128xbf16>
    %43 = vector.shape_cast %42 : vector<1x384x128xbf16> to vector<384x128xbf16>
    %cst_28 = arith.constant dense<0.000000e+00> : vector<288x128xf32>
    %44 = tpu.matmul %41, %43, %cst_28 {dimension_numbers = #tpu.dot_dimension_numbers<[1], [0], [0], [1], [0, 0, 1, 1], [], []>} : vector<288x384xbf16>, vector<384x128xbf16>, vector<288x128xf32> -> vector<288x128xf32>
    %45 = arith.addf %37, %44 : vector<288x128xf32>
    %c18 = arith.constant 18 : index
    %c0_29 = arith.constant 0 : index
    %46 = vector.load %arg5[%c18, %c0_29] : memref<342x128xbf16, #tpu.memory_space<vmem>>, vector<288x128xbf16>
    %c19_30 = arith.constant 19 : index
    %c0_31 = arith.constant 0 : index
    %47 = vector.load %arg5[%c19_30, %c0_31] : memref<342x128xbf16, #tpu.memory_space<vmem>>, vector<288x128xbf16>
    %c20 = arith.constant 20 : index
    %c0_32 = arith.constant 0 : index
    %48 = vector.load %arg5[%c20, %c0_32] : memref<342x128xbf16, #tpu.memory_space<vmem>>, vector<288x128xbf16>
    %49 = tpu.concatenate %46, %47, %48 in 1 : vector<288x128xbf16>, vector<288x128xbf16>, vector<288x128xbf16> -> vector<288x384xbf16>
    %c1_33 = arith.constant 1 : index
    %c0_34 = arith.constant 0 : index
    %c0_35 = arith.constant 0 : index
    %50 = vector.load %arg2[%c1_33, %c0_34, %c0_35] : memref<3x384x128xbf16, #tpu.memory_space<vmem>>, vector<1x384x128xbf16>
    %51 = vector.shape_cast %50 : vector<1x384x128xbf16> to vector<384x128xbf16>
    %cst_36 = arith.constant dense<0.000000e+00> : vector<288x128xf32>
    %52 = tpu.matmul %49, %51, %cst_36 {dimension_numbers = #tpu.dot_dimension_numbers<[1], [0], [0], [1], [0, 0, 1, 1], [], []>} : vector<288x384xbf16>, vector<384x128xbf16>, vector<288x128xf32> -> vector<288x128xf32>
    %53 = arith.addf %45, %52 : vector<288x128xf32>
    %c36 = arith.constant 36 : index
    %c0_37 = arith.constant 0 : index
    %54 = vector.load %arg5[%c36, %c0_37] : memref<342x128xbf16, #tpu.memory_space<vmem>>, vector<288x128xbf16>
    %c37_38 = arith.constant 37 : index
    %c0_39 = arith.constant 0 : index
    %55 = vector.load %arg5[%c37_38, %c0_39] : memref<342x128xbf16, #tpu.memory_space<vmem>>, vector<288x128xbf16>
    %c38 = arith.constant 38 : index
    %c0_40 = arith.constant 0 : index
    %56 = vector.load %arg5[%c38, %c0_40] : memref<342x128xbf16, #tpu.memory_space<vmem>>, vector<288x128xbf16>
    %57 = tpu.concatenate %54, %55, %56 in 1 : vector<288x128xbf16>, vector<288x128xbf16>, vector<288x128xbf16> -> vector<288x384xbf16>
    %c2_41 = arith.constant 2 : index
    %c0_42 = arith.constant 0 : index
    %c0_43 = arith.constant 0 : index
    %58 = vector.load %arg2[%c2_41, %c0_42, %c0_43] : memref<3x384x128xbf16, #tpu.memory_space<vmem>>, vector<1x384x128xbf16>
    %59 = vector.shape_cast %58 : vector<1x384x128xbf16> to vector<384x128xbf16>
    %cst_44 = arith.constant dense<0.000000e+00> : vector<288x128xf32>
    %60 = tpu.matmul %57, %59, %cst_44 {dimension_numbers = #tpu.dot_dimension_numbers<[1], [0], [0], [1], [0, 0, 1, 1], [], []>} : vector<288x384xbf16>, vector<384x128xbf16>, vector<288x128xf32> -> vector<288x128xf32>
    %61 = arith.addf %53, %60 : vector<288x128xf32>
    %62 = vector.extract_strided_slice %61 {offsets = [0, 0], sizes = [16, 128], strides = [1, 1]} : vector<288x128xf32> to vector<16x128xf32>
    %63 = vector.extract_strided_slice %61 {offsets = [18, 0], sizes = [16, 128], strides = [1, 1]} : vector<288x128xf32> to vector<16x128xf32>
    %64 = vector.extract_strided_slice %61 {offsets = [36, 0], sizes = [16, 128], strides = [1, 1]} : vector<288x128xf32> to vector<16x128xf32>
    %65 = vector.extract_strided_slice %61 {offsets = [54, 0], sizes = [16, 128], strides = [1, 1]} : vector<288x128xf32> to vector<16x128xf32>
    %66 = vector.extract_strided_slice %61 {offsets = [72, 0], sizes = [16, 128], strides = [1, 1]} : vector<288x128xf32> to vector<16x128xf32>
    %67 = vector.extract_strided_slice %61 {offsets = [90, 0], sizes = [16, 128], strides = [1, 1]} : vector<288x128xf32> to vector<16x128xf32>
    %68 = vector.extract_strided_slice %61 {offsets = [108, 0], sizes = [16, 128], strides = [1, 1]} : vector<288x128xf32> to vector<16x128xf32>
    %69 = vector.extract_strided_slice %61 {offsets = [126, 0], sizes = [16, 128], strides = [1, 1]} : vector<288x128xf32> to vector<16x128xf32>
    %70 = vector.extract_strided_slice %61 {offsets = [144, 0], sizes = [16, 128], strides = [1, 1]} : vector<288x128xf32> to vector<16x128xf32>
    %71 = vector.extract_strided_slice %61 {offsets = [162, 0], sizes = [16, 128], strides = [1, 1]} : vector<288x128xf32> to vector<16x128xf32>
    %72 = vector.extract_strided_slice %61 {offsets = [180, 0], sizes = [16, 128], strides = [1, 1]} : vector<288x128xf32> to vector<16x128xf32>
    %73 = vector.extract_strided_slice %61 {offsets = [198, 0], sizes = [16, 128], strides = [1, 1]} : vector<288x128xf32> to vector<16x128xf32>
    %74 = vector.extract_strided_slice %61 {offsets = [216, 0], sizes = [16, 128], strides = [1, 1]} : vector<288x128xf32> to vector<16x128xf32>
    %75 = vector.extract_strided_slice %61 {offsets = [234, 0], sizes = [16, 128], strides = [1, 1]} : vector<288x128xf32> to vector<16x128xf32>
    %76 = vector.extract_strided_slice %61 {offsets = [252, 0], sizes = [16, 128], strides = [1, 1]} : vector<288x128xf32> to vector<16x128xf32>
    %77 = vector.extract_strided_slice %61 {offsets = [270, 0], sizes = [16, 128], strides = [1, 1]} : vector<288x128xf32> to vector<16x128xf32>
    %78 = tpu.concatenate %62, %63, %64, %65, %66, %67, %68, %69, %70, %71, %72, %73, %74, %75, %76, %77 in 0 : vector<16x128xf32>, vector<16x128xf32>, vector<16x128xf32>, vector<16x128xf32>, vector<16x128xf32>, vector<16x128xf32>, vector<16x128xf32>, vector<16x128xf32>, vector<16x128xf32>, vector<16x128xf32>, vector<16x128xf32>, vector<16x128xf32>, vector<16x128xf32>, vector<16x128xf32>, vector<16x128xf32>, vector<16x128xf32> -> vector<256x128xf32>
    %79 = arith.truncf %78 : vector<256x128xf32> to vector<256x128xbf16>
    %c0_45 = arith.constant 0 : index
    %c0_46 = arith.constant 0 : index
    %c0_47 = arith.constant 0 : index
    %80 = vector.load %arg3[%c0_45, %c0_46, %c0_47] : memref<1x256x128xbf16, #tpu.memory_space<vmem>>, vector<1x256x128xbf16>
    %81 = vector.shape_cast %80 : vector<1x256x128xbf16> to vector<256x128xbf16>
    %82 = vector.shape_cast %79 : vector<256x128xbf16> to vector<1x256x128xbf16>
    tpu.vector_store %arg3[%c0_45, %c0_46, %c0_47], %82 {strides = array<i32>} : memref<1x256x128xbf16, #tpu.memory_space<vmem>>, vector<1x256x128xbf16>,
    %cst_48 = arith.constant dense<0.000000e+00> : vector<128xf32>
    %83 = vector.multi_reduction <add>, %78, %cst_48 [0] : vector<256x128xf32> to vector<128xf32>
    %84 = vector.shape_cast %83 : vector<128xf32> to vector<1x128xf32>
    %85 = arith.mulf %78, %78 : vector<256x128xf32>
    %cst_49 = arith.constant dense<0.000000e+00> : vector<128xf32>
    %86 = vector.multi_reduction <add>, %85, %cst_49 [0] : vector<256x128xf32> to vector<128xf32>
    %87 = vector.shape_cast %86 : vector<128xf32> to vector<1x128xf32>
    %88 = tpu.concatenate %84, %87 in 0 : vector<1x128xf32>, vector<1x128xf32> -> vector<2x128xf32>
    %c0_50 = arith.constant 0 : index
    %c0_51 = arith.constant 0 : index
    %c0_52 = arith.constant 0 : index
    %89 = vector.load %arg4[%c0_50, %c0_51, %c0_52] : memref<1x2x128xf32, #tpu.memory_space<vmem>>, vector<1x2x128xf32>
    %90 = vector.shape_cast %89 : vector<1x2x128xf32> to vector<2x128xf32>
    %91 = vector.shape_cast %88 : vector<2x128xf32> to vector<1x2x128xf32>
    tpu.vector_store %arg4[%c0_50, %c0_51, %c0_52], %91 {strides = array<i32>} : memref<1x2x128xf32, #tpu.memory_space<vmem>>, vector<1x2x128xf32>,
    return
  }
  func.func @transform_0(%arg0: i32) -> (i32, i32, i32) {
    %c0_i32 = arith.constant 0 : i32
    %c0_i32_0 = arith.constant 0 : i32
    %c0_i32_1 = arith.constant 0 : i32
    return %arg0, %c0_i32, %c0_i32_0 : i32, i32, i32
  }
  func.func @transform_1(%arg0: i32) -> (i32, i32, i32) {
    %c0_i32 = arith.constant 0 : i32
    %c0_i32_0 = arith.constant 0 : i32
    %c0_i32_1 = arith.constant 0 : i32
    %c0_i32_2 = arith.constant 0 : i32
    return %c0_i32, %c0_i32_0, %c0_i32_1 : i32, i32, i32
  }
  func.func @transform_2(%arg0: i32) -> (i32, i32, i32) {
    %c0_i32 = arith.constant 0 : i32
    %c0_i32_0 = arith.constant 0 : i32
    %c0_i32_1 = arith.constant 0 : i32
    return %arg0, %c0_i32, %c0_i32_0 : i32, i32, i32
  }
  func.func @transform_3(%arg0: i32) -> (i32, i32, i32) {
    %c0_i32 = arith.constant 0 : i32
    %c0_i32_0 = arith.constant 0 : i32
    %c0_i32_1 = arith.constant 0 : i32
    return %arg0, %c0_i32, %c0_i32_0 : i32, i32, i32
  }
}

module attributes {stable_mosaic.version = 11 : i64} {
  func.func @_conv_stats_kernel(%arg0: i32, %arg1: memref<1x256x128xbf16, #tpu.memory_space<vmem>>, %arg2: memref<1x128xf32, #tpu.memory_space<vmem>>, %arg3: memref<1x128xf32, #tpu.memory_space<vmem>>, %arg4: memref<3x384x128xbf16, #tpu.memory_space<vmem>>, %arg5: memref<1x256x128xbf16, #tpu.memory_space<vmem>>, %arg6: memref<1x2x128xf32, #tpu.memory_space<vmem>>, %arg7: memref<342x128xbf16, #tpu.memory_space<vmem>>) attributes {dimension_semantics = [#tpu.dimension_semantics<parallel>], iteration_bounds = array<i64: 2>, scalar_prefetch = 0 : i64, scratch_operands = 1 : i64, tpu.core_type = #tpu.core_type<tc>, window_params = [{transform_indices = @transform_0, window_bounds = array<i64: 1, 256, 128>}, {pipeline_mode = #tpu.pipeline_mode<synchronous>, transform_indices = @transform_1, window_bounds = array<i64: 1, 128>}, {pipeline_mode = #tpu.pipeline_mode<synchronous>, transform_indices = @transform_2, window_bounds = array<i64: 1, 128>}, {pipeline_mode = #tpu.pipeline_mode<synchronous>, transform_indices = @transform_3, window_bounds = array<i64: 3, 384, 128>}, {transform_indices = @transform_4, window_bounds = array<i64: 1, 256, 128>}, {transform_indices = @transform_5, window_bounds = array<i64: 1, 2, 128>}]} {
    %c0 = arith.constant 0 : index
    %c0_0 = arith.constant 0 : index
    %c0_1 = arith.constant 0 : index
    %0 = vector.load %arg1[%c0, %c0_0, %c0_1] : memref<1x256x128xbf16, #tpu.memory_space<vmem>>, vector<1x256x128xbf16>
    %1 = vector.shape_cast %0 : vector<1x256x128xbf16> to vector<256x128xbf16>
    %2 = arith.extf %1 : vector<256x128xbf16> to vector<256x128xf32>
    %c0_2 = arith.constant 0 : index
    %c0_3 = arith.constant 0 : index
    %3 = vector.load %arg2[%c0_2, %c0_3] : memref<1x128xf32, #tpu.memory_space<vmem>>, vector<1x128xf32>
    %4 = vector.broadcast %3 : vector<1x128xf32> to vector<256x128xf32>
    %5 = arith.mulf %2, %4 : vector<256x128xf32>
    %c0_4 = arith.constant 0 : index
    %c0_5 = arith.constant 0 : index
    %6 = vector.load %arg3[%c0_4, %c0_5] : memref<1x128xf32, #tpu.memory_space<vmem>>, vector<1x128xf32>
    %7 = vector.broadcast %6 : vector<1x128xf32> to vector<256x128xf32>
    %8 = arith.addf %5, %7 : vector<256x128xf32>
    %cst = arith.constant 0.000000e+00 : f32
    %9 = vector.broadcast %cst : f32 to vector<256x128xf32>
    %10 = arith.maximumf %8, %9 : vector<256x128xf32>
    %11 = arith.truncf %10 : vector<256x128xf32> to vector<256x128xbf16>
    %cst_6 = arith.constant 0.000000e+00 : bf16
    %12 = vector.broadcast %cst_6 : bf16 to vector<342x128xbf16>
    %c0_7 = arith.constant 0 : index
    %c0_8 = arith.constant 0 : index
    %13 = vector.load %arg7[%c0_7, %c0_8] : memref<342x128xbf16, #tpu.memory_space<vmem>>, vector<342x128xbf16>
    tpu.vector_store %arg7[%c0_7, %c0_8], %12 {strides = array<i32>} : memref<342x128xbf16, #tpu.memory_space<vmem>>, vector<342x128xbf16>,
    %14 = vector.extract_strided_slice %11 {offsets = [0, 0], sizes = [16, 128], strides = [1, 1]} : vector<256x128xbf16> to vector<16x128xbf16>
    %c19 = arith.constant 19 : index
    %c0_9 = arith.constant 0 : index
    %15 = vector.load %arg7[%c19, %c0_9] : memref<342x128xbf16, #tpu.memory_space<vmem>>, vector<16x128xbf16>
    tpu.vector_store %arg7[%c19, %c0_9], %14 {strides = array<i32>} : memref<342x128xbf16, #tpu.memory_space<vmem>>, vector<16x128xbf16>,
    %16 = vector.extract_strided_slice %11 {offsets = [16, 0], sizes = [16, 128], strides = [1, 1]} : vector<256x128xbf16> to vector<16x128xbf16>
    %c37 = arith.constant 37 : index
    %c0_10 = arith.constant 0 : index
    %17 = vector.load %arg7[%c37, %c0_10] : memref<342x128xbf16, #tpu.memory_space<vmem>>, vector<16x128xbf16>
    tpu.vector_store %arg7[%c37, %c0_10], %16 {strides = array<i32>} : memref<342x128xbf16, #tpu.memory_space<vmem>>, vector<16x128xbf16>,
    %18 = vector.extract_strided_slice %11 {offsets = [32, 0], sizes = [16, 128], strides = [1, 1]} : vector<256x128xbf16> to vector<16x128xbf16>
    %c55 = arith.constant 55 : index
    %c0_11 = arith.constant 0 : index
    %19 = vector.load %arg7[%c55, %c0_11] : memref<342x128xbf16, #tpu.memory_space<vmem>>, vector<16x128xbf16>
    tpu.vector_store %arg7[%c55, %c0_11], %18 {strides = array<i32>} : memref<342x128xbf16, #tpu.memory_space<vmem>>, vector<16x128xbf16>,
    %20 = vector.extract_strided_slice %11 {offsets = [48, 0], sizes = [16, 128], strides = [1, 1]} : vector<256x128xbf16> to vector<16x128xbf16>
    %c73 = arith.constant 73 : index
    %c0_12 = arith.constant 0 : index
    %21 = vector.load %arg7[%c73, %c0_12] : memref<342x128xbf16, #tpu.memory_space<vmem>>, vector<16x128xbf16>
    tpu.vector_store %arg7[%c73, %c0_12], %20 {strides = array<i32>} : memref<342x128xbf16, #tpu.memory_space<vmem>>, vector<16x128xbf16>,
    %22 = vector.extract_strided_slice %11 {offsets = [64, 0], sizes = [16, 128], strides = [1, 1]} : vector<256x128xbf16> to vector<16x128xbf16>
    %c91 = arith.constant 91 : index
    %c0_13 = arith.constant 0 : index
    %23 = vector.load %arg7[%c91, %c0_13] : memref<342x128xbf16, #tpu.memory_space<vmem>>, vector<16x128xbf16>
    tpu.vector_store %arg7[%c91, %c0_13], %22 {strides = array<i32>} : memref<342x128xbf16, #tpu.memory_space<vmem>>, vector<16x128xbf16>,
    %24 = vector.extract_strided_slice %11 {offsets = [80, 0], sizes = [16, 128], strides = [1, 1]} : vector<256x128xbf16> to vector<16x128xbf16>
    %c109 = arith.constant 109 : index
    %c0_14 = arith.constant 0 : index
    %25 = vector.load %arg7[%c109, %c0_14] : memref<342x128xbf16, #tpu.memory_space<vmem>>, vector<16x128xbf16>
    tpu.vector_store %arg7[%c109, %c0_14], %24 {strides = array<i32>} : memref<342x128xbf16, #tpu.memory_space<vmem>>, vector<16x128xbf16>,
    %26 = vector.extract_strided_slice %11 {offsets = [96, 0], sizes = [16, 128], strides = [1, 1]} : vector<256x128xbf16> to vector<16x128xbf16>
    %c127 = arith.constant 127 : index
    %c0_15 = arith.constant 0 : index
    %27 = vector.load %arg7[%c127, %c0_15] : memref<342x128xbf16, #tpu.memory_space<vmem>>, vector<16x128xbf16>
    tpu.vector_store %arg7[%c127, %c0_15], %26 {strides = array<i32>} : memref<342x128xbf16, #tpu.memory_space<vmem>>, vector<16x128xbf16>,
    %28 = vector.extract_strided_slice %11 {offsets = [112, 0], sizes = [16, 128], strides = [1, 1]} : vector<256x128xbf16> to vector<16x128xbf16>
    %c145 = arith.constant 145 : index
    %c0_16 = arith.constant 0 : index
    %29 = vector.load %arg7[%c145, %c0_16] : memref<342x128xbf16, #tpu.memory_space<vmem>>, vector<16x128xbf16>
    tpu.vector_store %arg7[%c145, %c0_16], %28 {strides = array<i32>} : memref<342x128xbf16, #tpu.memory_space<vmem>>, vector<16x128xbf16>,
    %30 = vector.extract_strided_slice %11 {offsets = [128, 0], sizes = [16, 128], strides = [1, 1]} : vector<256x128xbf16> to vector<16x128xbf16>
    %c163 = arith.constant 163 : index
    %c0_17 = arith.constant 0 : index
    %31 = vector.load %arg7[%c163, %c0_17] : memref<342x128xbf16, #tpu.memory_space<vmem>>, vector<16x128xbf16>
    tpu.vector_store %arg7[%c163, %c0_17], %30 {strides = array<i32>} : memref<342x128xbf16, #tpu.memory_space<vmem>>, vector<16x128xbf16>,
    %32 = vector.extract_strided_slice %11 {offsets = [144, 0], sizes = [16, 128], strides = [1, 1]} : vector<256x128xbf16> to vector<16x128xbf16>
    %c181 = arith.constant 181 : index
    %c0_18 = arith.constant 0 : index
    %33 = vector.load %arg7[%c181, %c0_18] : memref<342x128xbf16, #tpu.memory_space<vmem>>, vector<16x128xbf16>
    tpu.vector_store %arg7[%c181, %c0_18], %32 {strides = array<i32>} : memref<342x128xbf16, #tpu.memory_space<vmem>>, vector<16x128xbf16>,
    %34 = vector.extract_strided_slice %11 {offsets = [160, 0], sizes = [16, 128], strides = [1, 1]} : vector<256x128xbf16> to vector<16x128xbf16>
    %c199 = arith.constant 199 : index
    %c0_19 = arith.constant 0 : index
    %35 = vector.load %arg7[%c199, %c0_19] : memref<342x128xbf16, #tpu.memory_space<vmem>>, vector<16x128xbf16>
    tpu.vector_store %arg7[%c199, %c0_19], %34 {strides = array<i32>} : memref<342x128xbf16, #tpu.memory_space<vmem>>, vector<16x128xbf16>,
    %36 = vector.extract_strided_slice %11 {offsets = [176, 0], sizes = [16, 128], strides = [1, 1]} : vector<256x128xbf16> to vector<16x128xbf16>
    %c217 = arith.constant 217 : index
    %c0_20 = arith.constant 0 : index
    %37 = vector.load %arg7[%c217, %c0_20] : memref<342x128xbf16, #tpu.memory_space<vmem>>, vector<16x128xbf16>
    tpu.vector_store %arg7[%c217, %c0_20], %36 {strides = array<i32>} : memref<342x128xbf16, #tpu.memory_space<vmem>>, vector<16x128xbf16>,
    %38 = vector.extract_strided_slice %11 {offsets = [192, 0], sizes = [16, 128], strides = [1, 1]} : vector<256x128xbf16> to vector<16x128xbf16>
    %c235 = arith.constant 235 : index
    %c0_21 = arith.constant 0 : index
    %39 = vector.load %arg7[%c235, %c0_21] : memref<342x128xbf16, #tpu.memory_space<vmem>>, vector<16x128xbf16>
    tpu.vector_store %arg7[%c235, %c0_21], %38 {strides = array<i32>} : memref<342x128xbf16, #tpu.memory_space<vmem>>, vector<16x128xbf16>,
    %40 = vector.extract_strided_slice %11 {offsets = [208, 0], sizes = [16, 128], strides = [1, 1]} : vector<256x128xbf16> to vector<16x128xbf16>
    %c253 = arith.constant 253 : index
    %c0_22 = arith.constant 0 : index
    %41 = vector.load %arg7[%c253, %c0_22] : memref<342x128xbf16, #tpu.memory_space<vmem>>, vector<16x128xbf16>
    tpu.vector_store %arg7[%c253, %c0_22], %40 {strides = array<i32>} : memref<342x128xbf16, #tpu.memory_space<vmem>>, vector<16x128xbf16>,
    %42 = vector.extract_strided_slice %11 {offsets = [224, 0], sizes = [16, 128], strides = [1, 1]} : vector<256x128xbf16> to vector<16x128xbf16>
    %c271 = arith.constant 271 : index
    %c0_23 = arith.constant 0 : index
    %43 = vector.load %arg7[%c271, %c0_23] : memref<342x128xbf16, #tpu.memory_space<vmem>>, vector<16x128xbf16>
    tpu.vector_store %arg7[%c271, %c0_23], %42 {strides = array<i32>} : memref<342x128xbf16, #tpu.memory_space<vmem>>, vector<16x128xbf16>,
    %44 = vector.extract_strided_slice %11 {offsets = [240, 0], sizes = [16, 128], strides = [1, 1]} : vector<256x128xbf16> to vector<16x128xbf16>
    %c289 = arith.constant 289 : index
    %c0_24 = arith.constant 0 : index
    %45 = vector.load %arg7[%c289, %c0_24] : memref<342x128xbf16, #tpu.memory_space<vmem>>, vector<16x128xbf16>
    tpu.vector_store %arg7[%c289, %c0_24], %44 {strides = array<i32>} : memref<342x128xbf16, #tpu.memory_space<vmem>>, vector<16x128xbf16>,
    %cst_25 = arith.constant 0.000000e+00 : f32
    %46 = vector.broadcast %cst_25 : f32 to vector<288x128xf32>
    %c0_26 = arith.constant 0 : index
    %c0_27 = arith.constant 0 : index
    %47 = vector.load %arg7[%c0_26, %c0_27] : memref<342x128xbf16, #tpu.memory_space<vmem>>, vector<288x128xbf16>
    %c1 = arith.constant 1 : index
    %c0_28 = arith.constant 0 : index
    %48 = vector.load %arg7[%c1, %c0_28] : memref<342x128xbf16, #tpu.memory_space<vmem>>, vector<288x128xbf16>
    %c2 = arith.constant 2 : index
    %c0_29 = arith.constant 0 : index
    %49 = vector.load %arg7[%c2, %c0_29] : memref<342x128xbf16, #tpu.memory_space<vmem>>, vector<288x128xbf16>
    %50 = tpu.concatenate %47, %48, %49 in 1 : vector<288x128xbf16>, vector<288x128xbf16>, vector<288x128xbf16> -> vector<288x384xbf16>
    %c0_30 = arith.constant 0 : index
    %c0_31 = arith.constant 0 : index
    %c0_32 = arith.constant 0 : index
    %51 = vector.load %arg4[%c0_30, %c0_31, %c0_32] : memref<3x384x128xbf16, #tpu.memory_space<vmem>>, vector<1x384x128xbf16>
    %52 = vector.shape_cast %51 : vector<1x384x128xbf16> to vector<384x128xbf16>
    %cst_33 = arith.constant dense<0.000000e+00> : vector<288x128xf32>
    %53 = tpu.matmul %50, %52, %cst_33 {dimension_numbers = #tpu.dot_dimension_numbers<[1], [0], [0], [1], [0, 0, 1, 1], [], []>} : vector<288x384xbf16>, vector<384x128xbf16>, vector<288x128xf32> -> vector<288x128xf32>
    %54 = arith.addf %46, %53 : vector<288x128xf32>
    %c18 = arith.constant 18 : index
    %c0_34 = arith.constant 0 : index
    %55 = vector.load %arg7[%c18, %c0_34] : memref<342x128xbf16, #tpu.memory_space<vmem>>, vector<288x128xbf16>
    %c19_35 = arith.constant 19 : index
    %c0_36 = arith.constant 0 : index
    %56 = vector.load %arg7[%c19_35, %c0_36] : memref<342x128xbf16, #tpu.memory_space<vmem>>, vector<288x128xbf16>
    %c20 = arith.constant 20 : index
    %c0_37 = arith.constant 0 : index
    %57 = vector.load %arg7[%c20, %c0_37] : memref<342x128xbf16, #tpu.memory_space<vmem>>, vector<288x128xbf16>
    %58 = tpu.concatenate %55, %56, %57 in 1 : vector<288x128xbf16>, vector<288x128xbf16>, vector<288x128xbf16> -> vector<288x384xbf16>
    %c1_38 = arith.constant 1 : index
    %c0_39 = arith.constant 0 : index
    %c0_40 = arith.constant 0 : index
    %59 = vector.load %arg4[%c1_38, %c0_39, %c0_40] : memref<3x384x128xbf16, #tpu.memory_space<vmem>>, vector<1x384x128xbf16>
    %60 = vector.shape_cast %59 : vector<1x384x128xbf16> to vector<384x128xbf16>
    %cst_41 = arith.constant dense<0.000000e+00> : vector<288x128xf32>
    %61 = tpu.matmul %58, %60, %cst_41 {dimension_numbers = #tpu.dot_dimension_numbers<[1], [0], [0], [1], [0, 0, 1, 1], [], []>} : vector<288x384xbf16>, vector<384x128xbf16>, vector<288x128xf32> -> vector<288x128xf32>
    %62 = arith.addf %54, %61 : vector<288x128xf32>
    %c36 = arith.constant 36 : index
    %c0_42 = arith.constant 0 : index
    %63 = vector.load %arg7[%c36, %c0_42] : memref<342x128xbf16, #tpu.memory_space<vmem>>, vector<288x128xbf16>
    %c37_43 = arith.constant 37 : index
    %c0_44 = arith.constant 0 : index
    %64 = vector.load %arg7[%c37_43, %c0_44] : memref<342x128xbf16, #tpu.memory_space<vmem>>, vector<288x128xbf16>
    %c38 = arith.constant 38 : index
    %c0_45 = arith.constant 0 : index
    %65 = vector.load %arg7[%c38, %c0_45] : memref<342x128xbf16, #tpu.memory_space<vmem>>, vector<288x128xbf16>
    %66 = tpu.concatenate %63, %64, %65 in 1 : vector<288x128xbf16>, vector<288x128xbf16>, vector<288x128xbf16> -> vector<288x384xbf16>
    %c2_46 = arith.constant 2 : index
    %c0_47 = arith.constant 0 : index
    %c0_48 = arith.constant 0 : index
    %67 = vector.load %arg4[%c2_46, %c0_47, %c0_48] : memref<3x384x128xbf16, #tpu.memory_space<vmem>>, vector<1x384x128xbf16>
    %68 = vector.shape_cast %67 : vector<1x384x128xbf16> to vector<384x128xbf16>
    %cst_49 = arith.constant dense<0.000000e+00> : vector<288x128xf32>
    %69 = tpu.matmul %66, %68, %cst_49 {dimension_numbers = #tpu.dot_dimension_numbers<[1], [0], [0], [1], [0, 0, 1, 1], [], []>} : vector<288x384xbf16>, vector<384x128xbf16>, vector<288x128xf32> -> vector<288x128xf32>
    %70 = arith.addf %62, %69 : vector<288x128xf32>
    %71 = vector.extract_strided_slice %70 {offsets = [0, 0], sizes = [16, 128], strides = [1, 1]} : vector<288x128xf32> to vector<16x128xf32>
    %72 = vector.extract_strided_slice %70 {offsets = [18, 0], sizes = [16, 128], strides = [1, 1]} : vector<288x128xf32> to vector<16x128xf32>
    %73 = vector.extract_strided_slice %70 {offsets = [36, 0], sizes = [16, 128], strides = [1, 1]} : vector<288x128xf32> to vector<16x128xf32>
    %74 = vector.extract_strided_slice %70 {offsets = [54, 0], sizes = [16, 128], strides = [1, 1]} : vector<288x128xf32> to vector<16x128xf32>
    %75 = vector.extract_strided_slice %70 {offsets = [72, 0], sizes = [16, 128], strides = [1, 1]} : vector<288x128xf32> to vector<16x128xf32>
    %76 = vector.extract_strided_slice %70 {offsets = [90, 0], sizes = [16, 128], strides = [1, 1]} : vector<288x128xf32> to vector<16x128xf32>
    %77 = vector.extract_strided_slice %70 {offsets = [108, 0], sizes = [16, 128], strides = [1, 1]} : vector<288x128xf32> to vector<16x128xf32>
    %78 = vector.extract_strided_slice %70 {offsets = [126, 0], sizes = [16, 128], strides = [1, 1]} : vector<288x128xf32> to vector<16x128xf32>
    %79 = vector.extract_strided_slice %70 {offsets = [144, 0], sizes = [16, 128], strides = [1, 1]} : vector<288x128xf32> to vector<16x128xf32>
    %80 = vector.extract_strided_slice %70 {offsets = [162, 0], sizes = [16, 128], strides = [1, 1]} : vector<288x128xf32> to vector<16x128xf32>
    %81 = vector.extract_strided_slice %70 {offsets = [180, 0], sizes = [16, 128], strides = [1, 1]} : vector<288x128xf32> to vector<16x128xf32>
    %82 = vector.extract_strided_slice %70 {offsets = [198, 0], sizes = [16, 128], strides = [1, 1]} : vector<288x128xf32> to vector<16x128xf32>
    %83 = vector.extract_strided_slice %70 {offsets = [216, 0], sizes = [16, 128], strides = [1, 1]} : vector<288x128xf32> to vector<16x128xf32>
    %84 = vector.extract_strided_slice %70 {offsets = [234, 0], sizes = [16, 128], strides = [1, 1]} : vector<288x128xf32> to vector<16x128xf32>
    %85 = vector.extract_strided_slice %70 {offsets = [252, 0], sizes = [16, 128], strides = [1, 1]} : vector<288x128xf32> to vector<16x128xf32>
    %86 = vector.extract_strided_slice %70 {offsets = [270, 0], sizes = [16, 128], strides = [1, 1]} : vector<288x128xf32> to vector<16x128xf32>
    %87 = tpu.concatenate %71, %72, %73, %74, %75, %76, %77, %78, %79, %80, %81, %82, %83, %84, %85, %86 in 0 : vector<16x128xf32>, vector<16x128xf32>, vector<16x128xf32>, vector<16x128xf32>, vector<16x128xf32>, vector<16x128xf32>, vector<16x128xf32>, vector<16x128xf32>, vector<16x128xf32>, vector<16x128xf32>, vector<16x128xf32>, vector<16x128xf32>, vector<16x128xf32>, vector<16x128xf32>, vector<16x128xf32>, vector<16x128xf32> -> vector<256x128xf32>
    %88 = arith.truncf %87 : vector<256x128xf32> to vector<256x128xbf16>
    %c0_50 = arith.constant 0 : index
    %c0_51 = arith.constant 0 : index
    %c0_52 = arith.constant 0 : index
    %89 = vector.load %arg5[%c0_50, %c0_51, %c0_52] : memref<1x256x128xbf16, #tpu.memory_space<vmem>>, vector<1x256x128xbf16>
    %90 = vector.shape_cast %89 : vector<1x256x128xbf16> to vector<256x128xbf16>
    %91 = vector.shape_cast %88 : vector<256x128xbf16> to vector<1x256x128xbf16>
    tpu.vector_store %arg5[%c0_50, %c0_51, %c0_52], %91 {strides = array<i32>} : memref<1x256x128xbf16, #tpu.memory_space<vmem>>, vector<1x256x128xbf16>,
    %cst_53 = arith.constant dense<0.000000e+00> : vector<128xf32>
    %92 = vector.multi_reduction <add>, %87, %cst_53 [0] : vector<256x128xf32> to vector<128xf32>
    %93 = vector.shape_cast %92 : vector<128xf32> to vector<1x128xf32>
    %94 = arith.mulf %87, %87 : vector<256x128xf32>
    %cst_54 = arith.constant dense<0.000000e+00> : vector<128xf32>
    %95 = vector.multi_reduction <add>, %94, %cst_54 [0] : vector<256x128xf32> to vector<128xf32>
    %96 = vector.shape_cast %95 : vector<128xf32> to vector<1x128xf32>
    %97 = tpu.concatenate %93, %96 in 0 : vector<1x128xf32>, vector<1x128xf32> -> vector<2x128xf32>
    %c0_55 = arith.constant 0 : index
    %c0_56 = arith.constant 0 : index
    %c0_57 = arith.constant 0 : index
    %98 = vector.load %arg6[%c0_55, %c0_56, %c0_57] : memref<1x2x128xf32, #tpu.memory_space<vmem>>, vector<1x2x128xf32>
    %99 = vector.shape_cast %98 : vector<1x2x128xf32> to vector<2x128xf32>
    %100 = vector.shape_cast %97 : vector<2x128xf32> to vector<1x2x128xf32>
    tpu.vector_store %arg6[%c0_55, %c0_56, %c0_57], %100 {strides = array<i32>} : memref<1x2x128xf32, #tpu.memory_space<vmem>>, vector<1x2x128xf32>,
    return
  }
  func.func @transform_0(%arg0: i32) -> (i32, i32, i32) {
    %c0_i32 = arith.constant 0 : i32
    %c0_i32_0 = arith.constant 0 : i32
    %c0_i32_1 = arith.constant 0 : i32
    return %arg0, %c0_i32, %c0_i32_0 : i32, i32, i32
  }
  func.func @transform_1(%arg0: i32) -> (i32, i32) {
    %c0_i32 = arith.constant 0 : i32
    %c0_i32_0 = arith.constant 0 : i32
    %c0_i32_1 = arith.constant 0 : i32
    return %c0_i32, %c0_i32_0 : i32, i32
  }
  func.func @transform_2(%arg0: i32) -> (i32, i32) {
    %c0_i32 = arith.constant 0 : i32
    %c0_i32_0 = arith.constant 0 : i32
    %c0_i32_1 = arith.constant 0 : i32
    return %c0_i32, %c0_i32_0 : i32, i32
  }
  func.func @transform_3(%arg0: i32) -> (i32, i32, i32) {
    %c0_i32 = arith.constant 0 : i32
    %c0_i32_0 = arith.constant 0 : i32
    %c0_i32_1 = arith.constant 0 : i32
    %c0_i32_2 = arith.constant 0 : i32
    return %c0_i32, %c0_i32_0, %c0_i32_1 : i32, i32, i32
  }
  func.func @transform_4(%arg0: i32) -> (i32, i32, i32) {
    %c0_i32 = arith.constant 0 : i32
    %c0_i32_0 = arith.constant 0 : i32
    %c0_i32_1 = arith.constant 0 : i32
    return %arg0, %c0_i32, %c0_i32_0 : i32, i32, i32
  }
  func.func @transform_5(%arg0: i32) -> (i32, i32, i32) {
    %c0_i32 = arith.constant 0 : i32
    %c0_i32_0 = arith.constant 0 : i32
    %c0_i32_1 = arith.constant 0 : i32
    return %arg0, %c0_i32, %c0_i32_0 : i32, i32, i32
  }
}

</mosaic_0001>

<bundles_post_ra>
// kernel: conv_forward.5
= control target key start
LH: loop header
LB: loop body
LE: loop exit
PB: predicated region body
PF: predicated region fallthrough
CT: control target
= control target key end

     0   :  { %s1023_s0 = inlined_call_operand.vmem [shape: bf16[512,128], index: 0, kind: input, shape index: {}]   ;;  %s1024_s1 = inlined_call_operand.vmem [shape: f32[1,128], index: 1, kind: input, shape index: {}]   ;;  %s1025_s2 = inlined_call_operand.vmem [shape: f32[1,128], index: 2, kind: input, shape index: {}]   ;;  %s1026_s3 = inlined_call_operand.vmem [shape: f32[512,128], index: 3, kind: output, shape index: {}]  }
   0x1   :  { %v419_v0 = vld [vmem:[%s1023_s0] sm:$0xff]   ;;  %v546_v4 = vld [vmem:[%s1023_s0 + $0x8] sm:$0xff]   ;;  %v547_v5 = vld [vmem:[%s1023_s0 + $0x10] sm:$0xff]  }
   0x2   :  { %v603_v1 = vld [vmem:[%s1024_s1] ss:$0 sm:$0xff]  ;;  %v420_v2 = vunpack.c.l.bf16 %v419_v0  ;;  %v421_v3 = vunpack.c.h.bf16 %v419_v0  ;;  %v548_v6 = vld [vmem:[%s1023_s0 + $0x18] sm:$0xff]   ;;  %v424_v8 = vunpack.c.l.bf16 %v546_v4  ;;  %v425_v9 = vunpack.c.h.bf16 %v546_v4  ;;  %v550_v33 = vld [vmem:[%s1023_s0 + $0x28] sm:$0xff]  }
   0x3   :  { %v617_v7 = vld [vmem:[%s1025_s2] ss:$0 sm:$0xff]  ;;  %v428_v10 = vunpack.c.l.bf16 %v547_v5  ;;  %v429_v11 = vunpack.c.h.bf16 %v547_v5  ;;  %v432_v14 = vunpack.c.l.bf16 %v548_v6  ;;  %v433_v15 = vunpack.c.h.bf16 %v548_v6  ;;  %v551_v34 = vld [vmem:[%s1023_s0 + $0x30] sm:$0xff]   ;;  %v552_v39 = vld [vmem:[%s1023_s0 + $0x38] sm:$0xff]  }
   0x4   :  { %v149_v12 = vmul.f32 %v420_v2, %v603_v1  ;;  %v150_v13 = vmul.f32 %v421_v3, %v603_v1  ;;  %v151_v16 = vmul.f32 %v424_v8, %v603_v1  ;;  %v152_v17 = vmul.f32 %v425_v9, %v603_v1  ;;  %v549_v28 = vld [vmem:[%s1023_s0 + $0x20] sm:$0xff]   ;;  %v554_v6 = vld [vmem:[%s1023_s0 + $0x48] sm:$0xff]   ;;  %v555_v8 = vld [vmem:[%s1023_s0 + $0x50] sm:$0xff]  }
   0x5   :  { %v153_v18 = vmul.f32 %v428_v10, %v603_v1  ;;  %v154_v19 = vmul.f32 %v429_v11, %v603_v1  ;;  %v155_v22 = vmul.f32 %v432_v14, %v603_v1  ;;  %v156_v23 = vmul.f32 %v433_v15, %v603_v1  ;;  %v553_v0 = vld [vmem:[%s1023_s0 + $0x40] sm:$0xff]  }
   0x6   :  { %v220_v20 = vadd.f32 %v617_v7, %v149_v12  ;;  %v221_v21 = vadd.f32 %v617_v7, %v150_v13  ;;  %v222_v24 = vadd.f32 %v617_v7, %v151_v16  ;;  %v223_v25 = vadd.f32 %v617_v7, %v152_v17  ;;  %v556_v13 = vld [vmem:[%s1023_s0 + $0x58] sm:$0xff]  }
   0x7   :  { %v224_v26 = vadd.f32 %v617_v7, %v153_v18  ;;  %v225_v27 = vadd.f32 %v617_v7, %v154_v19  ;;  %v226_v31 = vadd.f32 %v617_v7, %v155_v22  ;;  %v227_v32 = vadd.f32 %v617_v7, %v156_v23 }
   0x8   :  { %v284_v29 = vmax.f32 %v220_v20, 0.0  ;;  %v285_v30 = vmax.f32 %v221_v21, 0.0  ;;  %v286_v35 = vmax.f32 %v222_v24, 0.0  ;;  %v287_v36 = vmax.f32 %v223_v25, 0.0 }
   0x9   :  { %v288_v37 = vmax.f32 %v224_v26, 0.0  ;;  %v289_v38 = vmax.f32 %v225_v27, 0.0  ;;  %v290_v40 = vmax.f32 %v226_v31, 0.0  ;;  %v291_v41 = vmax.f32 %v227_v32, 0.0 }
   0xa   :  { %348 = vst [vmem:[%s1026_s3] sm:$0xff] %v284_v29  ;;  %349 = vst [vmem:[%s1026_s3 + $0x8] sm:$0xff] %v285_v30  ;;  %v436_v42 = vunpack.c.l.bf16 %v549_v28  ;;  %v437_v43 = vunpack.c.h.bf16 %v549_v28  ;;  %v440_v44 = vunpack.c.l.bf16 %v550_v33  ;;  %v441_v45 = vunpack.c.h.bf16 %v550_v33 }
   0xb   :  { %350 = vst [vmem:[%s1026_s3 + $0x10] sm:$0xff] %v286_v35  ;;  %351 = vst [vmem:[%s1026_s3 + $0x18] sm:$0xff] %v287_v36  ;;  %v444_v46 = vunpack.c.l.bf16 %v551_v34  ;;  %v445_v47 = vunpack.c.h.bf16 %v551_v34  ;;  %v448_v50 = vunpack.c.l.bf16 %v552_v39  ;;  %v449_v51 = vunpack.c.h.bf16 %v552_v39 }
   0xc   :  { %352 = vst [vmem:[%s1026_s3 + $0x20] sm:$0xff] %v288_v37  ;;  %353 = vst [vmem:[%s1026_s3 + $0x28] sm:$0xff] %v289_v38  ;;  %v157_v48 = vmul.f32 %v436_v42, %v603_v1  ;;  %v158_v49 = vmul.f32 %v437_v43, %v603_v1  ;;  %v159_v52 = vmul.f32 %v440_v44, %v603_v1  ;;  %v452_v16 = vunpack.c.l.bf16 %v553_v0  ;;  %v557_v38 = vld [vmem:[%s1023_s0 + $0x60] sm:$0xff]   ;;  %v558_v43 = vld [vmem:[%s1023_s0 + $0x68] sm:$0xff]  }
   0xd   :  { %354 = vst [vmem:[%s1026_s3 + $0x30] sm:$0xff] %v290_v40  ;;  %355 = vst [vmem:[%s1026_s3 + $0x38] sm:$0xff] %v291_v41  ;;  %v160_v53 = vmul.f32 %v441_v45, %v603_v1  ;;  %v161_v54 = vmul.f32 %v444_v46, %v603_v1  ;;  %v162_v55 = vmul.f32 %v445_v47, %v603_v1  ;;  %v453_v17 = vunpack.c.h.bf16 %v553_v0  ;;  %v559_v44 = vld [vmem:[%s1023_s0 + $0x70] sm:$0xff]  }
   0xe   :  { %v228_v56 = vadd.f32 %v617_v7, %v157_v48  ;;  %v229_v57 = vadd.f32 %v617_v7, %v158_v49  ;;  %v163_v58 = vmul.f32 %v448_v50, %v603_v1  ;;  %v164_v59 = vmul.f32 %v449_v51, %v603_v1  ;;  %v560_v49 = vld [vmem:[%s1023_s0 + $0x78] sm:$0xff]  }
   0xf   :  { %v230_v60 = vadd.f32 %v617_v7, %v159_v52  ;;  %v231_v61 = vadd.f32 %v617_v7, %v160_v53  ;;  %v232_v62 = vadd.f32 %v617_v7, %v161_v54  ;;  %v233_v63 = vadd.f32 %v617_v7, %v162_v55 }
  0x10   :  { %v292_v2 = vmax.f32 %v228_v56, 0.0  ;;  %v293_v3 = vmax.f32 %v229_v57, 0.0  ;;  %v234_v4 = vadd.f32 %v617_v7, %v163_v58  ;;  %v235_v5 = vadd.f32 %v617_v7, %v164_v59 }
  0x11   :  { %v294_v9 = vmax.f32 %v230_v60, 0.0  ;;  %v295_v10 = vmax.f32 %v231_v61, 0.0  ;;  %v296_v11 = vmax.f32 %v232_v62, 0.0  ;;  %v297_v12 = vmax.f32 %v233_v63, 0.0 }
  0x12   :  { %356 = vst [vmem:[%s1026_s3 + $0x40] sm:$0xff] %v292_v2  ;;  %357 = vst [vmem:[%s1026_s3 + $0x48] sm:$0xff] %v293_v3  ;;  %v298_v14 = vmax.f32 %v234_v4, 0.0  ;;  %v299_v15 = vmax.f32 %v235_v5, 0.0  ;;  %v456_v18 = vunpack.c.l.bf16 %v554_v6  ;;  %v457_v19 = vunpack.c.h.bf16 %v554_v6 }
  0x13   :  { %358 = vst [vmem:[%s1026_s3 + $0x50] sm:$0xff] %v294_v9  ;;  %359 = vst [vmem:[%s1026_s3 + $0x58] sm:$0xff] %v295_v10  ;;  %v460_v20 = vunpack.c.l.bf16 %v555_v8  ;;  %v461_v21 = vunpack.c.h.bf16 %v555_v8  ;;  %v165_v22 = vmul.f32 %v452_v16, %v603_v1  ;;  %v166_v23 = vmul.f32 %v453_v17, %v603_v1  ;;  %v562_v17 = vld [vmem:[%s1023_s0 + $0x88] sm:$0xff]  }
  0x14   :  { %360 = vst [vmem:[%s1026_s3 + $0x60] sm:$0xff] %v296_v11  ;;  %361 = vst [vmem:[%s1026_s3 + $0x68] sm:$0xff] %v297_v12  ;;  %v464_v24 = vunpack.c.l.bf16 %v556_v13  ;;  %v465_v25 = vunpack.c.h.bf16 %v556_v13  ;;  %v167_v26 = vmul.f32 %v456_v18, %v603_v1  ;;  %v168_v27 = vmul.f32 %v457_v19, %v603_v1  ;;  %v561_v12 = vld [vmem:[%s1023_s0 + $0x80] sm:$0xff]   ;;  %v563_v18 = vld [vmem:[%s1023_s0 + $0x90] sm:$0xff]  }
  0x15   :  { %362 = vst [vmem:[%s1026_s3 + $0x70] sm:$0xff] %v298_v14  ;;  %363 = vst [vmem:[%s1026_s3 + $0x78] sm:$0xff] %v299_v15  ;;  %v169_v28 = vmul.f32 %v460_v20, %v603_v1  ;;  %v170_v29 = vmul.f32 %v461_v21, %v603_v1  ;;  %v236_v30 = vadd.f32 %v617_v7, %v165_v22  ;;  %v468_v52 = vunpack.c.l.bf16 %v557_v38 }
  0x16   :  { %v237_v31 = vadd.f32 %v617_v7, %v166_v23  ;;  %v171_v32 = vmul.f32 %v464_v24, %v603_v1  ;;  %v172_v33 = vmul.f32 %v465_v25, %v603_v1  ;;  %v238_v34 = vadd.f32 %v617_v7, %v167_v26  ;;  %v564_v23 = vld [vmem:[%s1023_s0 + $0x98] sm:$0xff]  }
  0x17   :  { %v239_v35 = vadd.f32 %v617_v7, %v168_v27  ;;  %v240_v36 = vadd.f32 %v617_v7, %v169_v28  ;;  %v241_v37 = vadd.f32 %v617_v7, %v170_v29  ;;  %v300_v39 = vmax.f32 %v236_v30, 0.0 }
  0x18   :  { %v301_v40 = vmax.f32 %v237_v31, 0.0  ;;  %v242_v41 = vadd.f32 %v617_v7, %v171_v32  ;;  %v243_v42 = vadd.f32 %v617_v7, %v172_v33  ;;  %v302_v45 = vmax.f32 %v238_v34, 0.0 }
  0x19   :  { %v303_v46 = vmax.f32 %v239_v35, 0.0  ;;  %v304_v47 = vmax.f32 %v240_v36, 0.0  ;;  %v305_v48 = vmax.f32 %v241_v37, 0.0  ;;  %364 = vst [vmem:[%s1026_s3 + $0x80] sm:$0xff] %v300_v39  ;;  %v469_v53 = vunpack.c.h.bf16 %v557_v38 }
  0x1a   :  { %365 = vst [vmem:[%s1026_s3 + $0x88] sm:$0xff] %v301_v40  ;;  %v306_v50 = vmax.f32 %v242_v41, 0.0  ;;  %v307_v51 = vmax.f32 %v243_v42, 0.0  ;;  %366 = vst [vmem:[%s1026_s3 + $0x90] sm:$0xff] %v302_v45  ;;  %v472_v54 = vunpack.c.l.bf16 %v558_v43  ;;  %v473_v55 = vunpack.c.h.bf16 %v558_v43 }
  0x1b   :  { %367 = vst [vmem:[%s1026_s3 + $0x98] sm:$0xff] %v303_v46  ;;  %368 = vst [vmem:[%s1026_s3 + $0xa0] sm:$0xff] %v304_v47  ;;  %v476_v56 = vunpack.c.l.bf16 %v559_v44  ;;  %v477_v57 = vunpack.c.h.bf16 %v559_v44  ;;  %v173_v58 = vmul.f32 %v468_v52, %v603_v1  ;;  %v174_v59 = vmul.f32 %v469_v53, %v603_v1  ;;  %v566_v53 = vld [vmem:[%s1023_s0 + $0xa8] sm:$0xff]  }
  0x1c   :  { %369 = vst [vmem:[%s1026_s3 + $0xa8] sm:$0xff] %v305_v48  ;;  %370 = vst [vmem:[%s1026_s3 + $0xb0] sm:$0xff] %v306_v50  ;;  %v480_v60 = vunpack.c.l.bf16 %v560_v49  ;;  %v481_v61 = vunpack.c.h.bf16 %v560_v49  ;;  %v175_v62 = vmul.f32 %v472_v54, %v603_v1  ;;  %v176_v63 = vmul.f32 %v473_v55, %v603_v1  ;;  %v565_v48 = vld [vmem:[%s1023_s0 + $0xa0] sm:$0xff]   ;;  %v567_v54 = vld [vmem:[%s1023_s0 + $0xb0] sm:$0xff]  }
  0x1d   :  { %371 = vst [vmem:[%s1026_s3 + $0xb8] sm:$0xff] %v307_v51  ;;  %v177_v0 = vmul.f32 %v476_v56, %v603_v1  ;;  %v178_v2 = vmul.f32 %v477_v57, %v603_v1  ;;  %v244_v3 = vadd.f32 %v617_v7, %v173_v58  ;;  %v245_v4 = vadd.f32 %v617_v7, %v174_v59  ;;  %v568_v59 = vld [vmem:[%s1023_s0 + $0xb8] sm:$0xff]  }
  0x1e   :  { %v179_v5 = vmul.f32 %v480_v60, %v603_v1  ;;  %v180_v6 = vmul.f32 %v481_v61, %v603_v1  ;;  %v246_v8 = vadd.f32 %v617_v7, %v175_v62  ;;  %v247_v9 = vadd.f32 %v617_v7, %v176_v63 }
  0x1f   :  { %v248_v10 = vadd.f32 %v617_v7, %v177_v0  ;;  %v249_v11 = vadd.f32 %v617_v7, %v178_v2  ;;  %v308_v13 = vmax.f32 %v244_v3, 0.0  ;;  %v309_v14 = vmax.f32 %v245_v4, 0.0 }
  0x20   :  { %v250_v15 = vadd.f32 %v617_v7, %v179_v5  ;;  %v251_v16 = vadd.f32 %v617_v7, %v180_v6  ;;  %v310_v19 = vmax.f32 %v246_v8, 0.0  ;;  %v311_v20 = vmax.f32 %v247_v9, 0.0 }
  0x21   :  { %v312_v21 = vmax.f32 %v248_v10, 0.0  ;;  %v313_v22 = vmax.f32 %v249_v11, 0.0  ;;  %372 = vst [vmem:[%s1026_s3 + $0xc0] sm:$0xff] %v308_v13  ;;  %373 = vst [vmem:[%s1026_s3 + $0xc8] sm:$0xff] %v309_v14  ;;  %v484_v26 = vunpack.c.l.bf16 %v561_v12  ;;  %v485_v27 = vunpack.c.h.bf16 %v561_v12 }
  0x22   :  { %v314_v24 = vmax.f32 %v250_v15, 0.0  ;;  %v315_v25 = vmax.f32 %v251_v16, 0.0  ;;  %374 = vst [vmem:[%s1026_s3 + $0xd0] sm:$0xff] %v310_v19  ;;  %375 = vst [vmem:[%s1026_s3 + $0xd8] sm:$0xff] %v311_v20  ;;  %v488_v28 = vunpack.c.l.bf16 %v562_v17  ;;  %v489_v29 = vunpack.c.h.bf16 %v562_v17 }
  0x23   :  { %376 = vst [vmem:[%s1026_s3 + $0xe0] sm:$0xff] %v312_v21  ;;  %377 = vst [vmem:[%s1026_s3 + $0xe8] sm:$0xff] %v313_v22  ;;  %v492_v30 = vunpack.c.l.bf16 %v563_v18  ;;  %v493_v31 = vunpack.c.h.bf16 %v563_v18  ;;  %v181_v32 = vmul.f32 %v484_v26, %v603_v1  ;;  %v182_v33 = vmul.f32 %v485_v27, %v603_v1  ;;  %v569_v22 = vld [vmem:[%s1023_s0 + $0xc0] sm:$0xff]   ;;  %v570_v27 = vld [vmem:[%s1023_s0 + $0xc8] sm:$0xff]  }
  0x24   :  { %378 = vst [vmem:[%s1026_s3 + $0xf0] sm:$0xff] %v314_v24  ;;  %379 = vst [vmem:[%s1026_s3 + $0xf8] sm:$0xff] %v315_v25  ;;  %v496_v34 = vunpack.c.l.bf16 %v564_v23  ;;  %v497_v35 = vunpack.c.h.bf16 %v564_v23  ;;  %v183_v36 = vmul.f32 %v488_v28, %v603_v1  ;;  %v184_v37 = vmul.f32 %v489_v29, %v603_v1  ;;  %v571_v28 = vld [vmem:[%s1023_s0 + $0xd0] sm:$0xff]  }
  0x25   :  { %v185_v38 = vmul.f32 %v492_v30, %v603_v1  ;;  %v186_v39 = vmul.f32 %v493_v31, %v603_v1  ;;  %v252_v40 = vadd.f32 %v617_v7, %v181_v32  ;;  %v253_v41 = vadd.f32 %v617_v7, %v182_v33  ;;  %v572_v33 = vld [vmem:[%s1023_s0 + $0xd8] sm:$0xff]  }
  0x26   :  { %v187_v42 = vmul.f32 %v496_v34, %v603_v1  ;;  %v188_v43 = vmul.f32 %v497_v35, %v603_v1  ;;  %v254_v44 = vadd.f32 %v617_v7, %v183_v36  ;;  %v255_v45 = vadd.f32 %v617_v7, %v184_v37 }
  0x27   :  { %v256_v46 = vadd.f32 %v617_v7, %v185_v38  ;;  %v257_v47 = vadd.f32 %v617_v7, %v186_v39  ;;  %v316_v49 = vmax.f32 %v252_v40, 0.0  ;;  %v317_v50 = vmax.f32 %v253_v41, 0.0 }
  0x28   :  { %v258_v51 = vadd.f32 %v617_v7, %v187_v42  ;;  %v259_v52 = vadd.f32 %v617_v7, %v188_v43  ;;  %v318_v55 = vmax.f32 %v254_v44, 0.0  ;;  %v319_v56 = vmax.f32 %v255_v45, 0.0 }
  0x29   :  { %v320_v57 = vmax.f32 %v256_v46, 0.0  ;;  %v321_v58 = vmax.f32 %v257_v47, 0.0  ;;  %380 = vst [vmem:[%s1026_s3 + $0x100] sm:$0xff] %v316_v49  ;;  %381 = vst [vmem:[%s1026_s3 + $0x108] sm:$0xff] %v317_v50  ;;  %v500_v62 = vunpack.c.l.bf16 %v565_v48  ;;  %v501_v63 = vunpack.c.h.bf16 %v565_v48 }
  0x2a   :  { %v322_v60 = vmax.f32 %v258_v51, 0.0  ;;  %v323_v61 = vmax.f32 %v259_v52, 0.0  ;;  %382 = vst [vmem:[%s1026_s3 + $0x110] sm:$0xff] %v318_v55  ;;  %383 = vst [vmem:[%s1026_s3 + $0x118] sm:$0xff] %v319_v56  ;;  %v504_v0 = vunpack.c.l.bf16 %v566_v53  ;;  %v505_v2 = vunpack.c.h.bf16 %v566_v53 }
  0x2b   :  { %384 = vst [vmem:[%s1026_s3 + $0x120] sm:$0xff] %v320_v57  ;;  %385 = vst [vmem:[%s1026_s3 + $0x128] sm:$0xff] %v321_v58  ;;  %v508_v3 = vunpack.c.l.bf16 %v567_v54  ;;  %v509_v4 = vunpack.c.h.bf16 %v567_v54  ;;  %v189_v5 = vmul.f32 %v500_v62, %v603_v1  ;;  %v190_v6 = vmul.f32 %v501_v63, %v603_v1  ;;  %v573_v58 = vld [vmem:[%s1023_s0 + $0xe0] sm:$0xff]   ;;  %v574_v63 = vld [vmem:[%s1023_s0 + $0xe8] sm:$0xff]  }
  0x2c   :  { %386 = vst [vmem:[%s1026_s3 + $0x130] sm:$0xff] %v322_v60  ;;  %387 = vst [vmem:[%s1026_s3 + $0x138] sm:$0xff] %v323_v61  ;;  %v512_v8 = vunpack.c.l.bf16 %v568_v59  ;;  %v513_v9 = vunpack.c.h.bf16 %v568_v59  ;;  %v191_v10 = vmul.f32 %v504_v0, %v603_v1  ;;  %v192_v11 = vmul.f32 %v505_v2, %v603_v1  ;;  %v575_v0 = vld [vmem:[%s1023_s0 + $0xf0] sm:$0xff]  }
  0x2d   :  { %v193_v12 = vmul.f32 %v508_v3, %v603_v1  ;;  %v194_v13 = vmul.f32 %v509_v4, %v603_v1  ;;  %v260_v14 = vadd.f32 %v617_v7, %v189_v5  ;;  %v261_v15 = vadd.f32 %v617_v7, %v190_v6  ;;  %v576_v6 = vld [vmem:[%s1023_s0 + $0xf8] sm:$0xff]  }
  0x2e   :  { %v195_v16 = vmul.f32 %v512_v8, %v603_v1  ;;  %v196_v17 = vmul.f32 %v513_v9, %v603_v1  ;;  %v262_v18 = vadd.f32 %v617_v7, %v191_v10  ;;  %v263_v19 = vadd.f32 %v617_v7, %v192_v11 }
  0x2f   :  { %v264_v20 = vadd.f32 %v617_v7, %v193_v12  ;;  %v265_v21 = vadd.f32 %v617_v7, %v194_v13  ;;  %v324_v23 = vmax.f32 %v260_v14, 0.0  ;;  %v325_v24 = vmax.f32 %v261_v15, 0.0 }
  0x30   :  { %v266_v25 = vadd.f32 %v617_v7, %v195_v16  ;;  %v267_v26 = vadd.f32 %v617_v7, %v196_v17  ;;  %v326_v29 = vmax.f32 %v262_v18, 0.0  ;;  %v327_v30 = vmax.f32 %v263_v19, 0.0 }
  0x31   :  { %v328_v31 = vmax.f32 %v264_v20, 0.0  ;;  %v329_v32 = vmax.f32 %v265_v21, 0.0  ;;  %388 = vst [vmem:[%s1026_s3 + $0x140] sm:$0xff] %v324_v23  ;;  %389 = vst [vmem:[%s1026_s3 + $0x148] sm:$0xff] %v325_v24  ;;  %v516_v36 = vunpack.c.l.bf16 %v569_v22  ;;  %v517_v37 = vunpack.c.h.bf16 %v569_v22 }
  0x32   :  { %v330_v34 = vmax.f32 %v266_v25, 0.0  ;;  %v331_v35 = vmax.f32 %v267_v26, 0.0  ;;  %390 = vst [vmem:[%s1026_s3 + $0x150] sm:$0xff] %v326_v29  ;;  %391 = vst [vmem:[%s1026_s3 + $0x158] sm:$0xff] %v327_v30  ;;  %v520_v38 = vunpack.c.l.bf16 %v570_v27  ;;  %v521_v39 = vunpack.c.h.bf16 %v570_v27 }
  0x33   :  { %392 = vst [vmem:[%s1026_s3 + $0x160] sm:$0xff] %v328_v31  ;;  %393 = vst [vmem:[%s1026_s3 + $0x168] sm:$0xff] %v329_v32  ;;  %v524_v40 = vunpack.c.l.bf16 %v571_v28  ;;  %v525_v41 = vunpack.c.h.bf16 %v571_v28  ;;  %v197_v42 = vmul.f32 %v516_v36, %v603_v1  ;;  %v198_v43 = vmul.f32 %v517_v37, %v603_v1 }
  0x34   :  { %394 = vst [vmem:[%s1026_s3 + $0x170] sm:$0xff] %v330_v34  ;;  %395 = vst [vmem:[%s1026_s3 + $0x178] sm:$0xff] %v331_v35  ;;  %v528_v44 = vunpack.c.l.bf16 %v572_v33  ;;  %v529_v45 = vunpack.c.h.bf16 %v572_v33  ;;  %v199_v46 = vmul.f32 %v520_v38, %v603_v1  ;;  %v200_v47 = vmul.f32 %v521_v39, %v603_v1 }
  0x35   :  { %v201_v48 = vmul.f32 %v524_v40, %v603_v1  ;;  %v202_v49 = vmul.f32 %v525_v41, %v603_v1  ;;  %v268_v50 = vadd.f32 %v617_v7, %v197_v42  ;;  %v269_v51 = vadd.f32 %v617_v7, %v198_v43 }
  0x36   :  { %v203_v52 = vmul.f32 %v528_v44, %v603_v1  ;;  %v204_v53 = vmul.f32 %v529_v45, %v603_v1  ;;  %v270_v54 = vadd.f32 %v617_v7, %v199_v46  ;;  %v271_v55 = vadd.f32 %v617_v7, %v200_v47 }
  0x37   :  { %v272_v56 = vadd.f32 %v617_v7, %v201_v48  ;;  %v273_v57 = vadd.f32 %v617_v7, %v202_v49  ;;  %v332_v59 = vmax.f32 %v268_v50, 0.0  ;;  %v333_v60 = vmax.f32 %v269_v51, 0.0 }
  0x38   :  { %v274_v61 = vadd.f32 %v617_v7, %v203_v52  ;;  %v275_v62 = vadd.f32 %v617_v7, %v204_v53  ;;  %v334_v2 = vmax.f32 %v270_v54, 0.0  ;;  %v335_v3 = vmax.f32 %v271_v55, 0.0 }
  0x39   :  { %v336_v4 = vmax.f32 %v272_v56, 0.0  ;;  %v337_v5 = vmax.f32 %v273_v57, 0.0  ;;  %396 = vst [vmem:[%s1026_s3 + $0x180] sm:$0xff] %v332_v59  ;;  %397 = vst [vmem:[%s1026_s3 + $0x188] sm:$0xff] %v333_v60  ;;  %v532_v10 = vunpack.c.l.bf16 %v573_v58  ;;  %v533_v11 = vunpack.c.h.bf16 %v573_v58 }
  0x3a   :  { %v338_v8 = vmax.f32 %v274_v61, 0.0  ;;  %v339_v9 = vmax.f32 %v275_v62, 0.0  ;;  %398 = vst [vmem:[%s1026_s3 + $0x190] sm:$0xff] %v334_v2  ;;  %399 = vst [vmem:[%s1026_s3 + $0x198] sm:$0xff] %v335_v3  ;;  %v536_v12 = vunpack.c.l.bf16 %v574_v63  ;;  %v537_v13 = vunpack.c.h.bf16 %v574_v63 }
  0x3b   :  { %400 = vst [vmem:[%s1026_s3 + $0x1a0] sm:$0xff] %v336_v4  ;;  %401 = vst [vmem:[%s1026_s3 + $0x1a8] sm:$0xff] %v337_v5  ;;  %v540_v14 = vunpack.c.l.bf16 %v575_v0  ;;  %v541_v15 = vunpack.c.h.bf16 %v575_v0  ;;  %v205_v16 = vmul.f32 %v532_v10, %v603_v1  ;;  %v206_v17 = vmul.f32 %v533_v11, %v603_v1 }
  0x3c   :  { %402 = vst [vmem:[%s1026_s3 + $0x1b0] sm:$0xff] %v338_v8  ;;  %403 = vst [vmem:[%s1026_s3 + $0x1b8] sm:$0xff] %v339_v9  ;;  %v544_v18 = vunpack.c.l.bf16 %v576_v6  ;;  %v545_v19 = vunpack.c.h.bf16 %v576_v6  ;;  %v207_v20 = vmul.f32 %v536_v12, %v603_v1  ;;  %v208_v21 = vmul.f32 %v537_v13, %v603_v1 }
  0x3d   :  { %v209_v22 = vmul.f32 %v540_v14, %v603_v1  ;;  %v210_v23 = vmul.f32 %v541_v15, %v603_v1  ;;  %v276_v24 = vadd.f32 %v617_v7, %v205_v16  ;;  %v277_v25 = vadd.f32 %v617_v7, %v206_v17 }
  0x3e   :  { %v211_v26 = vmul.f32 %v544_v18, %v603_v1  ;;  %v212_v27 = vmul.f32 %v545_v19, %v603_v1  ;;  %v278_v28 = vadd.f32 %v617_v7, %v207_v20  ;;  %v279_v29 = vadd.f32 %v617_v7, %v208_v21 }
  0x3f   :  { %v280_v30 = vadd.f32 %v617_v7, %v209_v22  ;;  %v281_v31 = vadd.f32 %v617_v7, %v210_v23  ;;  %v340_v32 = vmax.f32 %v276_v24, 0.0  ;;  %v341_v33 = vmax.f32 %v277_v25, 0.0 }
  0x40   :  { %v282_v34 = vadd.f32 %v617_v7, %v211_v26  ;;  %v283_v35 = vadd.f32 %v617_v7, %v212_v27  ;;  %v342_v36 = vmax.f32 %v278_v28, 0.0  ;;  %v343_v37 = vmax.f32 %v279_v29, 0.0 }
  0x41   :  { %v344_v38 = vmax.f32 %v280_v30, 0.0  ;;  %v345_v39 = vmax.f32 %v281_v31, 0.0  ;;  %404 = vst [vmem:[%s1026_s3 + $0x1c0] sm:$0xff] %v340_v32  ;;  %405 = vst [vmem:[%s1026_s3 + $0x1c8] sm:$0xff] %v341_v33 }
  0x42   :  { %v346_v1 = vmax.f32 %v282_v34, 0.0  ;;  %v347_v40 = vmax.f32 %v283_v35, 0.0  ;;  %406 = vst [vmem:[%s1026_s3 + $0x1d0] sm:$0xff] %v342_v36  ;;  %407 = vst [vmem:[%s1026_s3 + $0x1d8] sm:$0xff] %v343_v37 }
  0x43   :  { %408 = vst [vmem:[%s1026_s3 + $0x1e0] sm:$0xff] %v344_v38  ;;  %409 = vst [vmem:[%s1026_s3 + $0x1e8] sm:$0xff] %v345_v39 }
  0x44   :  { %410 = vst [vmem:[%s1026_s3 + $0x1f0] sm:$0xff] %v346_v1  ;;  %411 = vst [vmem:[%s1026_s3 + $0x1f8] sm:$0xff] %v347_v40 }

// kernel: conv_forward.3
= control target key start
LH: loop header
LB: loop body
LE: loop exit
PB: predicated region body
PF: predicated region fallthrough
CT: control target
= control target key end

     0   :  { %s4901_s12 = smov 0   ;;  %s6684_s0 = inlined_call_operand.vmem [shape: f32[2,256,128], index: 0, kind: input, shape index: {}]   ;;  %s6685_s1 = inlined_call_operand.vmem [shape: bf16[3,384,128], index: 1, kind: input, shape index: {}]   ;;  %s6686_s2 = inlined_call_operand.vmem [shape: bf16[2,256,128], index: 2, kind: output, shape index: {0}]   ;;  %s6687_s3 = inlined_call_operand.vmem [shape: f32[2,2,128], index: 3, kind: output, shape index: {1}]  }
   0x1 LB: > { %s4024_s13 = sadd.s32 4294967295, %s4878_s12   ;;  %p4028_p0 = scmp.ge.s32.totalorder %s4878_s12, 1  ;;  %s4878_s12 = sphi %s4901_s12, %s14_s12  }
   0x2   : > { %p140_p1 = scmp.lt.s32.totalorder %s4878_s12, 3 }
   0x4   : > { %p141_p2 = pnand %p4028_p0, %p140_p1 }
   0x6   : > { %144 = sbr.rel (%p141_p2) target bundleno = 656 (0x290), region = 28 }
   0xb   : > { %v4734_v0 = vld [vmem:[%s6685_s1 + $0xf8] sm:$0xff]   ;;  %v6693_v1 = vmov 0   ;;  %v4736_v3 = vld [vmem:[%s6685_s1 + $0xf0] sm:$0xff]   ;;  %p168_p3 = scmp.lt.s32.totalorder %s4024_s13, 1  ;;  %v4739_v5 = vld [vmem:[%s6685_s1 + $0x168] sm:$0xff]   ;;  %vm353_vm0 = vcmask 1042432  }
   0xc   : > { %1627 = vmatprep.subr.bf16.mxu0 %v6693_v1  ;;  %231 = vst [vmem:[#allocation2] sm:$0xf] %v6693_v1  ;;  %232 = vst [vmem:[#allocation2 + $0x4] sm:$0xf] %v6693_v1  ;;  %v4957_v2 = vld [vmem:[%s6685_s1 + $0x178] sm:$0xff]   ;;  %v4737_v4 = vld [vmem:[%s6685_s1 + $0x170] sm:$0xff]  }
   0xd   : > { %233 = vst [vmem:[#allocation2 + $0x8] sm:$0xf] %v6693_v1  ;;  %234 = vst [vmem:[#allocation2 + $0xc] sm:$0xf] %v6693_v1  ;;  %1628 = vmatpush1.bf16.msra.mxu0 %v4734_v0  ;;  %4709 = vmatprep.subr.bf16.mxu1 %v4957_v2  ;;  %v4738_v6 = vld [vmem:[%s6685_s1 + $0xe8] sm:$0xff]   ;;  %s6855_s13 = smov (!%p168_p3, %s4024_s13), 1 }
   0xe   : > { %235 = vst [vmem:[#allocation2 + $0x10] sm:$0xf] %v6693_v1  ;;  %236 = vst [vmem:[#allocation2 + $0x14] sm:$0xf] %v6693_v1  ;;  %1629 = vmatprep.subr.bf16.mxu0 %v6693_v1  ;;  %4717 = vmatpush3.bf16.msra.mxu1 %v4957_v2  ;;  %v4741_v7 = vld [vmem:[%s6685_s1 + $0x160] sm:$0xff]   ;;  %s4314_s30 = sshll.u32 %s6855_s13, 8 }
   0xf   : > { %237 = vst [vmem:[#allocation2 + $0x18] sm:$0xf] %v6693_v1  ;;  %238 = vst [vmem:[#allocation2 + $0x1c] sm:$0xf] %v6693_v1  ;;  %4710 = vmatprep.subr.bf16.mxu1 %v4737_v4  ;;  %v4740_v8 = vld [vmem:[%s6685_s1 + $0xe0] sm:$0xff]   ;;  %v4743_v9 = vld [vmem:[%s6685_s1 + $0x158] sm:$0xff]   ;;  %s4995_s8 = scalar_lea.vmem %s6684_s0, %s4314_s30 }
  0x10   : > { %239 = vst [vmem:[#allocation2 + $0x20] sm:$0xf] %v6693_v1  ;;  %240 = vst [vmem:[#allocation2 + $0x24] sm:$0xf] %v6693_v1  ;;  %v4742_v10 = vld [vmem:[%s6685_s1 + $0xd8] sm:$0xff]   ;;  %v4745_v11 = vld [vmem:[%s6685_s1 + $0x150] sm:$0xff]  }
  0x11   : > { %241 = vst [vmem:[#allocation2 + $0x28] sm:$0xf] %v6693_v1  ;;  %242 = vst [vmem:[#allocation2 + $0x2c] sm:$0xf] %v6693_v1  ;;  %1630 = vmatpush1.bf16.msra.mxu0 %v4736_v3  ;;  %v186_v12 = vld [vmem:[%s4995_s8 + $0x18] sm:$0xff]  ;;  %v187_v13 = vld [vmem:[%s4995_s8 + $0x20] sm:$0xff] }
  0x12   : > { %243 = vst [vmem:[#allocation2 + $0x30] sm:$0xf] %v6693_v1  ;;  %244 = vst [vmem:[#allocation2 + $0x34] sm:$0xf] %v6693_v1  ;;  %1631 = vmatprep.subr.bf16.mxu0 %v6693_v1  ;;  %4718 = vmatpush3.bf16.msra.mxu1 %v4737_v4  ;;  %v188_v14 = vld [vmem:[%s4995_s8 + $0x28] sm:$0xff]  ;;  %vm388_vm1 = vcmask 1043459   ;;  %v4319_v18 = vpack.c.bf16 %v186_v12, %v186_v12  ;;  %v4320_v19 = vpack.c.bf16 %v187_v13, %v187_v13 }
  0x13   : > { %245 = vst [vmem:[#allocation2 + $0x38] sm:$0xf] %v6693_v1  ;;  %246 = vst [vmem:[#allocation2 + $0x3c] sm:$0xf] %v6693_v1  ;;  %4711 = vmatprep.subr.bf16.mxu1 %v4739_v5  ;;  %vm6689_vm2 = vcmask 1043456   ;;  %vm6688_vm3 = vcmask 1040384   ;;  %v4321_v20 = vpack.c.bf16 %v188_v14, %v188_v14 }
  0x14   : > { %247 = vst [vmem:[#allocation2 + $0x40] sm:$0xf] %v6693_v1  ;;  %248 = vst [vmem:[#allocation2 + $0x44] sm:$0xf] %v6693_v1  ;;  %v189_v15 = vld [vmem:[%s4995_s8 + $0x30] sm:$0xff]  ;;  %v190_v16 = vld [vmem:[%s4995_s8 + $0x38] sm:$0xff] }
  0x15   : > { %249 = vst [vmem:[#allocation2 + $0x48] sm:$0xf] %v6693_v1  ;;  %250 = vst [vmem:[#allocation2 + $0x4c] sm:$0xf] %v6693_v1  ;;  %1632 = vmatpush1.bf16.msra.mxu0 %v4738_v6  ;;  %v191_v17 = vld [vmem:[%s4995_s8 + $0x40] sm:$0xff]  ;;  %v4744_v21 = vld [vmem:[%s6685_s1 + $0xd0] sm:$0xff]   ;;  %v5013_v22 = vpack.c.bf16 %v189_v15, %v189_v15  ;;  %v5015_v23 = vpack.c.bf16 %v190_v16, %v190_v16 }
  0x16   : > { %251 = vst [vmem:[#allocation2 + $0x50] sm:$0xf] %v6693_v1  ;;  %252 = vst [vmem:[#allocation2 + $0x54] sm:$0xf] %v6693_v1  ;;  %1633 = vmatprep.subr.bf16.mxu0 %v6693_v1  ;;  %4719 = vmatpush3.bf16.msra.mxu1 %v4739_v5  ;;  %vm6690_vm4 = vsmask.f32 2304  ;;  %v5018_v31 = vpack.c.bf16 %v191_v17, %v191_v17 }
  0x17   : > { %253 = vst [vmem:[#allocation2 + $0x58] sm:$0xf] %v6693_v1  ;;  %254 = vst [vmem:[#allocation2 + $0x5c] sm:$0xf] %v6693_v1  ;;  %4712 = vmatprep.subr.bf16.mxu1 %v4741_v7  ;;  %vm363_vm5 = vsmask.f32 3328 }
  0x18   : > { %255 = vst [vmem:[#allocation2 + $0x60] sm:$0xf] %v6693_v1  ;;  %256 = vst [vmem:[#allocation2 + $0x64] sm:$0xf] %v6693_v1  ;;  %vm364_vm6 = vsmask.f32 7440 }
  0x19   : > { %257 = vst [vmem:[#allocation2 + $0x68] sm:$0xf] %v6693_v1  ;;  %258 = vst [vmem:[#allocation2 + $0x6c] sm:$0xf] %v6693_v1  ;;  %1634 = vmatpush1.bf16.msra.mxu0 %v4740_v8  ;;  %vm304_vm7 = vcmask 1043457   ;;  %v334_v24 = vshrl.u32 %v4319_v18, 16 }
  0x1a   : > { %259 = vst [vmem:[#allocation2 + $0x70] sm:$0xf] %v6693_v1  ;;  %260 = vst [vmem:[#allocation2 + $0x74] sm:$0xf] %v6693_v1  ;;  %1635 = vmatprep.subr.bf16.mxu0 %v6693_v1  ;;  %4720 = vmatpush3.bf16.msra.mxu1 %v4741_v7  ;;  %vm305_vm8 = vsmask.f32 7942 }
  0x1b   : > { %261 = vst [vmem:[#allocation2 + $0x78] sm:$0xf] %v6693_v1  ;;  %262 = vst [vmem:[#allocation2 + $0x7c] sm:$0xf] %v6693_v1  ;;  %4713 = vmatprep.subr.bf16.mxu1 %v4743_v9  ;;  %v337_v25 = vshll.u32 %v4319_v18, 16  ;;  %v367_v26 = vshll.u32 %v4320_v19, 16 }
  0x1c   : > { %263 = vst [vmem:[#allocation2 + $0x80] sm:$0xf] %v6693_v1  ;;  %264 = vst [vmem:[#allocation2 + $0x84] sm:$0xf] %v6693_v1  ;;  %v370_v27 = vshrl.u32 %v4320_v19, 16  ;;  %v376_v28 = vshll.u32 %v4321_v20, 16 }
  0x1d   : > { %265 = vst [vmem:[#allocation2 + $0x88] sm:$0xf] %v6693_v1  ;;  %266 = vst [vmem:[#allocation2 + $0x8c] sm:$0xf] %v6693_v1  ;;  %1636 = vmatpush1.bf16.msra.mxu0 %v4742_v10  ;;  %v380_v29 = vshrl.u32 %v4321_v20, 16  ;;  %v4746_v32 = vld [vmem:[%s6685_s1 + $0xc8] sm:$0xff]  }
  0x1e   : > { %267 = vst [vmem:[#allocation2 + $0x90] sm:$0xf] %v6693_v1  ;;  %268 = vst [vmem:[#allocation2 + $0x94] sm:$0xf] %v6693_v1  ;;  %1637 = vmatprep.subr.bf16.mxu0 %v6693_v1  ;;  %4721 = vmatpush3.bf16.msra.mxu1 %v4743_v9  ;;  %vm389_vm9 = vsmask.f32 7950 }
  0x1f   : > { %269 = vst [vmem:[#allocation2 + $0x98] sm:$0xf] %v6693_v1  ;;  %270 = vst [vmem:[#allocation2 + $0x9c] sm:$0xf] %v6693_v1  ;;  %v391_v30 = vld [vmem:[#allocation2 + $0x18] sm:$0x8]  ;;  %4714 = vmatprep.subr.bf16.mxu1 %v4745_v11 }
  0x20   : > { %271 = vst [vmem:[#allocation2 + $0xa0] sm:$0xf] %v6693_v1  ;;  %v4747_v33 = vld [vmem:[%s6685_s1 + $0x148] sm:$0xff]   ;;  %v336_v34 = vrot.slane %v334_v24, 5  ;;  %v339_v35 = vrot.slane %v337_v25, 6  ;;  %v369_v36 = vrot.slane %v367_v26, 5  ;;  %vm5027_vm10 = vmand %vm388_vm1, %vm389_vm9 }
  0x21   : > { %v372_v37 = vrot.slane %v370_v27, 4  ;;  %1638 = vmatpush1.bf16.msra.mxu0 %v4744_v21  ;;  %vm5033_vm11 = vmand %vm353_vm0, %vm6690_vm4  ;;  %v378_v40 = vrot.slane %v376_v28, 5  ;;  %v382_v41 = vrot.slane %v380_v29, 4  ;;  %vm405_vm12 = vsmask.f32 256  ;;  %v4748_v49 = vld [vmem:[%s6685_s1 + $0xc0] sm:$0xff]  }
  0x22   : > { %vm406_vm13 = vsmask.f32 4368  ;;  %1639 = vmatprep.subr.bf16.mxu0 %v6693_v1  ;;  %v5038_v42 = vor.u32 %v339_v35, %v336_v34  ;;  %v355_v43 = vld [vmem:[#allocation2 + $0x18] sm:$0x7]  ;;  %vm5042_vm14 = vmor %vm363_vm5, %vm364_vm6  ;;  %v392_v46 = vsel %vm5027_vm10, %v369_v36, %v391_v30  ;;  %v397_v47 = vld [vmem:[#allocation2 + $0x20] sm:$0xf]  ;;  %4722 = vmatpush3.bf16.msra.mxu1 %v4745_v11 }
  0x23   : > { %v373_v45 = vor.u32 %v372_v37, %v369_v36  ;;  %v409_v48 = vshrl.u32 %v5013_v22, 16  ;;  %vm311_vm15 = vcmask 1041408   ;;  %v383_v50 = vor.u32 %v382_v41, %v378_v40  ;;  %393 = vst [vmem:[#allocation2 + $0x18] sm:$0x8] %v392_v46  ;;  %vm5054_vm0 = vmand %vm6689_vm2, %vm363_vm5  ;;  %v430_v55 = vld [vmem:[#allocation2 + $0x24] sm:$0xf]  ;;  %4715 = vmatprep.subr.bf16.mxu1 %v4747_v33 }
  0x24   : > { %v412_v52 = vshll.u32 %v5013_v22, 16  ;;  %v417_v53 = vshrl.u32 %v5015_v23, 16  ;;  %v420_v54 = vshll.u32 %v5015_v23, 16  ;;  %v4749_v56 = vld [vmem:[%s6685_s1 + $0x140] sm:$0xff]   ;;  %v342_v57 = vrot.slane %v5038_v42, 4  ;;  %vm5067_vm1 = vmor %vm405_vm12, %vm406_vm13  ;;  %v192_v10 = vld [vmem:[%s4995_s8 + $0x48] sm:$0xff] }
  0x25   : > { %v374_v58 = vrot.slane %v373_v45, 4  ;;  %v411_v60 = vrot.slane %v409_v48, 7  ;;  %vm428_vm5 = vsmask.f32 7938  ;;  %v436_v61 = vld [vmem:[#allocation2 + $0x2c] sm:$0x1]  ;;  %1640 = vmatpush1.bf16.msra.mxu0 %v4746_v32  ;;  %vm5085_vm9 = vmand %vm6688_vm3, %vm405_vm12  ;;  %v4325_v23 = vpack.c.bf16 %v192_v10, %v192_v10 }
  0x26   : > { %v384_v62 = vrot.slane %v383_v50, 4  ;;  %v419_v63 = vrot.slane %v417_v53, 7  ;;  %vm5072_vm6 = vmand %vm6689_vm2, %vm428_vm5  ;;  %v445_v3 = vshrl.u32 %v5018_v31, 16  ;;  %v448_v4 = vshll.u32 %v5018_v31, 16  ;;  %1641 = vmatprep.subr.bf16.mxu0 %v6693_v1  ;;  %v193_v11 = vld [vmem:[%s4995_s8 + $0x50] sm:$0xff]  ;;  %4723 = vmatpush3.bf16.msra.mxu1 %v4747_v33  ;;  %v4753_v19 = vld [vmem:[%s6685_s1 + $0x138] sm:$0xff]  }
  0x27   : > { %v356_v5 = vsel %vm5033_vm11, %v342_v57, %v355_v43  ;;  %v379_v6 = vsel %vm5042_vm14, %v374_v58, %v378_v40  ;;  %v414_v7 = vor.u32 %v412_v52, %v411_v60  ;;  %v415_v8 = vrot.slane %v411_v60, 4  ;;  %4716 = vmatprep.subr.bf16.mxu1 %v4749_v56  ;;  %v466_v18 = vld [vmem:[#allocation2 + $0x2c] sm:$0xe]  ;;  %vm5100_vm13 = vmand %vm304_vm7, %vm305_vm8  ;;  %v194_v33 = vld [vmem:[%s4995_s8 + $0x58] sm:$0xff]  ;;  %s4315_s29 = sshll.u32 %s6855_s13, 7  ;;  %s4033_s6 = sshll.u32 %s6855_s13, 1 }
  0x28   : > { %357 = vst [vmem:[#allocation2 + $0x18] sm:$0x7] %v356_v5  ;;  %394 = vst [vmem:[#allocation2 + $0x1c] sm:$0xf] %v379_v6  ;;  %v398_v12 = vsel %vm5054_vm0, %v384_v62, %v397_v47  ;;  %v422_v13 = vor.u32 %v420_v54, %v419_v63  ;;  %v424_v14 = vrot.slane %v419_v63, 4  ;;  %v447_v15 = vrot.slane %v445_v3, 6  ;;  %s6565_s5 = scalar_lea.vmem %s6686_s2, %s4315_s29  ;;  %s181_s10 = scalar_lea.vmem %s6687_s3, %s4033_s6 }
  0x29   : > { %399 = vst [vmem:[#allocation2 + $0x20] sm:$0xf] %v398_v12  ;;  %v431_v16 = vsel %vm5072_vm6, %v414_v7, %v430_v55  ;;  %v450_v17 = vrot.slane %v448_v4, 7  ;;  %vm279_vm12 = vsmask.f32 1280  ;;  %1642 = vmatpush1.bf16.msra.mxu0 %v4748_v49  ;;  %vm346_vm7 = vcmask 1043458  }
  0x2a   : > { %v423_v21 = vsel %vm5067_vm1, %v415_v8, %v422_v13  ;;  %432 = vst [vmem:[#allocation2 + $0x24] sm:$0xf] %v431_v16  ;;  %v437_v22 = vsel %vm5085_vm9, %v424_v14, %v436_v61  ;;  %vm280_vm3 = vsmask.f32 5392  ;;  %1643 = vmatprep.subr.bf16.mxu0 %v6693_v1  ;;  %vm347_vm8 = vsmask.f32 7946  ;;  %4724 = vmatpush3.bf16.msra.mxu1 %v4749_v56  ;;  %vm5121_vm4 = vmand %vm311_vm15, %vm279_vm12 }
  0x2b   : > { %433 = vst [vmem:[#allocation2 + $0x28] sm:$0xf] %v423_v21  ;;  %438 = vst [vmem:[#allocation2 + $0x2c] sm:$0x1] %v437_v22  ;;  %v451_v24 = vor.u32 %v450_v17, %v447_v15  ;;  %v4326_v25 = vpack.c.bf16 %v193_v11, %v193_v11  ;;  %v454_v26 = vshrl.u32 %v4325_v23, 16  ;;  %v457_v27 = vshll.u32 %v4325_v23, 16  ;;  %2125 = vmatprep.subr.bf16.mxu1 %v6693_v1 }
  0x2c   : > { %vm322_vm2 = vsmask.f32 6416  ;;  %vm5112_vm5 = vmor %vm279_vm12, %vm280_vm3  ;;  %v195_v34 = vld [vmem:[%s4995_s8 + $0x60] sm:$0xff]  ;;  %v4756_v40 = vld [vmem:[%s6685_s1 + $0x130] sm:$0xff]   ;;  %v4327_v41 = vpack.c.bf16 %v194_v33, %v194_v33  ;;  %vm6723_vm12 = vsmask.f32 2304 }
  0x2d   : > { %v467_v28 = vsel %vm5100_vm13, %v451_v24, %v466_v18  ;;  %v452_v30 = vrot.slane %v451_v24, 4  ;;  %v479_v31 = vshrl.u32 %v4326_v25, 16  ;;  %v482_v32 = vshll.u32 %v4326_v25, 16  ;;  %1644 = vmatpush2.bf16.msra.mxu0 %v4753_v19  ;;  %v470_v46 = vld [vmem:[#allocation2 + $0x34] sm:$0x3]  ;;  %vm5133_vm3 = vmand %vm346_vm7, %vm347_vm8  ;;  %v4759_v56 = vld [vmem:[%s6685_s1 + $0x128] sm:$0xff]  }
  0x2e   : > { %468 = vst [vmem:[#allocation2 + $0x2c] sm:$0xe] %v467_v28  ;;  %v456_v36 = vrot.slane %v454_v26, 6  ;;  %v459_v37 = vrot.slane %v457_v27, 7  ;;  %v4328_v43 = vpack.c.bf16 %v195_v34, %v195_v34  ;;  %v500_v48 = vld [vmem:[#allocation2 + $0x34] sm:$0xc]  ;;  %1645 = vmatprep.subr.bf16.mxu0 %v6693_v1  ;;  %vm5154_vm7 = vmor %vm6723_vm12, %vm322_vm2 }
  0x2f   : > { %v5128_v45 = vld [vmem:[#allocation2 + $0x18] sm:$0xff]   ;;  %v481_v47 = vrot.slane %v479_v31, 5  ;;  %v484_v52 = vrot.slane %v482_v32, 6  ;;  %v488_v53 = vshrl.u32 %v4327_v41, 16  ;;  %v491_v54 = vshll.u32 %v4327_v41, 16  ;;  %v196_v61 = vld [vmem:[%s4995_s8 + $0x68] sm:$0xff] }
  0x30   : > { %v460_v50 = vor.u32 %v459_v37, %v456_v36  ;;  %v534_v55 = vld [vmem:[#allocation2 + $0x3c] sm:$0x8]  ;;  %v1166_v58 = vrot.slane %v5128_v45, 1  ;;  %v513_v60 = vshll.u32 %v4328_v43, 16  ;;  %v4329_v8 = vpack.c.bf16 %v196_v61, %v196_v61  ;;  %v504_v14 = vld [vmem:[#allocation2 + $0x3c] sm:$0x7] }
  0x31   : > { %v5140_v57 = vld [vmem:[#allocation2 + $0x20] sm:$0xff]   ;;  %v485_v3 = vor.u32 %v484_v52, %v481_v47  ;;  %1646 = vmatpush2.bf16.msra.mxu0 %v4756_v40  ;;  %v490_v4 = vrot.slane %v488_v53, 5  ;;  %v493_v6 = vrot.slane %v491_v54, 6  ;;  %v516_v15 = vshrl.u32 %v4328_v43, 16  ;;  %v197_v33 = vld [vmem:[%s4995_s8 + $0x70] sm:$0xff]  ;;  %v198_v40 = vld [vmem:[%s4995_s8 + $0x78] sm:$0xff] }
  0x32   : > { %v461_v62 = vsel %vm5112_vm5, %v452_v30, %v460_v50  ;;  %v462_v63 = vrot.slane %v460_v50, 4  ;;  %v1168_v5 = vrot.slane %v5140_v57, 1  ;;  %1647 = vmatprep.subr.bf16.mxu0 %v6693_v1  ;;  %v515_v7 = vrot.slane %v513_v60, 5  ;;  %v4762_v25 = vld [vmem:[%s6685_s1 + $0x120] sm:$0xff]   ;;  %v4765_v53 = vld [vmem:[%s6685_s1 + $0x118] sm:$0xff]   ;;  %v4781_v20 = vld [vmem:[%s6685_s1 + $0x70] sm:$0xff]  }
  0x33   : > { %469 = vst [vmem:[#allocation2 + $0x30] sm:$0xf] %v461_v62  ;;  %v501_v11 = vsel %vm5133_vm3, %v485_v3, %v500_v48  ;;  %v486_v13 = vrot.slane %v485_v3, 4  ;;  %vm6726_vm8 = vcmask 1046528   ;;  %v494_v18 = vor.u32 %v493_v6, %v490_v4  ;;  %v538_v37 = vld [vmem:[#allocation2 + $0x44] sm:$0xf] }
  0x34   : > { %v471_v10 = vsel %vm5121_vm4, %v462_v63, %v470_v46  ;;  %v5163_v17 = vsel %vm6726_vm8, %v1166_v58, %v1168_v5  ;;  %502 = vst [vmem:[#allocation2 + $0x34] sm:$0xc] %v501_v11  ;;  %v535_v19 = vsel %vm5027_vm10, %v515_v7, %v534_v55  ;;  %v522_v21 = vshll.u32 %v4329_v8, 16  ;;  %vm6728_vm2 = vmmov %vm6726_vm8  ;;  %v199_v54 = vld [vmem:[%s4995_s8 + $0x80] sm:$0xff]  ;;  %v200_v55 = vld [vmem:[%s4995_s8 + $0x88] sm:$0xff] }
  0x35   : > { %v5158_v16 = vld [vmem:[#allocation2 + $0x28] sm:$0xff]   ;;  %6727 = vst [vmem:[#allocation3_spill] sm:$0xff] %v5163_v17  ;;  %472 = vst [vmem:[#allocation2 + $0x34] sm:$0x3] %v471_v10  ;;  %v6691_v22 = vrot.slane %v5163_v17, 1  ;;  %1648 = vmatpush2.bf16.msra.mxu0 %v4759_v56  ;;  %v518_v23 = vrot.slane %v516_v15, 4  ;;  %v495_v27 = vsel %vm5154_vm7, %v486_v13, %v494_v18  ;;  %v4330_v41 = vpack.c.bf16 %v197_v33, %v197_v33 }
  0x36   : > { %536 = vst [vmem:[#allocation2 + $0x3c] sm:$0x8] %v535_v19  ;;  %v526_v24 = vshrl.u32 %v4329_v8, 16  ;;  %v1170_v26 = vrot.slane %v5158_v16, 1  ;;  %v496_v28 = vrot.slane %v494_v18, 4  ;;  %v524_v30 = vrot.slane %v522_v21, 5  ;;  %1649 = vmatprep.subr.bf16.mxu0 %v6693_v1  ;;  %vm6730_vm12 = vmmov %vm6728_vm2 }
  0x37   : > { %503 = vst [vmem:[#allocation2 + $0x38] sm:$0xf] %v495_v27  ;;  %v519_v31 = vor.u32 %v518_v23, %v515_v7  ;;  %v4331_v48 = vpack.c.bf16 %v198_v40, %v198_v40  ;;  %v547_v50 = vshrl.u32 %v4330_v41, 16  ;;  %v550_v52 = vshll.u32 %v4330_v41, 16  ;;  %v570_v6 = vld [vmem:[#allocation2 + $0x50] sm:$0x1]  ;;  %vm6731_vm8 = vmmov %vm6728_vm2 }
  0x38   : > { %v528_v32 = vrot.slane %v526_v24, 4  ;;  %v5177_v34 = vsel %vm6728_vm2, %v1168_v5, %v1170_v26  ;;  %v505_v36 = vsel %vm5033_vm11, %v496_v28, %v504_v14  ;;  %v566_v5 = vld [vmem:[#allocation2 + $0x48] sm:$0xf]  ;;  %v4332_v7 = vpack.c.bf16 %v199_v54, %v199_v54  ;;  %v4755_v14 = vld [vmem:[%s6685_s1 + $0x38] sm:$0xff]   ;;  %v4768_v23 = vld [vmem:[%s6685_s1 + $0x110] sm:$0xff]  }
  0x39   : > { %6729 = vst [vmem:[#allocation4_spill] sm:$0xff] %v5177_v34  ;;  %v1380_v43 = vrot.slane %v5177_v34, 1  ;;  %506 = vst [vmem:[#allocation2 + $0x3c] sm:$0x7] %v505_v36  ;;  %v520_v46 = vrot.slane %v519_v31, 4  ;;  %1650 = vmatpush2.bf16.msra.mxu0 %v4762_v25  ;;  %v555_v63 = vshrl.u32 %v4331_v48, 16  ;;  %v4333_v8 = vpack.c.bf16 %v200_v55, %v200_v55 }
  0x3a   : > { %v529_v47 = vor.u32 %v528_v32, %v524_v30  ;;  %1651 = vmatprep.subr.bf16.mxu0 %v6693_v1  ;;  %v549_v3 = vrot.slane %v547_v50, 7  ;;  %v558_v4 = vshll.u32 %v4331_v48, 16  ;;  %v579_v19 = vshrl.u32 %v4332_v7, 16  ;;  %v4757_v54 = vld [vmem:[%s6685_s1 + $0x30] sm:$0xff]   ;;  %v4792_v9 = vld [vmem:[%s6685_s1 + $0x40] sm:$0xff]  }
  0x3b   : > { %v1381_v56 = vsel %vm6730_vm12, %v6691_v22, %v1380_v43  ;;  %v525_v61 = vsel %vm5042_vm14, %v520_v46, %v524_v30  ;;  %v557_v13 = vrot.slane %v555_v63, 7  ;;  %v582_v21 = vshll.u32 %v4332_v7, 16  ;;  %v600_v30 = vld [vmem:[#allocation2 + $0x50] sm:$0xe]  ;;  %vm6732_vm12 = vmmov %vm6728_vm2 }
  0x3c   : > { %v5192_v60 = vld [vmem:[#allocation2 + $0x30] sm:$0xff]   ;;  %v530_v62 = vrot.slane %v529_v47, 4  ;;  %4573 = vmatprep.mubr.bf16.mxu1 %v1381_v56  ;;  %537 = vst [vmem:[#allocation2 + $0x40] sm:$0xf] %v525_v61  ;;  %v552_v15 = vor.u32 %v550_v52, %v549_v3  ;;  %v553_v18 = vrot.slane %v549_v3, 4  ;;  %v588_v28 = vshrl.u32 %v4333_v8, 16 }
  0x3d   : > { %v1172_v10 = vrot.slane %v5192_v60, 1  ;;  %1652 = vmatpush2.bf16.msra.mxu0 %v4765_v53  ;;  %v560_v25 = vor.u32 %v558_v4, %v557_v13  ;;  %v562_v27 = vrot.slane %v557_v13, 4  ;;  %v581_v36 = vrot.slane %v579_v19, 6  ;;  %v201_v52 = vld [vmem:[%s4995_s8 + $0x90] sm:$0xff]  ;;  %v202_v53 = vld [vmem:[%s4995_s8 + $0x98] sm:$0xff] }
  0x3e   : > { %v539_v11 = vsel %vm5054_vm0, %v530_v62, %v538_v37  ;;  %1653 = vmatprep.subr.bf16.mxu0 %v6693_v1  ;;  %v567_v33 = vsel %vm5072_vm6, %v552_v15, %v566_v5  ;;  %v584_v37 = vrot.slane %v582_v21, 7  ;;  %v590_v41 = vrot.slane %v588_v28, 6  ;;  %v604_v4 = vld [vmem:[#allocation2 + $0x58] sm:$0x3]  ;;  %v203_v5 = vld [vmem:[%s4995_s8 + $0xa0] sm:$0xff]  ;;  %v204_v15 = vld [vmem:[%s4995_s8 + $0xa8] sm:$0xff] }
  0x3f   : > { %540 = vst [vmem:[#allocation2 + $0x44] sm:$0xf] %v539_v11  ;;  %v5207_v24 = vsel %vm6731_vm8, %v1170_v26, %v1172_v10  ;;  %v561_v40 = vsel %vm5067_vm1, %v553_v18, %v560_v25  ;;  %568 = vst [vmem:[#allocation2 + $0x48] sm:$0xf] %v567_v33  ;;  %v571_v26 = vsel %vm5085_vm9, %v562_v27, %v570_v6  ;;  %v591_v46 = vshll.u32 %v4333_v8, 16  ;;  %v4761_v25 = vld [vmem:[%s6685_s1 + $0x28] sm:$0xff]  }
  0x40   : > { %v1384_v31 = vrot.slane %v5207_v24, 1  ;;  %v5210_v32 = vld [vmem:[#allocation2 + $0x38] sm:$0xff]   ;;  %569 = vst [vmem:[#allocation2 + $0x4c] sm:$0xf] %v561_v40  ;;  %572 = vst [vmem:[#allocation2 + $0x50] sm:$0x1] %v571_v26  ;;  %v585_v50 = vor.u32 %v584_v37, %v581_v36  ;;  %v4334_v56 = vpack.c.bf16 %v201_v52, %v201_v52  ;;  %v4335_v61 = vpack.c.bf16 %v202_v53, %v202_v53 }
  0x41   : > { %1654 = vmatpush2.bf16.msra.mxu0 %v4768_v23  ;;  %v1174_v48 = vrot.slane %v5210_v32, 1  ;;  %v593_v55 = vrot.slane %v591_v46, 7  ;;  %v4336_v18 = vpack.c.bf16 %v203_v5, %v203_v5  ;;  %v1015_v19 = vshll.u32 %v5128_v45, 16  ;;  %vm6733_vm8 = vmmov %vm6728_vm2  ;;  %v668_v26 = vld [vmem:[#allocation2 + $0x60] sm:$0x8]  ;;  %v4853_v38 = vld [vmem:[%s6685_s1 + $0x170] sm:$0xff]  }
  0x42   : > { %v1385_v47 = vsel %vm6728_vm2, %v1380_v43, %v1384_v31  ;;  %1655 = vmatprep.subr.bf16.mxu0 %v6693_v1  ;;  %v4771_v43 = vld [vmem:[%s6685_s1 + $0x108] sm:$0xff]   ;;  %v586_v63 = vrot.slane %v585_v50, 4  ;;  %v601_v3 = vsel %vm5100_vm13, %v585_v50, %v600_v30  ;;  %v613_v11 = vshrl.u32 %v4334_v56, 16  ;;  %v634_v30 = vld [vmem:[#allocation2 + $0x58] sm:$0xc] }
  0x43   : > { %4574 = vmatmul.mubr.bf16.vlgmr.msra.gmra.mxu1 %v1385_v47  ;;  %v5230_v62 = vsel %vm6732_vm12, %v1172_v10, %v1174_v48  ;;  %v594_v8 = vor.u32 %v593_v55, %v590_v41  ;;  %602 = vst [vmem:[#allocation2 + $0x50] sm:$0xe] %v601_v3  ;;  %v616_v13 = vshll.u32 %v4334_v56, 16  ;;  %v625_v10 = vshll.u32 %v4335_v61, 16  ;;  %v638_v47 = vld [vmem:[#allocation2 + $0x60] sm:$0x7]  ;;  %vm6734_vm12 = vmmov %vm6728_vm2 }
  0x44   : > { %2126 = vmatpush1.bf16.msra.mxu1 %v4755_v14  ;;  %v1388_v6 = vrot.slane %v5230_v62, 1  ;;  %v622_v14 = vshrl.u32 %v4335_v61, 16  ;;  %v615_v33 = vrot.slane %v613_v11, 5  ;;  %v5257_v50 = vpack.c.bf16 %v204_v15, %v204_v15  ;;  %v4774_v3 = vld [vmem:[%s6685_s1 + $0x100] sm:$0xff]  }
  0x45   : > { %2127 = vmatprep.subr.bf16.mxu1 %v6693_v1  ;;  %1656 = vmatpush2.bf16.msra.mxu0 %v4771_v43  ;;  %v595_v27 = vsel %vm5112_vm5, %v586_v63, %v594_v8  ;;  %v596_v28 = vrot.slane %v594_v8, 4  ;;  %v618_v36 = vrot.slane %v616_v13, 6  ;;  %v627_v40 = vrot.slane %v625_v10, 6 }
  0x46   : > { %v5237_v7 = vld [vmem:[#allocation2 + $0x40] sm:$0xff]   ;;  %1657 = vmatprep.subr.bf16.mxu0 %v6693_v1  ;;  %v1389_v21 = vsel %vm6733_vm8, %v1384_v31, %v1388_v6  ;;  %603 = vst [vmem:[#allocation2 + $0x54] sm:$0xf] %v595_v27  ;;  %v624_v37 = vrot.slane %v622_v14, 5  ;;  %v647_v52 = vshll.u32 %v4336_v18, 16  ;;  %v650_v56 = vshrl.u32 %v4336_v18, 16  ;;  %vm6735_vm8 = vmmov %vm6728_vm2 }
  0x47   : > { %v1176_v23 = vrot.slane %v5237_v7, 1  ;;  %4577 = vmatprep.mubr.bf16.mxu1 %v1389_v21  ;;  %v5253_v41 = vld [vmem:[#allocation2 + $0x48] sm:$0xff]   ;;  %v605_v46 = vsel %vm5121_vm4, %v596_v28, %v604_v4  ;;  %v656_v63 = vshll.u32 %v5257_v50, 16  ;;  %v5278_v15 = vrot.slane %v1015_v19, 1  ;;  %v185_v27 = vld [vmem:[%s4995_s8 + $0x10] sm:$0xff] }
  0x48   : > { %2128 = vmatpush1.bf16.msra.mxu1 %v4757_v54  ;;  %v4763_v54 = vld [vmem:[%s6685_s1 + $0x20] sm:$0xff]   ;;  %606 = vst [vmem:[#allocation2 + $0x58] sm:$0x3] %v605_v46  ;;  %v628_v55 = vor.u32 %v627_v40, %v624_v37  ;;  %v1178_v61 = vrot.slane %v5253_v41, 1  ;;  %v649_v43 = vrot.slane %v647_v52, 5  ;;  %v652_v14 = vrot.slane %v650_v56, 4 }
  0x49   : > { %v5250_v31 = vsel %vm6728_vm2, %v1174_v48, %v1176_v23  ;;  %2129 = vmatprep.subr.bf16.mxu1 %v6693_v1  ;;  %v619_v48 = vor.u32 %v618_v36, %v615_v33  ;;  %1658 = vmatpush2.bf16.msra.mxu0 %v4774_v3  ;;  %v5289_v19 = vrot.slane %v656_v63, 5  ;;  %v4318_v37 = vpack.c.bf16 %v185_v27, %v185_v27  ;;  %v205_v3 = vld [vmem:[%s4995_s8 + $0xb0] sm:$0xff] }
  0x4a   : > { %v1392_v53 = vrot.slane %v5250_v31, 1  ;;  %v630_v11 = vrot.slane %v628_v55, 4  ;;  %v5273_v13 = vsel %vm6735_vm8, %v1176_v23, %v1178_v61  ;;  %v669_v10 = vsel %vm5027_vm10, %v649_v43, %v668_v26  ;;  %v184_v23 = vld [vmem:[%s4995_s8 + $0x8] sm:$0xff]  ;;  %4553 = vmatprep.subr.bf16.mxu0 %v4957_v2  ;;  %v4767_v26 = vld [vmem:[%s6685_s1 + $0x18] sm:$0xff]   ;;  %vm6737_vm8 = vmmov %vm6728_vm2 }
  0x4b   : > { %v620_v5 = vrot.slane %v619_v48, 4  ;;  %v635_v8 = vsel %vm5133_vm3, %v619_v48, %v634_v30  ;;  %v1396_v18 = vrot.slane %v5273_v13, 1  ;;  %670 = vst [vmem:[#allocation2 + $0x60] sm:$0x8] %v669_v10  ;;  %v653_v33 = vor.u32 %v652_v14, %v649_v43  ;;  %v307_v14 = vld [vmem:[#allocation2 + $0x8] sm:$0xe] }
  0x4c   : > { %v1393_v4 = vsel %vm6734_vm12, %v1388_v6, %v1392_v53  ;;  %2130 = vmatpush1.bf16.msra.mxu1 %v4761_v25  ;;  %636 = vst [vmem:[#allocation2 + $0x58] sm:$0xc] %v635_v8  ;;  %v183_v6 = vld [vmem:[%s4995_s8] sm:$0xff]  ;;  %v639_v25 = vsel %vm5033_vm11, %v630_v11, %v638_v47  ;;  %v4317_v36 = vpack.c.bf16 %v184_v23, %v184_v23  ;;  %v660_v52 = vshrl.u32 %v5257_v50, 16  ;;  %vm6736_vm12 = vmmov %vm6728_vm2 }
  0x4d   : > { %4578 = vmatmul.mubr.bf16.gmra.mxu1 %v1393_v4  ;;  %2131 = vmatprep.subr.bf16.mxu1 %v6693_v1  ;;  %v629_v21 = vsel %vm5154_vm7, %v620_v5, %v628_v55  ;;  %v4316_v28 = vpack.c.bf16 %v183_v6, %v183_v6  ;;  %v5287_v30 = vld [vmem:[#allocation2 + $0x50] sm:$0xff]   ;;  %640 = vst [vmem:[#allocation2 + $0x60] sm:$0x7] %v639_v25  ;;  %v654_v55 = vrot.slane %v653_v33, 4  ;;  %v328_v63 = vshll.u32 %v4318_v37, 16  ;;  %v206_v4 = vld [vmem:[%s4995_s8 + $0xb8] sm:$0xff] }
  0x4e   : > { %637 = vst [vmem:[#allocation2 + $0x5c] sm:$0xf] %v629_v21  ;;  %v1397_v40 = vsel %vm6728_vm2, %v1392_v53, %v1396_v18  ;;  %v1180_v48 = vrot.slane %v5287_v30, 1  ;;  %v292_v2 = vshrl.u32 %v4317_v36, 16  ;;  %v325_v53 = vshrl.u32 %v4318_v37, 16  ;;  %v4769_v6 = vld [vmem:[%s6685_s1 + $0x10] sm:$0xff]  }
  0x4f   : > { %v283_v46 = vshrl.u32 %v4316_v28, 16  ;;  %v286_v47 = vshll.u32 %v4316_v28, 16  ;;  %4581 = vmatprep.mubr.bf16.mxu1 %v1397_v40  ;;  %v659_v50 = vsel %vm5042_vm14, %v654_v55, %v5289_v19  ;;  %v313_v25 = vld [vmem:[#allocation2 + $0x10] sm:$0x3]  ;;  %v349_v28 = vld [vmem:[#allocation2 + $0x10] sm:$0xc]  ;;  %v4339_v37 = vpack.c.bf16 %v206_v4, %v206_v4 }
  0x50   : > { %2132 = vmatpush1.bf16.msra.mxu1 %v4763_v54  ;;  %v295_v54 = vshll.u32 %v4317_v36, 16  ;;  %v5302_v5 = vsel %vm6736_vm12, %v1178_v61, %v1180_v48  ;;  %v294_v8 = vrot.slane %v292_v2, 6  ;;  %671 = vst [vmem:[#allocation2 + $0x64] sm:$0xf] %v659_v50  ;;  %v327_v23 = vrot.slane %v325_v53, 5  ;;  %vm6738_vm12 = vmmov %vm6737_vm8 }
  0x51   : > { %2133 = vmatprep.subr.bf16.mxu1 %v6693_v1  ;;  %v285_v56 = vrot.slane %v283_v46, 6  ;;  %v288_v43 = vrot.slane %v286_v47, 7  ;;  %v1400_v10 = vrot.slane %v5302_v5, 1  ;;  %v330_v61 = vrot.slane %v328_v63, 6  ;;  %v4773_v46 = vld [vmem:[%s6685_s1 + $0x8] sm:$0xff]  }
  0x52   : > { %v297_v11 = vrot.slane %v295_v54, 7  ;;  %v662_v33 = vrot.slane %v660_v52, 4  ;;  %v4338_v36 = vpack.c.bf16 %v205_v3, %v205_v3  ;;  %v672_v54 = vld [vmem:[#allocation2 + $0x68] sm:$0xf]  ;;  %vm990_vm2 = vsmask.f32 7424 }
  0x53   : > { %v289_v21 = vor.u32 %v288_v43, %v285_v56  ;;  %v1401_v40 = vsel %vm6737_vm8, %v1396_v18, %v1400_v10  ;;  %v331_v2 = vor.u32 %v330_v61, %v327_v23  ;;  %v207_v18 = vld [vmem:[%s4995_s8 + $0xc0] sm:$0xff]  ;;  %v700_v23 = vld [vmem:[#allocation2 + $0x6c] sm:$0xf]  ;;  %v692_v61 = vshll.u32 %v4339_v37, 16 }
  0x54   : > { %2134 = vmatpush1.bf16.msra.mxu1 %v4767_v26  ;;  %v298_v27 = vor.u32 %v297_v11, %v294_v8  ;;  %v663_v56 = vor.u32 %v662_v33, %v5289_v19  ;;  %v681_v43 = vshrl.u32 %v4338_v36, 16  ;;  %v684_v53 = vshll.u32 %v4338_v36, 16 }
  0x55   : > { %2135 = vmatprep.subr.bf16.mxu1 %v6693_v1  ;;  %v5315_v26 = vld [vmem:[#allocation2 + $0x58] sm:$0xff]   ;;  %v290_v47 = vrot.slane %v289_v21, 4  ;;  %v308_v55 = vsel %vm5100_vm13, %v289_v21, %v307_v14  ;;  %4582 = vmatmul.mubr.bf16.gmra.mxu1 %v1401_v40  ;;  %v332_v4 = vrot.slane %v331_v2, 4  ;;  %v350_v50 = vsel %vm5133_vm3, %v331_v2, %v349_v28  ;;  %v704_v40 = vld [vmem:[#allocation2 + $0x74] sm:$0x1] }
  0x56   : > { %v300_v52 = vrot.slane %v298_v27, 4  ;;  %309 = vst [vmem:[#allocation2 + $0x8] sm:$0xe] %v308_v55  ;;  %v1182_v63 = vrot.slane %v5315_v26, 1  ;;  %351 = vst [vmem:[#allocation2 + $0x10] sm:$0xc] %v350_v50 }
  0x57   : > { %v299_v3 = vsel %vm5112_vm5, %v290_v47, %v298_v27  ;;  %v664_v8 = vrot.slane %v663_v56, 4  ;;  %v683_v11 = vrot.slane %v681_v43, 7  ;;  %v689_v14 = vshrl.u32 %v4339_v37, 16  ;;  %v5339_v33 = vld [vmem:[#allocation2 + $0x60] sm:$0xff]   ;;  %v734_v43 = vld [vmem:[#allocation2 + $0x74] sm:$0xe] }
  0x58   : > { %2136 = vmatpush1.bf16.msra.mxu1 %v4769_v6  ;;  %310 = vst [vmem:[#allocation2 + $0xc] sm:$0xf] %v299_v3  ;;  %v314_v19 = vsel %vm5121_vm4, %v300_v52, %v313_v25  ;;  %v5333_v6 = vsel %vm6738_vm12, %v1180_v48, %v1182_v63  ;;  %v341_v21 = vsel %vm5154_vm7, %v332_v4, %v5038_v42  ;;  %v4775_v42 = vld [vmem:[%s6685_s1] sm:$0xff]   ;;  %v1019_v2 = vshrl.u32 %v5128_v45, 16  ;;  %v208_v52 = vld [vmem:[%s4995_s8 + $0xc8] sm:$0xff]  ;;  %vm6739_vm12 = vmmov %vm6737_vm8 }
  0x59   : > { %2137 = vmatprep.subr.bf16.mxu1 %v6693_v1  ;;  %315 = vst [vmem:[#allocation2 + $0x10] sm:$0x3] %v314_v19  ;;  %v4340_v27 = vpack.c.bf16 %v207_v18, %v207_v18  ;;  %v1404_v28 = vrot.slane %v5333_v6, 1  ;;  %352 = vst [vmem:[#allocation2 + $0x14] sm:$0xf] %v341_v21  ;;  %v673_v25 = vsel %vm5054_vm0, %v664_v8, %v672_v54  ;;  %v687_v48 = vrot.slane %v683_v11, 4 }
  0x5a   : > { %v686_v36 = vor.u32 %v684_v53, %v683_v11  ;;  %674 = vst [vmem:[#allocation2 + $0x68] sm:$0xf] %v673_v25  ;;  %v691_v37 = vrot.slane %v689_v14, 7  ;;  %v1184_v54 = vrot.slane %v5339_v33, 1  ;;  %v1023_v53 = vshll.u32 %v5140_v57, 16  ;;  %v4780_v25 = vld [vmem:[%s6685_s1 + $0x78] sm:$0xff]  }
  0x5b   : > { %v713_v47 = vshrl.u32 %v4340_v27, 16  ;;  %v716_v55 = vshll.u32 %v4340_v27, 16  ;;  %v1405_v56 = vsel %vm6737_vm8, %v1400_v10, %v1404_v28  ;;  %v1021_v8 = vor.u32 %v1019_v2, %v5278_v15 }
  0x5c   : > { %2138 = vmatpush1.bf16.msra.mxu1 %v4773_v46  ;;  %v701_v46 = vsel %vm5072_vm6, %v686_v36, %v700_v23  ;;  %4585 = vmatprep.mubr.bf16.mxu1 %v1405_v56  ;;  %v694_v3 = vor.u32 %v692_v61, %v691_v37  ;;  %v696_v4 = vrot.slane %v691_v37, 4  ;;  %v5359_v10 = vsel %vm6739_vm12, %v1182_v63, %v1184_v54  ;;  %vm6741_vm12 = vmmov %vm6737_vm8 }
  0x5d   : > { %2139 = vmatprep.subr.bf16.mxu1 %v6693_v1  ;;  %v1264_v18 = vld [vmem:[#allocation2 + $0x8] sm:$0xe]  ;;  %702 = vst [vmem:[#allocation2 + $0x6c] sm:$0xf] %v701_v46  ;;  %v715_v50 = vrot.slane %v713_v47, 6  ;;  %v718_v19 = vrot.slane %v716_v55, 7  ;;  %v4341_v14 = vpack.c.bf16 %v208_v52, %v208_v52 }
  0x5e   : > { %v5362_v11 = vrot.slane %v1023_v53, 1  ;;  %v1408_v21 = vrot.slane %v5359_v10, 1  ;;  %v695_v61 = vsel %vm5067_vm1, %v687_v48, %v694_v3  ;;  %v705_v27 = vsel %vm5085_vm9, %v696_v4, %v704_v40  ;;  %v209_v48 = vld [vmem:[%s4995_s8 + $0xd0] sm:$0xff]  ;;  %v210_v40 = vld [vmem:[%s4995_s8 + $0xd8] sm:$0xff]  ;;  %v211_v53 = vld [vmem:[%s4995_s8 + $0xe0] sm:$0xff] }
  0x5f   : > { %v5365_v23 = vld [vmem:[#allocation2 + $0xc] sm:$0xf]  ;;  %v719_v63 = vor.u32 %v718_v19, %v715_v50  ;;  %703 = vst [vmem:[#allocation2 + $0x70] sm:$0xf] %v695_v61  ;;  %706 = vst [vmem:[#allocation2 + $0x74] sm:$0x1] %v705_v27  ;;  %v4342_v27 = vpack.c.bf16 %v209_v48, %v209_v48 }
  0x60   : > { %2140 = vmatpush1.bf16.msra.mxu1 %v4775_v42  ;;  %v4086_v36 = vcombine.low %v1264_v18, %v5365_v23  ;;  %v5378_v42 = vsel %vm990_vm2, %v1021_v8, %v5362_v11  ;;  %v722_v37 = vshrl.u32 %v4341_v14, 16  ;;  %v725_v47 = vshll.u32 %v4341_v14, 16  ;;  %v5385_v2 = vld [vmem:[#allocation2 + $0x10] sm:$0xff]  }
  0x61   : > { %2141 = vmatprep.subr.bf16.mxu1 %v6693_v1  ;;  %v1409_v55 = vsel %vm6737_vm8, %v1404_v28, %v1408_v21  ;;  %v735_v52 = vsel %vm5100_vm13, %v719_v63, %v734_v43  ;;  %v6692_v56 = vrot.slane %v5378_v42, 1  ;;  %v720_v46 = vrot.slane %v719_v63, 4  ;;  %vm6740_vm13 = vmmov %vm6737_vm8 }
  0x62   : > { %4586 = vmatmul.mubr.bf16.gmra.mxu1 %v1409_v55  ;;  %v1285_v18 = vshrl.u32 %v4086_v36, 16  ;;  %v1287_v3 = vshll.u32 %v4086_v36, 16  ;;  %v1366_v4 = vrot.slane %v4086_v36, 1  ;;  %736 = vst [vmem:[#allocation2 + $0x74] sm:$0xe] %v735_v52  ;;  %v724_v50 = vrot.slane %v722_v37, 6 }
  0x63   : > { %v1007_v19 = vshll.u32 %v5385_v2, 16  ;;  %v1011_v8 = vshrl.u32 %v5385_v2, 16  ;;  %v5394_v28 = vrot.slane %v5385_v2, 1  ;;  %v727_v43 = vrot.slane %v725_v47, 7 }
  0x64   : > { %2142 = vmatpush2.bf16.msra.mxu1 %v4780_v25  ;;  %v1289_v14 = vrot.slane %v1287_v3, 1  ;;  %v5399_v61 = vld [vmem:[#allocation2 + $0x68] sm:$0xff]   ;;  %v4343_v63 = vpack.c.bf16 %v210_v40, %v210_v40  ;;  %v5406_v52 = vpack.c.bf16 %v211_v53, %v211_v53  ;;  %v738_v3 = vld [vmem:[#allocation2 + $0x7c] sm:$0x3]  ;;  %v747_v48 = vshrl.u32 %v4342_v27, 16 }
  0x65   : > { %2143 = vmatprep.subr.bf16.mxu1 %v6693_v1  ;;  %v5402_v36 = vrot.slane %v1007_v19, 1  ;;  %v1367_v37 = vsel %vm6740_vm13, %v1366_v4, %v5394_v28  ;;  %v728_v55 = vor.u32 %v727_v43, %v724_v50  ;;  %v1186_v22 = vrot.slane %v5399_v61, 1 }
  0x66   : > { %v1290_v25 = vor.u32 %v1289_v14, %v1285_v18  ;;  %v5413_v47 = vsel %vm6741_vm12, %v5394_v28, %v1166_v58  ;;  %v750_v53 = vshll.u32 %v4342_v27, 16  ;;  %v4784_v18 = vld [vmem:[%s6685_s1 + $0x68] sm:$0xff]   ;;  %v749_v19 = vrot.slane %v747_v48, 5  ;;  %v768_v27 = vld [vmem:[#allocation2 + $0x7c] sm:$0xc] }
  0x67   : > { %v1013_v40 = vor.u32 %v1011_v8, %v5402_v36  ;;  %v729_v4 = vsel %vm5112_vm5, %v720_v46, %v728_v55  ;;  %v730_v50 = vrot.slane %v728_v55, 4  ;;  %v5426_v58 = vsel %vm6737_vm8, %v1184_v54, %v1186_v22  ;;  %vm6742_vm5 = vmmov %vm6737_vm8 }
  0x68   : > { %2144 = vmatpush2.bf16.msra.mxu1 %v4781_v20  ;;  %v1291_v45 = vsel %vm990_vm2, %v1290_v25, %v5402_v36  ;;  %737 = vst [vmem:[#allocation2 + $0x78] sm:$0xf] %v729_v4  ;;  %v756_v8 = vshrl.u32 %v4343_v63, 16  ;;  %v1412_v20 = vrot.slane %v5426_v58, 1  ;;  %v752_v55 = vrot.slane %v750_v53, 6 }
  0x69   : > { %2145 = vmatprep.subr.bf16.mxu1 %v6693_v1  ;;  %v5431_v29 = vsel %vm990_vm2, %v1013_v40, %v5278_v15  ;;  %v1368_v46 = vrot.slane %v1291_v45, 1  ;;  %v5434_v43 = vld [vmem:[#allocation2 + $0x70] sm:$0xff]   ;;  %v739_v14 = vsel %vm5121_vm4, %v730_v50, %v738_v3  ;;  %v759_v48 = vshll.u32 %v4343_v63, 16  ;;  %vm6743_vm4 = vmmov %vm6742_vm5  ;;  %v802_v45 = vld [vmem:[#allocation2 + $0x84] sm:$0x8] }
  0x6a   : > { %v1369_v54 = vrot.slane %v5431_v29, 1  ;;  %740 = vst [vmem:[#allocation2 + $0x7c] sm:$0x3] %v739_v14  ;;  %v758_v25 = vrot.slane %v756_v8, 5  ;;  %v1413_v15 = vsel %vm6742_vm5, %v1408_v21, %v1412_v20  ;;  %v1188_v40 = vrot.slane %v5434_v43, 1  ;;  %vm6744_vm13 = vmmov %vm6743_vm4  ;;  %v4785_v21 = vld [vmem:[%s6685_s1 + $0x60] sm:$0xff]  }
  0x6b   : > { %v781_v4 = vshll.u32 %v5406_v52, 16  ;;  %v1027_v35 = vshrl.u32 %v5140_v57, 16  ;;  %4589 = vmatprep.mubr.bf16.mxu1 %v1413_v15  ;;  %v753_v50 = vor.u32 %v752_v55, %v749_v19  ;;  %v761_v53 = vrot.slane %v759_v48, 6  ;;  %vm6745_vm12 = vmmov %vm6743_vm4  ;;  %v772_v8 = vld [vmem:[#allocation2 + $0x84] sm:$0x7]  ;;  %v214_v55 = vld [vmem:[%s4995_s8 + $0xf8] sm:$0xff] }
  0x6c   : > { %2146 = vmatpush2.bf16.msra.mxu1 %v4784_v18  ;;  %v1370_v3 = vsel %vm6743_vm4, %v1368_v46, %v1369_v54  ;;  %v1375_v63 = vsel %vm6744_vm13, %v1369_v54, %v6692_v56  ;;  %v212_v18 = vld [vmem:[%s4995_s8 + $0xe8] sm:$0xff]  ;;  %v5457_v57 = vsel %vm6745_vm12, %v1186_v22, %v1188_v40  ;;  %v1031_v19 = vshll.u32 %v5158_v16, 16  ;;  %v213_v54 = vld [vmem:[%s4995_s8 + $0xf0] sm:$0xff]  ;;  %v4852_v22 = vld [vmem:[%s6685_s1 + $0x178] sm:$0xff]  }
  0x6d   : > { %2147 = vmatprep.subr.bf16.mxu1 %v6693_v1  ;;  %1659 = vmatprep.mubr.bf16.mxu0 %v1370_v3  ;;  %v783_v46 = vrot.slane %v781_v4, 5  ;;  %v1029_v14 = vor.u32 %v1027_v35, %v5362_v11  ;;  %v1416_v48 = vrot.slane %v5457_v57, 1  ;;  %v769_v15 = vsel %vm5133_vm3, %v753_v50, %v768_v27  ;;  %vm6746_vm8 = vmmov %vm6743_vm4 }
  0x6e   : > { %1660 = vmatmul.mubr.bf16.vlgmr.msra.gmra.mxu0 %v1367_v37  ;;  %v754_v3 = vrot.slane %v753_v50, 4  ;;  %v762_v56 = vor.u32 %v761_v53, %v758_v25  ;;  %770 = vst [vmem:[#allocation2 + $0x7c] sm:$0xc] %v769_v15  ;;  %v1033_v4 = vrot.slane %v1031_v19, 1  ;;  %v4345_v35 = vpack.c.bf16 %v212_v18, %v212_v18 }
  0x6f   : > { %4554 = vmatpush3.bf16.msra.mxu0 %v4852_v22  ;;  %1667 = vmatprep.mubr.bf16.mxu0 %v1375_v63  ;;  %v803_v11 = vsel %vm5027_vm10, %v783_v46, %v802_v45  ;;  %v784_v37 = vshrl.u32 %v5406_v52, 16  ;;  %v1417_v49 = vsel %vm6746_vm8, %v1412_v20, %v1416_v48  ;;  %v4346_v50 = vpack.c.bf16 %v213_v54, %v213_v54  ;;  %v4788_v52 = vld [vmem:[%s6685_s1 + $0x58] sm:$0xff]   ;;  %v834_v22 = vld [vmem:[#allocation2 + $0x90] sm:$0xf]  ;;  %vm6748_vm10 = vmmov %vm6743_vm4 }
  0x70   : > { %v763_v27 = vsel %vm5154_vm7, %v754_v3, %v762_v56  ;;  %v764_v25 = vrot.slane %v762_v56, 4  ;;  %804 = vst [vmem:[#allocation2 + $0x84] sm:$0x8] %v803_v11  ;;  %2148 = vmatpush2.bf16.msra.mxu1 %v4785_v21  ;;  %4555 = vmatprep.subr.bf16.mxu0 %v4853_v38  ;;  %v5484_v20 = vsel %vm990_vm2, %v1029_v14, %v1033_v4  ;;  %v790_v63 = vshll.u32 %v4345_v35, 16 }
  0x71   : > { %4590 = vmatmul.mubr.bf16.gmra.mxu1 %v1417_v49  ;;  %771 = vst [vmem:[#allocation2 + $0x80] sm:$0xf] %v763_v27  ;;  %v786_v12 = vrot.slane %v784_v37, 4  ;;  %v794_v56 = vshrl.u32 %v4345_v35, 16  ;;  %2149 = vmatprep.subr.bf16.mxu1 %v6693_v1  ;;  %v1378_v45 = vrot.slane %v5484_v20, 1  ;;  %v4347_v21 = vpack.c.bf16 %v214_v55, %v214_v55  ;;  %v4854_v55 = vld [vmem:[%s6685_s1 + $0x168] sm:$0xff]  }
  0x72   : > { %v773_v53 = vsel %vm5033_vm11, %v764_v25, %v772_v8  ;;  %v815_v18 = vshrl.u32 %v4346_v50, 16  ;;  %v792_v54 = vrot.slane %v790_v63, 5  ;;  %v818_v3 = vshll.u32 %v4346_v50, 16  ;;  %v806_v35 = vld [vmem:[#allocation2 + $0x8c] sm:$0xf]  ;;  %vm6749_vm11 = vmmov %vm6743_vm4 }
  0x73   : > { %774 = vst [vmem:[#allocation2 + $0x84] sm:$0x7] %v773_v53  ;;  %v787_v19 = vor.u32 %v786_v12, %v783_v46  ;;  %v796_v15 = vrot.slane %v794_v56, 4  ;;  %4556 = vmatpush3.bf16.msra.mxu0 %v4853_v38  ;;  %v6747_v14 = vrot.slane %v5378_v42, 1  ;;  %v823_v8 = vshrl.u32 %v4347_v21, 16  ;;  %v4789_v46 = vld [vmem:[%s6685_s1 + $0x50] sm:$0xff]  }
  0x74   : > { %v817_v39 = vrot.slane %v815_v18, 7  ;;  %v826_v37 = vshll.u32 %v4347_v21, 16  ;;  %2150 = vmatpush2.bf16.msra.mxu1 %v4788_v52  ;;  %4557 = vmatprep.subr.bf16.mxu0 %v4854_v55  ;;  %v1035_v25 = vshrl.u32 %v5158_v16, 16  ;;  %v1039_v50 = vshll.u32 %v5192_v60, 16  ;;  %v838_v38 = vld [vmem:[#allocation2 + $0x98] sm:$0x1] }
  0x75   : > { %v1379_v11 = vsel %vm6748_vm10, %v6747_v14, %v1378_v45  ;;  %v788_v49 = vrot.slane %v787_v19, 4  ;;  %v797_v27 = vor.u32 %v796_v15, %v792_v54  ;;  %2151 = vmatprep.subr.bf16.mxu1 %v6693_v1  ;;  %v5505_v52 = vld [vmem:[#allocation2 + $0x78] sm:$0xff]   ;;  %v825_v56 = vrot.slane %v823_v8, 7  ;;  %v4791_v53 = vld [vmem:[%s6685_s1 + $0x48] sm:$0xff]  }
  0x76   : > { %1668 = vmatmul.mubr.bf16.gmra.mxu0 %v5413_v47  ;;  %v820_v12 = vor.u32 %v818_v3, %v817_v39  ;;  %v821_v63 = vrot.slane %v817_v39, 4  ;;  %v1043_v21 = vshrl.u32 %v5192_v60, 16  ;;  %v1037_v19 = vor.u32 %v1035_v25, %v1033_v4  ;;  %v4855_v60 = vld [vmem:[%s6685_s1 + $0x160] sm:$0xff]  }
  0x77   : > { %1675 = vmatprep.mubr.bf16.mxu0 %v1379_v11  ;;  %v793_v16 = vsel %vm5042_vm14, %v788_v49, %v792_v54  ;;  %v798_v18 = vrot.slane %v797_v27, 4  ;;  %v1041_v15 = vrot.slane %v1039_v50, 1  ;;  %4558 = vmatpush3.bf16.msra.mxu0 %v4854_v55  ;;  %v1190_v14 = vrot.slane %v5505_v52, 1  ;;  %v5538_v55 = vld [vmem:[#allocation2 + $0x4] sm:$0xf]  ;;  %vm6750_vm14 = vmmov %vm6743_vm4 }
  0x78   : > { %805 = vst [vmem:[#allocation2 + $0x88] sm:$0xf] %v793_v16  ;;  %v828_v3 = vor.u32 %v826_v37, %v825_v56  ;;  %v835_v39 = vsel %vm5072_vm6, %v820_v12, %v834_v22  ;;  %2152 = vmatpush2.bf16.msra.mxu1 %v4789_v46  ;;  %v830_v8 = vrot.slane %v825_v56, 4  ;;  %4559 = vmatprep.subr.bf16.mxu0 %v4855_v60  ;;  %v1047_v0 = vshll.u32 %v5210_v32, 16  ;;  %v841_v46 = vld [vmem:[#allocation2] sm:$0xf] }
  0x79   : > { %v807_v44 = vsel %vm5054_vm0, %v798_v18, %v806_v35  ;;  %836 = vst [vmem:[#allocation2 + $0x90] sm:$0xf] %v835_v39  ;;  %v5522_v4 = vsel %vm990_vm2, %v1037_v19, %v1041_v15  ;;  %2153 = vmatprep.subr.bf16.mxu1 %v6693_v1  ;;  %v1045_v54 = vor.u32 %v1043_v21, %v1041_v15  ;;  %v1051_v25 = vshrl.u32 %v5210_v32, 16  ;;  %vm6751_vm0 = vmmov %vm6743_vm4  ;;  %v843_v56 = vld [vmem:[#allocation2 + $0x8] sm:$0xf]  ;;  %v4857_v18 = vld [vmem:[%s6685_s1 + $0x150] sm:$0xff]  }
  0x7a   : > { %v5529_v22 = vsel %vm6749_vm11, %v1188_v40, %v1190_v14  ;;  %v5531_v11 = vld [vmem:[#allocation2 + $0x80] sm:$0xff]   ;;  %808 = vst [vmem:[#allocation2 + $0x8c] sm:$0xf] %v807_v44  ;;  %v829_v51 = vsel %vm5067_vm1, %v821_v63, %v828_v3  ;;  %v1382_v35 = vrot.slane %v5522_v4, 1  ;;  %v839_v37 = vsel %vm5085_vm9, %v830_v8, %v838_v38  ;;  %v4856_v38 = vld [vmem:[%s6685_s1 + $0x158] sm:$0xff]   ;;  %vm6752_vm1 = vmmov %vm6751_vm0 }
  0x7b   : > { %v1420_v49 = vrot.slane %v5529_v22, 1  ;;  %837 = vst [vmem:[#allocation2 + $0x94] sm:$0xf] %v829_v51  ;;  %840 = vst [vmem:[#allocation2 + $0x98] sm:$0x1] %v839_v37  ;;  %v1049_v40 = vrot.slane %v1047_v0, 1  ;;  %4560 = vmatpush3.bf16.msra.mxu0 %v4855_v60  ;;  %v5579_v3 = vcombine.low %v843_v56, %v5365_v23 }
  0x7c   : > { %v1192_v27 = vrot.slane %v5531_v11, 1  ;;  %v1383_v59 = vsel %vm6750_vm14, %v1378_v45, %v1382_v35  ;;  %2154 = vmatpush2.bf16.msra.mxu1 %v4791_v53  ;;  %v1055_v50 = vshll.u32 %v5237_v7, 16  ;;  %4561 = vmatprep.subr.bf16.mxu0 %v4856_v38  ;;  %v5566_v53 = vcombine.low %v841_v46, %v5538_v55  ;;  %vm6753_vm6 = vmmov %vm6751_vm0  ;;  %v4858_v51 = vld [vmem:[%s6685_s1 + $0x148] sm:$0xff]  }
  0x7d   : > { %v1421_v12 = vsel %vm6751_vm0, %v1416_v48, %v1420_v49  ;;  %2155 = vmatprep.subr.bf16.mxu1 %v6693_v1  ;;  %v5558_v45 = vsel %vm990_vm2, %v1045_v54, %v1049_v40  ;;  %v1053_v21 = vor.u32 %v1051_v25, %v1049_v40  ;;  %vm6755_vm9 = vmmov %vm6751_vm0  ;;  %v1063_v40 = vshll.u32 %v5253_v41, 16 }
  0x7e   : > { %4593 = vmatprep.mubr.bf16.mxu1 %v1421_v12  ;;  %v5561_v63 = vsel %vm6752_vm1, %v1190_v14, %v1192_v27  ;;  %1676 = vmatmul.mubr.bf16.gmra.mxu0 %v5163_v17  ;;  %v1386_v48 = vrot.slane %v5558_v45, 1  ;;  %v1057_v16 = vrot.slane %v1055_v50, 1  ;;  %v994_v60 = vshll.u32 %v5566_v53, 16  ;;  %vm6756_vm3 = vmmov %vm6751_vm0 }
  0x7f   : > { %v1424_v32 = vrot.slane %v5561_v63, 1  ;;  %1683 = vmatprep.mubr.bf16.mxu0 %v1383_v59  ;;  %4562 = vmatpush3.bf16.msra.mxu0 %v4856_v38  ;;  %vm6757_vm7 = vmmov %vm6751_vm0  ;;  %v1071_v17 = vshll.u32 %v5287_v30, 16 }
  0x80   : > { %2156 = vmatpush2.bf16.msra.mxu1 %v4792_v9  ;;  %4563 = vmatprep.subr.bf16.mxu0 %v4857_v18  ;;  %v1387_v54 = vsel %vm6755_vm9, %v1382_v35, %v1386_v48  ;;  %v5592_v0 = vsel %vm990_vm2, %v1053_v21, %v1057_v16  ;;  %v992_v9 = vshrl.u32 %v5566_v53, 16  ;;  %vm6758_vm5 = vmmov %vm6751_vm0  ;;  %v996_v50 = vrot.slane %v994_v60, 1  ;;  %v4859_v21 = vld [vmem:[%s6685_s1 + $0x140] sm:$0xff]  }
  0x81   : > { %v1425_v19 = vsel %vm6753_vm6, %v1420_v49, %v1424_v32  ;;  %v5573_v15 = vld [vmem:[#allocation2 + $0x88] sm:$0xff]   ;;  %3164 = vmatprep.subr.bf16.mxu1 %v6693_v1  ;;  %v1059_v49 = vshrl.u32 %v5237_v7, 16  ;;  %v1390_v38 = vrot.slane %v5592_v0, 1  ;;  %vm6759_vm4 = vmmov %vm6751_vm0 }
  0x82   : > { %4594 = vmatmul.mubr.bf16.gmra.mxu1 %v1425_v19  ;;  %v5576_v14 = vld [vmem:[#allocation2 + $0x90] sm:$0xff]   ;;  %v5582_v39 = vrot.slane %v5573_v15, 1  ;;  %v5584_v8 = vld [vmem:[#allocation2 + $0x98] ss:$0 sps:$4 sm:$0x33]   ;;  %vm6760_vm13 = vmmov %vm6751_vm0 }
  0x83   : > { %4564 = vmatpush3.bf16.msra.mxu0 %v4857_v18  ;;  %v5588_v44 = vrot.slane %v5576_v14, 1  ;;  %v1315_v46 = vrot.slane %v5584_v8, 1  ;;  %v5624_v18 = vld [vmem:[%s6685_s1 + $0xb8] sm:$0xff]   ;;  %v1061_v60 = vor.u32 %v1059_v49, %v1057_v16  ;;  %vm6761_vm12 = vmmov %vm6751_vm0  ;;  %v1003_v49 = vshrl.u32 %v5579_v3, 16 }
  0x84   : > { %6754 = vst [vmem:[#allocation5_spill] sm:$0xff] %v5582_v39  ;;  %4565 = vmatprep.subr.bf16.mxu0 %v4858_v51  ;;  %v5599_v37 = vsel %vm6756_vm3, %v1192_v27, %v5582_v39  ;;  %v999_v27 = vshll.u32 %v5579_v3, 16  ;;  %vm6762_vm8 = vmmov %vm6751_vm0 }
  0x85   : > { %v1428_v35 = vrot.slane %v5599_v37, 1  ;;  %v5608_v59 = vsel %vm6757_vm7, %v5582_v39, %v5588_v44  ;;  %v1316_v7 = vsel %vm6758_vm5, %v5588_v44, %v1315_v46  ;;  %v1391_v39 = vsel %vm6762_vm8, %v1386_v48, %v1390_v38  ;;  %vm6763_vm10 = vmmov %vm6751_vm0 }
  0x86   : > { %1684 = vmatmul.mubr.bf16.gmra.mxu0 %v5177_v34  ;;  %v1432_v25 = vrot.slane %v5608_v59, 1  ;;  %v1436_v56 = vrot.slane %v1316_v7, 1  ;;  %v997_v7 = vor.u32 %v996_v50, %v992_v9  ;;  %v1001_v1 = vrot.slane %v999_v27, 1  ;;  %v1269_v27 = vld [vmem:[#allocation2 + $0x8] sm:$0xc]  ;;  %vm6764_vm11 = vmmov %vm6751_vm0 }
  0x87   : > { %1691 = vmatprep.mubr.bf16.mxu0 %v1387_v54  ;;  %4566 = vmatpush3.bf16.msra.mxu0 %v4858_v51  ;;  %v1429_v12 = vsel %vm6759_vm4, %v1424_v32, %v1428_v35  ;;  %v1065_v54 = vrot.slane %v1063_v40, 1  ;;  %v1442_v32 = vrot.slane %v1315_v46, 1  ;;  %v1067_v34 = vshrl.u32 %v5253_v41, 16  ;;  %vm6765_vm14 = vmmov %vm6751_vm0 }
  0x88   : > { %4567 = vmatprep.subr.bf16.mxu0 %v4859_v21  ;;  %4597 = vmatprep.mubr.bf16.mxu1 %v1429_v12  ;;  %v1433_v19 = vsel %vm6760_vm13, %v1428_v35, %v1432_v25  ;;  %v1437_v51 = vsel %vm6761_vm12, %v1432_v25, %v1436_v56  ;;  %v1002_v46 = vsel %vm990_vm2, %v997_v7, %v1001_v1  ;;  %v1073_v41 = vrot.slane %v1071_v17, 1  ;;  %vm6767_vm1 = vmmov %vm6751_vm0 }
  0x89   : > { %v5633_v35 = vsel %vm990_vm2, %v1061_v60, %v1065_v54  ;;  %v1443_v16 = vsel %vm6763_vm10, %v1436_v56, %v1442_v32  ;;  %v1069_v40 = vor.u32 %v1067_v34, %v1065_v54  ;;  %v1127_v9 = vshll.u32 %v5573_v15, 16  ;;  %vm6768_vm6 = vmmov %vm6751_vm0 }
  0x8a   : > { %4598 = vmatmul.mubr.bf16.gmra.mxu1 %v1433_v19  ;;  %v1394_v48 = vrot.slane %v5633_v35, 1  ;;  %v1075_v25 = vshrl.u32 %v5287_v30, 16  ;;  %v1005_v12 = vor.u32 %v1003_v49, %v1001_v1  ;;  %v1131_v56 = vshrl.u32 %v5573_v15, 16  ;;  %vm6769_vm9 = vmmov %vm6751_vm0 }
  0x8b   : > { %4601 = vmatprep.mubr.bf16.mxu1 %v1437_v51  ;;  %4568 = vmatpush3.bf16.msra.mxu0 %v4859_v21  ;;  %v5642_v50 = vrot.slane %v1127_v9, 1  ;;  %v5648_v19 = vsel %vm990_vm2, %v1069_v40, %v1073_v41  ;;  %v1079_v17 = vshll.u32 %v5315_v26, 16  ;;  %v4090_v34 = vcombine.low %v1269_v27, %v5365_v23  ;;  %vm6770_vm3 = vmmov %vm6751_vm0 }
  0x8c   : > { %4605 = vmatprep.subr.bf16.mxu0 %v5624_v18  ;;  %v1395_v21 = vsel %vm6764_vm11, %v1390_v38, %v1394_v48  ;;  %v1297_v54 = vshrl.u32 %v5576_v14, 16  ;;  %v1301_v1 = vshll.u32 %v5584_v8, 16  ;;  %v1305_v51 = vshrl.u32 %v5584_v8, 16  ;;  %v4795_v38 = vld [vmem:[%s6685_s1 + $0x1b8] sm:$0xff]   ;;  %vm6771_vm7 = vmmov %vm6751_vm0 }
  0x8d   : > { %v5653_v60 = vor.u32 %v1131_v56, %v5642_v50  ;;  %v1010_v32 = vsel %vm990_vm2, %v1005_v12, %v5402_v36  ;;  %v1398_v23 = vrot.slane %v5648_v19, 1  ;;  %v1077_v7 = vor.u32 %v1075_v25, %v1073_v41  ;;  %v4796_v36 = vld [vmem:[%s6685_s1 + $0x1b0] sm:$0xff]   ;;  %vm6772_vm5 = vmmov %vm6751_vm0 }
  0x8e   : > { %1692 = vmatmul.mubr.bf16.gmra.mxu0 %v5207_v24  ;;  %v1303_v49 = vrot.slane %v1301_v1, 1  ;;  %v1311_v40 = vrot.slane %v4090_v34, 1  ;;  %v1087_v41 = vshll.u32 %v5339_v33, 16  ;;  %v6766_v56 = vmov 0   ;;  %vm6773_vm4 = vmmov %vm6751_vm0 }
  0x8f   : > { %1699 = vmatprep.mubr.bf16.mxu0 %v1391_v39  ;;  %v1293_v39 = vshll.u32 %v5576_v14, 16  ;;  %vm6774_vm13 = vmmov %vm6751_vm0 }
  0x90   : > { %v1307_v9 = vor.u32 %v1305_v51, %v1303_v49  ;;  %v5678_v12 = vsel %vm6765_vm14, %v1311_v40, %v5394_v28  ;;  %v878_v51 = vld [vmem:[#allocation2] sm:$0xe]  ;;  %vm6775_vm12 = vmmov %vm6751_vm0 }
  0x91   : > { %v1295_v30 = vrot.slane %v1293_v39, 1  ;;  %vm6776_vm8 = vmmov %vm6751_vm0 }
  0x92   : > { %4602 = vmatmul.mubr.bf16.gmra.mxu1 %v1443_v16  ;;  %vm6777_vm10 = vmmov %vm6751_vm0 }
  0x93   : > { %2157 = vmatprep.mubr.bf16.mxu1 %v1002_v46  ;;  %v1299_v16 = vor.u32 %v1297_v54, %v1295_v30  ;;  %v1081_v46 = vrot.slane %v1079_v17, 1  ;;  %v5667_v14 = vsel %vm990_vm2, %v5653_v60, %v1295_v30  ;;  %v1440_v17 = vrot.slane %v1307_v9, 1  ;;  %vm6778_vm11 = vmmov %vm6751_vm0 }
  0x94   : > { %v1430_v27 = vrot.slane %v5667_v14, 1  ;;  %vm6779_vm14 = vmmov %vm6751_vm0 }
  0x95   : > { %v1304_v8 = vsel %vm990_vm2, %v1299_v16, %v1303_v49  ;;  %v5683_v39 = vsel %vm990_vm2, %v1077_v7, %v1081_v46  ;;  %v4798_v7 = vld [vmem:[%s6685_s1 + $0x1a0] sm:$0xff]   ;;  %v1091_v16 = vshrl.u32 %v5339_v33, 16  ;;  %v1095_v49 = vshll.u32 %v5399_v61, 16  ;;  %v4799_v33 = vld [vmem:[%s6685_s1 + $0x198] sm:$0xff]  }
  0x96   : > { %1700 = vmatmul.mubr.bf16.gmra.mxu0 %v5230_v62  ;;  %v1434_v25 = vrot.slane %v1304_v8, 1  ;;  %v1402_v54 = vrot.slane %v5683_v39, 1 }
  0x97   : > { %1707 = vmatprep.mubr.bf16.mxu0 %v1395_v21  ;;  %v1083_v21 = vshrl.u32 %v5315_v26, 16  ;;  %v1089_v26 = vrot.slane %v1087_v41, 1  ;;  %v1097_v8 = vrot.slane %v1095_v49, 1  ;;  %v1103_v41 = vshll.u32 %v5434_v43, 16 }
  0x98   : > { %v5689_v34 = vsel %vm6767_vm1, %v1430_v27, %v1434_v25  ;;  %v5693_v30 = vsel %vm6768_vm6, %v1434_v25, %v1440_v17  ;;  %v4860_v17 = vld [vmem:[#allocation2 + $0x18] sm:$0xff]   ;;  %vm2854_vm1 = vcmask 1045504   ;;  %vm6780_vm6 = vmmov %vm6751_vm0 }
  0x99   : > { %v1085_v1 = vor.u32 %v1083_v21, %v1081_v46  ;;  %v1403_v46 = vsel %vm6769_vm9, %v1398_v23, %v1402_v54  ;;  %v1093_v9 = vor.u32 %v1091_v16, %v1089_v26  ;;  %v1105_v21 = vrot.slane %v1103_v41, 1  ;;  %v4861_v16 = vld [vmem:[#allocation2 + $0x20] sm:$0xff]   ;;  %vm6781_vm9 = vmmov %vm6751_vm0 }
  0x9a   : > { %2158 = vmatmul.mubr.bf16.vlgmr.msra.gmra.mxu1 %v5566_v53  ;;  %v1399_v53 = vsel %vm6751_vm0, %v1394_v48, %v1398_v23  ;;  %v4797_v48 = vld [vmem:[%s6685_s1 + $0x1a8] sm:$0xff]  }
  0x9b   : > { %3165 = vmatpush1.bf16.msra.mxu1 %v4795_v38  ;;  %2165 = vmatprep.mubr.bf16.mxu1 %v1010_v32  ;;  %v4085_v38 = vcombine.low %v878_v51, %v5538_v55  ;;  %v1162_v32 = vrot.slane %v5579_v3, 1  ;;  %v5712_v40 = vsel %vm990_vm2, %v1085_v1, %v1089_v26  ;;  %v1107_v1 = vshrl.u32 %v5434_v43, 16  ;;  %v4804_v43 = vld [vmem:[%s6685_s1 + $0x1f0] sm:$0xff]  }
  0x9c   : > { %3166 = vmatprep.subr.bf16.mxu1 %v6766_v56  ;;  %v1406_v23 = vrot.slane %v5712_v40, 1  ;;  %v1111_v51 = vshll.u32 %v5505_v52, 16 }
  0x9d   : > { %v1161_v55 = vrot.slane %v4085_v38, 1 }
  0x9e   : > { %1708 = vmatmul.mubr.bf16.gmra.mxu0 %v5250_v31  ;;  %v1407_v25 = vsel %vm6772_vm5, %v1402_v54, %v1406_v23  ;;  %vm6801_vm5 = vmmov %vm6751_vm0 }
  0x9f   : > { %3167 = vmatpush1.bf16.msra.mxu1 %v4796_v36  ;;  %1715 = vmatprep.mubr.bf16.mxu0 %v1399_v53  ;;  %v1099_v36 = vshrl.u32 %v5399_v61, 16  ;;  %v5736_v53 = vsel %vm990_vm2, %v1093_v9, %v1097_v8 }
  0xa0   : > { %3168 = vmatprep.subr.bf16.mxu1 %v6766_v56 }
  0xa1   : > { %v1101_v61 = vor.u32 %v1099_v36, %v1097_v8  ;;  %v4807_v36 = vld [vmem:[%s6685_s1 + $0x1e0] sm:$0xff]  }
  0xa2   : > { %2166 = vmatmul.mubr.bf16.gmra.mxu1 %v5579_v3  ;;  %v5723_v3 = vsel %vm6771_vm7, %v1161_v55, %v1162_v32  ;;  %v1115_v55 = vshrl.u32 %v5505_v52, 16  ;;  %vm6799_vm7 = vmmov %vm6751_vm0 }
  0xa3   : > { %2173 = vmatprep.mubr.bf16.mxu1 %v5431_v29  ;;  %3169 = vmatpush1.bf16.msra.mxu1 %v4797_v48  ;;  %v5716_v29 = vsel %vm6770_vm3, %v1162_v32, %v5394_v28  ;;  %v4800_v28 = vld [vmem:[%s6685_s1 + $0x190] sm:$0xff]   ;;  %v4802_v48 = vld [vmem:[%s6685_s1 + $0x180] sm:$0xff]   ;;  %v5752_v26 = vsel %vm990_vm2, %v1101_v61, %v1105_v21  ;;  %v1109_v32 = vor.u32 %v1107_v1, %v1105_v21  ;;  %vm6784_vm3 = vmmov %vm6751_vm0 }
  0xa4   : > { %3170 = vmatprep.subr.bf16.mxu1 %v6766_v56  ;;  %v1414_v38 = vrot.slane %v5752_v26, 1  ;;  %v4863_v21 = vld [vmem:[#allocation2 + $0x30] sm:$0xff]  }
  0xa6   : > { %1716 = vmatmul.mubr.bf16.gmra.mxu0 %v5273_v13 }
  0xa7   : > { %1723 = vmatprep.mubr.bf16.mxu0 %v1403_v46  ;;  %3171 = vmatpush1.bf16.msra.mxu1 %v4798_v7  ;;  %v1113_v7 = vrot.slane %v1111_v51, 1  ;;  %v4864_v51 = vld [vmem:[#allocation2 + $0x38] sm:$0xff]  }
  0xa8   : > { %3172 = vmatprep.subr.bf16.mxu1 %v6766_v56 }
  0xa9   : > { %v5769_v46 = vsel %vm990_vm2, %v1109_v32, %v1113_v7  ;;  %v1117_v8 = vor.u32 %v1115_v55, %v1113_v7  ;;  %v4866_v32 = vld [vmem:[#allocation2 + $0x48] sm:$0xff]   ;;  %v2517_v7 = vld [vmem:[#allocation2 + $0x10] sm:$0x8] }
  0xaa   : > { %2174 = vmatmul.mubr.bf16.gmra.mxu1 %v5385_v2  ;;  %v4801_v2 = vld [vmem:[%s6685_s1 + $0x188] sm:$0xff]   ;;  %v4867_v55 = vld [vmem:[#allocation2 + $0x50] sm:$0xff]  }
  0xab   : > { %2181 = vmatprep.mubr.bf16.mxu1 %v5378_v42  ;;  %3173 = vmatpush1.bf16.msra.mxu1 %v4799_v33  ;;  %v1410_v42 = vrot.slane %v5736_v53, 1  ;;  %v1119_v33 = vshll.u32 %v5531_v11, 16 }
  0xac   : > { %3174 = vmatprep.subr.bf16.mxu1 %v6766_v56 }
  0xad   : > { %v1411_v54 = vsel %vm6773_vm4, %v1406_v23, %v1410_v42  ;;  %v1415_v49 = vsel %vm6774_vm13, %v1410_v42, %v1414_v38  ;;  %v1418_v23 = vrot.slane %v5769_v46, 1  ;;  %v1121_v9 = vrot.slane %v1119_v33, 1  ;;  %vm6802_vm4 = vmmov %vm6751_vm0 }
  0xae   : > { %1724 = vmatmul.mubr.bf16.gmra.mxu0 %v5302_v5  ;;  %v1123_v42 = vshrl.u32 %v5531_v11, 16  ;;  %vm6806_vm13 = vmmov %vm6751_vm0 }
  0xaf   : > { %1731 = vmatprep.mubr.bf16.mxu0 %v1407_v25  ;;  %3175 = vmatpush1.bf16.msra.mxu1 %v4800_v28  ;;  %v4862_v28 = vld [vmem:[#allocation2 + $0x28] sm:$0xff]   ;;  %v1419_v41 = vsel %vm6775_vm12, %v1414_v38, %v1418_v23  ;;  %v5786_v25 = vsel %vm990_vm2, %v1117_v8, %v1121_v9  ;;  %v4865_v38 = vld [vmem:[#allocation2 + $0x40] sm:$0xff]   ;;  %vm6807_vm12 = vmmov %vm6751_vm0 }
  0xb0   : > { %3176 = vmatprep.subr.bf16.mxu1 %v6766_v56  ;;  %v1125_v61 = vor.u32 %v1123_v42, %v1121_v9  ;;  %v1372_v9 = vrot.slane %v5413_v47, 1  ;;  %v4869_v42 = vld [vmem:[#allocation2 + $0x60] sm:$0xff]  }
  0xb2   : > { %2182 = vmatmul.mubr.bf16.gmra.mxu1 %v4860_v17  ;;  %v4814_v17 = vld [vmem:[%s6685_s1 + $0x1d0] sm:$0xff]  }
  0xb3   : > { %2189 = vmatprep.mubr.bf16.mxu1 %v5484_v20  ;;  %3177 = vmatpush1.bf16.msra.mxu1 %v4801_v2  ;;  %v4803_v20 = vld [vmem:[%s6685_s1 + $0x1f8] sm:$0xff]   ;;  %v1422_v2 = vrot.slane %v5786_v25, 1 }
  0xb4   : > { %3178 = vmatprep.subr.bf16.mxu1 %v6766_v56 }
  0xb6   : > { %1732 = vmatmul.mubr.bf16.gmra.mxu0 %v5333_v6 }
  0xb7   : > { %1739 = vmatprep.mubr.bf16.mxu0 %v1411_v54  ;;  %3179 = vmatpush1.bf16.msra.mxu1 %v4802_v48  ;;  %v1423_v48 = vsel %vm6776_vm8, %v1418_v23, %v1422_v2  ;;  %v5803_v54 = vsel %vm990_vm2, %v1125_v61, %v5642_v50  ;;  %v4821_v50 = vld [vmem:[%s6685_s1 + $0x1c0] sm:$0xff]   ;;  %vm6809_vm8 = vmmov %vm6751_vm0 }
  0xb8   : > { %3180 = vmatprep.subr.bf16.mxu1 %v6766_v56  ;;  %v1426_v1 = vrot.slane %v5803_v54, 1  ;;  %v4813_v61 = vld [vmem:[%s6685_s1 + $0xa0] sm:$0xff]  }
  0xba   : > { %2190 = vmatmul.mubr.bf16.gmra.mxu1 %v4861_v16  ;;  %v5826_v16 = vld [vmem:[#allocation2 + $0x18] sm:$0xff]  }
  0xbb   : > { %2197 = vmatprep.mubr.bf16.mxu1 %v5522_v4  ;;  %3181 = vmatpush2.bf16.msra.mxu1 %v4803_v20  ;;  %v4805_v4 = vld [vmem:[%s6685_s1 + $0x1e8] sm:$0xff]   ;;  %v1427_v20 = vsel %vm6777_vm10, %v1422_v2, %v1426_v1  ;;  %vm6810_vm10 = vmmov %vm6751_vm0 }
  0xbc   : > { %3182 = vmatprep.subr.bf16.mxu1 %v6766_v56 }
  0xbe   : > { %1740 = vmatmul.mubr.bf16.gmra.mxu0 %v5359_v10 }
  0xbf   : > { %1747 = vmatprep.mubr.bf16.mxu0 %v1415_v49  ;;  %3183 = vmatpush2.bf16.msra.mxu1 %v4804_v43 }
  0xc0   : > { %3184 = vmatprep.subr.bf16.mxu1 %v6766_v56 }
  0xc2   : > { %2198 = vmatmul.mubr.bf16.gmra.mxu1 %v4862_v28  ;;  %v1371_v28 = vrot.slane %v5678_v12, 1  ;;  %v4811_v12 = vld [vmem:[%s6685_s1 + $0xb0] sm:$0xff]  }
  0xc3   : > { %2205 = vmatprep.mubr.bf16.mxu1 %v5558_v45  ;;  %3185 = vmatpush2.bf16.msra.mxu1 %v4805_v4  ;;  %v4810_v45 = vld [vmem:[%s6685_s1 + $0x1d8] sm:$0xff]  }
  0xc4   : > { %3186 = vmatprep.subr.bf16.mxu1 %v6766_v56 }
  0xc6   : > { %1748 = vmatmul.mubr.bf16.gmra.mxu0 %v5426_v58 }
  0xc7   : > { %1755 = vmatprep.mubr.bf16.mxu0 %v1419_v41  ;;  %3187 = vmatpush2.bf16.msra.mxu1 %v4807_v36  ;;  %v4868_v36 = vld [vmem:[#allocation2 + $0x58] sm:$0xff]  }
  0xc8   : > { %3188 = vmatprep.subr.bf16.mxu1 %v6766_v56 }
  0xca   : > { %2206 = vmatmul.mubr.bf16.gmra.mxu1 %v4863_v21  ;;  %v2479_v21 = vld [vmem:[#allocation2 + $0x10] sm:$0xc] }
  0xcb   : > { %2213 = vmatprep.mubr.bf16.mxu1 %v5592_v0  ;;  %3189 = vmatpush2.bf16.msra.mxu1 %v4810_v45  ;;  %v4817_v0 = vld [vmem:[%s6685_s1 + $0x1c8] sm:$0xff]  }
  0xcc   : > { %3190 = vmatprep.subr.bf16.mxu1 %v6766_v56 }
  0xce   : > { %1756 = vmatmul.mubr.bf16.gmra.mxu0 %v5457_v57 }
  0xcf   : > { %1763 = vmatprep.mubr.bf16.mxu0 %v1423_v48  ;;  %3191 = vmatpush2.bf16.msra.mxu1 %v4814_v17  ;;  %v4815_v17 = vld [vmem:[%s6685_s1 + $0x98] sm:$0xff]  }
  0xd0   : > { %3192 = vmatprep.subr.bf16.mxu1 %v6766_v56 }
  0xd2   : > { %2214 = vmatmul.mubr.bf16.gmra.mxu1 %v4864_v51  ;;  %v5886_v51 = vld [vmem:[#allocation2 + $0x90] ss:$0 sps:$4 sm:$0x11]  }
  0xd3   : > { %2221 = vmatprep.mubr.bf16.mxu1 %v5633_v35  ;;  %3193 = vmatpush2.bf16.msra.mxu1 %v4817_v0  ;;  %v1431_v35 = vsel %vm6778_vm11, %v1426_v1, %v1430_v27  ;;  %v2769_v27 = vrot.slane %v5826_v16, 1  ;;  %v4871_v0 = vld [vmem:[#allocation2 + $0x70] sm:$0xff]   ;;  %vm6812_vm11 = vmmov %vm6751_vm0 }
  0xd4   : > { %3194 = vmatprep.subr.bf16.mxu1 %v6766_v56  ;;  %v2480_v56 = vld [vmem:[#allocation2 + $0x14] sm:$0xf] }
  0xd5   : > { %v4207_v14 = vcombine.low %v2517_v7, %v2480_v56  ;;  %v4816_v1 = vld [vmem:[%s6685_s1 + $0x90] sm:$0xff]  }
  0xd6   : > { %1764 = vmatmul.mubr.bf16.gmra.mxu0 %v5529_v22 }
  0xd7   : > { %1771 = vmatprep.mubr.bf16.mxu0 %v1427_v20  ;;  %3195 = vmatpush2.bf16.msra.mxu1 %v4821_v50  ;;  %v2768_v43 = vrot.slane %v4207_v14, 1 }
  0xd9   : > { %v2770_v33 = vsel %vm6779_vm14, %v2768_v43, %v2769_v27  ;;  %vm6813_vm14 = vmmov %vm6751_vm0 }
  0xda   : > { %2222 = vmatmul.mubr.bf16.gmra.mxu1 %v4865_v38  ;;  %v2861_v4 = vrot.slane %v2770_v33, 2  ;;  %v2622_v38 = vshll.u32 %v5826_v16, 16 }
  0xdb   : > { %2229 = vmatprep.mubr.bf16.mxu1 %v5648_v19  ;;  %v5828_v19 = vld [vmem:[#allocation2 + $0x20] sm:$0xff]  }
  0xdc   : > { %v6700_v49 = vrot.slane %v5828_v19, 1  ;;  %v2624_v43 = vrot.slane %v2622_v38, 1 }
  0xde   : > { %1772 = vmatmul.mubr.bf16.gmra.mxu0 %v5561_v63 }
  0xdf   : > { %1779 = vmatprep.mubr.bf16.mxu0 %v1431_v35 }
  0xe2   : > { %2230 = vmatmul.mubr.bf16.gmra.mxu1 %v4866_v32  ;;  %v1135_v32 = vshll.u32 %v5886_v51, 16 }
  0xe3   : > { %2237 = vmatprep.mubr.bf16.mxu1 %v5683_v39  ;;  %v4806_v39 = vld [vmem:[#allocation2 + $0x98] ss:$0 sps:$4 sm:$0x11]  }
  0xe4   : > { %v1137_v33 = vrot.slane %v1135_v32, 1 }
  0xe6   : > { %1780 = vmatmul.mubr.bf16.gmra.mxu0 %v5599_v37 }
  0xe7   : > { %1787 = vmatprep.mubr.bf16.mxu0 %v5689_v34  ;;  %v5837_v34 = vsel %vm6751_vm0, %v2769_v27, %v6700_v49  ;;  %v2626_v27 = vshrl.u32 %v5826_v16, 16 }
  0xe8   : > { %v6699_v23 = vrot.slane %v5837_v34, 2 }
  0xea   : > { %2238 = vmatmul.mubr.bf16.gmra.mxu1 %v4867_v55  ;;  %v5844_v8 = vsel %vm2854_vm1, %v2861_v4, %v6699_v23  ;;  %v2630_v55 = vshll.u32 %v5828_v19, 16  ;;  %v4820_v4 = vld [vmem:[%s6685_s1 + $0x80] sm:$0xff]  }
  0xeb   : > { %2245 = vmatprep.mubr.bf16.mxu1 %v5712_v40  ;;  %v1438_v40 = vrot.slane %v4806_v39, 1 }
  0xed   : > { %v1439_v41 = vsel %vm6780_vm6, %v5588_v44, %v1438_v40  ;;  %v4812_v44 = vld [vmem:[%s6685_s1 + $0xa8] sm:$0xff]   ;;  %vm6814_vm6 = vmmov %vm6751_vm0 }
  0xee   : > { %1788 = vmatmul.mubr.bf16.gmra.mxu0 %v5608_v59  ;;  %v1373_v59 = vsel %vm6781_vm9, %v1371_v28, %v1372_v9  ;;  %v2632_v28 = vrot.slane %v2630_v55, 1  ;;  %vm6815_vm9 = vmmov %vm6751_vm0 }
  0xef   : > { %1795 = vmatprep.mubr.bf16.mxu0 %v5693_v30  ;;  %v6782_v30 = vld [vmem:[#allocation3_spill] sm:$0xff] }
  0xf0   : > { %v6783_v45 = vrot.slane %v6782_v30, 1 }
  0xf2   : > { %2246 = vmatmul.mubr.bf16.gmra.mxu1 %v4868_v36  ;;  %v1377_v2 = vsel %vm6784_vm3, %v1372_v9, %v6783_v45  ;;  %v2628_v9 = vor.u32 %v2626_v27, %v2624_v43  ;;  %v5910_v36 = vld [vmem:[#allocation2 + $0x28] sm:$0xff]   ;;  %vm6816_vm3 = vmmov %vm6751_vm0 }
  0xf3   : > { %2253 = vmatprep.mubr.bf16.mxu1 %v5736_v53  ;;  %v4870_v53 = vld [vmem:[#allocation2 + $0x68] sm:$0xff]  }
  0xf4   : > { %v2633_v45 = vsel %vm990_vm2, %v2628_v9, %v2632_v28 }
  0xf6   : > { %1796 = vmatmul.mubr.bf16.gmra.mxu0 %v1439_v41 }
  0xf7   : > { %4569 = vmatprep.mubr.bf16.mxu0 %v1373_v59 }
  0xfa   : > { %2254 = vmatmul.mubr.bf16.gmra.mxu1 %v4869_v42 }
  0xfb   : > { %2261 = vmatprep.mubr.bf16.mxu1 %v5752_v26 }
  0xfe   : > { %4570 = vmatmul.mubr.bf16.vlgmr.msra.gmra.mxu0 %v1377_v2  ;;  %v2634_v2 = vshrl.u32 %v5828_v19, 16 }
  0xff   : > { %4606 = vmatpush3.bf16.msra.mxu0 %v5624_v18  ;;  %4621 = vmatprep.mubr.bf16.mxu0 %v5723_v3 }
 0x100   : > { %4607 = vmatprep.subr.bf16.mxu0 %v4811_v12 }
 0x102   : > { %2262 = vmatmul.mubr.bf16.gmra.mxu1 %v4870_v53  ;;  %v2859_v53 = vrot.slane %v2633_v45, 2  ;;  %v4836_v45 = vld [vmem:[%s6685_s1 + $0x210] sm:$0xff]  }
 0x103   : > { %v5865_v26 = vpop.f32.mrf.mxu1  ;;  %2269 = vmatprep.mubr.bf16.mxu1 %v5769_v46  ;;  %4608 = vmatpush3.bf16.msra.mxu0 %v4811_v12  ;;  %v5880_v46 = vcombine.low %v2479_v21, %v2480_v56  ;;  %v2638_v12 = vshll.u32 %v5910_v36, 16  ;;  %v2636_v21 = vor.u32 %v2634_v2, %v2632_v28 }
 0x104   : > { %4609 = vmatprep.subr.bf16.mxu0 %v4812_v44 }
 0x105   : > { %v5871_v18 = vpop.f32.mrf.mxu1  ;;  %v2617_v20 = vshll.u32 %v5880_v46, 16  ;;  %v2615_v7 = vshrl.u32 %v5880_v46, 16 }
 0x107   : > { %v5873_v3 = vpop.f32.mrf.mxu1  ;;  %4610 = vmatpush3.bf16.msra.mxu0 %v4812_v44  ;;  %v2619_v14 = vrot.slane %v2617_v20, 1  ;;  %v4830_v20 = vld [vmem:[%s6685_s1 + $0x228] sm:$0xff]  }
 0x108   : > { %4611 = vmatprep.subr.bf16.mxu0 %v4813_v61 }
 0x109   : > { %v5878_v48 = vpop.f32.mrf.mxu1  ;;  %v2620_v40 = vor.u32 %v2619_v14, %v2615_v7  ;;  %v2856_v7 = vrot.slane %v5826_v16, 2 }
 0x10a   : > { %2270 = vmatmul.mubr.bf16.gmra.mxu1 %v4871_v0  ;;  %v5931_v0 = vld [vmem:[#allocation2 + $0x30] sm:$0xff]  }
 0x10b   : > { %2277 = vmatprep.mubr.bf16.mxu1 %v5786_v25  ;;  %4612 = vmatpush3.bf16.msra.mxu0 %v4813_v61  ;;  %v4818_v25 = vld [vmem:[%s6685_s1 + $0x88] sm:$0xff]   ;;  %v2625_v42 = vsel %vm990_vm2, %v2620_v40, %v2624_v43  ;;  %v4828_v61 = vld [vmem:[%s6685_s1 + $0x230] sm:$0xff]   ;;  %v2646_v32 = vshll.u32 %v5931_v0, 16  ;;  %v4832_v43 = vld [vmem:[%s6685_s1 + $0x220] sm:$0xff]   ;;  %v2650_v28 = vshrl.u32 %v5931_v0, 16 }
 0x10c   : > { %4613 = vmatprep.subr.bf16.mxu0 %v4815_v17  ;;  %v4834_v40 = vld [vmem:[%s6685_s1 + $0x218] sm:$0xff]  }
 0x10d   : > { %v5888_v50 = vpop.f32.mrf.mxu1  ;;  %v2648_v55 = vrot.slane %v2646_v32, 1 }
 0x10f   : > { %v5892_v35 = vpop.f32.mrf.mxu1  ;;  %4614 = vmatpush3.bf16.msra.mxu0 %v4815_v17  ;;  %v2640_v17 = vrot.slane %v2638_v12, 1  ;;  %v2652_v2 = vor.u32 %v2650_v28, %v2648_v55 }
 0x110   : > { %4615 = vmatprep.subr.bf16.mxu0 %v4816_v1 }
 0x111   : > { %v5898_v56 = vpop.f32.mrf.mxu1  ;;  %v2641_v38 = vsel %vm990_vm2, %v2636_v21, %v2640_v17 }
 0x112   : > { %2278 = vmatmul.mubr.bf16.gmra.mxu1 %v5505_v52  ;;  %v1138_v52 = vsel %vm990_vm2, %v5653_v60, %v1137_v33  ;;  %v2858_v60 = vrot.slane %v2625_v42, 2  ;;  %v2866_v14 = vrot.slane %v2641_v38, 2  ;;  %v5952_v33 = vld [vmem:[#allocation2 + $0x38] sm:$0xff]  }
 0x113   : > { %v5904_v39 = vpop.f32.mrf.mxu1  ;;  %2285 = vmatprep.mubr.bf16.mxu1 %v5803_v54  ;;  %4616 = vmatpush3.bf16.msra.mxu0 %v4816_v1  ;;  %v4823_v54 = vld [vmem:[%s6685_s1 + $0x238] sm:$0xff]  }
 0x114   : > { %4617 = vmatprep.subr.bf16.mxu0 %v4818_v25  ;;  %v2867_v16 = vsel %vm2854_vm1, %v2859_v53, %v2866_v14 }
 0x115   : > { %v5912_v41 = vpop.f32.mrf.mxu1 }
 0x117   : > { %4618 = vmatpush3.bf16.msra.mxu0 %v4818_v25  ;;  %v5919_v59 = vpop.f32.mrf.mxu1  ;;  %v2642_v25 = vshrl.u32 %v5910_v36, 16 }
 0x118   : > { %4619 = vmatprep.subr.bf16.mxu0 %v4820_v4 }
 0x119   : > { %v5926_v44 = vpop.f32.mrf.mxu1  ;;  %v2644_v27 = vor.u32 %v2642_v25, %v2640_v17  ;;  %v2658_v25 = vshrl.u32 %v5952_v33, 16 }
 0x11a   : > { %2286 = vmatmul.mubr.bf16.gmra.mxu1 %v5531_v11  ;;  %v2860_v11 = vsel %vm2854_vm1, %v2858_v60, %v2859_v53  ;;  %v5972_v60 = vld [vmem:[#allocation2 + $0x40] sm:$0xff]  }
 0x11b   : > { %2293 = vmatprep.mubr.bf16.mxu1 %v1138_v52  ;;  %4620 = vmatpush3.bf16.msra.mxu0 %v4820_v4  ;;  %v5934_v1 = vpop.f32.mrf.mxu1  ;;  %v2649_v9 = vsel %vm990_vm2, %v2644_v27, %v2648_v55 }
 0x11c   : > { %4657 = vmatprep.subr.bf16.mxu0 %v4823_v54  ;;  %v2872_v42 = vrot.slane %v2649_v9, 2 }
 0x11e   : > { %4622 = vmatmul.mubr.bf16.vlgmr.msra.gmra.mxu0 %v5716_v29  ;;  %v2873_v17 = vsel %vm2854_vm1, %v2866_v14, %v2872_v42 }
 0x11f   : > { %4658 = vmatpush3.bf16.msra.mxu0 %v4823_v54  ;;  %4625 = vmatprep.mubr.bf16.mxu0 %v5413_v47  ;;  %v2855_v47 = vrot.slane %v5880_v46, 2  ;;  %v6785_v46 = vld [vmem:[#allocation4_spill] sm:$0xff]  ;;  %v2864_v54 = vrot.slane %v5828_v19, 2 }
 0x120   : > { %4659 = vmatprep.subr.bf16.mxu0 %v4828_v61 }
 0x121   : > { %v2857_v4 = vsel %vm2854_vm1, %v2855_v47, %v2856_v7  ;;  %v2865_v21 = vsel %vm2854_vm1, %v2856_v7, %v2864_v54 }
 0x122   : > { %2294 = vmatmul.mubr.bf16.gmra.mxu1 %v5573_v15  ;;  %v5945_v29 = vpop.f32.mrf.mxu1 }
 0x123   : > { %3196 = vmatprep.mubr.bf16.mxu1 %v2860_v11  ;;  %4660 = vmatpush3.bf16.msra.mxu0 %v4828_v61 }
 0x124   : > { %4661 = vmatprep.subr.bf16.mxu0 %v4830_v20  ;;  %v5955_v15 = vpop.f32.mrf.mxu1 }
 0x126   : > { %4626 = vmatmul.mubr.bf16.gmra.mxu0 %v6782_v30  ;;  %v2654_v30 = vshll.u32 %v5952_v33, 16  ;;  %v5966_v52 = vpop.f32.mrf.mxu1 }
 0x127   : > { %4629 = vmatprep.mubr.bf16.mxu0 %v6785_v46  ;;  %4662 = vmatpush3.bf16.msra.mxu0 %v4830_v20  ;;  %v4838_v20 = vld [vmem:[%s6685_s1 + $0x208] sm:$0xff]  }
 0x128   : > { %4663 = vmatprep.subr.bf16.mxu0 %v4832_v43  ;;  %v2656_v12 = vrot.slane %v2654_v30, 1  ;;  %v5974_v53 = vpop.f32.mrf.mxu1 }
 0x12a   : > { %3197 = vmatmul.mubr.bf16.vlgmr.msra.gmra.mxu1 %v2857_v4  ;;  %v2657_v38 = vsel %vm990_vm2, %v2652_v2, %v2656_v12  ;;  %v2660_v27 = vor.u32 %v2658_v25, %v2656_v12  ;;  %v5996_v4 = vld [vmem:[#allocation2 + $0x48] sm:$0xff]  }
 0x12b   : > { %3204 = vmatprep.mubr.bf16.mxu1 %v2867_v16  ;;  %4664 = vmatpush3.bf16.msra.mxu0 %v4832_v43  ;;  %v2878_v14 = vrot.slane %v2657_v38, 2  ;;  %v4840_v43 = vld [vmem:[%s6685_s1 + $0x200] sm:$0xff]   ;;  %v2670_v2 = vshll.u32 %v5996_v4, 16 }
 0x12c   : > { %4665 = vmatprep.subr.bf16.mxu0 %v4834_v40 }
 0x12d   : > { %v2879_v9 = vsel %vm2854_vm1, %v2872_v42, %v2878_v14 }
 0x12e   : > { %4630 = vmatmul.mubr.bf16.gmra.mxu0 %v5207_v24  ;;  %v5977_v61 = vpop.f32.mrf.mxu0  ;;  %v2662_v24 = vshll.u32 %v5972_v60, 16 }
 0x12f   : > { %6786 = vst [vmem:[#allocation3_spill] sm:$0xff] %v5977_v61  ;;  %4633 = vmatprep.mubr.bf16.mxu0 %v5230_v62  ;;  %4666 = vmatpush3.bf16.msra.mxu0 %v4834_v40  ;;  %v2870_v62 = vrot.slane %v5910_v36, 2 }
 0x130   : > { %v1663_v11 = vpop.f32.mrf.mxu0  ;;  %4667 = vmatprep.subr.bf16.mxu0 %v4836_v45  ;;  %v2664_v55 = vrot.slane %v2662_v24, 1 }
 0x131   : > { %v5988_v32 = vpop.f32.mrf.mxu1  ;;  %v2871_v40 = vsel %vm2854_vm1, %v2864_v54, %v2870_v62  ;;  %v2876_v54 = vrot.slane %v5931_v0, 2  ;;  %v6014_v11 = vld [vmem:[#allocation2 + $0x50] sm:$0xff]  }
 0x132   : > { %3205 = vmatmul.mubr.bf16.gmra.mxu1 %v2865_v21  ;;  %v5990_v47 = vpop.f32.mrf.mxu0  ;;  %v2665_v30 = vsel %vm990_vm2, %v2660_v27, %v2664_v55 }
 0x133   : > { %6787 = vst [vmem:[#allocation4_spill] sm:$0xff] %v5990_v47  ;;  %3212 = vmatprep.mubr.bf16.mxu1 %v2873_v17  ;;  %4668 = vmatpush3.bf16.msra.mxu0 %v4836_v45  ;;  %v5998_v46 = vpop.f32.mrf.mxu1  ;;  %v2666_v45 = vshrl.u32 %v5972_v60, 16  ;;  %v2884_v21 = vrot.slane %v2665_v30, 2  ;;  %v2672_v17 = vrot.slane %v2670_v2, 1  ;;  %v2877_v25 = vsel %vm2854_vm1, %v2870_v62, %v2876_v54  ;;  %v6036_v2 = vld [vmem:[#allocation2 + $0x58] sm:$0xff]   ;;  %v6082_v47 = vld [vmem:[#allocation2 + $0x68] sm:$0xff]  }
 0x134   : > { %v1666_v7 = vpop.f32.mrf.mxu0  ;;  %4669 = vmatprep.subr.bf16.mxu0 %v4838_v20  ;;  %v2882_v62 = vrot.slane %v5952_v33, 2 }
 0x135   : > { %v6009_v12 = vpop.f32.mrf.mxu1  ;;  %v2668_v42 = vor.u32 %v2666_v45, %v2664_v55  ;;  %v2885_v7 = vsel %vm2854_vm1, %v2878_v14, %v2884_v21  ;;  %v2674_v55 = vshrl.u32 %v5996_v4, 16 }
 0x136   : > { %4634 = vmatmul.mubr.bf16.gmra.mxu0 %v5250_v31  ;;  %v6001_v16 = vpop.f32.mrf.mxu0 }
 0x137   : > { %6788 = vst [vmem:[#allocation6_spill] sm:$0xff] %v6001_v16  ;;  %4637 = vmatprep.mubr.bf16.mxu0 %v5273_v13  ;;  %4670 = vmatpush3.bf16.msra.mxu0 %v4838_v20  ;;  %v6016_v20 = vpop.f32.mrf.mxu1  ;;  %v2673_v27 = vsel %vm990_vm2, %v2668_v42, %v2672_v17  ;;  %v2676_v30 = vor.u32 %v2674_v55, %v2672_v17 }
 0x138   : > { %v1671_v28 = vpop.f32.mrf.mxu0  ;;  %4671 = vmatprep.subr.bf16.mxu0 %v4840_v43 }
 0x139   : > { %v2890_v28 = vrot.slane %v2673_v27, 2  ;;  %v2686_v27 = vshll.u32 %v6036_v2, 16 }
 0x13a   : > { %3213 = vmatmul.mubr.bf16.gmra.mxu1 %v2871_v40  ;;  %v6011_v31 = vpop.f32.mrf.mxu0  ;;  %v2678_v40 = vshll.u32 %v6014_v11, 16 }
 0x13b   : > { %6789 = vst [vmem:[#allocation7_spill] sm:$0xff] %v6011_v31  ;;  %3220 = vmatprep.mubr.bf16.mxu1 %v2879_v9  ;;  %4672 = vmatpush3.bf16.msra.mxu0 %v4840_v43 }
 0x13c   : > { %v1674_v13 = vpop.f32.mrf.mxu0  ;;  %v2680_v45 = vrot.slane %v2678_v40, 1 }
 0x13e   : > { %4638 = vmatmul.mubr.bf16.gmra.mxu0 %v5302_v5  ;;  %v1677_v38 = vpop.f32.mrf.mxu0  ;;  %v2681_v17 = vsel %vm990_vm2, %v2676_v30, %v2680_v45 }
 0x13f   : > { %v6021_v24 = vadd.f32 %v5871_v18, %v1677_v38  ;;  %4641 = vmatprep.mubr.bf16.mxu0 %v5333_v6  ;;  %v2883_v38 = vsel %vm2854_vm1, %v2876_v54, %v2882_v62  ;;  %v2888_v54 = vrot.slane %v5972_v60, 2 }
 0x140   : > { %v1679_v43 = vpop.f32.mrf.mxu0 }
 0x141   : > { %v2682_v43 = vshrl.u32 %v6014_v11, 16 }
 0x142   : > { %v6028_v9 = vpop.f32.mrf.mxu1  ;;  %3221 = vmatmul.mubr.bf16.gmra.mxu1 %v2877_v25  ;;  %v1680_v5 = vpop.f32.mrf.mxu0  ;;  %v2891_v25 = vsel %vm2854_vm1, %v2884_v21, %v2890_v28 }
 0x143   : > { %3228 = vmatprep.mubr.bf16.mxu1 %v2885_v7  ;;  %v6032_v18 = vadd.f32 %v5878_v48, %v1680_v5  ;;  %v2896_v5 = vrot.slane %v2681_v17, 2  ;;  %v2684_v21 = vor.u32 %v2682_v43, %v2680_v45 }
 0x144   : > { %v6034_v6 = vpop.f32.mrf.mxu1  ;;  %v1682_v14 = vpop.f32.mrf.mxu0 }
 0x145   : > { %v2688_v14 = vrot.slane %v2686_v27, 1  ;;  %v2897_v17 = vsel %vm2854_vm1, %v2890_v28, %v2896_v5  ;;  %v2690_v27 = vshrl.u32 %v6036_v2, 16 }
 0x146   : > { %v6038_v13 = vpop.f32.mrf.mxu1  ;;  %4642 = vmatmul.mubr.bf16.gmra.mxu0 %v5359_v10  ;;  %v6041_v42 = vpop.f32.mrf.mxu0 }
 0x147   : > { %4645 = vmatprep.mubr.bf16.mxu0 %v5426_v58  ;;  %v2689_v43 = vsel %vm990_vm2, %v2684_v21, %v2688_v14  ;;  %v2692_v21 = vor.u32 %v2690_v27, %v2688_v14  ;;  %v2773_v14 = vrot.slane %v5910_v36, 1  ;;  %v6107_v36 = vld [vmem:[#allocation2 + $0x70] sm:$0xff]  }
 0x148   : > { %v6045_v48 = vpop.f32.mrf.mxu1  ;;  %v1687_v7 = vpop.f32.mrf.mxu0 }
 0x149   : > { %v6058_v7 = vld [vmem:[#allocation2 + $0x60] sm:$0xff]  }
 0x14a   : > { %v6051_v55 = vpop.f32.mrf.mxu1  ;;  %3229 = vmatmul.mubr.bf16.gmra.mxu1 %v2883_v38  ;;  %v6053_v10 = vpop.f32.mrf.mxu0  ;;  %v2889_v38 = vsel %vm2854_vm1, %v2882_v62, %v2888_v54  ;;  %v2698_v27 = vshrl.u32 %v6058_v7, 16 }
 0x14b   : > { %6790 = vst [vmem:[#allocation8_spill] sm:$0xff] %v6051_v55  ;;  %3236 = vmatprep.mubr.bf16.mxu1 %v2891_v25 }
 0x14c   : > { %v6056_v58 = vpop.f32.mrf.mxu1  ;;  %v1690_v40 = vpop.f32.mrf.mxu0 }
 0x14d   : > { %v2694_v40 = vshll.u32 %v6058_v7, 16 }
 0x14e   : > { %v6060_v30 = vpop.f32.mrf.mxu1  ;;  %4646 = vmatmul.mubr.bf16.gmra.mxu0 %v5457_v57  ;;  %v1693_v23 = vpop.f32.mrf.mxu0 }
 0x14f   : > { %6791 = vst [vmem:[#allocation9_spill] sm:$0xff] %v6060_v30  ;;  %v6065_v49 = vadd.f32 %v5892_v35, %v1693_v23  ;;  %4649 = vmatprep.mubr.bf16.mxu0 %v5529_v22  ;;  %v2894_v23 = vrot.slane %v5996_v4, 2  ;;  %v2696_v31 = vrot.slane %v2694_v40, 1  ;;  %v2702_v40 = vshll.u32 %v6082_v47, 16 }
 0x150   : > { %v6068_v25 = vpop.f32.mrf.mxu1  ;;  %v1695_v45 = vpop.f32.mrf.mxu0 }
 0x151   : > { %6792 = vst [vmem:[#allocation10_spill] sm:$0xff] %v6068_v25  ;;  %v2902_v45 = vrot.slane %v2689_v43, 2  ;;  %v6162_v25 = vld [vmem:[#allocation2 + $0x80] sm:$0xff]  }
 0x152   : > { %v6074_v57 = vpop.f32.mrf.mxu1  ;;  %3237 = vmatmul.mubr.bf16.gmra.mxu1 %v2889_v38  ;;  %v1696_v62 = vpop.f32.mrf.mxu0 }
 0x153   : > { %6793 = vst [vmem:[#allocation11_spill] sm:$0xff] %v6074_v57  ;;  %3244 = vmatprep.mubr.bf16.mxu1 %v2897_v17  ;;  %v6078_v22 = vadd.f32 %v5904_v39, %v1696_v62  ;;  %v2895_v17 = vsel %vm2854_vm1, %v2888_v54, %v2894_v23  ;;  %v1196_v39 = vrot.slane %v5886_v51, 1  ;;  %v2903_v43 = vsel %vm2854_vm1, %v2896_v5, %v2902_v45  ;;  %v6798_v5 = vld [vmem:[#allocation5_spill] sm:$0xff] }
 0x154   : > { %v6080_v35 = vpop.f32.mrf.mxu1  ;;  %v1698_v28 = vpop.f32.mrf.mxu0  ;;  %v2900_v51 = vrot.slane %v6014_v11, 2 }
 0x155   : > { %6794 = vst [vmem:[#allocation12_spill] sm:$0xff] %v6080_v35  ;;  %v2700_v35 = vor.u32 %v2698_v27, %v2696_v31 }
 0x156   : > { %v6084_v61 = vpop.f32.mrf.mxu1  ;;  %4650 = vmatmul.mubr.bf16.gmra.mxu0 %v5561_v63  ;;  %v6087_v38 = vpop.f32.mrf.mxu0  ;;  %v2697_v63 = vsel %vm990_vm2, %v2692_v21, %v2696_v31  ;;  %v6800_v21 = vrot.slane %v5828_v19, 1  ;;  %v2710_v19 = vshll.u32 %v6107_v36, 16 }
 0x157   : > { %6795 = vst [vmem:[#allocation13_spill] sm:$0xff] %v6084_v61  ;;  %4653 = vmatprep.mubr.bf16.mxu0 %v5599_v37  ;;  %v2775_v61 = vrot.slane %v5931_v0, 1  ;;  %v2908_v16 = vrot.slane %v2697_v63, 2 }
 0x158   : > { %v6092_v62 = vpop.f32.mrf.mxu1  ;;  %v1703_v28 = vpop.f32.mrf.mxu0  ;;  %v2774_v0 = vsel %vm6801_vm5, %v6800_v21, %v2773_v14  ;;  %vm6818_vm5 = vmmov %vm6751_vm0 }
 0x159   : > { %6796 = vst [vmem:[#allocation14_spill] sm:$0xff] %v6092_v62  ;;  %v1197_v28 = vsel %vm6799_vm7, %v6798_v5, %v1196_v39  ;;  %v2901_v39 = vsel %vm2854_vm1, %v2894_v23, %v2900_v51  ;;  %v2909_v31 = vsel %vm2854_vm1, %v2902_v45, %v2908_v16  ;;  %v2777_v5 = vrot.slane %v5952_v33, 1  ;;  %vm6817_vm7 = vmmov %vm6751_vm0 }
 0x15a   : > { %v6100_v54 = vpop.f32.mrf.mxu1  ;;  %3245 = vmatmul.mubr.bf16.gmra.mxu1 %v2895_v17  ;;  %v6102_v37 = vpop.f32.mrf.mxu0  ;;  %v2776_v17 = vsel %vm6802_vm4, %v2773_v14, %v2775_v61  ;;  %vm6819_vm4 = vmmov %vm6751_vm0 }
 0x15b   : > { %6797 = vst [vmem:[#allocation15_spill] sm:$0xff] %v6100_v54  ;;  %3252 = vmatprep.mubr.bf16.mxu1 %v2903_v43  ;;  %v2704_v54 = vrot.slane %v2702_v40, 1  ;;  %v2874_v40 = vrot.slane %v2776_v17, 2 }
 0x15c   : > { %v2161_v57 = vpop.f32.mrf.mxu1  ;;  %v1706_v62 = vpop.f32.mrf.mxu0 }
 0x15d   : > { %v2868_v57 = vrot.slane %v2774_v0, 2  ;;  %v2706_v62 = vshrl.u32 %v6082_v47, 16  ;;  %v2705_v14 = vsel %vm990_vm2, %v2700_v35, %v2704_v54  ;;  %v6805_v0 = vrot.slane %v5837_v34, 2 }
 0x15e   : > { %v6113_v30 = vpop.f32.mrf.mxu1  ;;  %4654 = vmatmul.mubr.bf16.gmra.mxu0 %v1197_v28  ;;  %v6115_v43 = vpop.f32.mrf.mxu0  ;;  %v2779_v28 = vrot.slane %v5972_v60, 1  ;;  %v2712_v35 = vrot.slane %v2710_v19, 1  ;;  %v2778_v60 = vsel %vm6806_vm13, %v2775_v61, %v2777_v5  ;;  %vm6820_vm13 = vmmov %vm6751_vm0 }
 0x15f   : > { %6803 = vst [vmem:[#allocation5_spill] sm:$0xff] %v6113_v30  ;;  %4673 = vmatprep.mubr.bf16.mxu0 %v5844_v8  ;;  %v2906_v8 = vrot.slane %v6036_v2, 2  ;;  %v2869_v45 = vsel %vm2854_vm1, %v6805_v0, %v2868_v57  ;;  %v2875_v33 = vsel %vm2854_vm1, %v2868_v57, %v2874_v40 }
 0x160   : > { %v2164_v63 = vpop.f32.mrf.mxu1  ;;  %v1711_v27 = vpop.f32.mrf.mxu0 }
 0x161   : > { %v2914_v63 = vrot.slane %v2705_v14, 2  ;;  %v2708_v27 = vor.u32 %v2706_v62, %v2704_v54  ;;  %v2907_v34 = vsel %vm2854_vm1, %v2900_v51, %v2906_v8  ;;  %v2880_v62 = vrot.slane %v2778_v60, 2 }
 0x162   : > { %v6125_v21 = vpop.f32.mrf.mxu1  ;;  %3253 = vmatmul.mubr.bf16.gmra.mxu1 %v2901_v39  ;;  %v6128_v23 = vpop.f32.mrf.mxu0  ;;  %v2780_v39 = vsel %vm6807_vm12, %v2777_v5, %v2779_v28  ;;  %v2781_v14 = vrot.slane %v5996_v4, 1  ;;  %v2714_v5 = vshrl.u32 %v6107_v36, 16 }
 0x163   : > { %6804 = vst [vmem:[#allocation16_spill] sm:$0xff] %v6125_v21  ;;  %3260 = vmatprep.mubr.bf16.mxu1 %v2909_v31  ;;  %v6135_v21 = vld [vmem:[#allocation2 + $0x78] sm:$0xff]   ;;  %v2915_v54 = vsel %vm2854_vm1, %v2908_v16, %v2914_v63  ;;  %v2886_v19 = vrot.slane %v2780_v39, 2 }
 0x164   : > { %v2169_v17 = vpop.f32.mrf.mxu1  ;;  %v1714_v30 = vpop.f32.mrf.mxu0  ;;  %v2718_v0 = vshll.u32 %v6135_v21, 16 }
 0x165   : > { %v6145_v30 = vsel %vm990_vm2, %v2708_v27, %v2712_v35  ;;  %v2912_v27 = vrot.slane %v6058_v7, 2 }
 0x166   : > { %v6138_v55 = vpop.f32.mrf.mxu1  ;;  %4674 = vmatmul.mubr.bf16.vlgmr.msra.gmra.mxu0 %v2869_v45  ;;  %v6140_v31 = vpop.f32.mrf.mxu0  ;;  %v2783_v45 = vrot.slane %v6014_v11, 1  ;;  %v2920_v4 = vrot.slane %v6145_v30, 2  ;;  %v2782_v11 = vsel %vm6809_vm8, %v2779_v28, %v2781_v14 }
 0x167   : > { %6808 = vst [vmem:[#allocation17_spill] sm:$0xff] %v6138_v55  ;;  %4677 = vmatprep.mubr.bf16.mxu0 %v2875_v33  ;;  %v2881_v33 = vsel %vm2854_vm1, %v2874_v40, %v2880_v62  ;;  %v2913_v30 = vsel %vm2854_vm1, %v2906_v8, %v2912_v27  ;;  %v2787_v8 = vrot.slane %v6058_v7, 1 }
 0x168   : > { %v2172_v57 = vpop.f32.mrf.mxu1  ;;  %v1719_v61 = vpop.f32.mrf.mxu0  ;;  %v2784_v55 = vsel %vm6810_vm10, %v2781_v14, %v2783_v45 }
 0x169   : > { %v2887_v57 = vsel %vm2854_vm1, %v2880_v62, %v2886_v19  ;;  %v2716_v61 = vor.u32 %v2714_v5, %v2712_v35  ;;  %v2785_v62 = vrot.slane %v6036_v2, 1  ;;  %v2921_v35 = vsel %vm2854_vm1, %v2914_v63, %v2920_v4 }
 0x16a   : > { %v2175_v17 = vpop.f32.mrf.mxu1  ;;  %3261 = vmatmul.mubr.bf16.gmra.mxu1 %v2907_v34  ;;  %v6151_v51 = vpop.f32.mrf.mxu0  ;;  %v2720_v34 = vrot.slane %v2718_v0, 1  ;;  %v2898_v0 = vrot.slane %v2784_v55, 2  ;;  %v2918_v2 = vrot.slane %v6082_v47, 2 }
 0x16b   : > { %v6154_v16 = vadd.f32 %v2175_v17, %v6021_v24  ;;  %3268 = vmatprep.mubr.bf16.mxu1 %v2915_v54  ;;  %v2892_v17 = vrot.slane %v2782_v11, 2  ;;  %v2786_v11 = vsel %vm6812_vm11, %v2783_v45, %v2785_v62 }
 0x16c   : > { %v2177_v60 = vpop.f32.mrf.mxu1  ;;  %v1722_v39 = vpop.f32.mrf.mxu0  ;;  %v6173_v14 = vsel %vm990_vm2, %v2716_v61, %v2720_v34 }
 0x16d   : > { %v2726_v60 = vshll.u32 %v6162_v25, 16  ;;  %v2893_v55 = vsel %vm2854_vm1, %v2886_v19, %v2892_v17  ;;  %v2899_v7 = vsel %vm2854_vm1, %v2892_v17, %v2898_v0  ;;  %v2919_v19 = vsel %vm2854_vm1, %v2912_v27, %v2918_v2 }
 0x16e   : > { %v2178_v24 = vpop.f32.mrf.mxu1  ;;  %4678 = vmatmul.mubr.bf16.gmra.mxu0 %v2881_v33  ;;  %v6164_v54 = vpop.f32.mrf.mxu0  ;;  %v1863_v33 = vadd.f32 %v5865_v26, %v6041_v42  ;;  %v6187_v26 = vld [vmem:[#allocation2 + $0x88] sm:$0xff]   ;;  %v2730_v17 = vshrl.u32 %v6162_v25, 16 }
 0x16f   : > { %v6167_v40 = vadd.f32 %v2178_v24, %v6032_v18  ;;  %4681 = vmatprep.mubr.bf16.mxu0 %v2887_v57  ;;  %v2722_v18 = vshrl.u32 %v6135_v21, 16  ;;  %v2926_v24 = vrot.slane %v6173_v14, 2  ;;  %v2789_v14 = vrot.slane %v6082_v47, 1 }
 0x170   : > { %v2180_v28 = vpop.f32.mrf.mxu1  ;;  %v1727_v5 = vpop.f32.mrf.mxu0 }
 0x171   : > { %6811 = vst [vmem:[#allocation18_spill] sm:$0xff] %v6167_v40  ;;  %v2724_v28 = vor.u32 %v2722_v18, %v2720_v34  ;;  %v2728_v5 = vrot.slane %v2726_v60, 1  ;;  %v2927_v34 = vsel %vm2854_vm1, %v2920_v4, %v2926_v24  ;;  %v2791_v60 = vrot.slane %v6107_v36, 1 }
 0x172   : > { %v2183_v39 = vpop.f32.mrf.mxu1  ;;  %3269 = vmatmul.mubr.bf16.gmra.mxu1 %v2913_v30  ;;  %v6181_v57 = vpop.f32.mrf.mxu0  ;;  %v1866_v30 = vadd.f32 %v5873_v3, %v6053_v10  ;;  %v2734_v3 = vshll.u32 %v6187_v26, 16  ;;  %v2790_v4 = vsel %vm6751_vm0, %v2787_v8, %v2789_v14 }
 0x173   : > { %v6183_v63 = vadd.f32 %v2183_v39, %v1863_v33  ;;  %3276 = vmatprep.mubr.bf16.mxu1 %v2921_v35  ;;  %v2788_v33 = vsel %vm6813_vm14, %v2785_v62, %v2787_v8  ;;  %v2904_v39 = vrot.slane %v2786_v11, 2  ;;  %v2729_v27 = vsel %vm990_vm2, %v2724_v28, %v2728_v5 }
 0x174   : > { %v2185_v42 = vpop.f32.mrf.mxu1  ;;  %v1730_v61 = vpop.f32.mrf.mxu0  ;;  %v2910_v18 = vrot.slane %v2788_v33, 2  ;;  %v2924_v11 = vrot.slane %v6107_v36, 2  ;;  %v2736_v33 = vrot.slane %v2734_v3, 1  ;;  %v2792_v36 = vsel %vm6814_vm6, %v2789_v14, %v2791_v60 }
 0x175   : > { %v2905_v47 = vsel %vm2854_vm1, %v2898_v0, %v2904_v39 }
 0x176   : > { %v2186_v35 = vpop.f32.mrf.mxu1  ;;  %4682 = vmatmul.mubr.bf16.gmra.mxu0 %v2893_v55  ;;  %v6195_v45 = vpop.f32.mrf.mxu0  ;;  %v2925_v0 = vsel %vm2854_vm1, %v2918_v2, %v2924_v11  ;;  %v2922_v2 = vrot.slane %v2792_v36, 2 }
 0x177   : > { %v6197_v42 = vadd.f32 %v2186_v35, %v1866_v30  ;;  %4685 = vmatprep.mubr.bf16.mxu0 %v2899_v7  ;;  %v2732_v30 = vor.u32 %v2730_v17, %v2728_v5  ;;  %v6213_v35 = vld [vmem:[#allocation2 + $0x90] sm:$0xff]   ;;  %v2738_v17 = vshrl.u32 %v6187_v26, 16 }
 0x178   : > { %v2188_v10 = vpop.f32.mrf.mxu1  ;;  %v1735_v62 = vpop.f32.mrf.mxu0 }
 0x179   : > { %v2932_v62 = vrot.slane %v2729_v27, 2  ;;  %v6224_v5 = vsel %vm990_vm2, %v2732_v30, %v2736_v33 }
 0x17a   : > { %v2191_v55 = vpop.f32.mrf.mxu1  ;;  %3277 = vmatmul.mubr.bf16.gmra.mxu1 %v2919_v19  ;;  %v6206_v61 = vpop.f32.mrf.mxu0  ;;  %v2911_v19 = vsel %vm2854_vm1, %v2904_v39, %v2910_v18  ;;  %v2742_v39 = vshll.u32 %v6213_v35, 16 }
 0x17b   : > { %v6210_v7 = vadd.f32 %v2191_v55, %v6065_v49  ;;  %3284 = vmatprep.mubr.bf16.mxu1 %v2927_v34  ;;  %v2916_v34 = vrot.slane %v2790_v4, 2  ;;  %v2933_v14 = vsel %vm2854_vm1, %v2926_v24, %v2932_v62  ;;  %v2793_v55 = vrot.slane %v6135_v21, 1 }
 0x17c   : > { %v2193_v28 = vpop.f32.mrf.mxu1  ;;  %v1738_v10 = vpop.f32.mrf.mxu0  ;;  %v2930_v4 = vrot.slane %v6135_v21, 2  ;;  %v2744_v36 = vrot.slane %v2742_v39, 1  ;;  %v1882_v21 = vadd.f32 %v5898_v56, %v6102_v37  ;;  %v2797_v37 = vrot.slane %v6187_v26, 1 }
 0x17d   : > { %v2938_v28 = vrot.slane %v6224_v5, 2  ;;  %v2917_v24 = vsel %vm2854_vm1, %v2910_v18, %v2916_v34 }
 0x17e   : > { %v2194_v40 = vpop.f32.mrf.mxu1  ;;  %4686 = vmatmul.mubr.bf16.gmra.mxu0 %v2905_v47  ;;  %v6218_v49 = vpop.f32.mrf.mxu0  ;;  %v1879_v47 = vadd.f32 %v5888_v50, %v6087_v38  ;;  %v2923_v50 = vsel %vm2854_vm1, %v2916_v34, %v2922_v2  ;;  %v2794_v38 = vsel %vm6815_vm9, %v2791_v60, %v2793_v55 }
 0x17f   : > { %v6221_v8 = vadd.f32 %v2194_v40, %v6078_v22  ;;  %4689 = vmatprep.mubr.bf16.mxu0 %v2911_v19  ;;  %v2795_v22 = vrot.slane %v6162_v25, 1  ;;  %v2740_v19 = vor.u32 %v2738_v17, %v2736_v33  ;;  %v2939_v17 = vsel %vm2854_vm1, %v2932_v62, %v2938_v28 }
 0x180   : > { %v2196_v3 = vpop.f32.mrf.mxu1  ;;  %v1743_v27 = vpop.f32.mrf.mxu0  ;;  %v2928_v34 = vrot.slane %v2794_v38, 2 }
 0x181   : > { %v2796_v5 = vsel %vm6816_vm3, %v2793_v55, %v2795_v22  ;;  %v6254_v60 = vsel %vm990_vm2, %v2740_v19, %v2744_v36  ;;  %v2746_v55 = vshrl.u32 %v6213_v35, 16 }
 0x182   : > { %v2199_v40 = vpop.f32.mrf.mxu1  ;;  %3285 = vmatmul.mubr.bf16.gmra.mxu1 %v2925_v0  ;;  %v6234_v30 = vpop.f32.mrf.mxu0  ;;  %v6242_v0 = vld [vmem:[#allocation2 + $0x98] sm:$0xff]   ;;  %v2934_v56 = vrot.slane %v2796_v5, 2  ;;  %v2929_v38 = vsel %vm2854_vm1, %v2922_v2, %v2928_v34 }
 0x183   : > { %v6237_v10 = vadd.f32 %v2199_v40, %v1879_v47  ;;  %3292 = vmatprep.mubr.bf16.mxu1 %v2933_v14  ;;  %v2931_v14 = vsel %vm2854_vm1, %v2924_v11, %v2930_v4  ;;  %v2750_v11 = vshll.u32 %v6242_v0, 16 }
 0x184   : > { %v2201_v3 = vpop.f32.mrf.mxu1  ;;  %v1746_v27 = vpop.f32.mrf.mxu0 }
 0x185   : > { %v2799_v3 = vrot.slane %v6213_v35, 1 }
 0x186   : > { %v2202_v47 = vpop.f32.mrf.mxu1  ;;  %4690 = vmatmul.mubr.bf16.gmra.mxu0 %v2917_v24  ;;  %v6248_v18 = vpop.f32.mrf.mxu0  ;;  %v1887_v24 = vadd.f32 %v5919_v59, %v6115_v43  ;;  %v2798_v59 = vsel %vm6817_vm7, %v2795_v22, %v2797_v37  ;;  %v2748_v43 = vor.u32 %v2746_v55, %v2744_v36 }
 0x187   : > { %v6250_v33 = vadd.f32 %v2202_v47, %v1882_v21  ;;  %4693 = vmatprep.mubr.bf16.mxu0 %v2923_v50  ;;  %v2936_v50 = vrot.slane %v6162_v25, 2  ;;  %v2944_v21 = vrot.slane %v6254_v60, 2 }
 0x188   : > { %v2204_v39 = vpop.f32.mrf.mxu1  ;;  %v1751_v40 = vpop.f32.mrf.mxu0 }
 0x189   : > { %v2935_v39 = vsel %vm2854_vm1, %v2928_v34, %v2934_v56  ;;  %v2752_v40 = vrot.slane %v2750_v11, 1  ;;  %v2940_v34 = vrot.slane %v2798_v59, 2  ;;  %v2945_v36 = vsel %vm2854_vm1, %v2938_v28, %v2944_v21 }
 0x18a   : > { %v2207_v62 = vpop.f32.mrf.mxu1  ;;  %3293 = vmatmul.mubr.bf16.gmra.mxu1 %v2931_v14  ;;  %v6262_v27 = vpop.f32.mrf.mxu0  ;;  %v1890_v14 = vadd.f32 %v5934_v1, %v6128_v23  ;;  %v1895_v11 = vadd.f32 %v5912_v41, %v6140_v31  ;;  %v2942_v59 = vrot.slane %v6187_v26, 2 }
 0x18b   : > { %v6264_v19 = vadd.f32 %v2207_v62, %v1887_v24  ;;  %3300 = vmatprep.mubr.bf16.mxu1 %v2939_v17  ;;  %v2800_v24 = vsel %vm6818_vm5, %v2797_v37, %v2799_v3  ;;  %v6274_v17 = vld [vmem:[#allocation2 + $0xa0] ss:$0 sps:$4 sm:$0x77]   ;;  %v2937_v62 = vsel %vm2854_vm1, %v2930_v4, %v2936_v50  ;;  %v2753_v1 = vsel %vm990_vm2, %v2748_v43, %v2752_v40 }
 0x18c   : > { %v2209_v5 = vpop.f32.mrf.mxu1  ;;  %v1754_v47 = vpop.f32.mrf.mxu0  ;;  %v2946_v23 = vrot.slane %v2800_v24, 2  ;;  %v2801_v37 = vrot.slane %v6242_v0, 1  ;;  %v2803_v4 = vrot.slane %v6274_v17, 1  ;;  %v2941_v43 = vsel %vm2854_vm1, %v2934_v56, %v2940_v34 }
 0x18d   : > { %v2758_v5 = vshll.u32 %v6274_v17, 16  ;;  %v2950_v41 = vrot.slane %v2753_v1, 2  ;;  %v2943_v56 = vsel %vm2854_vm1, %v2936_v50, %v2942_v59  ;;  %v2948_v50 = vrot.slane %v6213_v35, 2 }
 0x18e   : > { %v2210_v25 = vpop.f32.mrf.mxu1  ;;  %4694 = vmatmul.mubr.bf16.gmra.mxu0 %v2929_v38  ;;  %v6276_v2 = vpop.f32.mrf.mxu0  ;;  %v2754_v38 = vshrl.u32 %v6242_v0, 16  ;;  %v2947_v31 = vsel %vm2854_vm1, %v2940_v34, %v2946_v23 }
 0x18f   : > { %v6278_v60 = vadd.f32 %v2210_v25, %v1890_v14  ;;  %4697 = vmatprep.mubr.bf16.mxu0 %v2935_v39  ;;  %v2802_v25 = vsel %vm6819_vm4, %v2799_v3, %v2801_v37  ;;  %v2951_v3 = vsel %vm2854_vm1, %v2944_v21, %v2950_v41  ;;  %v2949_v35 = vsel %vm2854_vm1, %v2942_v59, %v2948_v50 }
 0x190   : > { %v2212_v22 = vpop.f32.mrf.mxu1  ;;  %v1759_v55 = vpop.f32.mrf.mxu0  ;;  %v2952_v1 = vrot.slane %v2802_v25, 2 }
 0x191   : > { %v1898_v22 = vadd.f32 %v5926_v44, %v6151_v51  ;;  %v2760_v55 = vrot.slane %v2758_v5, 1  ;;  %v1903_v44 = vadd.f32 %v5955_v15, %v6164_v54  ;;  %v2762_v15 = vshrl.u32 %v6274_v17, 16 }
 0x192   : > { %v2215_v47 = vpop.f32.mrf.mxu1  ;;  %3301 = vmatmul.mubr.bf16.gmra.mxu1 %v2937_v62  ;;  %v6289_v39 = vpop.f32.mrf.mxu0  ;;  %v2756_v62 = vor.u32 %v2754_v38, %v2752_v40  ;;  %v2953_v5 = vsel %vm2854_vm1, %v2946_v23, %v2952_v1  ;;  %v1906_v54 = vadd.f32 %v5974_v53, %v6181_v57  ;;  %v2964_v23 = vrot.slane %v2803_v4, 2 }
 0x193   : > { %v6291_v28 = vadd.f32 %v2215_v47, %v1895_v11  ;;  %3308 = vmatprep.mubr.bf16.mxu1 %v2945_v36  ;;  %v2804_v11 = vsel %vm6820_vm13, %v2801_v37, %v2803_v4  ;;  %v1911_v17 = vadd.f32 %v5945_v29, %v6195_v45 }
 0x194   : > { %v2217_v14 = vpop.f32.mrf.mxu1  ;;  %v1762_v24 = vpop.f32.mrf.mxu0  ;;  %v2761_v51 = vsel %vm990_vm2, %v2756_v62, %v2760_v55  ;;  %vm6841_vm2 = vcmask 1043456  }
 0x195   : > { %v2958_v24 = vrot.slane %v2804_v11, 2  ;;  %vm6842_vm12 = vmmov %vm6841_vm2 }
 0x196   : > { %v2218_v47 = vpop.f32.mrf.mxu1  ;;  %4698 = vmatmul.mubr.bf16.gmra.mxu0 %v2941_v43  ;;  %v6300_v36 = vpop.f32.mrf.mxu0  ;;  %vm6843_vm8 = vmmov %vm6841_vm2 }
 0x197   : > { %v6302_v26 = vadd.f32 %v2218_v47, %v1898_v22  ;;  %4701 = vmatprep.mubr.bf16.mxu0 %v2947_v31  ;;  %v2956_v31 = vrot.slane %v2761_v51, 2  ;;  %v2959_v25 = vsel %vm2854_vm1, %v2952_v1, %v2958_v24  ;;  %v2764_v1 = vor.u32 %v2762_v15, %v2760_v55  ;;  %vm6844_vm10 = vmmov %vm6841_vm2 }
 0x198   : > { %v2220_v34 = vpop.f32.mrf.mxu1  ;;  %v1767_v14 = vpop.f32.mrf.mxu0  ;;  %v2965_v59 = vsel %vm2854_vm1, %v2958_v24, %v2964_v23  ;;  %v1919_v24 = vadd.f32 %v5998_v46, %v6218_v49  ;;  %v1927_v49 = vadd.f32 %v5988_v32, %v6248_v18  ;;  %vm6845_vm11 = vmmov %vm6841_vm2 }
 0x199   : > { %v2954_v14 = vrot.slane %v6242_v0, 2  ;;  %v2962_v51 = vrot.slane %v2764_v1, 2  ;;  %vm6846_vm14 = vmmov %vm6841_vm2 }
 0x19a   : > { %v2223_v40 = vpop.f32.mrf.mxu1  ;;  %3309 = vmatmul.mubr.bf16.gmra.mxu1 %v2943_v56  ;;  %v6309_v37 = vpop.f32.mrf.mxu0  ;;  %v2957_v56 = vsel %vm2854_vm1, %v2950_v41, %v2956_v31  ;;  %v1914_v41 = vadd.f32 %v5966_v52, %v6206_v61  ;;  %vm6849_vm0 = vmmov %vm6841_vm2 }
 0x19b   : > { %v6311_v38 = vadd.f32 %v2223_v40, %v1903_v44  ;;  %3316 = vmatprep.mubr.bf16.mxu1 %v2951_v3  ;;  %v2955_v40 = vsel %vm2854_vm1, %v2948_v50, %v2954_v14  ;;  %v2963_v0 = vsel %vm2854_vm1, %v2956_v31, %v2962_v51  ;;  %v1922_v50 = vadd.f32 %v6016_v20, %v6234_v30 }
 0x19c   : > { %v2225_v43 = vpop.f32.mrf.mxu1  ;;  %v1770_v21 = vpop.f32.mrf.mxu0  ;;  %v1930_v20 = vadd.f32 %v6009_v12, %v6262_v27 }
 0x19e   : > { %v2226_v22 = vpop.f32.mrf.mxu1  ;;  %4702 = vmatmul.mubr.bf16.gmra.mxu0 %v2953_v5  ;;  %v6319_v62 = vpop.f32.mrf.mxu0  ;;  %v4851_v5 = vld [vmem:[#allocation2 + $0xa0] ss:$0 sps:$4 sm:$0x33]  }
 0x19f   : > { %v6321_v11 = vadd.f32 %v2226_v22, %v1906_v54  ;;  %4705 = vmatprep.mubr.bf16.mxu0 %v2959_v25  ;;  %v2960_v61 = vrot.slane %v4851_v5, 2 }
 0x1a0   : > { %v2228_v47 = vpop.f32.mrf.mxu1  ;;  %v1775_v34 = vpop.f32.mrf.mxu0 }
 0x1a1   : > { %v2961_v31 = vsel %vm2854_vm1, %v2954_v14, %v2960_v61 }
 0x1a2   : > { %v2231_v3 = vpop.f32.mrf.mxu1  ;;  %3317 = vmatmul.mubr.bf16.gmra.mxu1 %v2949_v35  ;;  %v6327_v53 = vpop.f32.mrf.mxu0 }
 0x1a3   : > { %v6329_v57 = vadd.f32 %v2231_v3, %v1911_v17  ;;  %3324 = vmatprep.mubr.bf16.mxu1 %v2957_v56 }
 0x1a4   : > { %v2233_v4 = vpop.f32.mrf.mxu1  ;;  %v1778_v44 = vpop.f32.mrf.mxu0 }
 0x1a6   : > { %v2234_v55 = vpop.f32.mrf.mxu1  ;;  %4706 = vmatmul.mubr.bf16.gmra.mxu0 %v2965_v59  ;;  %v6335_v29 = vpop.f32.mrf.mxu0 }
 0x1a7   : > { %v6337_v45 = vadd.f32 %v2234_v55, %v1914_v41  ;;  %v1935_v41 = vadd.f32 %v6034_v6, %v6276_v2  ;;  %v1946_v2 = vadd.f32 %v6038_v13, %v6309_v37  ;;  %v6822_v13 = vld [vmem:[#allocation8_spill] sm:$0xff] }
 0x1a8   : > { %v2236_v43 = vpop.f32.mrf.mxu1  ;;  %v1783_v21 = vpop.f32.mrf.mxu0  ;;  %v1959_v37 = vadd.f32 %v6822_v13, %v6335_v29 }
 0x1a9   : > { %v1938_v43 = vadd.f32 %v6045_v48, %v6289_v39  ;;  %v1943_v21 = vadd.f32 %v6028_v9, %v6300_v36  ;;  %v1951_v48 = vadd.f32 %v6056_v58, %v6319_v62  ;;  %v6821_v9 = vld [vmem:[#allocation10_spill] sm:$0xff]  ;;  %v6823_v62 = vld [vmem:[#allocation9_spill] sm:$0xff] }
 0x1aa   : > { %v2239_v25 = vpop.f32.mrf.mxu1  ;;  %3325 = vmatmul.mubr.bf16.gmra.mxu1 %v2955_v40  ;;  %v1784_v15 = vpop.f32.mrf.mxu0  ;;  %v1954_v36 = vadd.f32 %v6821_v9, %v6327_v53  ;;  %v6830_v9 = vld [vmem:[#allocation4_spill] sm:$0xff] }
 0x1ab   : > { %v6343_v52 = vadd.f32 %v2239_v25, %v1919_v24  ;;  %3332 = vmatprep.mubr.bf16.mxu1 %v2963_v0 }
 0x1ac   : > { %v2241_v54 = vpop.f32.mrf.mxu1  ;;  %v1786_v22 = vpop.f32.mrf.mxu0 }
 0x1ae   : > { %v2242_v35 = vpop.f32.mrf.mxu1  ;;  %v1789_v23 = vpop.f32.mrf.mxu0 }
 0x1af   : > { %v6347_v47 = vadd.f32 %v2242_v35, %v1922_v50 }
 0x1b0   : > { %v2244_v56 = vpop.f32.mrf.mxu1  ;;  %v1791_v46 = vpop.f32.mrf.mxu0 }
 0x1b2   : > { %v2247_v34 = vpop.f32.mrf.mxu1  ;;  %3333 = vmatmul.mubr.bf16.gmra.mxu1 %v2961_v31  ;;  %v1792_v1 = vpop.f32.mrf.mxu0 }
 0x1b3   : > { %v6352_v17 = vadd.f32 %v2247_v34, %v1927_v49 }
 0x1b4   : > { %v2249_v3 = vpop.f32.mrf.mxu1  ;;  %v1794_v59 = vpop.f32.mrf.mxu0 }
 0x1b6   : > { %v2250_v30 = vpop.f32.mrf.mxu1  ;;  %v1797_v4 = vpop.f32.mrf.mxu0 }
 0x1b7   : > { %v6356_v44 = vadd.f32 %v2250_v30, %v1930_v20  ;;  %v1962_v20 = vadd.f32 %v6823_v62, %v1784_v15 }
 0x1b8   : > { %v2252_v14 = vpop.f32.mrf.mxu1  ;;  %v1799_v51 = vpop.f32.mrf.mxu0 }
 0x1ba   : > { %v2255_v32 = vpop.f32.mrf.mxu1  ;;  %v6360_v18 = vpop.f32.mrf.mxu0 }
 0x1bb   : > { %v6362_v55 = vadd.f32 %v2255_v32, %v1935_v41  ;;  %v6824_v41 = vld [vmem:[#allocation12_spill] sm:$0xff] }
 0x1bc   : > { %v2257_v40 = vpop.f32.mrf.mxu1  ;;  %v1802_v5 = vpop.f32.mrf.mxu0  ;;  %v1967_v32 = vadd.f32 %v6824_v41, %v1789_v23  ;;  %v6834_v41 = vld [vmem:[#allocation5_spill] sm:$0xff] }
 0x1bd   : > { %v6825_v40 = vld [vmem:[#allocation6_spill] sm:$0xff] }
 0x1be   : > { %v2258_v12 = vpop.f32.mrf.mxu1  ;;  %v4571_v46 = vpop.f32.mrf.mxu0 }
 0x1bf   : > { %v6366_v27 = vadd.f32 %v2258_v12, %v1938_v43  ;;  %v1847_v5 = vadd.f32 %v4571_v46, %v6825_v40  ;;  %v6826_v12 = vld [vmem:[#allocation3_spill] sm:$0xff] }
 0x1c0   : > { %v2260_v0 = vpop.f32.mrf.mxu1  ;;  %v1838_v59 = vpop.f32.mrf.mxu0  ;;  %v6831_v46 = vld [vmem:[#allocation15_spill] sm:$0xff] }
 0x1c1   : > { %v1839_v0 = vadd.f32 %v1838_v59, %v6826_v12 }
 0x1c2   : > { %v2263_v24 = vpop.f32.mrf.mxu1  ;;  %v4572_v51 = vpop.f32.mrf.mxu0 }
 0x1c3   : > { %v6370_v25 = vadd.f32 %v2263_v24, %v1943_v21 }
 0x1c4   : > { %v2265_v6 = vpop.f32.mrf.mxu1  ;;  %v1841_v21 = vpop.f32.mrf.mxu0 }
 0x1c5   : > { %v6827_v6 = vld [vmem:[#allocation14_spill] sm:$0xff] }
 0x1c6   : > { %v2266_v61 = vpop.f32.mrf.mxu1 }
 0x1c7   : > { %v6374_v54 = vadd.f32 %v2266_v61, %v1946_v2  ;;  %v1970_v2 = vadd.f32 %v6827_v6, %v1792_v1  ;;  %v6828_v61 = vld [vmem:[#allocation7_spill] sm:$0xff]  ;;  %v6833_v1 = vld [vmem:[#allocation17_spill] sm:$0xff] }
 0x1c8   : > { %v2268_v22 = vpop.f32.mrf.mxu1  ;;  %v1850_v15 = vadd.f32 %v4572_v51, %v6828_v61 }
 0x1c9   : > { %v6829_v22 = vld [vmem:[#allocation16_spill] sm:$0xff] }
 0x1ca   : > { %v2271_v39 = vpop.f32.mrf.mxu1  ;;  %v2171_v62 = vadd.f32 %v6833_v1, %v1850_v15 }
 0x1cb   : > { %v6378_v50 = vadd.f32 %v2271_v39, %v1951_v48  ;;  %v2168_v48 = vadd.f32 %v6829_v22, %v1847_v5 }
 0x1cc   : > { %v2273_v35 = vpop.f32.mrf.mxu1 }
 0x1ce   : > { %v2274_v31 = vpop.f32.mrf.mxu1 }
 0x1cf   : > { %v6382_v56 = vadd.f32 %v2274_v31, %v1954_v36  ;;  %v1842_v36 = vadd.f32 %v1841_v21, %v6830_v9  ;;  %v6836_v9 = vld [vmem:[#allocation18_spill] sm:$0xff] }
 0x1d0   : > { %v2276_v49 = vpop.f32.mrf.mxu1 }
 0x1d1   : > { %v2160_v49 = vadd.f32 %v6831_v46, %v1839_v0 }
 0x1d2   : > { %v2279_v34 = vpop.f32.mrf.mxu1 }
 0x1d3   : > { %v6386_v3 = vadd.f32 %v2279_v34, %v1959_v37  ;;  %v6832_v34 = vld [vmem:[#allocation11_spill] sm:$0xff] }
 0x1d4   : > { %v2281_v58 = vpop.f32.mrf.mxu1  ;;  %v1975_v59 = vadd.f32 %v6832_v34, %v1797_v4 }
 0x1d6   : > { %v2282_v30 = vpop.f32.mrf.mxu1 }
 0x1d7   : > { %v6389_v14 = vadd.f32 %v2282_v30, %v1962_v20 }
 0x1d8   : > { %v2284_v53 = vpop.f32.mrf.mxu1 }
 0x1da   : > { %v2287_v43 = vpop.f32.mrf.mxu1 }
 0x1db   : > { %v6394_v29 = vadd.f32 %v2287_v43, %v1967_v32  ;;  %v2163_v32 = vadd.f32 %v6834_v41, %v1842_v36  ;;  %v6835_v43 = vld [vmem:[#allocation13_spill] sm:$0xff] }
 0x1dc   : > { %v2289_v24 = vpop.f32.mrf.mxu1  ;;  %v1978_v12 = vadd.f32 %v6835_v43, %v6360_v18 }
 0x1de   : > { %v2290_v39 = vpop.f32.mrf.mxu1  ;;  %v4623_v35 = vpop.f32.mrf.mxu0 }
 0x1df   : > { %v6400_v23 = vadd.f32 %v2290_v39, %v1970_v2  ;;  %v6402_v31 = vadd.f32 %v4623_v35, %v2168_v48 }
 0x1e0   : > { %v2292_v13 = vpop.f32.mrf.mxu1  ;;  %v2336_v37 = vpop.f32.mrf.mxu0 }
 0x1e1   : > { %v6406_v58 = vadd.f32 %v2336_v37, %v2160_v49 }
 0x1e2   : > { %v2295_v20 = vpop.f32.mrf.mxu1  ;;  %v4624_v30 = vpop.f32.mrf.mxu0 }
 0x1e3   : > { %v6409_v51 = vadd.f32 %v2295_v20, %v1975_v59  ;;  %v6411_v53 = vadd.f32 %v4624_v30, %v2171_v62 }
 0x1e4   : > { %v2297_v40 = vpop.f32.mrf.mxu1  ;;  %v2339_v5 = vpop.f32.mrf.mxu0 }
 0x1e5   : > { %v6416_v0 = vadd.f32 %v2339_v5, %v2163_v32 }
 0x1e6   : > { %v2298_v4 = vpop.f32.mrf.mxu1  ;;  %v4627_v21 = vpop.f32.mrf.mxu0 }
 0x1e7   : > { %v6418_v24 = vadd.f32 %v2298_v4, %v1978_v12  ;;  %v6421_v6 = vadd.f32 %v4627_v21, %v6183_v63 }
 0x1e8   : > { %v2300_v2 = vpop.f32.mrf.mxu1  ;;  %v2352_v61 = vpop.f32.mrf.mxu0 }
 0x1e9   : > { %v6424_v15 = vadd.f32 %v2352_v61, %v6154_v16 }
 0x1ea   : > { %v6426_v22 = vpop.f32.mrf.mxu1  ;;  %v4628_v48 = vpop.f32.mrf.mxu0 }
 0x1eb   : > { %v6429_v39 = vadd.f32 %v4628_v48, %v6197_v42 }
 0x1ec   : > { %v3200_v18 = vpop.f32.mrf.mxu1  ;;  %v2355_v35 = vpop.f32.mrf.mxu0 }
 0x1ed   : > { %v6432_v36 = vadd.f32 %v2355_v35, %v6836_v9 }
 0x1ee   : > { %v6434_v46 = vpop.f32.mrf.mxu1  ;;  %v4631_v63 = vpop.f32.mrf.mxu0 }
 0x1ef   : > { %v6437_v49 = vadd.f32 %v4631_v63, %v6237_v10 }
 0x1f0   : > { %v3203_v13 = vpop.f32.mrf.mxu1  ;;  %v2368_v16 = vpop.f32.mrf.mxu0 }
 0x1f1   : > { %v6440_v37 = vadd.f32 %v2368_v16, %v6210_v7 }
 0x1f2   : > { %v6442_v34 = vpop.f32.mrf.mxu1  ;;  %v4632_v42 = vpop.f32.mrf.mxu0 }
 0x1f3   : > { %v6445_v59 = vadd.f32 %v4632_v42, %v6250_v33 }
 0x1f4   : > { %v3208_v1 = vpop.f32.mrf.mxu1  ;;  %v2371_v62 = vpop.f32.mrf.mxu0 }
 0x1f5   : > { %v6448_v20 = vadd.f32 %v2371_v62, %v6221_v8 }
 0x1f6   : > { %v6450_v30 = vpop.f32.mrf.mxu1  ;;  %v4635_v10 = vpop.f32.mrf.mxu0 }
 0x1f7   : > { %v6453_v41 = vadd.f32 %v4635_v10, %v6291_v28 }
 0x1f8   : > { %v3211_v32 = vpop.f32.mrf.mxu1  ;;  %v2384_v7 = vpop.f32.mrf.mxu0 }
 0x1f9   : > { %v6456_v40 = vadd.f32 %v2384_v7, %v6264_v19 }
 0x1fa   : > { %v6458_v5 = vpop.f32.mrf.mxu1  ;;  %v4636_v33 = vpop.f32.mrf.mxu0 }
 0x1fb   : > { %v6461_v43 = vadd.f32 %v4636_v33, %v6302_v26 }
 0x1fc   : > { %v3216_v12 = vpop.f32.mrf.mxu1  ;;  %v2387_v8 = vpop.f32.mrf.mxu0 }
 0x1fd   : > { %v6464_v4 = vadd.f32 %v2387_v8, %v6278_v60 }
 0x1fe   : > { %v6466_v21 = vpop.f32.mrf.mxu1  ;;  %v4639_v28 = vpop.f32.mrf.mxu0 }
 0x1ff   : > { %v6469_v2 = vadd.f32 %v4639_v28, %v6329_v57 }
 0x200   : > { %v3219_v61 = vpop.f32.mrf.mxu1  ;;  %v2400_v19 = vpop.f32.mrf.mxu0 }
 0x201   : > { %v6472_v48 = vadd.f32 %v2400_v19, %v6311_v38 }
 0x202   : > { %v6474_v18 = vpop.f32.mrf.mxu1  ;;  %v4640_v26 = vpop.f32.mrf.mxu0 }
 0x203   : > { %v6477_v35 = vadd.f32 %v4640_v26, %v6337_v45 }
 0x204   : > { %v3224_v9 = vpop.f32.mrf.mxu1  ;;  %v2403_v60 = vpop.f32.mrf.mxu0 }
 0x205   : > { %v6480_v63 = vadd.f32 %v2403_v60, %v6321_v11 }
 0x206   : > { %v6482_v13 = vpop.f32.mrf.mxu1  ;;  %v4643_v57 = vpop.f32.mrf.mxu0 }
 0x207   : > { %v6485_v16 = vadd.f32 %v4643_v57, %v6352_v17 }
 0x208   : > { %v3227_v42 = vpop.f32.mrf.mxu1  ;;  %v2416_v38 = vpop.f32.mrf.mxu0 }
 0x209   : > { %v6488_v1 = vadd.f32 %v2416_v38, %v6343_v52 }
 0x20a   : > { %v6490_v62 = vpop.f32.mrf.mxu1  ;;  %v4644_v45 = vpop.f32.mrf.mxu0 }
 0x20b   : > { %v6493_v10 = vadd.f32 %v4644_v45, %v6356_v44 }
 0x20c   : > { %v3232_v32 = vpop.f32.mrf.mxu1  ;;  %v2419_v11 = vpop.f32.mrf.mxu0 }
 0x20d   : > { %v6496_v7 = vadd.f32 %v2419_v11, %v6347_v47 }
 0x20e   : > { %v6498_v33 = vpop.f32.mrf.mxu1  ;;  %v4647_v17 = vpop.f32.mrf.mxu0 }
 0x20f   : > { %v6501_v12 = vadd.f32 %v4647_v17, %v6370_v25 }
 0x210   : > { %v3235_v8 = vpop.f32.mrf.mxu1  ;;  %v2432_v52 = vpop.f32.mrf.mxu0 }
 0x211   : > { %v6504_v28 = vadd.f32 %v2432_v52, %v6362_v55 }
 0x212   : > { %v6506_v61 = vpop.f32.mrf.mxu1  ;;  %v4648_v44 = vpop.f32.mrf.mxu0 }
 0x213   : > { %v6509_v19 = vadd.f32 %v4648_v44, %v6374_v54 }
 0x214   : > { %v3240_v26 = vpop.f32.mrf.mxu1  ;;  %v2435_v47 = vpop.f32.mrf.mxu0 }
 0x215   : > { %v6512_v9 = vadd.f32 %v2435_v47, %v6366_v27 }
 0x216   : > { %v6514_v60 = vpop.f32.mrf.mxu1  ;;  %v4651_v25 = vpop.f32.mrf.mxu0 }
 0x217   : > { %v6517_v57 = vadd.f32 %v4651_v25, %v6386_v3 }
 0x218   : > { %v3243_v42 = vpop.f32.mrf.mxu1  ;;  %v2448_v55 = vpop.f32.mrf.mxu0 }
 0x219   : > { %v6520_v38 = vadd.f32 %v2448_v55, %v6378_v50 }
 0x21a   : > { %v6522_v45 = vpop.f32.mrf.mxu1  ;;  %v4652_v54 = vpop.f32.mrf.mxu0 }
 0x21b   : > { %v6525_v32 = vadd.f32 %v4652_v54, %v6389_v14 }
 0x21c   : > { %v3248_v11 = vpop.f32.mrf.mxu1  ;;  %v2451_v27 = vpop.f32.mrf.mxu0 }
 0x21d   : > { %v6528_v17 = vadd.f32 %v2451_v27, %v6382_v56 }
 0x21e   : > { %v6530_v8 = vpop.f32.mrf.mxu1  ;;  %v4655_v3 = vpop.f32.mrf.mxu0 }
 0x21f   : > { %v6533_v52 = vadd.f32 %v4655_v3, %v6409_v51 }
 0x220   : > { %v3251_v44 = vpop.f32.mrf.mxu1  ;;  %v2464_v50 = vpop.f32.mrf.mxu0 }
 0x221   : > { %6837 = vst [vmem:[#allocation10_spill] sm:$0xff] %v6533_v52  ;;  %v6536_v26 = vadd.f32 %v2464_v50, %v6394_v29 }
 0x222   : > { %v6538_v47 = vpop.f32.mrf.mxu1  ;;  %v4656_v14 = vpop.f32.mrf.mxu0 }
 0x223   : > { %6838 = vst [vmem:[#allocation8_spill] sm:$0xff] %v6536_v26  ;;  %v6541_v25 = vadd.f32 %v4656_v14, %v6418_v24 }
 0x224   : > { %v3256_v42 = vpop.f32.mrf.mxu1  ;;  %v2467_v56 = vpop.f32.mrf.mxu0 }
 0x225   : > { %6839 = vst [vmem:[#allocation9_spill] sm:$0xff] %v6541_v25  ;;  %v6544_v55 = vadd.f32 %v2467_v56, %v6400_v23 }
 0x226   : > { %v6546_v54 = vpop.f32.mrf.mxu1  ;;  %v4675_v51 = vpop.f32.mrf.mxu0 }
 0x227   : > { %6840 = vst [vmem:[#allocation12_spill] sm:$0xff] %v6544_v55  ;;  %v3384_v11 = vadd.f32 %v4675_v51, %v6442_v34 }
 0x228   : > { %v3259_v27 = vpop.f32.mrf.mxu1  ;;  %v3375_v29 = vpop.f32.mrf.mxu0 }
 0x229   : > { %v3376_v3 = vadd.f32 %v3375_v29, %v6426_v22  ;;  %v3520_v24 = vadd.f32 %v3384_v11, %v6402_v31 }
 0x22a   : > { %v6550_v44 = vpop.f32.mrf.mxu1  ;;  %v4676_v50 = vpop.f32.mrf.mxu0 }
 0x22b   : > { %v3518_v14 = vadd.f32 %v3376_v3, %v6406_v58  ;;  %v3387_v42 = vadd.f32 %v4676_v50, %v6450_v30  ;;  %v3558_v22 = vrot.slane %v3520_v24, 2 }
 0x22c   : > { %v3264_v23 = vpop.f32.mrf.mxu1  ;;  %v3378_v56 = vpop.f32.mrf.mxu0 }
 0x22d   : > { %v3521_v25 = vadd.f32 %v3387_v42, %v6411_v53  ;;  %v3379_v34 = vadd.f32 %v3378_v56, %v6434_v46  ;;  %v3866_v58 = vmul.f32 %v3518_v14, %v3518_v14 }
 0x22e   : > { %v6558_v51 = vpop.f32.mrf.mxu1  ;;  %v4679_v27 = vpop.f32.mrf.mxu0 }
 0x22f   : > { %v3559_v29 = vrot.slane %v3521_v25, 2  ;;  %v3519_v52 = vadd.f32 %v3379_v34, %v6416_v0  ;;  %v3400_v31 = vadd.f32 %v4679_v27, %v6474_v18 }
 0x230   : > { %v3267_v11 = vpop.f32.mrf.mxu1  ;;  %v3391_v53 = vpop.f32.mrf.mxu0 }
 0x231   : > { %v3560_v46 = vsel %vm2854_vm1, %v3558_v22, %v3559_v29  ;;  %v4383_v30 = vpack.c.bf16 %v3519_v52, %v3518_v14  ;;  %v3829_v3 = vadd.f32 %v3519_v52, %v3518_v14  ;;  %v3867_v50 = vmul.f32 %v3519_v52, %v3519_v52 }
 0x232   : > { %v6568_v24 = vpop.f32.mrf.mxu1  ;;  %v3868_v25 = vmul.f32 %v3560_v46, %v3560_v46  ;;  %v3392_v0 = vadd.f32 %v3391_v53, %v6458_v5  ;;  %v4680_v18 = vpop.f32.mrf.mxu0  ;;  %v3524_v56 = vadd.f32 %v3400_v31, %v6421_v6 }
 0x233   : > { %4384 = vst [vmem:[%s6565_s5] sm:$0xff] %v4383_v30   ;;  %v3830_v42 = vadd.f32 %v3829_v3, %v3560_v46  ;;  %v3898_v23 = vadd.f32 %v3867_v50, %v3866_v58  ;;  %v3403_v34 = vadd.f32 %v4680_v18, %v6482_v13 }
 0x234   : > { %v3272_v27 = vpop.f32.mrf.mxu1  ;;  %v3522_v11 = vadd.f32 %v3392_v0, %v6424_v15  ;;  %v3394_v22 = vpop.f32.mrf.mxu0  ;;  %v3578_v30 = vrot.slane %v3524_v56, 6  ;;  %v3571_v0 = vrot.slane %v3524_v56, 4 }
 0x235   : > { %v3899_v55 = vadd.f32 %v3898_v23, %v3868_v25  ;;  %v3525_v52 = vadd.f32 %v3403_v34, %v6429_v39  ;;  %v3395_v14 = vadd.f32 %v3394_v22, %v6466_v21 }
 0x236   : > { %v6577_v26 = vpop.f32.mrf.mxu1  ;;  %v3561_v5 = vrot.slane %v3522_v11, 2  ;;  %v4683_v53 = vpop.f32.mrf.mxu0  ;;  %v3568_v18 = vrot.slane %v3522_v11, 4 }
 0x237   : > { %v3579_v58 = vrot.slane %v3525_v52, 6  ;;  %v3523_v6 = vadd.f32 %v3395_v14, %v6432_v36 }
 0x238   : > { %v3275_v31 = vpop.f32.mrf.mxu1  ;;  %v3562_v13 = vsel %vm2854_vm1, %v3559_v29, %v3561_v5  ;;  %v3407_v3 = vpop.f32.mrf.mxu0 }
 0x239   : > { %v4388_v15 = vpack.c.bf16 %v3562_v13, %v3560_v46  ;;  %v3831_v50 = vadd.f32 %v3830_v42, %v3562_v13  ;;  %v3869_v25 = vmul.f32 %v3562_v13, %v3562_v13  ;;  %v3580_v39 = vsel %vm311_vm15, %v3578_v30, %v3579_v58 }
 0x23a   : > { %v6582_v21 = vpop.f32.mrf.mxu1  ;;  %v3569_v23 = vrot.slane %v3523_v6, 4  ;;  %v3408_v34 = vadd.f32 %v3407_v3, %v6490_v62  ;;  %v4684_v27 = vpop.f32.mrf.mxu0  ;;  %v3416_v42 = vadd.f32 %v4683_v53, %v6506_v61 }
 0x23b   : > { %4460 = vst [vmem:[%s6565_s5 + $0x8] sm:$0xff] %v4388_v15   ;;  %v3900_v36 = vadd.f32 %v3899_v55, %v3869_v25  ;;  %v3419_v6 = vadd.f32 %v4684_v27, %v6514_v60 }
 0x23c   : > { %v3280_v22 = vpop.f32.mrf.mxu1  ;;  %v3570_v29 = vsel %vm6841_vm2, %v3568_v18, %v3569_v23  ;;  %v3572_v46 = vsel %vm6842_vm12, %v3569_v23, %v3571_v0  ;;  %v3526_v52 = vadd.f32 %v3408_v34, %v6440_v37  ;;  %v3410_v56 = vpop.f32.mrf.mxu0  ;;  %v3528_v53 = vadd.f32 %v3416_v42, %v6437_v49 }
 0x23d   : > { %v4393_v14 = vpack.c.bf16 %v3572_v46, %v3570_v29  ;;  %v3832_v5 = vadd.f32 %v3831_v50, %v3570_v29  ;;  %v3870_v11 = vmul.f32 %v3570_v29, %v3570_v29  ;;  %v3411_v55 = vadd.f32 %v3410_v56, %v6498_v33 }
 0x23e   : > { %v6590_v30 = vpop.f32.mrf.mxu1  ;;  %v3581_v62 = vrot.slane %v3526_v52, 6  ;;  %v4687_v31 = vpop.f32.mrf.mxu0  ;;  %v3871_v3 = vmul.f32 %v3572_v46, %v3572_v46  ;;  %v3872_v18 = vmul.f32 %v3580_v39, %v3580_v39 }
 0x23f   : > { %4461 = vst [vmem:[%s6565_s5 + $0x10] sm:$0xff] %v4393_v14   ;;  %v3833_v13 = vadd.f32 %v3832_v5, %v3572_v46  ;;  %v3901_v15 = vadd.f32 %v3900_v36, %v3870_v11  ;;  %v3432_v61 = vadd.f32 %v4687_v31, %v6538_v47  ;;  %v3527_v25 = vadd.f32 %v3411_v55, %v6448_v20 }
 0x240   : > { %v3283_v37 = vpop.f32.mrf.mxu1  ;;  %v3582_v50 = vsel %vm311_vm15, %v3579_v58, %v3581_v62  ;;  %v3423_v0 = vpop.f32.mrf.mxu0  ;;  %v3529_v36 = vadd.f32 %v3419_v6, %v6445_v59  ;;  %v3875_v11 = vmul.f32 %v3528_v53, %v3528_v53 }
 0x241   : > { %v3902_v60 = vadd.f32 %v3901_v15, %v3871_v3  ;;  %v4398_v33 = vpack.c.bf16 %v3582_v50, %v3580_v39  ;;  %v3834_v23 = vadd.f32 %v3833_v13, %v3580_v39  ;;  %v3873_v27 = vmul.f32 %v3582_v50, %v3582_v50 }
 0x242   : > { %v6599_v34 = vpop.f32.mrf.mxu1  ;;  %v4403_v47 = vpack.c.bf16 %v3528_v53, %v3527_v25  ;;  %v3424_v22 = vadd.f32 %v3423_v0, %v6522_v45  ;;  %v4688_v29 = vpop.f32.mrf.mxu0  ;;  %v3532_v20 = vadd.f32 %v3432_v61, %v6453_v41  ;;  %v3874_v52 = vmul.f32 %v3527_v25, %v3527_v25 }
 0x243   : > { %4462 = vst [vmem:[%s6565_s5 + $0x18] sm:$0xff] %v4398_v33   ;;  %v3835_v49 = vadd.f32 %v3834_v23, %v3582_v50  ;;  %v3903_v58 = vadd.f32 %v3902_v60, %v3872_v18  ;;  %v3435_v46 = vadd.f32 %v4688_v29, %v6546_v54  ;;  %v3588_v62 = vrot.slane %v3529_v36, 2 }
 0x244   : > { %v3288_v42 = vpop.f32.mrf.mxu1  ;;  %4463 = vst [vmem:[%s6565_s5 + $0x20] sm:$0xff] %v4403_v47   ;;  %v3530_v39 = vadd.f32 %v3424_v22, %v6456_v40  ;;  %v3426_v56 = vpop.f32.mrf.mxu0  ;;  %v3598_v13 = vrot.slane %v3532_v20, 4 }
 0x245   : > { %v3836_v14 = vadd.f32 %v3835_v49, %v3527_v25  ;;  %v3904_v5 = vadd.f32 %v3903_v58, %v3873_v27  ;;  %v3533_v59 = vadd.f32 %v3435_v46, %v6461_v43  ;;  %v3427_v45 = vadd.f32 %v3426_v56, %v6530_v8 }
 0x246   : > { %v6610_v6 = vpop.f32.mrf.mxu1  ;;  %v3589_v55 = vrot.slane %v3530_v39, 2  ;;  %v4691_v41 = vpop.f32.mrf.mxu0 }
 0x247   : > { %v3837_v31 = vadd.f32 %v3836_v14, %v3528_v53  ;;  %v3905_v54 = vadd.f32 %v3904_v5, %v3874_v52  ;;  %v3600_v3 = vrot.slane %v3533_v59, 4  ;;  %v3531_v61 = vadd.f32 %v3427_v45, %v6464_v4 }
 0x248   : > { %v3291_v15 = vpop.f32.mrf.mxu1  ;;  %v3590_v40 = vsel %vm2854_vm1, %v3588_v62, %v3589_v55  ;;  %v3439_v37 = vpop.f32.mrf.mxu0  ;;  %v3448_v53 = vadd.f32 %v4691_v41, %v6568_v24  ;;  %v3606_v56 = vrot.slane %v3533_v59, 6 }
 0x249   : > { %v3906_v50 = vadd.f32 %v3905_v54, %v3875_v11  ;;  %v3838_v43 = vadd.f32 %v3837_v31, %v3590_v40  ;;  %v3876_v25 = vmul.f32 %v3590_v40, %v3590_v40  ;;  %v3601_v8 = vsel %vm6843_vm8, %v3598_v13, %v3600_v3 }
 0x24a   : > { %v6615_v0 = vpop.f32.mrf.mxu1  ;;  %v3591_v18 = vrot.slane %v3531_v61, 2  ;;  %v3597_v60 = vrot.slane %v3531_v61, 4  ;;  %v4692_v33 = vpop.f32.mrf.mxu0  ;;  %v3440_v27 = vadd.f32 %v3439_v37, %v6550_v44  ;;  %v3536_v24 = vadd.f32 %v3448_v53, %v6469_v2 }
 0x24b   : > { %v3907_v23 = vadd.f32 %v3906_v50, %v3876_v25  ;;  %v3451_v36 = vadd.f32 %v4692_v33, %v6577_v26  ;;  %v3879_v31 = vmul.f32 %v3601_v8, %v3601_v8 }
 0x24c   : > { %v3296_v4 = vpop.f32.mrf.mxu1  ;;  %v3592_v47 = vsel %vm2854_vm1, %v3589_v55, %v3591_v18  ;;  %v3599_v22 = vsel %vm6844_vm10, %v3597_v60, %v3598_v13  ;;  %v3442_v29 = vpop.f32.mrf.mxu0  ;;  %v3534_v44 = vadd.f32 %v3440_v27, %v6472_v48 }
 0x24d   : > { %v4408_v49 = vpack.c.bf16 %v3592_v47, %v3590_v40  ;;  %v4413_v58 = vpack.c.bf16 %v3601_v8, %v3599_v22  ;;  %v3839_v20 = vadd.f32 %v3838_v43, %v3592_v47  ;;  %v3877_v46 = vmul.f32 %v3592_v47, %v3592_v47 }
 0x24e   : > { %v6622_v42 = vpop.f32.mrf.mxu1  ;;  %v3537_v26 = vadd.f32 %v3451_v36, %v6477_v35  ;;  %v3443_v52 = vadd.f32 %v3442_v29, %v6558_v51  ;;  %v4695_v39 = vpop.f32.mrf.mxu0  ;;  %v3878_v5 = vmul.f32 %v3599_v22, %v3599_v22  ;;  %v3607_v62 = vrot.slane %v3534_v44, 6 }
 0x24f   : > { %4464 = vst [vmem:[%s6565_s5 + $0x28] sm:$0xff] %v4408_v49   ;;  %4465 = vst [vmem:[%s6565_s5 + $0x30] sm:$0xff] %v4413_v58   ;;  %v3840_v14 = vadd.f32 %v3839_v20, %v3599_v22  ;;  %v3908_v45 = vadd.f32 %v3907_v23, %v3877_v46  ;;  %v3464_v2 = vadd.f32 %v4695_v39, %v6599_v34 }
 0x250   : > { %v3299_v11 = vpop.f32.mrf.mxu1  ;;  %v4423_v55 = vpack.c.bf16 %v3537_v26, %v3536_v24  ;;  %v3535_v41 = vadd.f32 %v3443_v52, %v6480_v63  ;;  %v3455_v48 = vpop.f32.mrf.mxu0  ;;  %v3608_v59 = vsel %vm311_vm15, %v3606_v56, %v3607_v62  ;;  %v3882_v4 = vmul.f32 %v3536_v24, %v3536_v24 }
 0x251   : > { %v3909_v35 = vadd.f32 %v3908_v45, %v3878_v5  ;;  %v3841_v54 = vadd.f32 %v3840_v14, %v3601_v8  ;;  %v3456_v3 = vadd.f32 %v3455_v48, %v6582_v21  ;;  %v3880_v61 = vmul.f32 %v3608_v59, %v3608_v59 }
 0x252   : > { %v3302_v51 = vpop.f32.mrf.mxu1  ;;  %4467 = vst [vmem:[%s6565_s5 + $0x40] sm:$0xff] %v4423_v55   ;;  %v3609_v13 = vrot.slane %v3535_v41, 6  ;;  %v4696_v15 = vpop.f32.mrf.mxu0  ;;  %v3540_v34 = vadd.f32 %v3464_v2, %v6485_v16  ;;  %v3883_v16 = vmul.f32 %v3537_v26, %v3537_v26 }
 0x253   : > { %v3842_v40 = vadd.f32 %v3841_v54, %v3608_v59  ;;  %v3910_v37 = vadd.f32 %v3909_v35, %v3879_v31  ;;  %v3467_v43 = vadd.f32 %v4696_v15, %v6610_v6  ;;  %v3538_v21 = vadd.f32 %v3456_v3, %v6488_v1 }
 0x254   : > { %v3304_v50 = vpop.f32.mrf.mxu1  ;;  %v3610_v63 = vsel %vm311_vm15, %v3607_v62, %v3609_v13  ;;  %v3458_v25 = vpop.f32.mrf.mxu0  ;;  %v3625_v6 = vrot.slane %v3540_v34, 4  ;;  %v3619_v44 = vrot.slane %v3540_v34, 2 }
 0x255   : > { %v3911_v8 = vadd.f32 %v3910_v37, %v3880_v61  ;;  %v4418_v18 = vpack.c.bf16 %v3610_v63, %v3608_v59  ;;  %v3843_v60 = vadd.f32 %v3842_v40, %v3610_v63  ;;  %v3881_v53 = vmul.f32 %v3610_v63, %v3610_v63 }
 0x256   : > { %v3305_v33 = vpop.f32.mrf.mxu1  ;;  %v3541_v23 = vadd.f32 %v3467_v43, %v6493_v10  ;;  %v3459_v27 = vadd.f32 %v3458_v25, %v6590_v30  ;;  %v4699_v36 = vpop.f32.mrf.mxu0  ;;  %v3616_v39 = vrot.slane %v3538_v21, 2 }
 0x257   : > { %4466 = vst [vmem:[%s6565_s5 + $0x38] sm:$0xff] %v4418_v18   ;;  %v3844_v47 = vadd.f32 %v3843_v60, %v3536_v24  ;;  %v3912_v22 = vadd.f32 %v3911_v8, %v3881_v53  ;;  %v3480_v14 = vadd.f32 %v4699_v36, %v3302_v51 }
 0x258   : > { %v3307_v29 = vpop.f32.mrf.mxu1  ;;  %v3626_v49 = vrot.slane %v3541_v23, 4  ;;  %v3539_v58 = vadd.f32 %v3459_v27, %v6496_v7  ;;  %v3471_v20 = vpop.f32.mrf.mxu0 }
 0x259   : > { %v3913_v46 = vadd.f32 %v3912_v22, %v3882_v4  ;;  %v3845_v52 = vadd.f32 %v3844_v47, %v3537_v26  ;;  %v3472_v1 = vadd.f32 %v3471_v20, %v6615_v0  ;;  %v3544_v48 = vadd.f32 %v3480_v14, %v6501_v12 }
 0x25a   : > { %v3310_v10 = vpop.f32.mrf.mxu1  ;;  %v3627_v30 = vsel %vm6845_vm11, %v3625_v6, %v3626_v49  ;;  %v3617_v56 = vrot.slane %v3539_v58, 2  ;;  %v4700_v24 = vpop.f32.mrf.mxu0 }
 0x25b   : > { %v3914_v5 = vadd.f32 %v3913_v46, %v3883_v16  ;;  %v3542_v45 = vadd.f32 %v3472_v1, %v6504_v28  ;;  %v3483_v15 = vadd.f32 %v4700_v24, %v3305_v33  ;;  %v3886_v37 = vmul.f32 %v3627_v30, %v3627_v30 }
 0x25c   : > { %v3312_v11 = vpop.f32.mrf.mxu1  ;;  %v3618_v7 = vsel %vm2854_vm1, %v3616_v39, %v3617_v56  ;;  %v3620_v62 = vsel %vm2854_vm1, %v3617_v56, %v3619_v44  ;;  %v3474_v55 = vpop.f32.mrf.mxu0  ;;  %v3637_v34 = vrot.slane %v3544_v48, 6 }
 0x25d   : > { %v4428_v26 = vpack.c.bf16 %v3620_v62, %v3618_v7  ;;  %v3846_v41 = vadd.f32 %v3845_v52, %v3618_v7  ;;  %v3884_v0 = vmul.f32 %v3618_v7, %v3618_v7  ;;  %v3628_v31 = vrot.slane %v3542_v45, 4 }
 0x25e   : > { %v3313_v2 = vpop.f32.mrf.mxu1  ;;  %v3475_v35 = vadd.f32 %v3474_v55, %v6622_v42  ;;  %v4703_v54 = vpop.f32.mrf.mxu0  ;;  %v3885_v59 = vmul.f32 %v3620_v62, %v3620_v62  ;;  %v3634_v42 = vrot.slane %v3542_v45, 6 }
 0x25f   : > { %4468 = vst [vmem:[%s6565_s5 + $0x48] sm:$0xff] %v4428_v26   ;;  %v3847_v51 = vadd.f32 %v3846_v41, %v3620_v62  ;;  %v3915_v28 = vadd.f32 %v3914_v5, %v3884_v0  ;;  %v3629_v3 = vsel %vm6846_vm14, %v3626_v49, %v3628_v31 }
 0x260   : > { %v3315_v13 = vpop.f32.mrf.mxu1  ;;  %v3543_v40 = vadd.f32 %v3475_v35, %v6512_v9  ;;  %v3487_v61 = vpop.f32.mrf.mxu0  ;;  %v4433_v12 = vpack.c.bf16 %v3629_v3, %v3627_v30  ;;  %v3887_v21 = vmul.f32 %v3629_v3, %v3629_v3  ;;  %v3545_v9 = vadd.f32 %v3483_v15, %v6509_v19 }
 0x261   : > { %v3848_v50 = vadd.f32 %v3847_v51, %v3627_v30  ;;  %v3916_v63 = vadd.f32 %v3915_v28, %v3885_v59  ;;  %v3488_v8 = vadd.f32 %v3487_v61, %v3310_v10  ;;  %v6847_v51 = vld [vmem:[#allocation8_spill] sm:$0xff] }
 0x262   : > { %v3318_v43 = vpop.f32.mrf.mxu1  ;;  %v3635_v25 = vrot.slane %v3543_v40, 6  ;;  %v4704_v18 = vpop.f32.mrf.mxu0  ;;  %4469 = vst [vmem:[%s6565_s5 + $0x50] sm:$0xff] %v4433_v12   ;;  %v3890_v39 = vmul.f32 %v3545_v9, %v3545_v9  ;;  %v6848_v12 = vld [vmem:[#allocation12_spill] sm:$0xff] }
 0x263   : > { %v3917_v60 = vadd.f32 %v3916_v63, %v3886_v37  ;;  %v3849_v53 = vadd.f32 %v3848_v50, %v3629_v3  ;;  %v3496_v23 = vadd.f32 %v4703_v54, %v3318_v43  ;;  %v3546_v4 = vadd.f32 %v3488_v8, %v6520_v38 }
 0x264   : > { %v3320_v33 = vpop.f32.mrf.mxu1  ;;  %v3636_v27 = vsel %vm311_vm15, %v3634_v42, %v3635_v25  ;;  %v3638_v36 = vsel %vm311_vm15, %v3635_v25, %v3637_v34  ;;  %v3490_v47 = vpop.f32.mrf.mxu0 }
 0x265   : > { %v3918_v22 = vadd.f32 %v3917_v60, %v3887_v21  ;;  %v4438_v16 = vpack.c.bf16 %v3638_v36, %v3636_v27  ;;  %v3850_v29 = vadd.f32 %v3849_v53, %v3636_v27  ;;  %v3888_v6 = vmul.f32 %v3636_v27, %v3636_v27 }
 0x266   : > { %v3321_v49 = vpop.f32.mrf.mxu1  ;;  %v3889_v58 = vmul.f32 %v3638_v36, %v3638_v36  ;;  %v3548_v20 = vadd.f32 %v3496_v23, %v6517_v57  ;;  %v4443_v46 = vpack.c.bf16 %v3546_v4, %v3545_v9  ;;  %v4707_v44 = vpop.f32.mrf.mxu0  ;;  %v3491_v10 = vadd.f32 %v3490_v47, %v3313_v2  ;;  %v6850_v23 = vld [vmem:[#allocation10_spill] sm:$0xff] }
 0x267   : > { %4470 = vst [vmem:[%s6565_s5 + $0x58] sm:$0xff] %v4438_v16   ;;  %v3851_v19 = vadd.f32 %v3850_v29, %v3638_v36  ;;  %v3919_v52 = vadd.f32 %v3918_v22, %v3888_v6  ;;  %v3499_v1 = vadd.f32 %v4704_v18, %v3321_v49  ;;  %v3891_v11 = vmul.f32 %v3546_v4, %v3546_v4 }
 0x268   : > { %v3323_v30 = vpop.f32.mrf.mxu1  ;;  %4471 = vst [vmem:[%s6565_s5 + $0x60] sm:$0xff] %v4443_v46   ;;  %v3503_v38 = vpop.f32.mrf.mxu0  ;;  %v3547_v5 = vadd.f32 %v3491_v10, %v6528_v17  ;;  %v3645_v7 = vrot.slane %v3548_v20, 2 }
 0x269   : > { %v3920_v56 = vadd.f32 %v3919_v52, %v3889_v58  ;;  %v3852_v14 = vadd.f32 %v3851_v19, %v3545_v9  ;;  %v3549_v24 = vadd.f32 %v3499_v1, %v6525_v32  ;;  %v6852_v58 = vld [vmem:[#allocation9_spill] sm:$0xff] }
 0x26a   : > { %v3326_v45 = vpop.f32.mrf.mxu1  ;;  %v4708_v57 = vpop.f32.mrf.mxu0  ;;  %v3644_v0 = vrot.slane %v3547_v5, 2 }
 0x26b   : > { %v3853_v62 = vadd.f32 %v3852_v14, %v3546_v4  ;;  %v3921_v55 = vadd.f32 %v3920_v56, %v3890_v39  ;;  %v3647_v26 = vrot.slane %v3549_v24, 2  ;;  %v3504_v2 = vadd.f32 %v3503_v38, %v3326_v45 }
 0x26c   : > { %v3328_v41 = vpop.f32.mrf.mxu1  ;;  %v3506_v48 = vpop.f32.mrf.mxu0  ;;  %v3646_v32 = vsel %vm2854_vm1, %v3644_v0, %v3645_v7  ;;  %v3653_v15 = vrot.slane %v3549_v24, 4 }
 0x26d   : > { %v3922_v31 = vadd.f32 %v3921_v55, %v3891_v11  ;;  %v3648_v35 = vsel %vm2854_vm1, %v3645_v7, %v3647_v26  ;;  %v3550_v17 = vadd.f32 %v3504_v2, %v6847_v51  ;;  %v3854_v28 = vadd.f32 %v3853_v62, %v3646_v32  ;;  %vm6851_vm1 = vmmov %vm6849_vm0 }
 0x26e   : > { %v3329_v54 = vpop.f32.mrf.mxu1  ;;  %v4448_v59 = vpack.c.bf16 %v3648_v35, %v3646_v32  ;;  %v3892_v13 = vmul.f32 %v3646_v32, %v3646_v32  ;;  %v3893_v37 = vmul.f32 %v3648_v35, %v3648_v35 }
 0x26f   : > { %v3507_v3 = vadd.f32 %v3506_v48, %v3329_v54  ;;  %v3654_v61 = vrot.slane %v3550_v17, 4  ;;  %v3855_v63 = vadd.f32 %v3854_v28, %v3648_v35 }
 0x270   : > { %v3331_v40 = vpop.f32.mrf.mxu1  ;;  %4472 = vst [vmem:[%s6565_s5 + $0x68] sm:$0xff] %v4448_v59   ;;  %v3923_v50 = vadd.f32 %v3922_v31, %v3892_v13 }
 0x271   : > { %v3551_v34 = vadd.f32 %v3507_v3, %v6848_v12  ;;  %v3655_v42 = vsel %vm6849_vm0, %v3653_v15, %v3654_v61 }
 0x272   : > { %v3334_v43 = vpop.f32.mrf.mxu1  ;;  %v3856_v8 = vadd.f32 %v3855_v63, %v3655_v42  ;;  %v3894_v18 = vmul.f32 %v3655_v42, %v3655_v42  ;;  %v3924_v60 = vadd.f32 %v3923_v50, %v3893_v37 }
 0x273   : > { %v3512_v25 = vadd.f32 %v4707_v44, %v3334_v43  ;;  %v3656_v21 = vrot.slane %v3551_v34, 4  ;;  %v3662_v27 = vrot.slane %v3551_v34, 6 }
 0x274   : > { %v3336_v53 = vpop.f32.mrf.mxu1  ;;  %v3925_v9 = vadd.f32 %v3924_v60, %v3894_v18 }
 0x275   : > { %v3552_v33 = vadd.f32 %v3512_v25, %v6850_v23  ;;  %v3657_v4 = vsel %vm6851_vm1, %v3654_v61, %v3656_v21 }
 0x276   : > { %v3337_v36 = vpop.f32.mrf.mxu1  ;;  %v4453_v16 = vpack.c.bf16 %v3657_v4, %v3655_v42  ;;  %v3857_v29 = vadd.f32 %v3856_v8, %v3657_v4  ;;  %v3895_v6 = vmul.f32 %v3657_v4, %v3657_v4 }
 0x277   : > { %v3663_v47 = vrot.slane %v3552_v33, 6  ;;  %v3515_v22 = vadd.f32 %v4708_v57, %v3337_v36 }
 0x278   : > { %v3339_v49 = vpop.f32.mrf.mxu1  ;;  %4473 = vst [vmem:[%s6565_s5 + $0x70] sm:$0xff] %v4453_v16   ;;  %v3926_v52 = vadd.f32 %v3925_v9, %v3895_v6 }
 0x279   : > { %v3553_v20 = vadd.f32 %v3515_v22, %v6852_v58  ;;  %v3664_v46 = vsel %vm311_vm15, %v3662_v27, %v3663_v47 }
 0x27a   : > { %v3858_v44 = vadd.f32 %v3857_v29, %v3664_v46  ;;  %v3896_v19 = vmul.f32 %v3664_v46, %v3664_v46 }
 0x27b   : > { %v3665_v1 = vrot.slane %v3553_v20, 6 }
 0x27c   : > { %v3927_v10 = vadd.f32 %v3926_v52, %v3896_v19 }
 0x27d   : > { %v3666_v39 = vsel %vm311_vm15, %v3663_v47, %v3665_v1  ;;  %vm6853_vm15 = vcmask 1040384  }
 0x27e   : > { %v3897_v30 = vmul.f32 %v3666_v39, %v3666_v39  ;;  %v4458_v38 = vpack.c.bf16 %v3666_v39, %v3664_v46  ;;  %v3859_v56 = vadd.f32 %v3858_v44, %v3666_v39 }
 0x280   : > { %4474 = vst [vmem:[%s6565_s5 + $0x78] sm:$0xff] %v4458_v38   ;;  %v3860_v14 = vrot.slane %v3859_v56, 4  ;;  %v3928_v24 = vadd.f32 %v3927_v10, %v3897_v30 }
 0x282   : > { %v3861_v5 = vadd.f32 %v3860_v14, %v3859_v56  ;;  %v3929_v45 = vrot.slane %v3928_v24, 4 }
 0x284   : > { %v3862_v11 = vrot.slane %v3861_v5, 2  ;;  %v3930_v57 = vadd.f32 %v3929_v45, %v3928_v24 }
 0x286   : > { %v3863_v7 = vadd.f32 %v3862_v11, %v3861_v5  ;;  %v3931_v62 = vrot.slane %v3930_v57, 2 }
 0x288   : > { %v3864_v55 = vrot.slane %v3863_v7, 1  ;;  %v3932_v26 = vadd.f32 %v3931_v62, %v3930_v57 }
 0x28a   : > { %v3933_v41 = vrot.slane %v3932_v26, 1  ;;  %v3865_v0 = vadd.f32 %v3864_v55, %v3863_v7 }
 0x28c   : > { %v3934_v2 = vadd.f32 %v3933_v41, %v3932_v26 }
 0x28e   : > { %v3936_v48 = vsel %vm6853_vm15, %v3865_v0, %v3934_v2 }
 0x28f   : > { %3937 = vst [vmem:[%s181_s10] sm:$0x3] %v3936_v48 }
 0x290 PF: > { %s14_s12 = sadd.s32 1, %s4878_s12  }
 0x291   : > { %p11_p4 = scmp.ge.s32.totalorder %s14_s12, 4  }
 0x293   :  { %13 = sbr.rel (!%p11_p4) target bundleno = 1 (0x1), region = 72 }

// kernel: conv_forward.4
= control target key start
LH: loop header
LB: loop body
LE: loop exit
PB: predicated region body
PF: predicated region fallthrough
CT: control target
= control target key end

     0   :  { %s5190_s18 = smov 0   ;;  %s7069_s0 = inlined_call_operand.vmem [shape: bf16[2,256,128], index: 0, kind: input, shape index: {}]   ;;  %s7070_s1 = inlined_call_operand.vmem [shape: f32[1,128], index: 1, kind: input, shape index: {}]   ;;  %s7071_s2 = inlined_call_operand.vmem [shape: f32[1,128], index: 2, kind: input, shape index: {}]   ;;  %s7072_s3 = inlined_call_operand.vmem [shape: bf16[3,384,128], index: 3, kind: input, shape index: {}]   ;;  %s7073_s4 = inlined_call_operand.vmem [shape: bf16[2,256,128], index: 4, kind: output, shape index: {0}]   ;;  %s7074_s5 = inlined_call_operand.vmem [shape: f32[2,2,128], index: 5, kind: output, shape index: {1}]  }
   0x1 LB: > { %s4220_s19 = sadd.s32 4294967295, %s5157_s18   ;;  %p4224_p0 = scmp.ge.s32.totalorder %s5157_s18, 1  ;;  %s5157_s18 = sphi %s5190_s18, %s16_s18  }
   0x2   : > { %p190_p1 = scmp.lt.s32.totalorder %s5157_s18, 3 }
   0x4   : > { %p191_p2 = pnand %p4224_p0, %p190_p1 }
   0x6   : > { %194 = sbr.rel (%p191_p2) target bundleno = 689 (0x2b1), region = 36 }
   0xb   : > { %v5011_v0 = vld [vmem:[%s7072_s3 + $0xf8] sm:$0xff]   ;;  %v7081_v1 = vmov 0   ;;  %v5012_v2 = vld [vmem:[%s7072_s3 + $0xf0] sm:$0xff]   ;;  %p222_p3 = scmp.lt.s32.totalorder %s4220_s19, 1  ;;  %v5014_v5 = vld [vmem:[%s7072_s3 + $0xe8] sm:$0xff]   ;;  %vm549_vm0 = vcmask 1042432  }
   0xc   : > { %1823 = vmatprep.subr.bf16.mxu0 %v7081_v1  ;;  %427 = vst [vmem:[#allocation2] sm:$0xf] %v7081_v1  ;;  %428 = vst [vmem:[#allocation2 + $0x4] sm:$0xf] %v7081_v1  ;;  %v5249_v3 = vld [vmem:[%s7072_s3 + $0x178] sm:$0xff]   ;;  %v5015_v4 = vld [vmem:[%s7072_s3 + $0x170] sm:$0xff]  }
   0xd   : > { %429 = vst [vmem:[#allocation2 + $0x8] sm:$0xf] %v7081_v1  ;;  %430 = vst [vmem:[#allocation2 + $0xc] sm:$0xf] %v7081_v1  ;;  %1824 = vmatpush1.bf16.msra.mxu0 %v5011_v0  ;;  %4986 = vmatprep.subr.bf16.mxu1 %v5249_v3  ;;  %v5017_v6 = vld [vmem:[%s7072_s3 + $0x168] sm:$0xff]   ;;  %s7167_s19 = smov (!%p222_p3, %s4220_s19), 1 }
   0xe   : > { %431 = vst [vmem:[#allocation2 + $0x10] sm:$0xf] %v7081_v1  ;;  %432 = vst [vmem:[#allocation2 + $0x14] sm:$0xf] %v7081_v1  ;;  %1825 = vmatprep.subr.bf16.mxu0 %v7081_v1  ;;  %4994 = vmatpush3.bf16.msra.mxu1 %v5249_v3  ;;  %v5016_v7 = vld [vmem:[%s7072_s3 + $0xe0] sm:$0xff]   ;;  %s4512_s11 = sshll.u32 %s7167_s19, 7 }
   0xf   : > { %433 = vst [vmem:[#allocation2 + $0x18] sm:$0xf] %v7081_v1  ;;  %434 = vst [vmem:[#allocation2 + $0x1c] sm:$0xf] %v7081_v1  ;;  %4987 = vmatprep.subr.bf16.mxu1 %v5015_v4  ;;  %v5019_v8 = vld [vmem:[%s7072_s3 + $0x160] sm:$0xff]   ;;  %v5018_v9 = vld [vmem:[%s7072_s3 + $0xd8] sm:$0xff]   ;;  %s5290_s20 = scalar_lea.vmem %s7069_s0, %s4512_s11  ;;  %s6976_s17 = scalar_lea.vmem %s7073_s4, %s4512_s11 }
  0x10   : > { %435 = vst [vmem:[#allocation2 + $0x20] sm:$0xf] %v7081_v1  ;;  %436 = vst [vmem:[#allocation2 + $0x24] sm:$0xf] %v7081_v1  ;;  %v5021_v10 = vld [vmem:[%s7072_s3 + $0x158] sm:$0xff]   ;;  %v5020_v11 = vld [vmem:[%s7072_s3 + $0xd0] sm:$0xff]  }
  0x11   : > { %437 = vst [vmem:[#allocation2 + $0x28] sm:$0xf] %v7081_v1  ;;  %438 = vst [vmem:[#allocation2 + $0x2c] sm:$0xf] %v7081_v1  ;;  %1826 = vmatpush1.bf16.msra.mxu0 %v5012_v2  ;;  %v5023_v12 = vld [vmem:[%s7072_s3 + $0x150] sm:$0xff]   ;;  %v5299_v13 = vld [vmem:[%s5290_s20 + $0x8] sm:$0xff]  }
  0x12   : > { %439 = vst [vmem:[#allocation2 + $0x30] sm:$0xf] %v7081_v1  ;;  %440 = vst [vmem:[#allocation2 + $0x34] sm:$0xf] %v7081_v1  ;;  %1827 = vmatprep.subr.bf16.mxu0 %v7081_v1  ;;  %4995 = vmatpush3.bf16.msra.mxu1 %v5015_v4  ;;  %v4723_v14 = vld [vmem:[%s5290_s20 + $0x10] sm:$0xff]   ;;  %v4724_v15 = vld [vmem:[%s5290_s20 + $0x18] sm:$0xff]   ;;  %v4585_v16 = vunpack.c.h.bf16 %v5299_v13 }
  0x13   : > { %441 = vst [vmem:[#allocation2 + $0x38] sm:$0xf] %v7081_v1  ;;  %442 = vst [vmem:[#allocation2 + $0x3c] sm:$0xf] %v7081_v1  ;;  %4988 = vmatprep.subr.bf16.mxu1 %v5017_v6  ;;  %v4588_v17 = vunpack.c.l.bf16 %v4723_v14  ;;  %v4589_v18 = vunpack.c.h.bf16 %v4723_v14  ;;  %v4592_v19 = vunpack.c.l.bf16 %v4724_v15  ;;  %v4725_v20 = vld [vmem:[%s5290_s20 + $0x20] sm:$0xff]   ;;  %vm584_vm1 = vcmask 1043459  }
  0x14   : > { %443 = vst [vmem:[#allocation2 + $0x40] sm:$0xf] %v7081_v1  ;;  %444 = vst [vmem:[#allocation2 + $0x44] sm:$0xf] %v7081_v1  ;;  %v5309_v21 = vld [vmem:[%s7070_s1] ss:$0 sm:$0xff]  ;;  %v4593_v22 = vunpack.c.h.bf16 %v4724_v15  ;;  %v4596_v23 = vunpack.c.l.bf16 %v4725_v20  ;;  %v4597_v47 = vunpack.c.h.bf16 %v4725_v20 }
  0x15   : > { %445 = vst [vmem:[#allocation2 + $0x48] sm:$0xf] %v7081_v1  ;;  %446 = vst [vmem:[#allocation2 + $0x4c] sm:$0xf] %v7081_v1  ;;  %1828 = vmatpush1.bf16.msra.mxu0 %v5014_v5  ;;  %v5314_v24 = vld [vmem:[%s7071_s2] ss:$0 sm:$0xff]  ;;  %v311_v25 = vmul.f32 %v4585_v16, %v5309_v21  ;;  %v312_v26 = vmul.f32 %v4588_v17, %v5309_v21  ;;  %v313_v27 = vmul.f32 %v4589_v18, %v5309_v21 }
  0x16   : > { %447 = vst [vmem:[#allocation2 + $0x50] sm:$0xf] %v7081_v1  ;;  %448 = vst [vmem:[#allocation2 + $0x54] sm:$0xf] %v7081_v1  ;;  %1829 = vmatprep.subr.bf16.mxu0 %v7081_v1  ;;  %4996 = vmatpush3.bf16.msra.mxu1 %v5017_v6  ;;  %vm7077_vm2 = vsmask.f32 2304  ;;  %v314_v28 = vmul.f32 %v4592_v19, %v5309_v21  ;;  %v315_v31 = vmul.f32 %v4593_v22, %v5309_v21 }
  0x17   : > { %449 = vst [vmem:[#allocation2 + $0x58] sm:$0xf] %v7081_v1  ;;  %450 = vst [vmem:[#allocation2 + $0x5c] sm:$0xf] %v7081_v1  ;;  %4989 = vmatprep.subr.bf16.mxu1 %v5019_v8  ;;  %vm559_vm3 = vsmask.f32 3328  ;;  %v316_v32 = vmul.f32 %v4596_v23, %v5309_v21  ;;  %v350_v33 = vadd.f32 %v5314_v24, %v311_v25  ;;  %v351_v34 = vadd.f32 %v5314_v24, %v312_v26 }
  0x18   : > { %451 = vst [vmem:[#allocation2 + $0x60] sm:$0xf] %v7081_v1  ;;  %452 = vst [vmem:[#allocation2 + $0x64] sm:$0xf] %v7081_v1  ;;  %vm7076_vm4 = vcmask 1043456   ;;  %v5022_v29 = vld [vmem:[%s7072_s3 + $0xc8] sm:$0xff]   ;;  %v352_v35 = vadd.f32 %v5314_v24, %v313_v27  ;;  %v353_v36 = vadd.f32 %v5314_v24, %v314_v28  ;;  %v354_v38 = vadd.f32 %v5314_v24, %v315_v31 }
  0x19   : > { %453 = vst [vmem:[#allocation2 + $0x68] sm:$0xf] %v7081_v1  ;;  %454 = vst [vmem:[#allocation2 + $0x6c] sm:$0xf] %v7081_v1  ;;  %1830 = vmatpush1.bf16.msra.mxu0 %v5016_v7  ;;  %v5025_v30 = vld [vmem:[%s7072_s3 + $0x148] sm:$0xff]   ;;  %v5024_v37 = vld [vmem:[%s7072_s3 + $0xc0] sm:$0xff]   ;;  %v355_v39 = vadd.f32 %v5314_v24, %v316_v32  ;;  %v5352_v58 = vmul.f32 %v4597_v47, %v5309_v21 }
  0x1a   : > { %455 = vst [vmem:[#allocation2 + $0x70] sm:$0xf] %v7081_v1  ;;  %456 = vst [vmem:[#allocation2 + $0x74] sm:$0xf] %v7081_v1  ;;  %1831 = vmatprep.subr.bf16.mxu0 %v7081_v1  ;;  %4997 = vmatpush3.bf16.msra.mxu1 %v5019_v8  ;;  %vm560_vm5 = vsmask.f32 7440 }
  0x1b   : > { %457 = vst [vmem:[#allocation2 + $0x78] sm:$0xf] %v7081_v1  ;;  %458 = vst [vmem:[#allocation2 + $0x7c] sm:$0xf] %v7081_v1  ;;  %4990 = vmatprep.subr.bf16.mxu1 %v5021_v10  ;;  %vm585_vm6 = vsmask.f32 7950 }
  0x1c   : > { %459 = vst [vmem:[#allocation2 + $0x80] sm:$0xf] %v7081_v1  ;;  %460 = vst [vmem:[#allocation2 + $0x84] sm:$0xf] %v7081_v1  ;;  %vm601_vm7 = vsmask.f32 256 }
  0x1d   : > { %461 = vst [vmem:[#allocation2 + $0x88] sm:$0xf] %v7081_v1  ;;  %462 = vst [vmem:[#allocation2 + $0x8c] sm:$0xf] %v7081_v1  ;;  %1832 = vmatpush1.bf16.msra.mxu0 %v5018_v9  ;;  %vm602_vm8 = vsmask.f32 4368 }
  0x1e   : > { %463 = vst [vmem:[#allocation2 + $0x90] sm:$0xf] %v7081_v1  ;;  %464 = vst [vmem:[#allocation2 + $0x94] sm:$0xf] %v7081_v1  ;;  %1833 = vmatprep.subr.bf16.mxu0 %v7081_v1  ;;  %4998 = vmatpush3.bf16.msra.mxu1 %v5021_v10  ;;  %vm7075_vm9 = vcmask 1040384   ;;  %v382_v40 = vmax.f32 %v350_v33, 0.0 }
  0x1f   : > { %465 = vst [vmem:[#allocation2 + $0x98] sm:$0xf] %v7081_v1  ;;  %466 = vst [vmem:[#allocation2 + $0x9c] sm:$0xf] %v7081_v1  ;;  %4991 = vmatprep.subr.bf16.mxu1 %v5023_v12  ;;  %v383_v41 = vmax.f32 %v351_v34, 0.0  ;;  %v384_v42 = vmax.f32 %v352_v35, 0.0 }
  0x20   : > { %467 = vst [vmem:[#allocation2 + $0xa0] sm:$0xf] %v7081_v1  ;;  %v385_v43 = vmax.f32 %v353_v36, 0.0  ;;  %v5027_v44 = vld [vmem:[%s7072_s3 + $0x140] sm:$0xff]   ;;  %v386_v45 = vmax.f32 %v354_v38, 0.0  ;;  %v387_v46 = vmax.f32 %v355_v39, 0.0  ;;  %v4517_v49 = vpack.c.bf16 %v382_v40, %v382_v40  ;;  %vm5356_vm13 = vmand %vm549_vm0, %vm7077_vm2 }
  0x21   : > { %1834 = vmatpush1.bf16.msra.mxu0 %v5020_v11  ;;  %vm500_vm10 = vcmask 1043457   ;;  %vm501_vm11 = vsmask.f32 7942  ;;  %vm624_vm12 = vsmask.f32 7938  ;;  %v5342_v48 = vld [vmem:[%s5290_s20 + $0x28] sm:$0xff]   ;;  %v4518_v50 = vpack.c.bf16 %v383_v41, %v383_v41  ;;  %vm5362_vm14 = vmand %vm584_vm1, %vm585_vm6 }
  0x22   : > { %1835 = vmatprep.subr.bf16.mxu0 %v7081_v1  ;;  %4999 = vmatpush3.bf16.msra.mxu1 %v5023_v12  ;;  %v4519_v51 = vpack.c.bf16 %v384_v42, %v384_v42  ;;  %v4520_v52 = vpack.c.bf16 %v385_v43, %v385_v43  ;;  %v5026_v53 = vld [vmem:[%s7072_s3 + $0x138] sm:$0xff]   ;;  %v4521_v55 = vpack.c.bf16 %v386_v45, %v386_v45  ;;  %v4600_v57 = vunpack.c.l.bf16 %v5342_v48  ;;  %vm5369_vm15 = vmand %vm7076_vm4, %vm559_vm3  ;;  %v5028_v12 = vld [vmem:[%s7072_s3 + $0x130] sm:$0xff]   ;;  %s4229_s11 = sshll.u32 %s7167_s19, 1 }
  0x23   : > { %4992 = vmatprep.subr.bf16.mxu1 %v5025_v30  ;;  %v587_v54 = vld [vmem:[#allocation2 + $0x18] sm:$0x8]  ;;  %v5348_v56 = vpack.c.bf16 %v387_v46, %v387_v46  ;;  %v530_v59 = vshrl.u32 %v4517_v49, 16  ;;  %v533_v60 = vshll.u32 %v4517_v49, 16  ;;  %v563_v62 = vshll.u32 %v4518_v50, 16  ;;  %vm5378_vm0 = vmor %vm559_vm3, %vm560_vm5  ;;  %v4727_v45 = vld [vmem:[%s5290_s20 + $0x30] sm:$0xff]   ;;  %s235_s23 = scalar_lea.vmem %s7074_s5, %s4229_s11 }
  0x24   : > { %v566_v63 = vshrl.u32 %v4518_v50, 16  ;;  %v572_v0 = vshll.u32 %v4519_v51, 16  ;;  %v576_v2 = vshrl.u32 %v4519_v51, 16  ;;  %v605_v5 = vshrl.u32 %v4520_v52, 16  ;;  %v551_v14 = vld [vmem:[#allocation2 + $0x18] sm:$0x7]  ;;  %vm5388_vm1 = vmand %vm7076_vm4, %vm624_vm12 }
  0x25   : > { %1836 = vmatpush1.bf16.msra.mxu0 %v5022_v29  ;;  %v608_v6 = vshll.u32 %v4520_v52, 16  ;;  %v532_v7 = vrot.slane %v530_v59, 5  ;;  %v535_v8 = vrot.slane %v533_v60, 6  ;;  %v565_v9 = vrot.slane %v563_v62, 5  ;;  %v593_v25 = vld [vmem:[#allocation2 + $0x20] sm:$0xf]  ;;  %vm5394_vm3 = vmor %vm601_vm7, %vm602_vm8 }
  0x26   : > { %1837 = vmatprep.subr.bf16.mxu0 %v7081_v1  ;;  %5000 = vmatpush3.bf16.msra.mxu1 %v5025_v30  ;;  %v568_v10 = vrot.slane %v566_v63, 4  ;;  %v574_v16 = vrot.slane %v572_v0, 5  ;;  %v578_v17 = vrot.slane %v576_v2, 4  ;;  %v607_v18 = vrot.slane %v605_v5, 7  ;;  %v626_v28 = vld [vmem:[#allocation2 + $0x24] sm:$0xf]  ;;  %vm5403_vm5 = vmand %vm7075_vm9, %vm601_vm7 }
  0x27   : > { %4993 = vmatprep.subr.bf16.mxu1 %v5027_v44  ;;  %v613_v19 = vshrl.u32 %v4521_v55, 16  ;;  %v5382_v20 = vor.u32 %v535_v8, %v532_v7  ;;  %v588_v23 = vsel %vm5362_vm14, %v565_v9, %v587_v54  ;;  %v616_v26 = vshll.u32 %v4521_v55, 16  ;;  %v632_v34 = vld [vmem:[#allocation2 + $0x2c] sm:$0x1]  ;;  %vm5414_vm6 = vmand %vm500_vm10, %vm501_vm11  ;;  %v5035_v7 = vld [vmem:[%s7072_s3 + $0x120] sm:$0xff]  }
  0x28   : > { %v569_v22 = vor.u32 %v568_v10, %v565_v9  ;;  %v579_v29 = vor.u32 %v578_v17, %v574_v16  ;;  %589 = vst [vmem:[#allocation2 + $0x18] sm:$0x8] %v588_v23  ;;  %v610_v31 = vor.u32 %v608_v6, %v607_v18  ;;  %v611_v32 = vrot.slane %v607_v18, 4  ;;  %v5032_v55 = vld [vmem:[%s7072_s3 + $0x128] sm:$0xff]   ;;  %v4728_v6 = vld [vmem:[%s5290_s20 + $0x38] sm:$0xff]  }
  0x29   : > { %1838 = vmatpush1.bf16.msra.mxu0 %v5024_v37  ;;  %v615_v33 = vrot.slane %v613_v19, 7  ;;  %v538_v35 = vrot.slane %v5382_v20, 4  ;;  %v641_v38 = vshrl.u32 %v5348_v56, 16  ;;  %v644_v39 = vshll.u32 %v5348_v56, 16  ;;  %v5038_v23 = vld [vmem:[%s7072_s3 + $0x118] sm:$0xff]  }
  0x2a   : > { %1839 = vmatprep.subr.bf16.mxu0 %v7081_v1  ;;  %5001 = vmatpush3.bf16.msra.mxu1 %v5027_v44  ;;  %v570_v36 = vrot.slane %v569_v22, 4  ;;  %v580_v40 = vrot.slane %v579_v29, 4  ;;  %v627_v43 = vsel %vm5388_vm1, %v610_v31, %v626_v28  ;;  %v662_v44 = vld [vmem:[#allocation2 + $0x2c] sm:$0xe]  ;;  %v318_v56 = vmul.f32 %v4600_v57, %v5309_v21  ;;  %v1030_v15 = vld [vmem:[#allocation2 + $0x90] sm:$0xf] }
  0x2b   : > { %2321 = vmatprep.subr.bf16.mxu1 %v7081_v1  ;;  %v618_v41 = vor.u32 %v616_v26, %v615_v33  ;;  %v620_v42 = vrot.slane %v615_v33, 4  ;;  %v552_v47 = vsel %vm5356_vm13, %v538_v35, %v551_v14  ;;  %628 = vst [vmem:[#allocation2 + $0x24] sm:$0xf] %v627_v43  ;;  %v643_v50 = vrot.slane %v641_v38, 6  ;;  %v6022_v27 = vld [vmem:[#allocation2 + $0x4] sm:$0xf] }
  0x2c   : > { %v575_v49 = vsel %vm5378_vm0, %v570_v36, %v574_v16  ;;  %v646_v51 = vrot.slane %v644_v39, 7  ;;  %553 = vst [vmem:[#allocation2 + $0x18] sm:$0x7] %v552_v47  ;;  %v594_v52 = vsel %vm5369_vm15, %v580_v40, %v593_v25  ;;  %vm1356_vm7 = vcmask 1046528   ;;  %v5453_v16 = vld [vmem:[%s5290_s20 + $0x40] sm:$0xff]  }
  0x2d   : > { %1840 = vmatpush2.bf16.msra.mxu0 %v5026_v53  ;;  %590 = vst [vmem:[#allocation2 + $0x1c] sm:$0xf] %v575_v49  ;;  %v619_v53 = vsel %vm5394_vm3, %v611_v32, %v618_v41  ;;  %v633_v54 = vsel %vm5403_vm5, %v620_v42, %v632_v34  ;;  %595 = vst [vmem:[#allocation2 + $0x20] sm:$0xf] %v594_v52  ;;  %v356_v60 = vadd.f32 %v5314_v24, %v5352_v58  ;;  %vm475_vm8 = vsmask.f32 1280 }
  0x2e   : > { %1841 = vmatprep.subr.bf16.mxu0 %v7081_v1  ;;  %629 = vst [vmem:[#allocation2 + $0x28] sm:$0xf] %v619_v53  ;;  %634 = vst [vmem:[#allocation2 + $0x2c] sm:$0x1] %v633_v54  ;;  %v5435_v59 = vor.u32 %v646_v51, %v643_v50  ;;  %vm542_vm10 = vcmask 1043458   ;;  %v357_v62 = vadd.f32 %v5314_v24, %v318_v56  ;;  %vm507_vm12 = vcmask 1041408  }
  0x2f   : > { %vm476_vm11 = vsmask.f32 5392  ;;  %v4601_v57 = vunpack.c.h.bf16 %v5342_v48  ;;  %v4604_v63 = vunpack.c.l.bf16 %v4727_v45  ;;  %v388_v2 = vmax.f32 %v356_v60, 0.0  ;;  %v5041_v49 = vld [vmem:[%s7072_s3 + $0x110] sm:$0xff]  }
  0x30   : > { %v663_v0 = vsel %vm5414_vm6, %v5435_v59, %v662_v44  ;;  %vm543_vm9 = vsmask.f32 7946  ;;  %v648_v5 = vrot.slane %v5435_v59, 4  ;;  %v389_v58 = vmax.f32 %v357_v62, 0.0  ;;  %v696_v44 = vld [vmem:[#allocation2 + $0x34] sm:$0xc]  ;;  %vm5486_vm2 = vmor %vm475_vm8, %vm476_vm11 }
  0x31   : > { %1842 = vmatpush2.bf16.msra.mxu0 %v5028_v12  ;;  %664 = vst [vmem:[#allocation2 + $0x2c] sm:$0xe] %v663_v0  ;;  %v319_v48 = vmul.f32 %v4601_v57, %v5309_v21  ;;  %v320_v8 = vmul.f32 %v4604_v63, %v5309_v21  ;;  %v4605_v9 = vunpack.c.h.bf16 %v4727_v45  ;;  %v4523_v10 = vpack.c.bf16 %v388_v2, %v388_v2  ;;  %vm5498_vm4 = vmand %vm542_vm10, %vm543_vm9 }
  0x32   : > { %1843 = vmatprep.subr.bf16.mxu0 %v7081_v1  ;;  %v4608_v12 = vunpack.c.l.bf16 %v4728_v6  ;;  %v4609_v14 = vunpack.c.h.bf16 %v4728_v6  ;;  %v4584_v17 = vunpack.c.l.bf16 %v5299_v13  ;;  %v4524_v18 = vpack.c.bf16 %v389_v58, %v389_v58  ;;  %vm5506_vm11 = vmand %vm507_vm12, %vm475_vm8  ;;  %v666_v58 = vld [vmem:[#allocation2 + $0x34] sm:$0x3] }
  0x33   : > { %v358_v19 = vadd.f32 %v5314_v24, %v319_v48  ;;  %v359_v22 = vadd.f32 %v5314_v24, %v320_v8  ;;  %v321_v25 = vmul.f32 %v4605_v9, %v5309_v21  ;;  %v650_v28 = vshrl.u32 %v4523_v10, 16 }
  0x34   : > { %v5462_v26 = vld [vmem:[#allocation2 + $0x18] sm:$0xff]   ;;  %v322_v29 = vmul.f32 %v4608_v12, %v5309_v21  ;;  %v5466_v31 = vmul.f32 %v4609_v14, %v5309_v21  ;;  %v4612_v13 = vunpack.c.l.bf16 %v5453_v16  ;;  %v5469_v32 = vld [vmem:[#allocation2 + $0x20] sm:$0xff]   ;;  %v653_v33 = vshll.u32 %v4523_v10, 16 }
  0x35   : > { %1844 = vmatpush2.bf16.msra.mxu0 %v5032_v55  ;;  %v360_v34 = vadd.f32 %v5314_v24, %v321_v25  ;;  %v4613_v35 = vunpack.c.h.bf16 %v5453_v16  ;;  %v5474_v36 = vmul.f32 %v4584_v17, %v5309_v21  ;;  %v1362_v38 = vrot.slane %v5462_v26, 1  ;;  %v730_v25 = vld [vmem:[#allocation2 + $0x3c] sm:$0x8] }
  0x36   : > { %1845 = vmatprep.subr.bf16.mxu0 %v7081_v1  ;;  %v652_v39 = vrot.slane %v650_v28, 6  ;;  %v675_v40 = vshrl.u32 %v4524_v18, 16  ;;  %v678_v41 = vshll.u32 %v4524_v18, 16  ;;  %v1364_v42 = vrot.slane %v5469_v32, 1  ;;  %v5044_v28 = vld [vmem:[%s7072_s3 + $0x108] sm:$0xff]  }
  0x37   : > { %v655_v43 = vrot.slane %v653_v33, 7  ;;  %v390_v45 = vmax.f32 %v358_v19, 0.0  ;;  %v391_v47 = vmax.f32 %v359_v22, 0.0  ;;  %v392_v54 = vmax.f32 %v360_v34, 0.0 }
  0x38   : > { %v5482_v50 = vld [vmem:[#allocation2 + $0x28] sm:$0xff]   ;;  %v677_v52 = vrot.slane %v675_v40, 5  ;;  %v680_v53 = vrot.slane %v678_v41, 6  ;;  %v361_v55 = vadd.f32 %v5314_v24, %v322_v29  ;;  %v5494_v56 = vsel %vm1356_vm7, %v1362_v38, %v1364_v42 }
  0x39   : > { %1846 = vmatpush2.bf16.msra.mxu0 %v5035_v7  ;;  %v656_v62 = vor.u32 %v655_v43, %v652_v39  ;;  %v4525_v57 = vpack.c.bf16 %v390_v45, %v390_v45  ;;  %v4526_v63 = vpack.c.bf16 %v391_v47, %v391_v47  ;;  %v1366_v0 = vrot.slane %v5482_v50, 1  ;;  %v700_v45 = vld [vmem:[#allocation2 + $0x3c] sm:$0x7] }
  0x3a   : > { %1847 = vmatprep.subr.bf16.mxu0 %v7081_v1  ;;  %v7078_v2 = vrot.slane %v5494_v56, 1  ;;  %v681_v7 = vor.u32 %v680_v53, %v677_v52  ;;  %v4527_v48 = vpack.c.bf16 %v392_v54, %v392_v54  ;;  %vm7109_vm9 = vsmask.f32 6416  ;;  %v5047_v54 = vld [vmem:[%s7072_s3 + $0x100] sm:$0xff]  }
  0x3b   : > { %v657_v8 = vsel %vm5486_vm2, %v648_v5, %v656_v62  ;;  %v658_v9 = vrot.slane %v656_v62, 4  ;;  %v684_v10 = vshrl.u32 %v4525_v57, 16  ;;  %v687_v12 = vshll.u32 %v4525_v57, 16 }
  0x3c   : > { %v5518_v14 = vsel %vm1356_vm7, %v1364_v42, %v1366_v0  ;;  %665 = vst [vmem:[#allocation2 + $0x30] sm:$0xf] %v657_v8  ;;  %v697_v17 = vsel %vm5498_vm4, %v681_v7, %v696_v44  ;;  %v682_v18 = vrot.slane %v681_v7, 4  ;;  %v709_v19 = vshll.u32 %v4526_v63, 16  ;;  %v4579_v8 = vld [vmem:[%s5290_s20] sm:$0xff]  }
  0x3d   : > { %1848 = vmatpush2.bf16.msra.mxu0 %v5038_v23  ;;  %v1576_v22 = vrot.slane %v5518_v14, 1  ;;  %v667_v59 = vsel %vm5506_vm11, %v658_v9, %v666_v58  ;;  %698 = vst [vmem:[#allocation2 + $0x34] sm:$0xc] %v697_v17  ;;  %v686_v5 = vrot.slane %v684_v10, 5  ;;  %v689_v23 = vrot.slane %v687_v12, 6 }
  0x3e   : > { %1849 = vmatprep.subr.bf16.mxu0 %v7081_v1  ;;  %668 = vst [vmem:[#allocation2 + $0x34] sm:$0x3] %v667_v59  ;;  %vm7110_vm8 = vsmask.f32 2304  ;;  %v711_v33 = vrot.slane %v709_v19, 5  ;;  %v712_v34 = vshrl.u32 %v4526_v63, 16  ;;  %v362_v43 = vadd.f32 %v5314_v24, %v5466_v31 }
  0x3f   : > { %vm5530_vm10 = vmor %vm7110_vm8, %vm7109_vm9  ;;  %v718_v39 = vshll.u32 %v4527_v48, 16  ;;  %v722_v40 = vshrl.u32 %v4527_v48, 16  ;;  %v1577_v41 = vsel %vm1356_vm7, %v7078_v2, %v1576_v22  ;;  %v690_v42 = vor.u32 %v689_v23, %v686_v5  ;;  %v734_v10 = vld [vmem:[#allocation2 + $0x44] sm:$0xf] }
  0x40   : > { %v393_v44 = vmax.f32 %v361_v55, 0.0  ;;  %4850 = vmatprep.mubr.bf16.mxu1 %v1577_v41  ;;  %v731_v47 = vsel %vm5362_vm14, %v711_v33, %v730_v25  ;;  %v394_v31 = vmax.f32 %v362_v43, 0.0  ;;  %v324_v7 = vmul.f32 %v4612_v13, %v5309_v21 }
  0x41   : > { %1850 = vmatpush2.bf16.msra.mxu0 %v5041_v49  ;;  %v714_v49 = vrot.slane %v712_v34, 4  ;;  %v720_v52 = vrot.slane %v718_v39, 5  ;;  %v724_v53 = vrot.slane %v722_v40, 4  ;;  %v691_v62 = vsel %vm5530_vm10, %v682_v18, %v690_v42  ;;  %732 = vst [vmem:[#allocation2 + $0x3c] sm:$0x8] %v731_v47 }
  0x42   : > { %1851 = vmatprep.subr.bf16.mxu0 %v7081_v1  ;;  %v692_v57 = vrot.slane %v690_v42, 4  ;;  %v4528_v55 = vpack.c.bf16 %v393_v44, %v393_v44  ;;  %699 = vst [vmem:[#allocation2 + $0x38] sm:$0xf] %v691_v62  ;;  %v325_v48 = vmul.f32 %v4613_v35, %v5309_v21  ;;  %v4529_v12 = vpack.c.bf16 %v394_v31, %v394_v31  ;;  %v762_v39 = vld [vmem:[#allocation2 + $0x48] sm:$0xf] }
  0x43   : > { %v715_v63 = vor.u32 %v714_v49, %v711_v33  ;;  %v725_v58 = vor.u32 %v724_v53, %v720_v52  ;;  %v363_v5 = vadd.f32 %v5314_v24, %v324_v7  ;;  %v766_v42 = vld [vmem:[#allocation2 + $0x50] sm:$0x1]  ;;  %vm1186_vm9 = vsmask.f32 7424 }
  0x44   : > { %v701_v9 = vsel %vm5356_vm13, %v692_v57, %v700_v45  ;;  %v743_v17 = vshrl.u32 %v4528_v55, 16  ;;  %v746_v18 = vshll.u32 %v4528_v55, 16  ;;  %v364_v13 = vadd.f32 %v5314_v24, %v325_v48 }
  0x45   : > { %1852 = vmatpush2.bf16.msra.mxu0 %v5044_v28  ;;  %702 = vst [vmem:[#allocation2 + $0x3c] sm:$0x7] %v701_v9  ;;  %v716_v19 = vrot.slane %v715_v63, 4  ;;  %v726_v59 = vrot.slane %v725_v58, 4  ;;  %v5561_v23 = vld [vmem:[#allocation2 + $0x30] sm:$0xff]   ;;  %v751_v35 = vshrl.u32 %v4529_v12, 16  ;;  %v4580_v28 = vunpack.c.l.bf16 %v4579_v8 }
  0x46   : > { %1853 = vmatprep.subr.bf16.mxu0 %v7081_v1  ;;  %v745_v16 = vrot.slane %v743_v17, 7  ;;  %v754_v25 = vshll.u32 %v4529_v12, 16  ;;  %v395_v40 = vmax.f32 %v363_v5, 0.0  ;;  %v396_v41 = vmax.f32 %v364_v13, 0.0  ;;  %v5034_v63 = vld [vmem:[%s7072_s3 + $0x38] sm:$0xff]   ;;  %v5589_v17 = vld [vmem:[%s5290_s20 + $0x48] sm:$0xff]  }
  0x47   : > { %v721_v33 = vsel %vm5378_vm0, %v716_v19, %v720_v52  ;;  %v735_v34 = vsel %vm5369_vm15, %v726_v59, %v734_v10  ;;  %v1368_v43 = vrot.slane %v5561_v23, 1  ;;  %v753_v47 = vrot.slane %v751_v35, 7  ;;  %v5036_v19 = vld [vmem:[%s7072_s3 + $0x30] sm:$0xff]  }
  0x48   : > { %733 = vst [vmem:[#allocation2 + $0x40] sm:$0xf] %v721_v33  ;;  %736 = vst [vmem:[#allocation2 + $0x44] sm:$0xf] %v735_v34  ;;  %v748_v44 = vor.u32 %v746_v18, %v745_v16  ;;  %v749_v45 = vrot.slane %v745_v16, 4  ;;  %v4530_v49 = vpack.c.bf16 %v395_v40, %v395_v40  ;;  %v4531_v53 = vpack.c.bf16 %v396_v41, %v396_v41 }
  0x49   : > { %1854 = vmatpush2.bf16.msra.mxu0 %v5047_v54  ;;  %v4581_v54 = vunpack.c.h.bf16 %v4579_v8  ;;  %v308_v52 = vmul.f32 %v4580_v28, %v5309_v21  ;;  %v5573_v62 = vsel %vm1356_vm7, %v1366_v0, %v1368_v43  ;;  %v756_v57 = vor.u32 %v754_v25, %v753_v47  ;;  %v796_v25 = vld [vmem:[#allocation2 + $0x50] sm:$0xe] }
  0x4a   : > { %4830 = vmatprep.subr.bf16.mxu0 %v5249_v3  ;;  %7113 = vst [vmem:[#allocation3_spill] sm:$0xff] %v5573_v62  ;;  %v763_v3 = vsel %vm5388_vm1, %v748_v44, %v762_v39  ;;  %v758_v31 = vrot.slane %v753_v47, 4  ;;  %v1580_v55 = vrot.slane %v5573_v62, 1  ;;  %v775_v58 = vshrl.u32 %v4530_v49, 16 }
  0x4b   : > { %764 = vst [vmem:[#allocation2 + $0x48] sm:$0xf] %v763_v3  ;;  %v778_v7 = vshll.u32 %v4530_v49, 16  ;;  %v784_v48 = vshrl.u32 %v4531_v53, 16  ;;  %v757_v0 = vsel %vm5394_vm3, %v749_v45, %v756_v57  ;;  %v787_v10 = vshll.u32 %v4531_v53, 16 }
  0x4c   : > { %v5581_v8 = vld [vmem:[#allocation2 + $0x38] sm:$0xff]   ;;  %v767_v9 = vsel %vm5403_vm5, %v758_v31, %v766_v42  ;;  %v309_v12 = vmul.f32 %v4581_v54, %v5309_v21  ;;  %v1581_v18 = vsel %vm1356_vm7, %v1576_v22, %v1580_v55  ;;  %765 = vst [vmem:[#allocation2 + $0x4c] sm:$0xf] %v757_v0  ;;  %v777_v59 = vrot.slane %v775_v58, 6 }
  0x4d   : > { %768 = vst [vmem:[#allocation2 + $0x50] sm:$0x1] %v767_v9  ;;  %v780_v5 = vrot.slane %v778_v7, 7  ;;  %v786_v13 = vrot.slane %v784_v48, 6  ;;  %4851 = vmatmul.mubr.bf16.vlgmr.msra.gmra.mxu1 %v1581_v18  ;;  %v1370_v16 = vrot.slane %v5581_v8, 1  ;;  %v789_v35 = vrot.slane %v787_v10, 7 }
  0x4e   : > { %v347_v28 = vadd.f32 %v5314_v24, %v308_v52  ;;  %v348_v33 = vadd.f32 %v5314_v24, %v309_v12  ;;  %2322 = vmatpush1.bf16.msra.mxu1 %v5034_v63  ;;  %v349_v39 = vadd.f32 %v5314_v24, %v5474_v36  ;;  %v1211_v40 = vshll.u32 %v5462_v26, 16  ;;  %v5040_v63 = vld [vmem:[%s7072_s3 + $0x28] sm:$0xff]  }
  0x4f   : > { %v5600_v22 = vld [vmem:[#allocation2 + $0x40] sm:$0xff]   ;;  %v781_v34 = vor.u32 %v780_v5, %v777_v59  ;;  %v4616_v41 = vunpack.c.l.bf16 %v5589_v17  ;;  %2323 = vmatprep.subr.bf16.mxu1 %v7081_v1  ;;  %v5608_v42 = vsel %vm1356_vm7, %v1368_v43, %v1370_v16  ;;  %v5610_v44 = vor.u32 %v789_v35, %v786_v13 }
  0x50   : > { %7114 = vst [vmem:[#allocation4_spill] sm:$0xff] %v5608_v42  ;;  %v379_v45 = vmax.f32 %v347_v28, 0.0  ;;  %v380_v47 = vmax.f32 %v348_v33, 0.0  ;;  %v1584_v49 = vrot.slane %v5608_v42, 1  ;;  %v1372_v53 = vrot.slane %v5600_v22, 1 }
  0x51   : > { %v782_v54 = vrot.slane %v781_v34, 4  ;;  %v797_v36 = vsel %vm5414_vm6, %v781_v34, %v796_v25  ;;  %v381_v52 = vmax.f32 %v349_v39, 0.0  ;;  %v5626_v7 = vrot.slane %v1211_v40, 1 }
  0x52   : > { %798 = vst [vmem:[#allocation2 + $0x50] sm:$0xe] %v797_v36  ;;  %v4514_v57 = vpack.c.bf16 %v379_v45, %v379_v45  ;;  %v4515_v3 = vpack.c.bf16 %v380_v47, %v380_v47  ;;  %2324 = vmatpush1.bf16.msra.mxu1 %v5036_v19  ;;  %v1585_v43 = vsel %vm1356_vm7, %v1580_v55, %v1584_v49  ;;  %v503_v19 = vld [vmem:[#allocation2 + $0x8] sm:$0xe]  ;;  %v4617_v59 = vunpack.c.h.bf16 %v5589_v17  ;;  %v509_v45 = vld [vmem:[#allocation2 + $0x10] sm:$0x3] }
  0x53   : > { %v5618_v31 = vsel %vm1356_vm7, %v1370_v16, %v1372_v53  ;;  %v791_v58 = vsel %vm5486_vm2, %v782_v54, %v5610_v44  ;;  %4854 = vmatprep.mubr.bf16.mxu1 %v1585_v43  ;;  %2325 = vmatprep.subr.bf16.mxu1 %v7081_v1  ;;  %v5630_v0 = vld [vmem:[#allocation2 + $0x48] sm:$0xff]   ;;  %v4516_v10 = vpack.c.bf16 %v381_v52, %v381_v52  ;;  %v5042_v16 = vld [vmem:[%s7072_s3 + $0x20] sm:$0xff]   ;;  %v545_v47 = vld [vmem:[#allocation2 + $0x10] sm:$0xc] }
  0x54   : > { %7115 = vst [vmem:[#allocation5_spill] sm:$0xff] %v5618_v31  ;;  %v1588_v48 = vrot.slane %v5618_v31, 1  ;;  %799 = vst [vmem:[#allocation2 + $0x54] sm:$0xf] %v791_v58  ;;  %v479_v55 = vshrl.u32 %v4514_v57, 16  ;;  %v482_v9 = vshll.u32 %v4514_v57, 16  ;;  %v326_v5 = vmul.f32 %v4616_v41, %v5309_v21 }
  0x55   : > { %v488_v12 = vshrl.u32 %v4515_v3, 16  ;;  %v491_v18 = vshll.u32 %v4515_v3, 16  ;;  %v1374_v35 = vrot.slane %v5630_v0, 1  ;;  %v521_v39 = vshrl.u32 %v4516_v10, 16  ;;  %v800_v43 = vld [vmem:[#allocation2 + $0x58] sm:$0x3] }
  0x56   : > { %v1589_v13 = vsel %vm1356_vm7, %v1584_v49, %v1588_v48  ;;  %v481_v25 = vrot.slane %v479_v55, 6  ;;  %v484_v28 = vrot.slane %v482_v9, 7  ;;  %v524_v40 = vshll.u32 %v4516_v10, 16  ;;  %2326 = vmatpush1.bf16.msra.mxu1 %v5040_v63  ;;  %v4731_v58 = vld [vmem:[%s5290_s20 + $0x50] sm:$0xff]  }
  0x57   : > { %4855 = vmatmul.mubr.bf16.gmra.mxu1 %v1589_v13  ;;  %v490_v33 = vrot.slane %v488_v12, 6  ;;  %v493_v34 = vrot.slane %v491_v18, 7  ;;  %v5640_v17 = vsel %vm1356_vm7, %v1372_v53, %v1374_v35  ;;  %v327_v49 = vmul.f32 %v4617_v59, %v5309_v21  ;;  %2327 = vmatprep.subr.bf16.mxu1 %v7081_v1 }
  0x58   : > { %v485_v41 = vor.u32 %v484_v28, %v481_v25  ;;  %v365_v54 = vadd.f32 %v5314_v24, %v326_v5  ;;  %v1592_v36 = vrot.slane %v5640_v17, 1  ;;  %v523_v57 = vrot.slane %v521_v39, 5  ;;  %v5046_v5 = vld [vmem:[%s7072_s3 + $0x18] sm:$0xff]  }
  0x59   : > { %v494_v52 = vor.u32 %v493_v34, %v490_v33  ;;  %v526_v3 = vrot.slane %v524_v40, 6  ;;  %v366_v0 = vadd.f32 %v5314_v24, %v327_v49  ;;  %v792_v59 = vrot.slane %v5610_v44, 4 }
  0x5a   : > { %v486_v63 = vrot.slane %v485_v41, 4  ;;  %v504_v53 = vsel %vm5414_vm6, %v485_v41, %v503_v19  ;;  %v397_v55 = vmax.f32 %v365_v54, 0.0  ;;  %v1593_v9 = vsel %vm1356_vm7, %v1588_v48, %v1592_v36  ;;  %2328 = vmatpush1.bf16.msra.mxu1 %v5042_v16 }
  0x5b   : > { %v5651_v10 = vld [vmem:[#allocation2 + $0x50] sm:$0xff]   ;;  %v496_v12 = vrot.slane %v494_v52, 4  ;;  %505 = vst [vmem:[#allocation2 + $0x8] sm:$0xe] %v504_v53  ;;  %v527_v18 = vor.u32 %v526_v3, %v523_v57  ;;  %4858 = vmatprep.mubr.bf16.mxu1 %v1593_v9  ;;  %v398_v13 = vmax.f32 %v366_v0, 0.0  ;;  %v4620_v28 = vunpack.c.l.bf16 %v4731_v58  ;;  %2329 = vmatprep.subr.bf16.mxu1 %v7081_v1  ;;  %v5681_v53 = vld [vmem:[%s5290_s20 + $0x58] sm:$0xff]  }
  0x5c   : > { %v495_v19 = vsel %vm5486_vm2, %v486_v63, %v494_v52  ;;  %v4532_v25 = vpack.c.bf16 %v397_v55, %v397_v55  ;;  %v1376_v48 = vrot.slane %v5651_v10, 1  ;;  %v801_v34 = vsel %vm5506_vm11, %v792_v59, %v800_v43  ;;  %v5048_v3 = vld [vmem:[%s7072_s3 + $0x10] sm:$0xff]  }
  0x5d   : > { %506 = vst [vmem:[#allocation2 + $0xc] sm:$0xf] %v495_v19  ;;  %v510_v44 = vsel %vm5506_vm11, %v496_v12, %v509_v45  ;;  %v528_v16 = vrot.slane %v527_v18, 4  ;;  %v546_v33 = vsel %vm5498_vm4, %v527_v18, %v545_v47  ;;  %v4533_v39 = vpack.c.bf16 %v398_v13, %v398_v13  ;;  %802 = vst [vmem:[#allocation2 + $0x58] sm:$0x3] %v801_v34 }
  0x5e   : > { %511 = vst [vmem:[#allocation2 + $0x10] sm:$0x3] %v510_v44  ;;  %547 = vst [vmem:[#allocation2 + $0x10] sm:$0xc] %v546_v33  ;;  %v809_v40 = vshrl.u32 %v4532_v25, 16  ;;  %v812_v41 = vshll.u32 %v4532_v25, 16  ;;  %v5670_v49 = vsel %vm1356_vm7, %v1374_v35, %v1376_v48  ;;  %v4621_v54 = vunpack.c.h.bf16 %v4731_v58  ;;  %2330 = vmatpush1.bf16.msra.mxu1 %v5046_v5 }
  0x5f   : > { %v537_v45 = vsel %vm5530_vm10, %v528_v16, %v5382_v20  ;;  %v830_v47 = vld [vmem:[#allocation2 + $0x58] sm:$0xc]  ;;  %v328_v52 = vmul.f32 %v4620_v28, %v5309_v21  ;;  %v1596_v57 = vrot.slane %v5670_v49, 1  ;;  %v818_v63 = vshrl.u32 %v4533_v39, 16  ;;  %2331 = vmatprep.subr.bf16.mxu1 %v7081_v1 }
  0x60   : > { %548 = vst [vmem:[#allocation2 + $0x14] sm:$0xf] %v537_v45  ;;  %v811_v43 = vrot.slane %v809_v40, 5  ;;  %v814_v35 = vrot.slane %v812_v41, 6  ;;  %v821_v20 = vshll.u32 %v4533_v39, 16  ;;  %v329_v58 = vmul.f32 %v4621_v54, %v5309_v21 }
  0x61   : > { %v367_v0 = vadd.f32 %v5314_v24, %v328_v52  ;;  %v1215_v55 = vshrl.u32 %v5462_v26, 16  ;;  %v1597_v9 = vsel %vm1356_vm7, %v1592_v36, %v1596_v57  ;;  %v820_v59 = vrot.slane %v818_v63, 5  ;;  %v5053_v36 = vld [vmem:[%s7072_s3 + $0x8] sm:$0xff]   ;;  %v834_v41 = vld [vmem:[#allocation2 + $0x60] sm:$0x7] }
  0x62   : > { %v1460_v12 = vld [vmem:[#allocation2 + $0x8] sm:$0xe]  ;;  %v815_v18 = vor.u32 %v814_v35, %v811_v43  ;;  %v1219_v5 = vshll.u32 %v5469_v32, 16  ;;  %4859 = vmatmul.mubr.bf16.gmra.mxu1 %v1597_v9  ;;  %v823_v19 = vrot.slane %v821_v20, 6  ;;  %v368_v13 = vadd.f32 %v5314_v24, %v329_v58  ;;  %v5715_v52 = vld [vmem:[%s7070_s1] ss:$0 sm:$0xff] }
  0x63   : > { %v399_v25 = vmax.f32 %v367_v0, 0.0  ;;  %v1217_v21 = vor.u32 %v1215_v55, %v5626_v7  ;;  %2332 = vmatpush1.bf16.msra.mxu1 %v5048_v3  ;;  %v4624_v34 = vunpack.c.l.bf16 %v5681_v53  ;;  %v4625_v43 = vunpack.c.h.bf16 %v5681_v53  ;;  %v864_v55 = vld [vmem:[#allocation2 + $0x60] sm:$0x8] }
  0x64   : > { %v5693_v28 = vld [vmem:[#allocation2 + $0xc] sm:$0xf]  ;;  %v816_v44 = vrot.slane %v815_v18, 4  ;;  %v831_v16 = vsel %vm5498_vm4, %v815_v18, %v830_v47  ;;  %v5700_v33 = vrot.slane %v1219_v5, 1  ;;  %v824_v39 = vor.u32 %v823_v19, %v820_v59  ;;  %2333 = vmatprep.subr.bf16.mxu1 %v7081_v1  ;;  %v5054_v47 = vld [vmem:[%s7072_s3] sm:$0xff]  }
  0x65   : > { %v4284_v24 = vcombine.low %v1460_v12, %v5693_v28  ;;  %832 = vst [vmem:[#allocation2 + $0x58] sm:$0xc] %v831_v16  ;;  %v400_v40 = vmax.f32 %v368_v13, 0.0  ;;  %v4534_v45 = vpack.c.bf16 %v399_v25, %v399_v25  ;;  %v330_v3 = vmul.f32 %v5715_v52, %v4624_v34  ;;  %v5722_v5 = vld [vmem:[%s5290_s20 + $0x60] sm:$0xff]  }
  0x66   : > { %v5710_v54 = vsel %vm1186_vm9, %v1217_v21, %v5700_v33  ;;  %v825_v0 = vsel %vm5530_vm10, %v816_v44, %v824_v39  ;;  %v826_v9 = vrot.slane %v824_v39, 4 }
  0x67   : > { %v5049_v35 = vld [vmem:[#allocation2 + $0x10] sm:$0xff]   ;;  %v1481_v63 = vshrl.u32 %v4284_v24, 16  ;;  %v1483_v20 = vshll.u32 %v4284_v24, 16  ;;  %v1562_v58 = vrot.slane %v4284_v24, 1  ;;  %833 = vst [vmem:[#allocation2 + $0x5c] sm:$0xf] %v825_v0  ;;  %v4535_v12 = vpack.c.bf16 %v400_v40, %v400_v40  ;;  %2334 = vmatpush1.bf16.msra.mxu1 %v5053_v36 }
  0x68   : > { %v843_v18 = vshll.u32 %v4534_v45, 16  ;;  %v846_v59 = vshrl.u32 %v4534_v45, 16  ;;  %v1203_v19 = vshll.u32 %v5049_v35, 16  ;;  %v1207_v13 = vshrl.u32 %v5049_v35, 16  ;;  %2335 = vmatprep.subr.bf16.mxu1 %v7081_v1  ;;  %v5057_v45 = vld [vmem:[%s7072_s3 + $0x78] sm:$0xff]  }
  0x69   : > { %v1485_v25 = vrot.slane %v1483_v20, 1  ;;  %v5724_v53 = vrot.slane %v5049_v35, 1  ;;  %v835_v21 = vsel %vm5356_vm13, %v826_v9, %v834_v41  ;;  %v852_v34 = vshll.u32 %v4535_v12, 16 }
  0x6a   : > { %v845_v44 = vrot.slane %v843_v18, 5  ;;  %v848_v16 = vrot.slane %v846_v59, 4  ;;  %v5729_v24 = vrot.slane %v1203_v19, 1  ;;  %836 = vst [vmem:[#allocation2 + $0x60] sm:$0x7] %v835_v21  ;;  %v4628_v40 = vunpack.c.l.bf16 %v5722_v5 }
  0x6b   : > { %v1486_v39 = vor.u32 %v1485_v25, %v1481_v63  ;;  %v1563_v36 = vsel %vm1356_vm7, %v1562_v58, %v5724_v53  ;;  %v854_v20 = vrot.slane %v852_v34, 5  ;;  %2336 = vmatpush1.bf16.msra.mxu1 %v5054_v47  ;;  %v1570_v0 = vrot.slane %v5710_v54, 1  ;;  %v5752_v18 = vld [vmem:[%s7071_s2] ss:$0 sm:$0xff] }
  0x6c   : > { %v849_v35 = vor.u32 %v848_v16, %v845_v44  ;;  %v865_v41 = vsel %vm5362_vm14, %v845_v44, %v864_v55  ;;  %v1209_v63 = vor.u32 %v1207_v13, %v5729_v24  ;;  %v5747_v9 = vsel %vm1356_vm7, %v5724_v53, %v1362_v38  ;;  %2337 = vmatprep.subr.bf16.mxu1 %v7081_v1 }
  0x6d   : > { %v1487_v58 = vsel %vm1186_vm9, %v1486_v39, %v5729_v24  ;;  %866 = vst [vmem:[#allocation2 + $0x60] sm:$0x8] %v865_v41  ;;  %v369_v47 = vadd.f32 %v5752_v18, %v330_v3  ;;  %v856_v19 = vshrl.u32 %v4535_v12, 16  ;;  %v331_v13 = vmul.f32 %v5715_v52, %v4625_v43  ;;  %v5058_v3 = vld [vmem:[%s7072_s3 + $0x70] sm:$0xff]   ;;  %v868_v39 = vld [vmem:[#allocation2 + $0x68] sm:$0xf] }
  0x6e   : > { %v1564_v55 = vrot.slane %v1487_v58, 1  ;;  %v850_v59 = vrot.slane %v849_v35, 4  ;;  %v5759_v26 = vsel %vm1186_vm9, %v1209_v63, %v5626_v7  ;;  %v5761_v38 = vld [vmem:[#allocation2 + $0x58] sm:$0xff]   ;;  %v332_v21 = vmul.f32 %v5715_v52, %v4628_v40 }
  0x6f   : > { %v401_v25 = vmax.f32 %v369_v47, 0.0  ;;  %v1223_v44 = vshrl.u32 %v5469_v32, 16  ;;  %v1565_v16 = vrot.slane %v5759_v26, 1  ;;  %v858_v12 = vrot.slane %v856_v19, 4  ;;  %2338 = vmatpush2.bf16.msra.mxu1 %v5057_v45  ;;  %v5781_v45 = vld [vmem:[%s5290_s20 + $0x68] sm:$0xff]  }
  0x70   : > { %v855_v43 = vsel %vm5378_vm0, %v850_v59, %v854_v20  ;;  %v370_v7 = vadd.f32 %v5752_v18, %v331_v13  ;;  %v1378_v34 = vrot.slane %v5761_v38, 1  ;;  %v371_v35 = vadd.f32 %v5752_v18, %v332_v21  ;;  %2339 = vmatprep.subr.bf16.mxu1 %v7081_v1  ;;  %v896_v21 = vld [vmem:[#allocation2 + $0x6c] sm:$0xf] }
  0x71   : > { %867 = vst [vmem:[#allocation2 + $0x64] sm:$0xf] %v855_v43  ;;  %v4536_v40 = vpack.c.bf16 %v401_v25, %v401_v25  ;;  %v1225_v32 = vor.u32 %v1223_v44, %v5700_v33  ;;  %v1566_v41 = vsel %vm1356_vm7, %v1564_v55, %v1565_v16  ;;  %v1571_v63 = vsel %vm1356_vm7, %v1565_v16, %v1570_v0  ;;  %v5061_v16 = vld [vmem:[%s7072_s3 + $0x68] sm:$0xff]  }
  0x72   : > { %v859_v58 = vor.u32 %v858_v12, %v854_v20  ;;  %v402_v47 = vmax.f32 %v370_v7, 0.0  ;;  %1855 = vmatprep.mubr.bf16.mxu0 %v1566_v41  ;;  %v5788_v59 = vsel %vm1356_vm7, %v1376_v48, %v1378_v34  ;;  %v403_v13 = vmax.f32 %v371_v35, 0.0  ;;  %v5131_v48 = vld [vmem:[%s7072_s3 + $0x178] sm:$0xff]  }
  0x73   : > { %v877_v19 = vshrl.u32 %v4536_v40, 16  ;;  %v880_v33 = vshll.u32 %v4536_v40, 16  ;;  %1856 = vmatmul.mubr.bf16.vlgmr.msra.gmra.mxu0 %v1563_v36  ;;  %v7079_v55 = vrot.slane %v5788_v59, 1  ;;  %2340 = vmatpush2.bf16.msra.mxu1 %v5058_v3  ;;  %v1227_v44 = vshll.u32 %v5482_v50, 16 }
  0x74   : > { %v860_v25 = vrot.slane %v859_v58, 4  ;;  %v4537_v20 = vpack.c.bf16 %v402_v47, %v402_v47  ;;  %4831 = vmatpush3.bf16.msra.mxu0 %v5131_v48  ;;  %1863 = vmatprep.mubr.bf16.mxu0 %v1571_v63  ;;  %v4538_v36 = vpack.c.bf16 %v403_v13, %v403_v13  ;;  %v4629_v12 = vunpack.c.h.bf16 %v5722_v5  ;;  %v5132_v5 = vld [vmem:[%s7072_s3 + $0x170] sm:$0xff]  }
  0x75   : > { %v879_v43 = vrot.slane %v877_v19, 7  ;;  %v4632_v7 = vunpack.c.l.bf16 %v5781_v45  ;;  %v1601_v3 = vsel %vm1356_vm7, %v1596_v57, %v7079_v55  ;;  %2341 = vmatprep.subr.bf16.mxu1 %v7081_v1  ;;  %4832 = vmatprep.subr.bf16.mxu0 %v5132_v5  ;;  %v900_v47 = vld [vmem:[#allocation2 + $0x74] sm:$0x1] }
  0x76   : > { %v869_v40 = vsel %vm5369_vm15, %v860_v25, %v868_v39  ;;  %v885_v35 = vshrl.u32 %v4537_v20, 16  ;;  %v888_v41 = vshll.u32 %v4537_v20, 16  ;;  %4862 = vmatprep.mubr.bf16.mxu1 %v1601_v3  ;;  %v909_v19 = vshrl.u32 %v4538_v36, 16  ;;  %v5812_v57 = vld [vmem:[%s5290_s20 + $0x70] sm:$0xff]  }
  0x77   : > { %870 = vst [vmem:[#allocation2 + $0x68] sm:$0xf] %v869_v40  ;;  %v882_v63 = vor.u32 %v880_v33, %v879_v43  ;;  %v883_v58 = vrot.slane %v879_v43, 4  ;;  %v912_v13 = vshll.u32 %v4538_v36, 16  ;;  %v930_v25 = vld [vmem:[#allocation2 + $0x74] sm:$0xe]  ;;  %v333_v2 = vmul.f32 %v5715_v52, %v4629_v12  ;;  %2342 = vmatpush2.bf16.msra.mxu1 %v5061_v16 }
  0x78   : > { %v5814_v48 = vld [vmem:[#allocation2 + $0x60] sm:$0xff]   ;;  %v887_v39 = vrot.slane %v885_v35, 7  ;;  %v1229_v20 = vrot.slane %v1227_v44, 1  ;;  %v334_v55 = vmul.f32 %v5715_v52, %v4632_v7  ;;  %v911_v36 = vrot.slane %v909_v19, 6  ;;  %2343 = vmatprep.subr.bf16.mxu1 %v7081_v1  ;;  %4833 = vmatpush3.bf16.msra.mxu0 %v5132_v5  ;;  %v5133_v35 = vld [vmem:[%s7072_s3 + $0x168] sm:$0xff]  }
  0x79   : > { %v5062_v33 = vld [vmem:[%s7072_s3 + $0x60] sm:$0xff]   ;;  %v897_v43 = vsel %vm5388_vm1, %v882_v63, %v896_v21  ;;  %v914_v3 = vrot.slane %v912_v13, 7  ;;  %v4633_v40 = vunpack.c.h.bf16 %v5781_v45  ;;  %v1380_v44 = vrot.slane %v5814_v48, 1  ;;  %4834 = vmatprep.subr.bf16.mxu0 %v5133_v35 }
  0x7a   : > { %898 = vst [vmem:[#allocation2 + $0x6c] sm:$0xf] %v897_v43  ;;  %v890_v12 = vor.u32 %v888_v41, %v887_v39  ;;  %v892_v7 = vrot.slane %v887_v39, 4  ;;  %v5827_v16 = vsel %vm1186_vm9, %v1225_v32, %v1229_v20  ;;  %v372_v63 = vadd.f32 %v5752_v18, %v333_v2  ;;  %v5065_v41 = vld [vmem:[%s7072_s3 + $0x58] sm:$0xff]  }
  0x7b   : > { %v5832_v21 = vor.u32 %v914_v3, %v911_v36  ;;  %v7080_v45 = vrot.slane %v5827_v16, 1  ;;  %v373_v5 = vadd.f32 %v5752_v18, %v334_v55  ;;  %v5845_v32 = vsel %vm1356_vm7, %v1378_v34, %v1380_v44  ;;  %1864 = vmatmul.mubr.bf16.gmra.mxu0 %v5747_v9  ;;  %2344 = vmatpush2.bf16.msra.mxu1 %v5062_v33 }
  0x7c   : > { %v891_v19 = vsel %vm5394_vm3, %v883_v58, %v890_v12  ;;  %v901_v2 = vsel %vm5403_vm5, %v892_v7, %v900_v47  ;;  %v4636_v55 = vunpack.c.l.bf16 %v5812_v57  ;;  %v1604_v13 = vrot.slane %v5845_v32, 1  ;;  %2345 = vmatprep.subr.bf16.mxu1 %v7081_v1  ;;  %4835 = vmatpush3.bf16.msra.mxu0 %v5133_v35 }
  0x7d   : > { %899 = vst [vmem:[#allocation2 + $0x70] sm:$0xf] %v891_v19  ;;  %902 = vst [vmem:[#allocation2 + $0x74] sm:$0x1] %v901_v2  ;;  %v931_v34 = vsel %vm5414_vm6, %v5832_v21, %v930_v25  ;;  %v1575_v58 = vsel %vm1356_vm7, %v1570_v0, %v7080_v45  ;;  %v404_v39 = vmax.f32 %v372_v63, 0.0  ;;  %v405_v47 = vmax.f32 %v373_v5, 0.0 }
  0x7e   : > { %932 = vst [vmem:[#allocation2 + $0x74] sm:$0xe] %v931_v34  ;;  %1871 = vmatprep.mubr.bf16.mxu0 %v1575_v58  ;;  %v916_v33 = vrot.slane %v5832_v21, 4  ;;  %v335_v43 = vmul.f32 %v5715_v52, %v4633_v40  ;;  %v336_v46 = vmul.f32 %v5715_v52, %v4636_v55  ;;  %v5134_v25 = vld [vmem:[%s7072_s3 + $0x160] sm:$0xff]   ;;  %v7116_v0 = vrot.slane %v5788_v59, 1  ;;  %v5066_v40 = vld [vmem:[%s7072_s3 + $0x50] sm:$0xff]  }
  0x7f   : > { %4836 = vmatprep.subr.bf16.mxu0 %v5134_v25  ;;  %v4539_v3 = vpack.c.bf16 %v404_v39, %v404_v39  ;;  %v1231_v12 = vshrl.u32 %v5482_v50, 16  ;;  %v1235_v7 = vshll.u32 %v5561_v23, 16  ;;  %v4540_v35 = vpack.c.bf16 %v405_v47, %v405_v47  ;;  %2346 = vmatpush2.bf16.msra.mxu1 %v5065_v41  ;;  %v5135_v47 = vld [vmem:[%s7072_s3 + $0x158] sm:$0xff]   ;;  %v998_v45 = vld [vmem:[#allocation2 + $0x84] sm:$0x8] }
  0x80   : > { %v1605_v36 = vsel %vm1356_vm7, %v7116_v0, %v1604_v13  ;;  %v374_v21 = vadd.f32 %v5752_v18, %v335_v43  ;;  %v375_v63 = vadd.f32 %v5752_v18, %v336_v46  ;;  %v4637_v5 = vunpack.c.h.bf16 %v5812_v57  ;;  %4837 = vmatpush3.bf16.msra.mxu0 %v5134_v25  ;;  %2347 = vmatprep.subr.bf16.mxu1 %v7081_v1  ;;  %v5068_v25 = vld [vmem:[%s7072_s3 + $0x48] sm:$0xff]  }
  0x81   : > { %4863 = vmatmul.mubr.bf16.gmra.mxu1 %v1605_v36  ;;  %v5882_v19 = vld [vmem:[#allocation2 + $0x68] sm:$0xff]   ;;  %v918_v2 = vshrl.u32 %v4539_v3, 16  ;;  %v921_v55 = vshll.u32 %v4539_v3, 16  ;;  %v1233_v34 = vor.u32 %v1231_v12, %v1229_v20  ;;  %v5884_v50 = vrot.slane %v1235_v7, 1  ;;  %4838 = vmatprep.subr.bf16.mxu0 %v5135_v47  ;;  %v964_v20 = vld [vmem:[#allocation2 + $0x7c] sm:$0xc] }
  0x82   : > { %v943_v23 = vshrl.u32 %v4540_v35, 16  ;;  %v946_v58 = vshll.u32 %v4540_v35, 16  ;;  %v406_v39 = vmax.f32 %v374_v21, 0.0  ;;  %v407_v0 = vmax.f32 %v375_v63, 0.0  ;;  %v934_v36 = vld [vmem:[#allocation2 + $0x7c] sm:$0x3] }
  0x83   : > { %v1382_v57 = vrot.slane %v5882_v19, 1  ;;  %v920_v43 = vrot.slane %v918_v2, 6  ;;  %v923_v46 = vrot.slane %v921_v55, 7  ;;  %v5893_v41 = vsel %vm1186_vm9, %v1233_v34, %v5884_v50  ;;  %1872 = vmatmul.mubr.bf16.gmra.mxu0 %v5494_v56  ;;  %2348 = vmatpush2.bf16.msra.mxu1 %v5066_v40  ;;  %v5069_v55 = vld [vmem:[%s7072_s3 + $0x40] sm:$0xff]  }
  0x84   : > { %v945_v3 = vrot.slane %v943_v23, 5  ;;  %v948_v12 = vrot.slane %v946_v58, 6  ;;  %v4541_v7 = vpack.c.bf16 %v406_v39, %v406_v39  ;;  %v4542_v35 = vpack.c.bf16 %v407_v0, %v407_v0  ;;  %4839 = vmatpush3.bf16.msra.mxu0 %v5135_v47  ;;  %2349 = vmatprep.subr.bf16.mxu1 %v7081_v1 }
  0x85   : > { %v5902_v21 = vsel %vm1356_vm7, %v1380_v44, %v1382_v57  ;;  %v5904_v63 = vld [vmem:[#allocation2 + $0x70] sm:$0xff]   ;;  %v924_v2 = vor.u32 %v923_v46, %v920_v43  ;;  %v337_v34 = vmul.f32 %v5715_v52, %v4637_v5  ;;  %v4736_v46 = vld [vmem:[%s5290_s20 + $0x78] sm:$0xff]   ;;  %vm7165_vm6 = vcmask 1040384  }
  0x86   : > { %v1608_v23 = vrot.slane %v5902_v21, 1  ;;  %v949_v58 = vor.u32 %v948_v12, %v945_v3  ;;  %v952_v39 = vshrl.u32 %v4541_v7, 16  ;;  %v955_v0 = vshll.u32 %v4541_v7, 16  ;;  %v5136_v44 = vld [vmem:[%s7072_s3 + $0x150] sm:$0xff]  }
  0x87   : > { %4840 = vmatprep.subr.bf16.mxu0 %v5136_v44  ;;  %v1384_v43 = vrot.slane %v5904_v63, 1  ;;  %v925_v5 = vsel %vm5486_vm2, %v916_v33, %v924_v2  ;;  %v926_v40 = vrot.slane %v924_v2, 4  ;;  %v977_v47 = vshll.u32 %v4542_v35, 16  ;;  %2350 = vmatpush2.bf16.msra.mxu1 %v5068_v25 }
  0x88   : > { %v1609_v3 = vsel %vm1356_vm7, %v1604_v13, %v1608_v23  ;;  %933 = vst [vmem:[#allocation2 + $0x78] sm:$0xf] %v925_v5  ;;  %v965_v12 = vsel %vm5498_vm4, %v949_v58, %v964_v20  ;;  %v950_v7 = vrot.slane %v949_v58, 4  ;;  %v954_v1 = vrot.slane %v952_v39, 5  ;;  %4841 = vmatpush3.bf16.msra.mxu0 %v5136_v44  ;;  %v5949_v44 = vld [vmem:[#allocation2 + $0x30] sm:$0xff]  }
  0x89   : > { %4866 = vmatprep.mubr.bf16.mxu1 %v1609_v3  ;;  %v5928_v51 = vsel %vm1356_vm7, %v1382_v57, %v1384_v43  ;;  %v935_v33 = vsel %vm5506_vm11, %v926_v40, %v934_v36  ;;  %966 = vst [vmem:[#allocation2 + $0x7c] sm:$0xc] %v965_v12  ;;  %v957_v13 = vrot.slane %v955_v0, 6  ;;  %v979_v2 = vrot.slane %v977_v47, 5  ;;  %v968_v36 = vld [vmem:[#allocation2 + $0x84] sm:$0x7] }
  0x8a   : > { %v1612_v60 = vrot.slane %v5928_v51, 1  ;;  %936 = vst [vmem:[#allocation2 + $0x7c] sm:$0x3] %v935_v33  ;;  %v7117_v20 = vrot.slane %v5893_v41, 1  ;;  %v7118_v58 = vrot.slane %v5827_v16, 1  ;;  %v376_v5 = vadd.f32 %v5752_v18, %v337_v34  ;;  %v5137_v47 = vld [vmem:[%s7072_s3 + $0x148] sm:$0xff]  }
  0x8b   : > { %v980_v57 = vshrl.u32 %v4542_v35, 16  ;;  %v7119_v3 = vmov 0   ;;  %v958_v6 = vor.u32 %v957_v13, %v954_v1  ;;  %v999_v25 = vsel %vm5362_vm14, %v979_v2, %v998_v45  ;;  %4842 = vmatprep.subr.bf16.mxu0 %v5137_v47 }
  0x8c   : > { %v1579_v39 = vsel %vm1356_vm7, %v7118_v58, %v7117_v20  ;;  %2351 = vmatprep.subr.bf16.mxu1 %v7119_v3  ;;  %v4640_v0 = vunpack.c.l.bf16 %v4736_v46  ;;  %v4641_v40 = vunpack.c.h.bf16 %v4736_v46  ;;  %v1613_v35 = vsel %vm1356_vm7, %v1608_v23, %v1612_v60  ;;  %1000 = vst [vmem:[#allocation2 + $0x84] sm:$0x8] %v999_v25  ;;  %4843 = vmatpush3.bf16.msra.mxu0 %v5137_v47 }
  0x8d   : > { %1879 = vmatprep.mubr.bf16.mxu0 %v1579_v39  ;;  %v408_v1 = vmax.f32 %v376_v5, 0.0  ;;  %v982_v34 = vrot.slane %v980_v57, 4  ;;  %v1239_v4 = vshrl.u32 %v5949_v44, 16  ;;  %4867 = vmatmul.mubr.bf16.gmra.mxu1 %v1613_v35  ;;  %v959_v45 = vsel %vm5530_vm10, %v950_v7, %v958_v6  ;;  %v1039_v57 = vld [vmem:[#allocation2 + $0x8] sm:$0xf] }
  0x8e   : > { %1880 = vmatmul.mubr.bf16.gmra.mxu0 %v5518_v14  ;;  %v960_v46 = vrot.slane %v958_v6, 4  ;;  %v338_v12 = vmul.f32 %v5715_v52, %v4640_v0  ;;  %v339_v33 = vmul.f32 %v5715_v52, %v4641_v40  ;;  %967 = vst [vmem:[#allocation2 + $0x80] sm:$0xf] %v959_v45  ;;  %v1243_v58 = vshll.u32 %v5581_v8, 16  ;;  %2352 = vmatpush2.bf16.msra.mxu1 %v5069_v55  ;;  %v5139_v52 = vld [vmem:[%s7072_s3 + $0x140] sm:$0xff]  }
  0x8f   : > { %v4543_v23 = vpack.c.bf16 %v408_v1, %v408_v1  ;;  %v983_v13 = vor.u32 %v982_v34, %v979_v2  ;;  %v1241_v20 = vor.u32 %v1239_v4, %v5884_v50  ;;  %v1247_v5 = vshrl.u32 %v5581_v8, 16  ;;  %3360 = vmatprep.subr.bf16.mxu1 %v7119_v3  ;;  %4844 = vmatprep.subr.bf16.mxu0 %v5139_v52  ;;  %v1002_v1 = vld [vmem:[#allocation2 + $0x8c] sm:$0xf] }
  0x90   : > { %v969_v39 = vsel %vm5356_vm13, %v960_v46, %v968_v36  ;;  %v377_v29 = vadd.f32 %v5752_v18, %v338_v12  ;;  %v378_v7 = vadd.f32 %v5752_v18, %v339_v33  ;;  %v1245_v61 = vrot.slane %v1243_v58, 1  ;;  %4845 = vmatpush3.bf16.msra.mxu0 %v5139_v52 }
  0x91   : > { %970 = vst [vmem:[#allocation2 + $0x84] sm:$0x7] %v969_v39  ;;  %v984_v50 = vrot.slane %v983_v13, 4  ;;  %v986_v55 = vshll.u32 %v4543_v23, 16  ;;  %v990_v2 = vshrl.u32 %v4543_v23, 16  ;;  %v5967_v6 = vld [vmem:[#allocation2 + $0x78] sm:$0xff]  }
  0x92   : > { %v409_v36 = vmax.f32 %v377_v29, 0.0  ;;  %v410_v25 = vmax.f32 %v378_v7, 0.0  ;;  %v1251_v18 = vshll.u32 %v5600_v22, 16  ;;  %v5971_v40 = vsel %vm1186_vm9, %v1241_v20, %v1245_v61 }
  0x93   : > { %v988_v8 = vrot.slane %v986_v55, 5  ;;  %v992_v0 = vrot.slane %v990_v2, 4  ;;  %v1249_v47 = vor.u32 %v1247_v5, %v1245_v61  ;;  %v1386_v35 = vrot.slane %v5967_v6, 1  ;;  %v1034_v61 = vld [vmem:[#allocation2 + $0x98] sm:$0x1] }
  0x94   : > { %v4544_v34 = vpack.c.bf16 %v409_v36, %v409_v36  ;;  %v4545_v4 = vpack.c.bf16 %v410_v25, %v410_v25  ;;  %v1582_v45 = vrot.slane %v5971_v40, 1  ;;  %v1253_v33 = vrot.slane %v1251_v18, 1 }
  0x95   : > { %v989_v46 = vsel %vm5378_vm0, %v984_v50, %v988_v8  ;;  %v993_v12 = vor.u32 %v992_v0, %v988_v8  ;;  %v5978_v22 = vcombine.low %v1039_v57, %v5693_v28  ;;  %v5983_v23 = vsel %vm1356_vm7, %v1384_v43, %v1386_v35 }
  0x96   : > { %1001 = vst [vmem:[#allocation2 + $0x88] sm:$0xf] %v989_v46  ;;  %v1011_v13 = vshrl.u32 %v4544_v34, 16  ;;  %v1014_v20 = vshll.u32 %v4544_v34, 16  ;;  %v1019_v58 = vshrl.u32 %v4545_v4, 16  ;;  %v1616_v39 = vrot.slane %v5983_v23, 1 }
  0x97   : > { %v994_v29 = vrot.slane %v993_v12, 4  ;;  %v1022_v7 = vshll.u32 %v4545_v4, 16  ;;  %v7120_v5 = vrot.slane %v5893_v41, 1  ;;  %v5992_v43 = vsel %vm1186_vm9, %v1249_v47, %v1253_v33  ;;  %v6011_v46 = vld [vmem:[#allocation2 + $0x40] sm:$0xff]  }
  0x98   : > { %v5989_v28 = vld [vmem:[#allocation2 + $0x80] sm:$0xff]   ;;  %v1013_v57 = vrot.slane %v1011_v13, 7  ;;  %v1021_v50 = vrot.slane %v1019_v58, 7  ;;  %v1617_v55 = vsel %vm1356_vm7, %v1612_v60, %v1616_v39  ;;  %v1586_v36 = vrot.slane %v5992_v43, 1 }
  0x99   : > { %v1583_v52 = vsel %vm1356_vm7, %v7120_v5, %v1582_v45  ;;  %v1003_v2 = vsel %vm5369_vm15, %v994_v29, %v1002_v1  ;;  %4870 = vmatprep.mubr.bf16.mxu1 %v1617_v55  ;;  %v1388_v25 = vrot.slane %v5989_v28, 1  ;;  %v1195_v60 = vshll.u32 %v5978_v22, 16  ;;  %v6026_v29 = vld [vmem:[#allocation2 + $0x48] sm:$0xff]  }
  0x9a   : > { %1887 = vmatprep.mubr.bf16.mxu0 %v1583_v52  ;;  %1004 = vst [vmem:[#allocation2 + $0x8c] sm:$0xf] %v1003_v2  ;;  %v1016_v18 = vor.u32 %v1014_v20, %v1013_v57  ;;  %v1017_v8 = vrot.slane %v1013_v57, 4  ;;  %v1024_v0 = vor.u32 %v1022_v7, %v1021_v50  ;;  %v1026_v47 = vrot.slane %v1021_v50, 4 }
  0x9b   : > { %1888 = vmatmul.mubr.bf16.gmra.mxu0 %v5573_v62  ;;  %v1587_v34 = vsel %vm1356_vm7, %v1582_v45, %v1586_v36  ;;  %v6005_v11 = vsel %vm1356_vm7, %v1386_v35, %v1388_v25  ;;  %v1255_v12 = vshrl.u32 %v6011_v46, 16  ;;  %v6017_v45 = vld [vmem:[%s7072_s3 + $0xb8] sm:$0xff]   ;;  %v1037_v35 = vld [vmem:[#allocation2] sm:$0xf]  ;;  %v6024_v20 = vrot.slane %v1195_v60, 1 }
  0x9c   : > { %v1025_v1 = vsel %vm5394_vm3, %v1017_v8, %v1024_v0  ;;  %v1031_v4 = vsel %vm5388_vm1, %v1016_v18, %v1030_v15  ;;  %1895 = vmatprep.mubr.bf16.mxu0 %v1587_v34  ;;  %v1620_v13 = vrot.slane %v6005_v11, 1  ;;  %v1035_v30 = vsel %vm5403_vm5, %v1026_v47, %v1034_v61  ;;  %4882 = vmatprep.subr.bf16.mxu0 %v6017_v45 }
  0x9d   : > { %1032 = vst [vmem:[#allocation2 + $0x90] sm:$0xf] %v1031_v4  ;;  %1033 = vst [vmem:[#allocation2 + $0x94] sm:$0xf] %v1025_v1  ;;  %v1257_v58 = vor.u32 %v1255_v12, %v1253_v33  ;;  %v1259_v7 = vshll.u32 %v6026_v29, 16  ;;  %v1199_v15 = vshrl.u32 %v5978_v22, 16  ;;  %v6041_v18 = vcombine.low %v1037_v35, %v6022_v27 }
  0x9e   : > { %1036 = vst [vmem:[#allocation2 + $0x98] sm:$0x1] %v1035_v30  ;;  %v1263_v5 = vshrl.u32 %v6026_v29, 16  ;;  %v1621_v37 = vsel %vm1356_vm7, %v1616_v39, %v1620_v13  ;;  %v1267_v52 = vshll.u32 %v5651_v10, 16  ;;  %v1271_v33 = vshrl.u32 %v5651_v10, 16 }
  0x9f   : > { %4871 = vmatmul.mubr.bf16.gmra.mxu1 %v1621_v37  ;;  %v1261_v57 = vrot.slane %v1259_v7, 1  ;;  %v1201_v50 = vor.u32 %v1199_v15, %v6024_v20  ;;  %v1275_v55 = vshll.u32 %v5761_v38, 16  ;;  %v1190_v15 = vshll.u32 %v6041_v18, 16 }
  0xa0   : > { %v1269_v61 = vrot.slane %v1267_v52, 1  ;;  %v1279_v52 = vshrl.u32 %v5761_v38, 16  ;;  %vm3050_vm2 = vcmask 1045504   ;;  %vm7157_vm4 = vcmask 1043456  }
  0xa1   : > { %v6037_v2 = vld [vmem:[#allocation2 + $0x88] sm:$0xff]   ;;  %v6044_v39 = vsel %vm1186_vm9, %v1257_v58, %v1261_v57  ;;  %v6048_v8 = vsel %vm1186_vm9, %v1201_v50, %v5729_v24  ;;  %v1265_v0 = vor.u32 %v1263_v5, %v1261_v57  ;;  %v1277_v4 = vrot.slane %v1275_v55, 1  ;;  %vm7158_vm13 = vmmov %vm7157_vm4 }
  0xa2   : > { %v6051_v10 = vrot.slane %v6037_v2, 1  ;;  %v1590_v47 = vrot.slane %v6044_v39, 1  ;;  %v1273_v1 = vor.u32 %v1271_v33, %v1269_v61  ;;  %v1283_v50 = vshll.u32 %v5814_v48, 16  ;;  %vm7159_vm14 = vmmov %vm7157_vm4 }
  0xa3   : > { %1896 = vmatmul.mubr.bf16.gmra.mxu0 %v5608_v42  ;;  %v6055_v60 = vsel %vm1186_vm9, %v1265_v0, %v1269_v61  ;;  %v1192_v61 = vrot.slane %v1190_v15, 1  ;;  %v1291_v15 = vshll.u32 %v5882_v19, 16  ;;  %vm7160_vm15 = vmmov %vm7157_vm4 }
  0xa4   : > { %7121 = vst [vmem:[#allocation6_spill] sm:$0xff] %v6051_v10  ;;  %v5064_v34 = vld [vmem:[#allocation2 + $0x90] sm:$0xff]   ;;  %v6059_v12 = vsel %vm1356_vm7, %v1388_v25, %v6051_v10  ;;  %v1591_v24 = vsel %vm1356_vm7, %v1586_v36, %v1590_v47  ;;  %v1594_v35 = vrot.slane %v6055_v60, 1  ;;  %v6076_v57 = vsel %vm1186_vm9, %v1273_v1, %v1277_v4  ;;  %vm7161_vm0 = vmmov %vm7157_vm4 }
  0xa5   : > { %v5067_v30 = vld [vmem:[#allocation2 + $0x98] ss:$0 sps:$4 sm:$0x33]   ;;  %v1624_v58 = vrot.slane %v6059_v12, 1  ;;  %v6064_v7 = vrot.slane %v5064_v34, 1  ;;  %1903 = vmatprep.mubr.bf16.mxu0 %v1591_v24  ;;  %v1281_v24 = vor.u32 %v1279_v52, %v1277_v4  ;;  %vm7162_vm1 = vmmov %vm7161_vm0 }
  0xa6   : > { %v1511_v5 = vrot.slane %v5067_v30, 1  ;;  %v1595_v37 = vsel %vm1356_vm7, %v1590_v47, %v1594_v35  ;;  %v1598_v47 = vrot.slane %v6076_v57, 1  ;;  %v1501_v52 = vshrl.u32 %v5067_v30, 16  ;;  %vm7163_vm3 = vmmov %vm7161_vm0 }
  0xa7   : > { %v1625_v25 = vsel %vm1356_vm7, %v1620_v13, %v1624_v58  ;;  %v6073_v36 = vsel %vm1356_vm7, %v6051_v10, %v6064_v7  ;;  %v1188_v13 = vshrl.u32 %v6041_v18, 16  ;;  %vm7164_vm5 = vmmov %vm7161_vm0 }
  0xa8   : > { %4874 = vmatprep.mubr.bf16.mxu1 %v1625_v25  ;;  %v1628_v33 = vrot.slane %v6073_v36, 1  ;;  %v1512_v55 = vsel %vm1356_vm7, %v6064_v7, %v1511_v5  ;;  %v1285_v25 = vrot.slane %v1283_v50, 1  ;;  %v1638_v10 = vrot.slane %v1511_v5, 1 }
  0xa9   : > { %v1632_v38 = vrot.slane %v1512_v55, 1  ;;  %v1193_v42 = vor.u32 %v1192_v61, %v1188_v13  ;;  %v1599_v62 = vsel %vm1356_vm7, %v1594_v35, %v1598_v47  ;;  %v1287_v55 = vshrl.u32 %v5814_v48, 16  ;;  %v5072_v61 = vld [vmem:[%s7072_s3 + $0x1b8] sm:$0xff]  }
  0xaa   : > { %v1629_v0 = vsel %vm1356_vm7, %v1624_v58, %v1628_v33  ;;  %v1489_v58 = vshll.u32 %v5064_v34, 16  ;;  %v1497_v35 = vshll.u32 %v5067_v30, 16  ;;  %v1299_v30 = vshll.u32 %v5904_v63, 16 }
  0xab   : > { %1904 = vmatmul.mubr.bf16.gmra.mxu0 %v5618_v31  ;;  %4875 = vmatmul.mubr.bf16.gmra.mxu1 %v1629_v0  ;;  %v1633_v1 = vsel %vm1356_vm7, %v1628_v33, %v1632_v38  ;;  %v6090_v31 = vsel %vm1186_vm9, %v1281_v24, %v1285_v25  ;;  %v1639_v0 = vsel %vm1356_vm7, %v1632_v38, %v1638_v10  ;;  %v1293_v33 = vrot.slane %v1291_v15, 1 }
  0xac   : > { %1911 = vmatprep.mubr.bf16.mxu0 %v1595_v37  ;;  %4878 = vmatprep.mubr.bf16.mxu1 %v1633_v1  ;;  %v1493_v37 = vshrl.u32 %v5064_v34, 16  ;;  %v1198_v4 = vsel %vm1186_vm9, %v1193_v42, %v6024_v20  ;;  %v6097_v5 = vrot.slane %v1489_v58, 1  ;;  %v1602_v48 = vrot.slane %v6090_v31, 1 }
  0xad   : > { %v1289_v50 = vor.u32 %v1287_v55, %v1285_v25  ;;  %v1499_v34 = vrot.slane %v1497_v35, 1  ;;  %v1295_v20 = vshrl.u32 %v5882_v19, 16  ;;  %v1074_v55 = vld [vmem:[#allocation2] sm:$0xe]  ;;  %v1301_v58 = vrot.slane %v1299_v30, 1 }
  0xae   : > { %v1495_v13 = vor.u32 %v1493_v37, %v6097_v5  ;;  %v1603_v10 = vsel %vm1356_vm7, %v1598_v47, %v1602_v48  ;;  %v4283_v37 = vcombine.low %v1074_v55, %v6022_v27  ;;  %v1307_v27 = vshll.u32 %v5967_v6, 16 }
  0xaf   : > { %v1503_v42 = vor.u32 %v1501_v52, %v1499_v34  ;;  %v1297_v15 = vor.u32 %v1295_v20, %v1293_v33  ;;  %v1311_v30 = vshrl.u32 %v5967_v6, 16 }
  0xb0   : > { %v6103_v38 = vsel %vm1186_vm9, %v1495_v13, %v1499_v34  ;;  %v1357_v35 = vrot.slane %v4283_v37, 1  ;;  %v1309_v34 = vrot.slane %v1307_v27, 1  ;;  %v5143_v27 = vld [vmem:[#allocation2 + $0x18] sm:$0xff]  }
  0xb1   : > { %v1630_v1 = vrot.slane %v6103_v38, 1  ;;  %v1636_v47 = vrot.slane %v1503_v42, 1  ;;  %v5099_v38 = vld [vmem:[%s7072_s3 + $0x1c0] sm:$0xff]  }
  0xb2   : > { %v1313_v55 = vor.u32 %v1311_v30, %v1309_v34 }
  0xb3   : > { %1912 = vmatmul.mubr.bf16.gmra.mxu0 %v5640_v17  ;;  %4879 = vmatmul.mubr.bf16.gmra.mxu1 %v1639_v0  ;;  %v6119_v25 = vsel %vm1356_vm7, %v1630_v1, %v1636_v47  ;;  %v1358_v0 = vrot.slane %v5978_v22, 1 }
  0xb4   : > { %1919 = vmatprep.mubr.bf16.mxu0 %v1599_v62  ;;  %2353 = vmatprep.mubr.bf16.mxu1 %v1198_v4  ;;  %v6106_v62 = vsel %vm1186_vm9, %v1289_v50, %v1293_v33  ;;  %v5073_v4 = vld [vmem:[%s7072_s3 + $0x1b0] sm:$0xff]   ;;  %v1303_v50 = vshrl.u32 %v5904_v63, 16  ;;  %v5074_v33 = vld [vmem:[%s7072_s3 + $0x1a8] sm:$0xff]  }
  0xb5   : > { %v1606_v24 = vrot.slane %v6106_v62, 1 }
  0xb6   : > { %v1305_v13 = vor.u32 %v1303_v50, %v1301_v58 }
  0xb7   : > { %v1607_v52 = vsel %vm1356_vm7, %v1602_v48, %v1606_v24 }
  0xb8   : > { %v6154_v20 = vsel %vm1186_vm9, %v1305_v13, %v1309_v34  ;;  %v5079_v13 = vld [vmem:[%s7072_s3 + $0x180] sm:$0xff]  }
  0xb9   : > { %v1614_v47 = vrot.slane %v6154_v20, 1 }
  0xbb   : > { %1920 = vmatmul.mubr.bf16.gmra.mxu0 %v5670_v49  ;;  %2354 = vmatmul.mubr.bf16.vlgmr.msra.gmra.mxu1 %v6041_v18  ;;  %v6131_v18 = vsel %vm1186_vm9, %v1297_v15, %v1301_v58  ;;  %v5077_v58 = vld [vmem:[%s7072_s3 + $0x190] sm:$0xff]  }
  0xbc   : > { %1927 = vmatprep.mubr.bf16.mxu0 %v1603_v10  ;;  %3361 = vmatpush1.bf16.msra.mxu1 %v5072_v61  ;;  %v1610_v48 = vrot.slane %v6131_v18, 1  ;;  %v5075_v10 = vld [vmem:[%s7072_s3 + $0x1a0] sm:$0xff]   ;;  %v1315_v61 = vshll.u32 %v5989_v28, 16 }
  0xbd   : > { %2361 = vmatprep.mubr.bf16.mxu1 %v6048_v8  ;;  %3362 = vmatprep.subr.bf16.mxu1 %v7119_v3  ;;  %v6138_v8 = vsel %vm1356_vm7, %v1357_v35, %v1358_v0  ;;  %v1319_v35 = vshrl.u32 %v5989_v28, 16 }
  0xbe   : > { %v1611_v42 = vsel %vm1356_vm7, %v1606_v24, %v1610_v48  ;;  %v5142_v24 = vld [vmem:[#allocation2 + $0x10] sm:$0xff]   ;;  %v1317_v15 = vrot.slane %v1315_v61, 1  ;;  %v1615_v37 = vsel %vm1356_vm7, %v1610_v48, %v1614_v47  ;;  %v5144_v61 = vld [vmem:[#allocation2 + $0x20] sm:$0xff]  }
  0xc0   : > { %3363 = vmatpush1.bf16.msra.mxu1 %v5073_v4  ;;  %v6171_v4 = vsel %vm1186_vm9, %v1313_v55, %v1317_v15 }
  0xc1   : > { %3364 = vmatprep.subr.bf16.mxu1 %v7119_v3  ;;  %v1618_v50 = vrot.slane %v6171_v4, 1 }
  0xc3   : > { %1928 = vmatmul.mubr.bf16.gmra.mxu0 %v5788_v59  ;;  %2362 = vmatmul.mubr.bf16.gmra.mxu1 %v5978_v22  ;;  %v1619_v34 = vsel %vm1356_vm7, %v1614_v47, %v1618_v50  ;;  %v5081_v47 = vld [vmem:[%s7072_s3 + $0x1f0] sm:$0xff]   ;;  %v6316_v22 = vld [vmem:[#allocation2 + $0x18] sm:$0xff]  }
  0xc4   : > { %1935 = vmatprep.mubr.bf16.mxu0 %v1607_v52  ;;  %2369 = vmatprep.mubr.bf16.mxu1 %v5759_v26  ;;  %v5076_v26 = vld [vmem:[%s7072_s3 + $0x198] sm:$0xff]   ;;  %v1323_v52 = vshll.u32 %v6037_v2, 16 }
  0xc5   : > { %3365 = vmatpush1.bf16.msra.mxu1 %v5074_v33  ;;  %v1321_v33 = vor.u32 %v1319_v35, %v1317_v15  ;;  %v5088_v35 = vld [vmem:[%s7072_s3 + $0x1d8] sm:$0xff]  }
  0xc6   : > { %3366 = vmatprep.subr.bf16.mxu1 %v7119_v3  ;;  %v1325_v48 = vrot.slane %v1323_v52, 1  ;;  %v5091_v52 = vld [vmem:[%s7072_s3 + $0x1d0] sm:$0xff]  }
  0xc9   : > { %3367 = vmatpush1.bf16.msra.mxu1 %v5075_v10  ;;  %v6188_v10 = vsel %vm1186_vm9, %v1321_v33, %v1325_v48 }
  0xca   : > { %3368 = vmatprep.subr.bf16.mxu1 %v7119_v3  ;;  %v1622_v30 = vrot.slane %v6188_v10, 1 }
  0xcb   : > { %1936 = vmatmul.mubr.bf16.gmra.mxu0 %v5845_v32  ;;  %2370 = vmatmul.mubr.bf16.gmra.mxu1 %v5142_v24 }
  0xcc   : > { %1943 = vmatprep.mubr.bf16.mxu0 %v1611_v42  ;;  %2377 = vmatprep.mubr.bf16.mxu1 %v5710_v54  ;;  %v5078_v54 = vld [vmem:[%s7072_s3 + $0x188] sm:$0xff]   ;;  %v1327_v42 = vshrl.u32 %v6037_v2, 16  ;;  %v1623_v24 = vsel %vm1356_vm7, %v1618_v50, %v1622_v30 }
  0xcd   : > { %3369 = vmatpush1.bf16.msra.mxu1 %v5076_v26  ;;  %v5146_v50 = vld [vmem:[#allocation2 + $0xc] sm:$0xf] }
  0xce   : > { %3370 = vmatprep.subr.bf16.mxu1 %v7119_v3  ;;  %v6197_v26 = vor.u32 %v1327_v42, %v1325_v48 }
  0xd0   : > { %v1492_v55 = vsel %vm1186_vm9, %v6197_v26, %v6097_v5  ;;  %v5084_v5 = vld [vmem:[%s7072_s3 + $0x1e0] sm:$0xff]  }
  0xd1   : > { %3371 = vmatpush1.bf16.msra.mxu1 %v5077_v58  ;;  %v1626_v15 = vrot.slane %v1492_v55, 1  ;;  %v5145_v58 = vld [vmem:[#allocation2 + $0x28] sm:$0xff]  }
  0xd2   : > { %3372 = vmatprep.subr.bf16.mxu1 %v7119_v3 }
  0xd3   : > { %1944 = vmatmul.mubr.bf16.gmra.mxu0 %v5902_v21  ;;  %2378 = vmatmul.mubr.bf16.gmra.mxu1 %v5143_v27 }
  0xd4   : > { %1951 = vmatprep.mubr.bf16.mxu0 %v1615_v37  ;;  %2385 = vmatprep.mubr.bf16.mxu1 %v5827_v16  ;;  %v5080_v16 = vld [vmem:[%s7072_s3 + $0x1f8] sm:$0xff]   ;;  %v1627_v37 = vsel %vm1356_vm7, %v1622_v30, %v1626_v15 }
  0xd5   : > { %3373 = vmatpush1.bf16.msra.mxu1 %v5078_v54  ;;  %v1631_v54 = vsel %vm1356_vm7, %v1626_v15, %v1630_v1  ;;  %v5083_v1 = vld [vmem:[#allocation2 + $0x98] ss:$0 sps:$4 sm:$0x11]   ;;  %v1361_v15 = vsel %vm1356_vm7, %v1358_v0, %v5724_v53 }
  0xd6   : > { %3374 = vmatprep.subr.bf16.mxu1 %v7119_v3 }
  0xd9   : > { %3375 = vmatpush1.bf16.msra.mxu1 %v5079_v13  ;;  %v1634_v13 = vrot.slane %v5083_v1, 1 }
  0xda   : > { %3376 = vmatprep.subr.bf16.mxu1 %v7119_v3 }
  0xdb   : > { %1952 = vmatmul.mubr.bf16.gmra.mxu0 %v5928_v51  ;;  %2386 = vmatmul.mubr.bf16.gmra.mxu1 %v5144_v61  ;;  %v1635_v42 = vsel %vm1356_vm7, %v6064_v7, %v1634_v13  ;;  %v5090_v7 = vld [vmem:[%s7072_s3 + $0xa0] sm:$0xff]   ;;  %v5094_v61 = vld [vmem:[%s7072_s3 + $0x88] sm:$0xff]  }
  0xdc   : > { %1959 = vmatprep.mubr.bf16.mxu0 %v1619_v34  ;;  %2393 = vmatprep.mubr.bf16.mxu1 %v5893_v41  ;;  %v5082_v41 = vld [vmem:[%s7072_s3 + $0x1e8] sm:$0xff]   ;;  %v1568_v34 = vrot.slane %v5747_v9, 1 }
  0xdd   : > { %3377 = vmatpush2.bf16.msra.mxu1 %v5080_v16 }
  0xde   : > { %3378 = vmatprep.subr.bf16.mxu1 %v7119_v3 }
  0xe1   : > { %3379 = vmatpush2.bf16.msra.mxu1 %v5081_v47  ;;  %v5150_v47 = vld [vmem:[#allocation2 + $0x60] sm:$0xff]  }
  0xe2   : > { %3380 = vmatprep.subr.bf16.mxu1 %v7119_v3 }
  0xe3   : > { %1960 = vmatmul.mubr.bf16.gmra.mxu0 %v5983_v23  ;;  %2394 = vmatmul.mubr.bf16.gmra.mxu1 %v5145_v58  ;;  %v5104_v58 = vld [vmem:[%s7072_s3 + $0x230] sm:$0xff]  }
  0xe4   : > { %1967 = vmatprep.mubr.bf16.mxu0 %v1623_v24  ;;  %2401 = vmatprep.mubr.bf16.mxu1 %v5971_v40  ;;  %v1465_v40 = vld [vmem:[#allocation2 + $0x8] sm:$0xc]  ;;  %v5096_v24 = vld [vmem:[%s7072_s3 + $0x80] sm:$0xff]  }
  0xe5   : > { %3381 = vmatpush2.bf16.msra.mxu1 %v5082_v41  ;;  %v4288_v27 = vcombine.low %v1465_v40, %v5146_v50  ;;  %v5100_v41 = vld [vmem:[%s7072_s3 + $0x238] sm:$0xff]  }
  0xe6   : > { %3382 = vmatprep.subr.bf16.mxu1 %v7119_v3 }
  0xe7   : > { %v1507_v33 = vrot.slane %v4288_v27, 1 }
  0xe9   : > { %3383 = vmatpush2.bf16.msra.mxu1 %v5084_v5  ;;  %v1508_v48 = vsel %vm1356_vm7, %v1507_v33, %v5724_v53  ;;  %v2675_v5 = vld [vmem:[#allocation2 + $0x10] sm:$0xc]  ;;  %v5106_v53 = vld [vmem:[%s7072_s3 + $0x228] sm:$0xff]  }
  0xea   : > { %3384 = vmatprep.subr.bf16.mxu1 %v7119_v3 }
  0xeb   : > { %1968 = vmatmul.mubr.bf16.gmra.mxu0 %v6005_v11  ;;  %2402 = vmatmul.mubr.bf16.gmra.mxu1 %v5949_v44  ;;  %v5095_v44 = vld [vmem:[%s7072_s3 + $0x1c8] sm:$0xff]  }
  0xec   : > { %1975 = vmatprep.mubr.bf16.mxu0 %v1627_v37  ;;  %2409 = vmatprep.mubr.bf16.mxu1 %v5992_v43  ;;  %v5147_v43 = vld [vmem:[#allocation2 + $0x38] sm:$0xff]   ;;  %v6308_v37 = vld [vmem:[#allocation2 + $0x14] sm:$0xf] }
  0xed   : > { %3385 = vmatpush2.bf16.msra.mxu1 %v5088_v35  ;;  %v6325_v35 = vld [vmem:[#allocation2 + $0x90] ss:$0 sps:$4 sm:$0x11]  }
  0xee   : > { %3386 = vmatprep.subr.bf16.mxu1 %v7119_v3 }
  0xf1   : > { %3387 = vmatpush2.bf16.msra.mxu1 %v5091_v52  ;;  %v2818_v52 = vshll.u32 %v6316_v22, 16 }
  0xf2   : > { %3388 = vmatprep.subr.bf16.mxu1 %v7119_v3 }
  0xf3   : > { %1976 = vmatmul.mubr.bf16.gmra.mxu0 %v6059_v12  ;;  %2410 = vmatmul.mubr.bf16.gmra.mxu1 %v5147_v43  ;;  %v2822_v43 = vshrl.u32 %v6316_v22, 16 }
  0xf4   : > { %1983 = vmatprep.mubr.bf16.mxu0 %v1631_v54  ;;  %2417 = vmatprep.mubr.bf16.mxu1 %v6044_v39  ;;  %v1567_v39 = vrot.slane %v1508_v48, 1  ;;  %v5108_v54 = vld [vmem:[%s7072_s3 + $0x220] sm:$0xff]  }
  0xf5   : > { %3389 = vmatpush2.bf16.msra.mxu1 %v5095_v44  ;;  %v2820_v44 = vrot.slane %v2818_v52, 1 }
  0xf6   : > { %3390 = vmatprep.subr.bf16.mxu1 %v7119_v3  ;;  %v1569_v3 = vsel %vm1356_vm7, %v1567_v39, %v1568_v34  ;;  %v6351_v39 = vld [vmem:[#allocation2 + $0x28] sm:$0xff]  }
  0xf7   : > { %v2824_v13 = vor.u32 %v2822_v43, %v2820_v44 }
  0xf9   : > { %3391 = vmatpush2.bf16.msra.mxu1 %v5099_v38 }
  0xfb   : > { %1984 = vmatmul.mubr.bf16.gmra.mxu0 %v6073_v36  ;;  %2418 = vmatmul.mubr.bf16.gmra.mxu1 %v6011_v46  ;;  %v7122_v36 = vrot.slane %v5494_v56, 1  ;;  %v5087_v46 = vld [vmem:[%s7072_s3 + $0xb0] sm:$0xff]  }
  0xfc   : > { %1991 = vmatprep.mubr.bf16.mxu0 %v6119_v25  ;;  %2425 = vmatprep.mubr.bf16.mxu1 %v6055_v60  ;;  %v5148_v60 = vld [vmem:[#allocation2 + $0x50] sm:$0xff]  }
  0xfd   : > { %v1573_v25 = vsel %vm1356_vm7, %v1568_v34, %v7122_v36 }
 0x103   : > { %1992 = vmatmul.mubr.bf16.gmra.mxu0 %v1635_v42  ;;  %2426 = vmatmul.mubr.bf16.gmra.mxu1 %v6026_v29  ;;  %v5089_v29 = vld [vmem:[%s7072_s3 + $0xa8] sm:$0xff]  }
 0x104   : > { %4846 = vmatprep.mubr.bf16.mxu0 %v1569_v3  ;;  %2433 = vmatprep.mubr.bf16.mxu1 %v6076_v57  ;;  %v5112_v3 = vld [vmem:[%s7072_s3 + $0x210] sm:$0xff]  }
 0x10b   : > { %4847 = vmatmul.mubr.bf16.vlgmr.msra.gmra.mxu0 %v1573_v25  ;;  %2434 = vmatmul.mubr.bf16.gmra.mxu1 %v5148_v60 }
 0x10c   : > { %4883 = vmatpush3.bf16.msra.mxu0 %v6017_v45  ;;  %4898 = vmatprep.mubr.bf16.mxu0 %v6138_v8  ;;  %v5092_v45 = vld [vmem:[%s7072_s3 + $0x98] sm:$0xff]  }
 0x10d   : > { %4884 = vmatprep.subr.bf16.mxu0 %v5087_v46  ;;  %2441 = vmatprep.mubr.bf16.mxu1 %v6090_v31  ;;  %v6270_v57 = vpop.f32.mrf.mxu1  ;;  %v5149_v8 = vld [vmem:[#allocation2 + $0x58] sm:$0xff]   ;;  %v5093_v31 = vld [vmem:[%s7072_s3 + $0x90] sm:$0xff]  }
 0x10f   : > { %v6276_v16 = vpop.f32.mrf.mxu1 }
 0x110   : > { %4885 = vmatpush3.bf16.msra.mxu0 %v5087_v46  ;;  %v7125_v46 = vld [vmem:[#allocation4_spill] sm:$0xff] }
 0x111   : > { %4886 = vmatprep.subr.bf16.mxu0 %v5089_v29  ;;  %v6281_v30 = vpop.f32.mrf.mxu1 }
 0x113   : > { %2442 = vmatmul.mubr.bf16.gmra.mxu1 %v5149_v8 }
 0x114   : > { %4887 = vmatpush3.bf16.msra.mxu0 %v5089_v29  ;;  %2449 = vmatprep.mubr.bf16.mxu1 %v6106_v62  ;;  %v6287_v62 = vpop.f32.mrf.mxu1 }
 0x115   : > { %4888 = vmatprep.subr.bf16.mxu0 %v5090_v7 }
 0x117   : > { %v6292_v55 = vpop.f32.mrf.mxu1 }
 0x118   : > { %4889 = vmatpush3.bf16.msra.mxu0 %v5090_v7 }
 0x119   : > { %4890 = vmatprep.subr.bf16.mxu0 %v5092_v45 }
 0x11b   : > { %2450 = vmatmul.mubr.bf16.gmra.mxu1 %v5150_v47 }
 0x11c   : > { %4891 = vmatpush3.bf16.msra.mxu0 %v5092_v45  ;;  %2457 = vmatprep.mubr.bf16.mxu1 %v6131_v18  ;;  %v6299_v18 = vpop.f32.mrf.mxu1  ;;  %v2834_v45 = vshll.u32 %v6351_v39, 16 }
 0x11d   : > { %4892 = vmatprep.subr.bf16.mxu0 %v5093_v31 }
 0x120   : > { %4893 = vmatpush3.bf16.msra.mxu0 %v5093_v31  ;;  %v5115_v31 = vld [vmem:[%s7072_s3 + $0x208] sm:$0xff]  }
 0x121   : > { %4894 = vmatprep.subr.bf16.mxu0 %v5094_v61 }
 0x123   : > { %2458 = vmatmul.mubr.bf16.gmra.mxu1 %v5882_v19  ;;  %v6310_v19 = vpop.f32.mrf.mxu1 }
 0x124   : > { %4895 = vmatpush3.bf16.msra.mxu0 %v5094_v61  ;;  %2465 = vmatprep.mubr.bf16.mxu1 %v6154_v20  ;;  %v6314_v20 = vcombine.low %v2675_v5, %v6308_v37 }
 0x125   : > { %4896 = vmatprep.subr.bf16.mxu0 %v5096_v24  ;;  %v6323_v0 = vpop.f32.mrf.mxu1 }
 0x126   : > { %v2813_v40 = vshll.u32 %v6314_v20, 16  ;;  %v2811_v50 = vshrl.u32 %v6314_v20, 16 }
 0x128   : > { %4897 = vmatpush3.bf16.msra.mxu0 %v5096_v24  ;;  %v2815_v27 = vrot.slane %v2813_v40, 1  ;;  %v7126_v40 = vld [vmem:[#allocation5_spill] sm:$0xff] }
 0x129   : > { %4934 = vmatprep.subr.bf16.mxu0 %v5100_v41 }
 0x12a   : > { %v2816_v48 = vor.u32 %v2815_v27, %v2811_v50 }
 0x12b   : > { %4899 = vmatmul.mubr.bf16.vlgmr.msra.gmra.mxu0 %v1361_v15  ;;  %2466 = vmatmul.mubr.bf16.gmra.mxu1 %v5904_v63  ;;  %v6335_v63 = vpop.f32.mrf.mxu1 }
 0x12c   : > { %4935 = vmatpush3.bf16.msra.mxu0 %v5100_v41  ;;  %4902 = vmatprep.mubr.bf16.mxu0 %v5747_v9  ;;  %v6327_v9 = vld [vmem:[#allocation2 + $0x20] sm:$0xff]   ;;  %v2821_v29 = vsel %vm1186_vm9, %v2816_v48, %v2820_v44  ;;  %v6376_v41 = vld [vmem:[#allocation2 + $0x30] sm:$0xff]  }
 0x12d   : > { %4936 = vmatprep.subr.bf16.mxu0 %v5104_v58  ;;  %2473 = vmatprep.mubr.bf16.mxu1 %v6171_v4  ;;  %v1331_v4 = vshll.u32 %v6325_v35, 16  ;;  %v2826_v33 = vshll.u32 %v6327_v9, 16  ;;  %v6347_v38 = vpop.f32.mrf.mxu1  ;;  %v2830_v7 = vshrl.u32 %v6327_v9, 16  ;;  %v3054_v47 = vrot.slane %v2821_v29, 2 }
 0x12e   : > { %v2842_v50 = vshll.u32 %v6376_v41, 16  ;;  %v2846_v29 = vshrl.u32 %v6376_v41, 16 }
 0x12f   : > { %v2828_v34 = vrot.slane %v2826_v33, 1  ;;  %v3051_v33 = vrot.slane %v6314_v20, 2 }
 0x130   : > { %4937 = vmatpush3.bf16.msra.mxu0 %v5104_v58  ;;  %v2836_v58 = vrot.slane %v2834_v45, 1  ;;  %v3060_v45 = vrot.slane %v6327_v9, 2 }
 0x131   : > { %4938 = vmatprep.subr.bf16.mxu0 %v5106_v53  ;;  %v2829_v60 = vsel %vm1186_vm9, %v2824_v13, %v2828_v34  ;;  %v2832_v15 = vor.u32 %v2830_v7, %v2828_v34  ;;  %v2844_v34 = vrot.slane %v2842_v50, 1 }
 0x132   : > { %v3055_v24 = vrot.slane %v2829_v60, 2 }
 0x133   : > { %4903 = vmatmul.mubr.bf16.gmra.mxu0 %v5494_v56  ;;  %v5110_v56 = vld [vmem:[%s7072_s3 + $0x218] sm:$0xff]   ;;  %2474 = vmatmul.mubr.bf16.gmra.mxu1 %v5967_v6  ;;  %v6349_v1 = vpop.f32.mrf.mxu0  ;;  %v6356_v6 = vpop.f32.mrf.mxu1  ;;  %v2837_v27 = vsel %vm1186_vm9, %v2832_v15, %v2836_v58  ;;  %v6418_v15 = vld [vmem:[#allocation2 + $0x40] sm:$0xff]  }
 0x134   : > { %4906 = vmatprep.mubr.bf16.mxu0 %v5518_v14  ;;  %4939 = vmatpush3.bf16.msra.mxu0 %v5106_v53  ;;  %v1333_v14 = vrot.slane %v1331_v4, 1  ;;  %v5117_v53 = vld [vmem:[%s7072_s3 + $0x200] sm:$0xff]   ;;  %v2838_v4 = vshrl.u32 %v6351_v39, 16  ;;  %v3062_v48 = vrot.slane %v2837_v27, 2  ;;  %v2858_v50 = vshll.u32 %v6418_v15, 16 }
 0x135   : > { %4940 = vmatprep.subr.bf16.mxu0 %v5108_v54  ;;  %2481 = vmatprep.mubr.bf16.mxu1 %v6188_v10  ;;  %v1859_v42 = vpop.f32.mrf.mxu0  ;;  %v7123_v10 = vld [vmem:[#allocation3_spill] sm:$0xff] }
 0x136   : > { %v1334_v25 = vsel %vm1186_vm9, %v6197_v26, %v1333_v14  ;;  %v6372_v26 = vpop.f32.mrf.mxu1  ;;  %v2840_v13 = vor.u32 %v2838_v4, %v2836_v58  ;;  %v6399_v42 = vld [vmem:[#allocation2 + $0x38] sm:$0xff]  }
 0x137   : > { %v6359_v36 = vpop.f32.mrf.mxu0  ;;  %v2854_v4 = vshrl.u32 %v6399_v42, 16 }
 0x138   : > { %4941 = vmatpush3.bf16.msra.mxu0 %v5108_v54  ;;  %7124 = vst [vmem:[#allocation3_spill] sm:$0xff] %v6359_v36  ;;  %v3056_v54 = vsel %vm3050_vm2, %v3054_v47, %v3055_v24 }
 0x139   : > { %4942 = vmatprep.subr.bf16.mxu0 %v5110_v56  ;;  %v1862_v8 = vpop.f32.mrf.mxu0 }
 0x13b   : > { %4907 = vmatmul.mubr.bf16.gmra.mxu0 %v7123_v10  ;;  %2482 = vmatmul.mubr.bf16.gmra.mxu1 %v5989_v28  ;;  %v6374_v61 = vpop.f32.mrf.mxu0 }
 0x13c   : > { %4910 = vmatprep.mubr.bf16.mxu0 %v7125_v46  ;;  %4943 = vmatpush3.bf16.msra.mxu0 %v5110_v56  ;;  %v3052_v56 = vrot.slane %v6316_v22, 2  ;;  %v2845_v46 = vsel %vm1186_vm9, %v2840_v13, %v2844_v34  ;;  %v6435_v13 = vld [vmem:[#allocation2 + $0x48] sm:$0xff]  }
 0x13d   : > { %4944 = vmatprep.subr.bf16.mxu0 %v5112_v3  ;;  %2489 = vmatprep.mubr.bf16.mxu1 %v1334_v25  ;;  %v1867_v5 = vpop.f32.mrf.mxu0  ;;  %v3063_v25 = vsel %vm3050_vm2, %v3055_v24, %v3062_v48 }
 0x13f   : > { %v6384_v52 = vpop.f32.mrf.mxu0 }
 0x140   : > { %4945 = vmatpush3.bf16.msra.mxu0 %v5112_v3  ;;  %7127 = vst [vmem:[#allocation4_spill] sm:$0xff] %v6384_v52 }
 0x141   : > { %4946 = vmatprep.subr.bf16.mxu0 %v5115_v31  ;;  %v6381_v28 = vpop.f32.mrf.mxu1  ;;  %v1870_v44 = vpop.f32.mrf.mxu0 }
 0x143   : > { %4911 = vmatmul.mubr.bf16.gmra.mxu0 %v7126_v40  ;;  %2490 = vmatmul.mubr.bf16.gmra.mxu1 %v6037_v2  ;;  %v6392_v43 = vpop.f32.mrf.mxu1  ;;  %v1873_v14 = vpop.f32.mrf.mxu0  ;;  %v3053_v2 = vsel %vm3050_vm2, %v3051_v33, %v3052_v56  ;;  %v3066_v33 = vrot.slane %v6351_v39, 2 }
 0x144   : > { %4914 = vmatprep.mubr.bf16.mxu0 %v5640_v17  ;;  %4947 = vmatpush3.bf16.msra.mxu0 %v5115_v31  ;;  %v6397_v17 = vadd.f32 %v6276_v16, %v1873_v14  ;;  %v2850_v16 = vshll.u32 %v6399_v42, 16  ;;  %v2848_v31 = vor.u32 %v2846_v29, %v2844_v34  ;;  %v2862_v29 = vshrl.u32 %v6418_v15, 16 }
 0x145   : > { %4948 = vmatprep.subr.bf16.mxu0 %v5117_v53  ;;  %3392 = vmatprep.mubr.bf16.mxu1 %v3056_v54  ;;  %v1875_v3 = vpop.f32.mrf.mxu0  ;;  %v6401_v10 = vpop.f32.mrf.mxu1 }
 0x146   : > { %v2852_v47 = vrot.slane %v2850_v16, 1  ;;  %v3067_v3 = vsel %vm3050_vm2, %v3060_v45, %v3066_v33  ;;  %v2866_v16 = vshll.u32 %v6435_v13, 16 }
 0x147   : > { %v6405_v20 = vpop.f32.mrf.mxu0  ;;  %v6412_v7 = vpop.f32.mrf.mxu1 }
 0x148   : > { %4949 = vmatpush3.bf16.msra.mxu0 %v5117_v53  ;;  %v2853_v54 = vsel %vm1186_vm9, %v2848_v31, %v2852_v47  ;;  %v2856_v14 = vor.u32 %v2854_v4, %v2852_v47 }
 0x149   : > { %v1878_v60 = vpop.f32.mrf.mxu0 }
 0x14b   : > { %4915 = vmatmul.mubr.bf16.gmra.mxu0 %v5670_v49  ;;  %3393 = vmatmul.mubr.bf16.vlgmr.msra.gmra.mxu1 %v3053_v2  ;;  %v3068_v49 = vrot.slane %v2845_v46, 2 }
 0x14c   : > { %4918 = vmatprep.mubr.bf16.mxu0 %v5788_v59  ;;  %3400 = vmatprep.mubr.bf16.mxu1 %v3063_v25  ;;  %v3061_v59 = vsel %vm3050_vm2, %v3052_v56, %v3060_v45  ;;  %v2713_v56 = vld [vmem:[#allocation2 + $0x10] sm:$0x8] }
 0x14d   : > { %v6420_v5 = vpop.f32.mrf.mxu1  ;;  %v3069_v53 = vsel %vm3050_vm2, %v3062_v48, %v3068_v49  ;;  %v2860_v48 = vrot.slane %v2858_v50, 1 }
 0x14e   : > { %v1881_v8 = vpop.f32.mrf.mxu0 }
 0x14f   : > { %v6416_v24 = vadd.f32 %v6270_v57, %v1881_v8  ;;  %v6432_v44 = vpop.f32.mrf.mxu1  ;;  %v2861_v25 = vsel %vm1186_vm9, %v2856_v14, %v2860_v48  ;;  %v3072_v8 = vrot.slane %v6376_v41, 2  ;;  %v2864_v47 = vor.u32 %v2862_v29, %v2860_v48 }
 0x150   : > { %v1883_v58 = vpop.f32.mrf.mxu0  ;;  %v1392_v48 = vrot.slane %v6325_v35, 1  ;;  %v7128_v35 = vld [vmem:[#allocation6_spill] sm:$0xff] }
 0x151   : > { %v6437_v34 = vpop.f32.mrf.mxu1  ;;  %v2868_v58 = vrot.slane %v2866_v16, 1 }
 0x152   : > { %v1884_v40 = vpop.f32.mrf.mxu0 }
 0x153   : > { %4919 = vmatmul.mubr.bf16.gmra.mxu0 %v5845_v32  ;;  %v6429_v57 = vadd.f32 %v6281_v30, %v1884_v40  ;;  %3401 = vmatmul.mubr.bf16.gmra.mxu1 %v3061_v59  ;;  %v3074_v32 = vrot.slane %v2853_v54, 2  ;;  %v4405_v30 = vcombine.low %v2713_v56, %v6308_v37  ;;  %v6450_v37 = vpop.f32.mrf.mxu1  ;;  %v2870_v56 = vshrl.u32 %v6435_v13, 16 }
 0x154   : > { %4922 = vmatprep.mubr.bf16.mxu0 %v5902_v21  ;;  %v1886_v27 = vpop.f32.mrf.mxu0  ;;  %3408 = vmatprep.mubr.bf16.mxu1 %v3069_v53 }
 0x155   : > { %v3075_v21 = vsel %vm3050_vm2, %v3068_v49, %v3074_v32  ;;  %v2964_v45 = vrot.slane %v4405_v30, 1  ;;  %v2965_v49 = vrot.slane %v6316_v22, 1 }
 0x157   : > { %v2966_v54 = vsel %vm1356_vm7, %v2964_v45, %v2965_v49  ;;  %v6488_v45 = vld [vmem:[#allocation2 + $0x58] sm:$0xff]  }
 0x158   : > { %v3057_v30 = vrot.slane %v2966_v54, 2 }
 0x15b   : > { %4923 = vmatmul.mubr.bf16.gmra.mxu0 %v5928_v51  ;;  %v1889_v2 = vpop.f32.mrf.mxu0  ;;  %3409 = vmatmul.mubr.bf16.gmra.mxu1 %v3067_v3  ;;  %v2967_v51 = vrot.slane %v6327_v9, 1  ;;  %v3073_v9 = vsel %vm3050_vm2, %v3066_v33, %v3072_v8 }
 0x15c   : > { %v6445_v46 = vadd.f32 %v6299_v18, %v1889_v2  ;;  %4926 = vmatprep.mubr.bf16.mxu0 %v5983_v23  ;;  %3416 = vmatprep.mubr.bf16.mxu1 %v3075_v21  ;;  %v3080_v18 = vrot.slane %v2861_v25, 2  ;;  %v6458_v23 = vld [vmem:[#allocation2 + $0x50] sm:$0xff]   ;;  %v2971_v21 = vrot.slane %v6376_v41, 1  ;;  %v3078_v2 = vrot.slane %v6399_v42, 2 }
 0x15d   : > { %v1891_v60 = vpop.f32.mrf.mxu0  ;;  %v2968_v22 = vsel %vm1356_vm7, %v2965_v49, %v2967_v51  ;;  %v2874_v14 = vshll.u32 %v6458_v23, 16 }
 0x15e   : > { %v3081_v4 = vsel %vm3050_vm2, %v3074_v32, %v3080_v18  ;;  %v3058_v32 = vrot.slane %v2968_v22, 2  ;;  %v1393_v60 = vsel %vm1356_vm7, %v7128_v35, %v1392_v48 }
 0x15f   : > { %v1892_v31 = vpop.f32.mrf.mxu0  ;;  %v6460_v40 = vpop.f32.mrf.mxu1  ;;  %v2876_v16 = vrot.slane %v2874_v14, 1  ;;  %v2973_v14 = vrot.slane %v6399_v42, 1 }
 0x160   : > { %v6456_v59 = vadd.f32 %v6323_v0, %v1892_v31  ;;  %v6472_v0 = vsel %vm1186_vm9, %v2864_v47, %v2868_v58  ;;  %v3059_v49 = vsel %vm3050_vm2, %v3057_v30, %v3058_v32 }
 0x161   : > { %v1894_v53 = vpop.f32.mrf.mxu0  ;;  %v6469_v27 = vpop.f32.mrf.mxu1  ;;  %v3086_v25 = vrot.slane %v6472_v0, 2 }
 0x162   : > { %v3079_v53 = vsel %vm3050_vm2, %v3072_v8, %v3078_v2  ;;  %v2975_v8 = vrot.slane %v6418_v15, 1 }
 0x163   : > { %4927 = vmatmul.mubr.bf16.gmra.mxu0 %v6005_v11  ;;  %v6467_v50 = vpop.f32.mrf.mxu0  ;;  %v2969_v11 = vrot.slane %v6351_v39, 1  ;;  %3417 = vmatmul.mubr.bf16.gmra.mxu1 %v3073_v9  ;;  %v6479_v3 = vpop.f32.mrf.mxu1  ;;  %v3087_v54 = vsel %vm3050_vm2, %v3080_v18, %v3086_v25  ;;  %v2878_v9 = vshrl.u32 %v6458_v23, 16  ;;  %v3084_v18 = vrot.slane %v6418_v15, 2 }
 0x164   : > { %4930 = vmatprep.mubr.bf16.mxu0 %v6059_v12  ;;  %3424 = vmatprep.mubr.bf16.mxu1 %v3081_v4  ;;  %v2872_v12 = vor.u32 %v2870_v56, %v2868_v58  ;;  %v2882_v4 = vshll.u32 %v6488_v45, 16  ;;  %v2976_v15 = vsel %vm1356_vm7, %v2973_v14, %v2975_v8 }
 0x165   : > { %v1899_v33 = vpop.f32.mrf.mxu0  ;;  %v2970_v31 = vsel %vm1356_vm7, %v2967_v51, %v2969_v11  ;;  %v6492_v41 = vpop.f32.mrf.mxu1  ;;  %v2972_v47 = vsel %vm1356_vm7, %v2969_v11, %v2971_v21  ;;  %v6507_v11 = vld [vmem:[#allocation2 + $0x60] sm:$0xff]   ;;  %v2880_v35 = vor.u32 %v2878_v9, %v2876_v16 }
 0x166   : > { %v2877_v22 = vsel %vm1186_vm9, %v2872_v12, %v2876_v16  ;;  %v3064_v0 = vrot.slane %v2970_v31, 2  ;;  %v3070_v56 = vrot.slane %v2972_v47, 2  ;;  %v2974_v47 = vsel %vm1356_vm7, %v2971_v21, %v2973_v14 }
 0x167   : > { %v6484_v29 = vpop.f32.mrf.mxu0  ;;  %v3092_v33 = vrot.slane %v2877_v22, 2  ;;  %v2886_v16 = vshrl.u32 %v6488_v45, 16  ;;  %v3076_v21 = vrot.slane %v2974_v47, 2 }
 0x168   : > { %v3065_v42 = vsel %vm3050_vm2, %v3058_v32, %v3064_v0  ;;  %v3071_v31 = vsel %vm3050_vm2, %v3064_v0, %v3070_v56 }
 0x169   : > { %v1902_v39 = vpop.f32.mrf.mxu0  ;;  %v3093_v32 = vsel %vm3050_vm2, %v3086_v25, %v3092_v33  ;;  %v3077_v47 = vsel %vm3050_vm2, %v3070_v56, %v3076_v21 }
 0x16b   : > { %4931 = vmatmul.mubr.bf16.gmra.mxu0 %v1393_v60  ;;  %v6497_v58 = vpop.f32.mrf.mxu0  ;;  %v6503_v48 = vpop.f32.mrf.mxu1  ;;  %3425 = vmatmul.mubr.bf16.gmra.mxu1 %v3079_v53  ;;  %v2884_v60 = vrot.slane %v2882_v4, 1 }
 0x16c   : > { %4950 = vmatprep.mubr.bf16.mxu0 %v3059_v49  ;;  %7129 = vst [vmem:[#allocation5_spill] sm:$0xff] %v6503_v48  ;;  %3432 = vmatprep.mubr.bf16.mxu1 %v3087_v54  ;;  %v3085_v54 = vsel %vm3050_vm2, %v3078_v2, %v3084_v18  ;;  %v2977_v2 = vrot.slane %v6435_v13, 1 }
 0x16d   : > { %v1907_v51 = vpop.f32.mrf.mxu0  ;;  %v6509_v12 = vpop.f32.mrf.mxu1  ;;  %v6529_v4 = vsel %vm1186_vm9, %v2880_v35, %v2884_v60  ;;  %v2888_v25 = vor.u32 %v2886_v16, %v2884_v60 }
 0x16e   : > { %v3082_v51 = vrot.slane %v2976_v15, 2  ;;  %v6542_v15 = vld [vmem:[#allocation2 + $0x68] sm:$0xff]  }
 0x16f   : > { %v1908_v30 = vpop.f32.mrf.mxu0  ;;  %v6517_v53 = vpop.f32.mrf.mxu1 }
 0x170   : > { %v6512_v39 = vadd.f32 %v6372_v26, %v1908_v30  ;;  %7130 = vst [vmem:[#allocation6_spill] sm:$0xff] %v6517_v53  ;;  %v2890_v26 = vshll.u32 %v6507_v11, 16  ;;  %v2979_v30 = vrot.slane %v6458_v23, 1 }
 0x171   : > { %v1910_v49 = vpop.f32.mrf.mxu0  ;;  %v6525_v9 = vpop.f32.mrf.mxu1 }
 0x172   : > { %v3098_v49 = vrot.slane %v6529_v4, 2  ;;  %v2892_v53 = vrot.slane %v2890_v26, 1 }
 0x173   : > { %4951 = vmatmul.mubr.bf16.vlgmr.msra.gmra.mxu0 %v3065_v42  ;;  %v6521_v22 = vpop.f32.mrf.mxu0  ;;  %v6532_v14 = vpop.f32.mrf.mxu1  ;;  %3433 = vmatmul.mubr.bf16.gmra.mxu1 %v3085_v54  ;;  %v3090_v42 = vrot.slane %v6435_v13, 2  ;;  %v3083_v54 = vsel %vm3050_vm2, %v3076_v21, %v3082_v51  ;;  %v2980_v13 = vsel %vm1356_vm7, %v2977_v2, %v2979_v30  ;;  %v2898_v21 = vshll.u32 %v6542_v15, 16 }
 0x174   : > { %4954 = vmatprep.mubr.bf16.mxu0 %v3071_v31  ;;  %7131 = vst [vmem:[#allocation7_spill] sm:$0xff] %v6532_v14  ;;  %3440 = vmatprep.mubr.bf16.mxu1 %v3093_v32  ;;  %v2978_v14 = vsel %vm1356_vm7, %v2975_v8, %v2977_v2  ;;  %v3099_v16 = vsel %vm3050_vm2, %v3092_v33, %v3098_v49  ;;  %v2894_v8 = vshrl.u32 %v6507_v11, 16  ;;  %v2981_v33 = vrot.slane %v6488_v45, 1 }
 0x175   : > { %v1915_v0 = vpop.f32.mrf.mxu0  ;;  %v6539_v31 = vpop.f32.mrf.mxu1  ;;  %v3091_v60 = vsel %vm3050_vm2, %v3084_v18, %v3090_v42  ;;  %v6552_v26 = vsel %vm1186_vm9, %v2888_v25, %v2892_v53  ;;  %v3088_v2 = vrot.slane %v2978_v14, 2  ;;  %v3094_v18 = vrot.slane %v2980_v13, 2 }
 0x176   : > { %7132 = vst [vmem:[#allocation8_spill] sm:$0xff] %v6539_v31  ;;  %v2983_v25 = vrot.slane %v6507_v11, 1  ;;  %v2900_v14 = vrot.slane %v2898_v21, 1 }
 0x177   : > { %v6537_v35 = vpop.f32.mrf.mxu0  ;;  %v6546_v32 = vpop.f32.mrf.mxu1  ;;  %v3089_v13 = vsel %vm3050_vm2, %v3082_v51, %v3088_v2 }
 0x178   : > { %7133 = vst [vmem:[#allocation9_spill] sm:$0xff] %v6546_v32 }
 0x179   : > { %v1918_v0 = vpop.f32.mrf.mxu0  ;;  %v6554_v4 = vpop.f32.mrf.mxu1 }
 0x17a   : > { %7134 = vst [vmem:[#allocation10_spill] sm:$0xff] %v6554_v4  ;;  %v6567_v4 = vld [vmem:[#allocation2 + $0x70] sm:$0xff]  }
 0x17b   : > { %4955 = vmatmul.mubr.bf16.gmra.mxu0 %v3077_v47  ;;  %v1921_v56 = vpop.f32.mrf.mxu0  ;;  %v6562_v31 = vpop.f32.mrf.mxu1  ;;  %3441 = vmatmul.mubr.bf16.gmra.mxu1 %v3091_v60  ;;  %v3096_v47 = vrot.slane %v6458_v23, 2  ;;  %v3095_v60 = vsel %vm3050_vm2, %v3088_v2, %v3094_v18  ;;  %v2984_v23 = vsel %vm1356_vm7, %v2981_v33, %v2983_v25 }
 0x17c   : > { %v6557_v0 = vadd.f32 %v6392_v43, %v1921_v56  ;;  %4958 = vmatprep.mubr.bf16.mxu0 %v3083_v54  ;;  %7135 = vst [vmem:[#allocation11_spill] sm:$0xff] %v6562_v31  ;;  %3448 = vmatprep.mubr.bf16.mxu1 %v3099_v16  ;;  %v3104_v43 = vrot.slane %v6552_v26, 2  ;;  %v2896_v54 = vor.u32 %v2894_v8, %v2892_v53  ;;  %v2902_v53 = vshrl.u32 %v6542_v15, 16 }
 0x17d   : > { %v1923_v32 = vpop.f32.mrf.mxu0  ;;  %v2357_v48 = vpop.f32.mrf.mxu1  ;;  %v2982_v16 = vsel %vm1356_vm7, %v2979_v30, %v2981_v33  ;;  %v3097_v26 = vsel %vm3050_vm2, %v3090_v42, %v3096_v47  ;;  %v3106_v33 = vrot.slane %v2984_v23, 2  ;;  %v2985_v42 = vrot.slane %v6542_v15, 1  ;;  %v6598_v23 = vld [vmem:[#allocation2 + $0x78] sm:$0xff]  }
 0x17e   : > { %v3105_v51 = vsel %vm3050_vm2, %v3098_v49, %v3104_v43  ;;  %v3100_v21 = vrot.slane %v2982_v16, 2  ;;  %v3102_v49 = vrot.slane %v6488_v45, 2 }
 0x17f   : > { %v1924_v56 = vpop.f32.mrf.mxu0  ;;  %v6575_v36 = vpop.f32.mrf.mxu1 }
 0x180   : > { %v6570_v32 = vadd.f32 %v6412_v7, %v1924_v56  ;;  %7136 = vst [vmem:[#allocation12_spill] sm:$0xff] %v6575_v36  ;;  %v2906_v7 = vshll.u32 %v6567_v4, 16  ;;  %v3101_v16 = vsel %vm3050_vm2, %v3094_v18, %v3100_v21 }
 0x181   : > { %v1926_v31 = vpop.f32.mrf.mxu0  ;;  %v2360_v8 = vpop.f32.mrf.mxu1 }
 0x182   : > { %v6583_v31 = vsel %vm1186_vm9, %v2896_v54, %v2900_v14  ;;  %v2904_v8 = vor.u32 %v2902_v53, %v2900_v14  ;;  %v2908_v36 = vrot.slane %v2906_v7, 1  ;;  %v3103_v14 = vsel %vm3050_vm2, %v3096_v47, %v3102_v49 }
 0x183   : > { %4959 = vmatmul.mubr.bf16.gmra.mxu0 %v3089_v13  ;;  %v1929_v48 = vpop.f32.mrf.mxu0  ;;  %v6589_v56 = vpop.f32.mrf.mxu1  ;;  %3449 = vmatmul.mubr.bf16.gmra.mxu1 %v3097_v26  ;;  %v2987_v13 = vrot.slane %v6567_v4, 1  ;;  %v3110_v54 = vrot.slane %v6583_v31, 2  ;;  %v3107_v26 = vsel %vm3050_vm2, %v3100_v21, %v3106_v33  ;;  %v2914_v21 = vshll.u32 %v6598_v23, 16 }
 0x184   : > { %v6586_v30 = vadd.f32 %v6381_v28, %v1929_v48  ;;  %4962 = vmatprep.mubr.bf16.mxu0 %v3095_v60  ;;  %7137 = vst [vmem:[#allocation13_spill] sm:$0xff] %v6589_v56  ;;  %3456 = vmatprep.mubr.bf16.mxu1 %v3105_v51  ;;  %v2986_v51 = vsel %vm1356_vm7, %v2983_v25, %v2985_v42  ;;  %v2910_v25 = vshrl.u32 %v6567_v4, 16 }
 0x185   : > { %v1931_v2 = vpop.f32.mrf.mxu0  ;;  %v2365_v48 = vpop.f32.mrf.mxu1  ;;  %v6605_v45 = vsel %vm1356_vm7, %v2985_v42, %v2987_v13  ;;  %v3111_v53 = vsel %vm3050_vm2, %v3104_v43, %v3110_v54  ;;  %v3112_v42 = vrot.slane %v2986_v51, 2 }
 0x186   : > { %v3118_v43 = vrot.slane %v6605_v45, 2 }
 0x187   : > { %v1932_v28 = vpop.f32.mrf.mxu0  ;;  %v6602_v56 = vpop.f32.mrf.mxu1 }
 0x188   : > { %v6595_v60 = vadd.f32 %v6401_v10, %v1932_v28  ;;  %7138 = vst [vmem:[#allocation14_spill] sm:$0xff] %v6602_v56  ;;  %v6610_v10 = vsel %vm1186_vm9, %v2904_v8, %v2908_v36  ;;  %v6617_v28 = vld [vmem:[#allocation2 + $0x80] sm:$0xff]   ;;  %v2989_v8 = vrot.slane %v6598_v23, 1  ;;  %v3113_v56 = vsel %vm3050_vm2, %v3106_v33, %v3112_v42 }
 0x189   : > { %v1934_v2 = vpop.f32.mrf.mxu0  ;;  %v2368_v7 = vpop.f32.mrf.mxu1  ;;  %v2918_v33 = vshrl.u32 %v6598_v23, 16 }
 0x18a   : > { %v3108_v2 = vrot.slane %v6507_v11, 2  ;;  %v2912_v7 = vor.u32 %v2910_v25, %v2908_v36 }
 0x18b   : > { %4963 = vmatmul.mubr.bf16.gmra.mxu0 %v3101_v16  ;;  %v1937_v18 = vpop.f32.mrf.mxu0  ;;  %v2371_v48 = vpop.f32.mrf.mxu1  ;;  %3457 = vmatmul.mubr.bf16.gmra.mxu1 %v3103_v14  ;;  %v2991_v16 = vrot.slane %v6617_v28, 1  ;;  %v2054_v14 = vadd.f32 %v6287_v62, %v6405_v20  ;;  %v2922_v62 = vshll.u32 %v6617_v28, 16 }
 0x18c   : > { %v6613_v31 = vadd.f32 %v6432_v44, %v1937_v18  ;;  %4966 = vmatprep.mubr.bf16.mxu0 %v3107_v26  ;;  %v6623_v44 = vadd.f32 %v2371_v48, %v6397_v17  ;;  %3464 = vmatprep.mubr.bf16.mxu1 %v3111_v53  ;;  %v3116_v26 = vrot.slane %v6610_v10, 2  ;;  %v3119_v17 = vsel %vm3050_vm2, %v3112_v42, %v3118_v43  ;;  %v6651_v42 = vld [vmem:[#allocation2 + $0x90] sm:$0xff]  }
 0x18d   : > { %v1939_v47 = vpop.f32.mrf.mxu0  ;;  %v2373_v18 = vpop.f32.mrf.mxu1  ;;  %v2990_v53 = vsel %vm1356_vm7, %v2987_v13, %v2989_v8  ;;  %v6636_v10 = vsel %vm1356_vm7, %v2989_v8, %v2991_v16  ;;  %v3109_v36 = vsel %vm3050_vm2, %v3102_v49, %v3108_v2 }
 0x18e   : > { %7139 = vst [vmem:[#allocation15_spill] sm:$0xff] %v6623_v44  ;;  %v2916_v47 = vrot.slane %v2914_v21, 1  ;;  %v3117_v13 = vsel %vm3050_vm2, %v3110_v54, %v3116_v26  ;;  %v3124_v21 = vrot.slane %v2990_v53, 2  ;;  %v3114_v18 = vrot.slane %v6542_v15, 2 }
 0x18f   : > { %v1940_v51 = vpop.f32.mrf.mxu0  ;;  %v2374_v11 = vpop.f32.mrf.mxu1  ;;  %v2924_v53 = vrot.slane %v2922_v62, 1 }
 0x190   : > { %v6628_v45 = vadd.f32 %v6450_v37, %v1940_v51  ;;  %v6638_v48 = vadd.f32 %v2374_v11, %v2054_v14  ;;  %v6649_v25 = vsel %vm1186_vm9, %v2912_v7, %v2916_v47  ;;  %v2995_v14 = vrot.slane %v6651_v42, 1 }
 0x191   : > { %v1942_v52 = vpop.f32.mrf.mxu0  ;;  %v2376_v20 = vpop.f32.mrf.mxu1  ;;  %v3122_v7 = vrot.slane %v6649_v25, 2 }
 0x192   : > { %7140 = vst [vmem:[#allocation16_spill] sm:$0xff] %v6638_v48  ;;  %v6645_v52 = vld [vmem:[#allocation2 + $0x88] sm:$0xff]   ;;  %v6666_v48 = vld [vmem:[#allocation2 + $0x98] sm:$0xff]  }
 0x193   : > { %4967 = vmatmul.mubr.bf16.gmra.mxu0 %v3113_v56  ;;  %v6641_v37 = vpop.f32.mrf.mxu0  ;;  %v3130_v56 = vrot.slane %v6636_v10, 2  ;;  %v2993_v8 = vrot.slane %v6645_v52, 1  ;;  %v2379_v51 = vpop.f32.mrf.mxu1  ;;  %3465 = vmatmul.mubr.bf16.gmra.mxu1 %v3109_v36  ;;  %v3125_v10 = vsel %vm3050_vm2, %v3118_v43, %v3124_v21  ;;  %v3123_v62 = vsel %vm3050_vm2, %v3116_v26, %v3122_v7 }
 0x194   : > { %4970 = vmatprep.mubr.bf16.mxu0 %v3119_v17  ;;  %v6658_v54 = vadd.f32 %v2379_v51, %v6416_v24  ;;  %3472 = vmatprep.mubr.bf16.mxu1 %v3117_v13  ;;  %v2920_v17 = vor.u32 %v2918_v33, %v2916_v47  ;;  %v6669_v13 = vld [vmem:[#allocation2 + $0xa0] ss:$0 sps:$4 sm:$0x77]   ;;  %v3115_v33 = vsel %vm3050_vm2, %v3108_v2, %v3114_v18  ;;  %v2930_v51 = vshll.u32 %v6645_v52, 16 }
 0x195   : > { %v1947_v49 = vpop.f32.mrf.mxu0  ;;  %v2381_v20 = vpop.f32.mrf.mxu1  ;;  %v3131_v36 = vsel %vm3050_vm2, %v3124_v21, %v3130_v56  ;;  %v2994_v15 = vsel %vm1356_vm7, %v2991_v16, %v2993_v8  ;;  %v2996_v24 = vsel %vm1356_vm7, %v2993_v8, %v2995_v14  ;;  %v2926_v8 = vshrl.u32 %v6617_v28, 16 }
 0x196   : > { %v6677_v43 = vsel %vm1186_vm9, %v2920_v17, %v2924_v53  ;;  %v3142_v20 = vrot.slane %v2996_v24, 2  ;;  %v2997_v2 = vrot.slane %v6666_v48, 1  ;;  %v2999_v17 = vrot.slane %v6669_v13, 1 }
 0x197   : > { %v6661_v11 = vpop.f32.mrf.mxu0  ;;  %v2382_v44 = vpop.f32.mrf.mxu1 }
 0x198   : > { %v6672_v47 = vadd.f32 %v2382_v44, %v6429_v57  ;;  %v3136_v57 = vrot.slane %v2994_v15, 2  ;;  %v2932_v15 = vrot.slane %v2930_v51, 1 }
 0x199   : > { %v1950_v49 = vpop.f32.mrf.mxu0  ;;  %v2384_v16 = vpop.f32.mrf.mxu1 }
 0x19a   : > { %7141 = vst [vmem:[#allocation17_spill] sm:$0xff] %v6672_v47  ;;  %v3128_v49 = vrot.slane %v6677_v43, 2  ;;  %v3143_v47 = vsel %vm3050_vm2, %v3136_v57, %v3142_v20 }
 0x19b   : > { %4971 = vmatmul.mubr.bf16.gmra.mxu0 %v3125_v10  ;;  %v1953_v25 = vpop.f32.mrf.mxu0  ;;  %v2387_v26 = vpop.f32.mrf.mxu1  ;;  %3473 = vmatmul.mubr.bf16.gmra.mxu1 %v3115_v33 }
 0x19c   : > { %v6680_v21 = vadd.f32 %v6469_v27, %v1953_v25  ;;  %4974 = vmatprep.mubr.bf16.mxu0 %v3131_v36  ;;  %v6687_v10 = vadd.f32 %v2387_v26, %v6445_v46  ;;  %3480 = vmatprep.mubr.bf16.mxu1 %v3123_v62  ;;  %v3120_v27 = vrot.slane %v6567_v4, 2  ;;  %v2928_v36 = vor.u32 %v2926_v8, %v2924_v53 }
 0x19d   : > { %v1955_v44 = vpop.f32.mrf.mxu0  ;;  %v2389_v16 = vpop.f32.mrf.mxu1  ;;  %v2998_v46 = vsel %vm1356_vm7, %v2995_v14, %v2997_v2  ;;  %v3000_v62 = vsel %vm1356_vm7, %v2997_v2, %v2999_v17  ;;  %v2938_v2 = vshll.u32 %v6651_v42, 16 }
 0x19e   : > { %v3137_v44 = vsel %vm3050_vm2, %v3130_v56, %v3136_v57  ;;  %v3121_v43 = vsel %vm3050_vm2, %v3114_v18, %v3120_v27  ;;  %v2933_v56 = vsel %vm1186_vm9, %v2928_v36, %v2932_v15  ;;  %v3148_v14 = vrot.slane %v2998_v46, 2 }
 0x19f   : > { %v1956_v25 = vpop.f32.mrf.mxu0  ;;  %v2390_v26 = vpop.f32.mrf.mxu1  ;;  %v2075_v57 = vadd.f32 %v6292_v55, %v6467_v50  ;;  %v2078_v50 = vadd.f32 %v6310_v19, %v6484_v29  ;;  %v3160_v19 = vrot.slane %v2999_v17, 2  ;;  %v2083_v29 = vadd.f32 %v6347_v38, %v6497_v58 }
 0x1a0   : > { %v6692_v24 = vadd.f32 %v6492_v41, %v1956_v25  ;;  %v6699_v4 = vadd.f32 %v2390_v26, %v6456_v59  ;;  %v3129_v41 = vsel %vm3050_vm2, %v3122_v7, %v3128_v49  ;;  %v2934_v59 = vshrl.u32 %v6645_v52, 16 }
 0x1a1   : > { %v1958_v33 = vpop.f32.mrf.mxu0  ;;  %v2392_v8 = vpop.f32.mrf.mxu1  ;;  %v3154_v25 = vrot.slane %v3000_v62, 2  ;;  %v3126_v7 = vrot.slane %v6598_v23, 2  ;;  %v3149_v55 = vsel %vm3050_vm2, %v3142_v20, %v3148_v14  ;;  %v2940_v26 = vrot.slane %v2938_v2, 1 }
 0x1a2   : > { %v2936_v46 = vor.u32 %v2934_v59, %v2932_v15 }
 0x1a3   : > { %4975 = vmatmul.mubr.bf16.gmra.mxu0 %v3137_v44  ;;  %v1961_v53 = vpop.f32.mrf.mxu0  ;;  %v2395_v16 = vpop.f32.mrf.mxu1  ;;  %3481 = vmatmul.mubr.bf16.gmra.mxu1 %v3121_v43  ;;  %v3155_v43 = vsel %vm3050_vm2, %v3148_v14, %v3154_v25  ;;  %v3127_v23 = vsel %vm3050_vm2, %v3120_v27, %v3126_v7  ;;  %v2942_v14 = vshrl.u32 %v6651_v42, 16  ;;  %v3161_v38 = vsel %vm3050_vm2, %v3154_v25, %v3160_v19 }
 0x1a4   : > { %v6705_v51 = vadd.f32 %v6460_v40, %v1961_v53  ;;  %4978 = vmatprep.mubr.bf16.mxu0 %v3143_v47  ;;  %v6711_v44 = vadd.f32 %v2395_v16, %v2075_v57  ;;  %3488 = vmatprep.mubr.bf16.mxu1 %v3129_v41  ;;  %v3134_v47 = vrot.slane %v2933_v56, 2  ;;  %v2941_v15 = vsel %vm1186_vm9, %v2936_v46, %v2940_v26 }
 0x1a5   : > { %v1963_v18 = vpop.f32.mrf.mxu0  ;;  %v2397_v36 = vpop.f32.mrf.mxu1  ;;  %v2946_v57 = vshll.u32 %v6666_v48, 16  ;;  %v3140_v17 = vrot.slane %v2941_v15, 2  ;;  %v2944_v58 = vor.u32 %v2942_v14, %v2940_v26  ;;  %v2950_v26 = vshrl.u32 %v6666_v48, 16 }
 0x1a7   : > { %v1964_v40 = vpop.f32.mrf.mxu0  ;;  %v2398_v53 = vpop.f32.mrf.mxu1 }
 0x1a8   : > { %v6715_v33 = vadd.f32 %v6479_v3, %v1964_v40  ;;  %v6721_v8 = vadd.f32 %v2398_v53, %v2078_v50  ;;  %v3135_v3 = vsel %vm3050_vm2, %v3128_v49, %v3134_v47  ;;  %v2948_v40 = vrot.slane %v2946_v57, 1 }
 0x1a9   : > { %v1966_v62 = vpop.f32.mrf.mxu0  ;;  %v2400_v56 = vpop.f32.mrf.mxu1  ;;  %v2954_v53 = vshll.u32 %v6669_v13, 16 }
 0x1aa   : > { %v2949_v25 = vsel %vm1186_vm9, %v2944_v58, %v2948_v40 }
 0x1ab   : > { %4979 = vmatmul.mubr.bf16.gmra.mxu0 %v3149_v55  ;;  %v1969_v41 = vpop.f32.mrf.mxu0  ;;  %v2403_v59 = vpop.f32.mrf.mxu1  ;;  %3489 = vmatmul.mubr.bf16.gmra.mxu1 %v3127_v23  ;;  %v2956_v19 = vrot.slane %v2954_v53, 1 }
 0x1ac   : > { %v6726_v20 = vadd.f32 %v6509_v12, %v1969_v41  ;;  %4982 = vmatprep.mubr.bf16.mxu0 %v3155_v43  ;;  %v6733_v2 = vadd.f32 %v2403_v59, %v2083_v29  ;;  %3496 = vmatprep.mubr.bf16.mxu1 %v3135_v3  ;;  %v3132_v12 = vrot.slane %v6617_v28, 2  ;;  %v3141_v43 = vsel %vm3050_vm2, %v3134_v47, %v3140_v17 }
 0x1ad   : > { %v1971_v27 = vpop.f32.mrf.mxu0  ;;  %v2405_v18 = vpop.f32.mrf.mxu1  ;;  %v3146_v3 = vrot.slane %v2949_v25, 2 }
 0x1ae   : > { %v3133_v46 = vsel %vm3050_vm2, %v3126_v7, %v3132_v12  ;;  %v3138_v7 = vrot.slane %v6645_v52, 2 }
 0x1af   : > { %v1972_v49 = vpop.f32.mrf.mxu0  ;;  %v2406_v55 = vpop.f32.mrf.mxu1  ;;  %v3147_v52 = vsel %vm3050_vm2, %v3140_v17, %v3146_v3 }
 0x1b0   : > { %v6737_v16 = vadd.f32 %v6525_v9, %v1972_v49  ;;  %v6741_v50 = vadd.f32 %v2406_v55, %v6512_v39  ;;  %v2091_v9 = vadd.f32 %v6335_v63, %v6521_v22  ;;  %v2094_v63 = vadd.f32 %v6356_v6, %v6537_v35 }
 0x1b1   : > { %v1974_v36 = vpop.f32.mrf.mxu0  ;;  %v2408_v28 = vpop.f32.mrf.mxu1  ;;  %v2952_v22 = vor.u32 %v2950_v26, %v2948_v40  ;;  %v3139_v57 = vsel %vm3050_vm2, %v3132_v12, %v3138_v7  ;;  %v3144_v35 = vrot.slane %v6651_v42, 2 }
 0x1b2   : > { %v2958_v36 = vshrl.u32 %v6669_v13, 16  ;;  %v3150_v13 = vrot.slane %v6666_v48, 2 }
 0x1b3   : > { %4983 = vmatmul.mubr.bf16.gmra.mxu0 %v3161_v38  ;;  %v6744_v62 = vpop.f32.mrf.mxu0  ;;  %v2411_v39 = vpop.f32.mrf.mxu1  ;;  %3497 = vmatmul.mubr.bf16.gmra.mxu1 %v3133_v46  ;;  %v2957_v49 = vsel %vm1186_vm9, %v2952_v22, %v2956_v19  ;;  %v3145_v28 = vsel %vm3050_vm2, %v3138_v7, %v3144_v35  ;;  %v5128_v22 = vld [vmem:[#allocation2 + $0xa0] ss:$0 sps:$4 sm:$0x33]  }
 0x1b4   : > { %v6752_v41 = vadd.f32 %v2411_v39, %v2091_v9  ;;  %3504 = vmatprep.mubr.bf16.mxu1 %v3141_v43  ;;  %v3152_v12 = vrot.slane %v2957_v49, 2  ;;  %v2960_v25 = vor.u32 %v2958_v36, %v2956_v19  ;;  %v3156_v48 = vrot.slane %v5128_v22, 2 }
 0x1b5   : > { %v1979_v23 = vpop.f32.mrf.mxu0  ;;  %v2413_v47 = vpop.f32.mrf.mxu1 }
 0x1b6   : > { %v3153_v9 = vsel %vm3050_vm2, %v3146_v3, %v3152_v12  ;;  %v3158_v39 = vrot.slane %v2960_v25, 2  ;;  %v3151_v3 = vsel %vm3050_vm2, %v3144_v35, %v3150_v13 }
 0x1b7   : > { %v6755_v56 = vpop.f32.mrf.mxu0  ;;  %v2414_v15 = vpop.f32.mrf.mxu1 }
 0x1b8   : > { %v6759_v14 = vadd.f32 %v2414_v15, %v2094_v63 }
 0x1b9   : > { %v1982_v29 = vpop.f32.mrf.mxu0  ;;  %v2416_v59 = vpop.f32.mrf.mxu1 }
 0x1ba   : > { %v3159_v29 = vsel %vm3050_vm2, %v3152_v12, %v3158_v39 }
 0x1bb   : > { %v6762_v27 = vpop.f32.mrf.mxu0  ;;  %v2419_v38 = vpop.f32.mrf.mxu1  ;;  %3505 = vmatmul.mubr.bf16.gmra.mxu1 %v3139_v57 }
 0x1bc   : > { %v6767_v6 = vadd.f32 %v2419_v38, %v6557_v0  ;;  %3512 = vmatprep.mubr.bf16.mxu1 %v3147_v52 }
 0x1bd   : > { %v1987_v18 = vpop.f32.mrf.mxu0  ;;  %v2421_v40 = vpop.f32.mrf.mxu1 }
 0x1be   : > { %v2123_v18 = vadd.f32 %v6420_v5, %v6641_v37 }
 0x1bf   : > { %v6770_v58 = vpop.f32.mrf.mxu0  ;;  %v2422_v46 = vpop.f32.mrf.mxu1 }
 0x1c0   : > { %v6774_v17 = vadd.f32 %v2422_v46, %v6570_v32 }
 0x1c1   : > { %v1990_v55 = vpop.f32.mrf.mxu0  ;;  %v2424_v0 = vpop.f32.mrf.mxu1 }
 0x1c3   : > { %v6777_v43 = vpop.f32.mrf.mxu0  ;;  %v2427_v26 = vpop.f32.mrf.mxu1  ;;  %3513 = vmatmul.mubr.bf16.gmra.mxu1 %v3145_v28 }
 0x1c4   : > { %v6781_v53 = vadd.f32 %v2427_v26, %v6586_v30  ;;  %3520 = vmatprep.mubr.bf16.mxu1 %v3153_v9 }
 0x1c5   : > { %v1995_v42 = vpop.f32.mrf.mxu0  ;;  %v2429_v32 = vpop.f32.mrf.mxu1 }
 0x1c7   : > { %v6784_v23 = vpop.f32.mrf.mxu0  ;;  %v2430_v47 = vpop.f32.mrf.mxu1 }
 0x1c8   : > { %v6787_v63 = vadd.f32 %v2430_v47, %v6595_v60  ;;  %v3157_v60 = vsel %vm3050_vm2, %v3150_v13, %v3156_v48 }
 0x1c9   : > { %v1998_v7 = vpop.f32.mrf.mxu0  ;;  %v2432_v19 = vpop.f32.mrf.mxu1 }
 0x1cb   : > { %v2435_v30 = vpop.f32.mrf.mxu1  ;;  %3521 = vmatmul.mubr.bf16.gmra.mxu1 %v3151_v3  ;;  %v7143_v3 = vld [vmem:[#allocation13_spill] sm:$0xff] }
 0x1cc   : > { %v6792_v15 = vadd.f32 %v2435_v30, %v6613_v31  ;;  %3528 = vmatprep.mubr.bf16.mxu1 %v3159_v29  ;;  %v2126_v31 = vadd.f32 %v6437_v34, %v6661_v11  ;;  %v7144_v29 = vld [vmem:[#allocation3_spill] sm:$0xff] }
 0x1cd   : > { %v2437_v57 = vpop.f32.mrf.mxu1 }
 0x1cf   : > { %v2438_v59 = vpop.f32.mrf.mxu1 }
 0x1d0   : > { %v6795_v52 = vadd.f32 %v2438_v59, %v6628_v45  ;;  %v4848_v45 = vpop.f32.mrf.mxu0 }
 0x1d1   : > { %v2440_v49 = vpop.f32.mrf.mxu1  ;;  %v2043_v26 = vadd.f32 %v4848_v45, %v6374_v61 }
 0x1d2   : > { %v2034_v9 = vpop.f32.mrf.mxu0  ;;  %v7146_v49 = vld [vmem:[#allocation14_spill] sm:$0xff] }
 0x1d3   : > { %v2443_v38 = vpop.f32.mrf.mxu1  ;;  %3529 = vmatmul.mubr.bf16.gmra.mxu1 %v3157_v60  ;;  %v2035_v13 = vadd.f32 %v2034_v9, %v6349_v1  ;;  %v2364_v22 = vadd.f32 %v7143_v3, %v2043_v26  ;;  %v7150_v3 = vld [vmem:[#allocation17_spill] sm:$0xff] }
 0x1d4   : > { %v6800_v35 = vadd.f32 %v2443_v38, %v2123_v18  ;;  %v4849_v42 = vpop.f32.mrf.mxu0 }
 0x1d5   : > { %v2445_v40 = vpop.f32.mrf.mxu1 }
 0x1d6   : > { %v2037_v39 = vpop.f32.mrf.mxu0 }
 0x1d7   : > { %v2446_v12 = vpop.f32.mrf.mxu1  ;;  %v2038_v30 = vadd.f32 %v2037_v39, %v7144_v29 }
 0x1d8   : > { %v6804_v36 = vadd.f32 %v2446_v12, %v2126_v31  ;;  %v7147_v12 = vld [vmem:[#allocation12_spill] sm:$0xff] }
 0x1d9   : > { %v2448_v55 = vpop.f32.mrf.mxu1 }
 0x1da   : > { %v2359_v55 = vadd.f32 %v7147_v12, %v2038_v30  ;;  %v7152_v30 = vld [vmem:[#allocation16_spill] sm:$0xff] }
 0x1db   : > { %v2451_v46 = vpop.f32.mrf.mxu1 }
 0x1dc   : > { %v6807_v28 = vadd.f32 %v2451_v46, %v6680_v21  ;;  %v7142_v21 = vld [vmem:[#allocation4_spill] sm:$0xff] }
 0x1dd   : > { %v2453_v0 = vpop.f32.mrf.mxu1  ;;  %v2046_v7 = vadd.f32 %v4849_v42, %v7142_v21 }
 0x1df   : > { %v2454_v5 = vpop.f32.mrf.mxu1  ;;  %v2367_v18 = vadd.f32 %v7146_v49, %v2046_v7 }
 0x1e0   : > { %v6810_v37 = vadd.f32 %v2454_v5, %v6692_v24 }
 0x1e1   : > { %v2456_v25 = vpop.f32.mrf.mxu1 }
 0x1e3   : > { %v2459_v34 = vpop.f32.mrf.mxu1 }
 0x1e4   : > { %v6814_v11 = vadd.f32 %v2459_v34, %v6705_v51  ;;  %v7145_v51 = vld [vmem:[#allocation11_spill] sm:$0xff] }
 0x1e5   : > { %v2461_v32 = vpop.f32.mrf.mxu1  ;;  %v2356_v57 = vadd.f32 %v7145_v51, %v2035_v13 }
 0x1e6   : > { %v7149_v32 = vld [vmem:[#allocation15_spill] sm:$0xff] }
 0x1e7   : > { %v2462_v47 = vpop.f32.mrf.mxu1 }
 0x1e8   : > { %v6820_v24 = vadd.f32 %v2462_v47, %v6715_v33 }
 0x1e9   : > { %v2464_v61 = vpop.f32.mrf.mxu1 }
 0x1eb   : > { %v4900_v19 = vpop.f32.mrf.mxu0  ;;  %v2467_v1 = vpop.f32.mrf.mxu1 }
 0x1ec   : > { %v6823_v48 = vadd.f32 %v4900_v19, %v2364_v22  ;;  %v6830_v38 = vadd.f32 %v2467_v1, %v6726_v20  ;;  %v7148_v20 = vld [vmem:[#allocation5_spill] sm:$0xff]  ;;  %v7151_v22 = vld [vmem:[#allocation6_spill] sm:$0xff]  ;;  %v7153_v1 = vld [vmem:[#allocation8_spill] sm:$0xff] }
 0x1ed   : > { %v2532_v59 = vpop.f32.mrf.mxu0  ;;  %v2469_v33 = vpop.f32.mrf.mxu1  ;;  %v2155_v26 = vadd.f32 %v7148_v20, %v6744_v62  ;;  %v2158_v19 = vadd.f32 %v7151_v22, %v6755_v56  ;;  %v2163_v49 = vadd.f32 %v7153_v1, %v6762_v27 }
 0x1ee   : > { %v6826_v60 = vadd.f32 %v2532_v59, %v2356_v57 }
 0x1ef   : > { %v4901_v40 = vpop.f32.mrf.mxu0  ;;  %v2470_v46 = vpop.f32.mrf.mxu1 }
 0x1f0   : > { %v6832_v31 = vadd.f32 %v4901_v40, %v2367_v18  ;;  %v6838_v9 = vadd.f32 %v2470_v46, %v6737_v16  ;;  %v7154_v46 = vld [vmem:[#allocation10_spill] sm:$0xff] }
 0x1f1   : > { %v2535_v45 = vpop.f32.mrf.mxu0  ;;  %v2472_v25 = vpop.f32.mrf.mxu1 }
 0x1f2   : > { %v6835_v0 = vadd.f32 %v2535_v45, %v2359_v55 }
 0x1f3   : > { %v4904_v5 = vpop.f32.mrf.mxu0  ;;  %v2475_v13 = vpop.f32.mrf.mxu1 }
 0x1f4   : > { %v6841_v42 = vadd.f32 %v4904_v5, %v6658_v54  ;;  %v6848_v21 = vadd.f32 %v2475_v13, %v2155_v26  ;;  %v2166_v5 = vadd.f32 %v7154_v46, %v6770_v58  ;;  %v7155_v13 = vld [vmem:[#allocation7_spill] sm:$0xff] }
 0x1f5   : > { %v2548_v34 = vpop.f32.mrf.mxu0  ;;  %v2477_v47 = vpop.f32.mrf.mxu1 }
 0x1f6   : > { %v6846_v39 = vadd.f32 %v2548_v34, %v7149_v32  ;;  %v2171_v32 = vadd.f32 %v7155_v13, %v6777_v43 }
 0x1f7   : > { %v4905_v7 = vpop.f32.mrf.mxu0  ;;  %v2478_v29 = vpop.f32.mrf.mxu1 }
 0x1f8   : > { %v6851_v16 = vadd.f32 %v4905_v7, %v7150_v3  ;;  %v6858_v62 = vadd.f32 %v2478_v29, %v2158_v19  ;;  %v7156_v19 = vld [vmem:[#allocation9_spill] sm:$0xff] }
 0x1f9   : > { %v2551_v54 = vpop.f32.mrf.mxu0  ;;  %v2480_v57 = vpop.f32.mrf.mxu1 }
 0x1fa   : > { %v6856_v61 = vadd.f32 %v2551_v54, %v7152_v30  ;;  %v2174_v54 = vadd.f32 %v7156_v19, %v6784_v23 }
 0x1fb   : > { %v4908_v51 = vpop.f32.mrf.mxu0  ;;  %v2483_v40 = vpop.f32.mrf.mxu1 }
 0x1fc   : > { %v6861_v59 = vadd.f32 %v4908_v51, %v6711_v44  ;;  %v6868_v56 = vadd.f32 %v2483_v40, %v2163_v49 }
 0x1fd   : > { %v2564_v18 = vpop.f32.mrf.mxu0  ;;  %v2485_v55 = vpop.f32.mrf.mxu1 }
 0x1fe   : > { %v6866_v33 = vadd.f32 %v2564_v18, %v6687_v10 }
 0x1ff   : > { %v4909_v12 = vpop.f32.mrf.mxu0  ;;  %v2486_v25 = vpop.f32.mrf.mxu1 }
 0x200   : > { %v6871_v45 = vadd.f32 %v4909_v12, %v6721_v8  ;;  %v6878_v27 = vadd.f32 %v2486_v25, %v2166_v5 }
 0x201   : > { %v2567_v44 = vpop.f32.mrf.mxu0  ;;  %v2488_v10 = vpop.f32.mrf.mxu1 }
 0x202   : > { %v6876_v20 = vadd.f32 %v2567_v44, %v6699_v4 }
 0x203   : > { %v4912_v26 = vpop.f32.mrf.mxu0  ;;  %v2491_v7 = vpop.f32.mrf.mxu1 }
 0x204   : > { %v6881_v34 = vadd.f32 %v4912_v26, %v6752_v41  ;;  %v2492_v58 = vadd.f32 %v2491_v7, %v2171_v32 }
 0x205   : > { %v2580_v8 = vpop.f32.mrf.mxu0  ;;  %v2493_v22 = vpop.f32.mrf.mxu1 }
 0x206   : > { %v6886_v47 = vadd.f32 %v2580_v8, %v6733_v2 }
 0x207   : > { %v4913_v3 = vpop.f32.mrf.mxu0  ;;  %v2494_v41 = vpop.f32.mrf.mxu1 }
 0x208   : > { %v6889_v4 = vadd.f32 %v4913_v3, %v6759_v14  ;;  %v2495_v43 = vadd.f32 %v2494_v41, %v2174_v54 }
 0x209   : > { %v2583_v29 = vpop.f32.mrf.mxu0  ;;  %v2496_v57 = vpop.f32.mrf.mxu1 }
 0x20a   : > { %v6894_v30 = vadd.f32 %v2583_v29, %v6741_v50 }
 0x20b   : > { %v4916_v51 = vpop.f32.mrf.mxu0  ;;  %v3394_v49 = vpop.f32.mrf.mxu1 }
 0x20c   : > { %v6897_v2 = vadd.f32 %v4916_v51, %v6781_v53 }
 0x20d   : > { %v2596_v1 = vpop.f32.mrf.mxu0  ;;  %v3396_v40 = vpop.f32.mrf.mxu1 }
 0x20e   : > { %v6900_v18 = vadd.f32 %v2596_v1, %v6767_v6 }
 0x20f   : > { %v4917_v14 = vpop.f32.mrf.mxu0  ;;  %v6905_v55 = vpop.f32.mrf.mxu1 }
 0x210   : > { %v6903_v23 = vadd.f32 %v4917_v14, %v6787_v63 }
 0x211   : > { %v2599_v12 = vpop.f32.mrf.mxu0  ;;  %v3399_v5 = vpop.f32.mrf.mxu1 }
 0x212   : > { %v6908_v50 = vadd.f32 %v2599_v12, %v6774_v17 }
 0x213   : > { %v4920_v46 = vpop.f32.mrf.mxu0  ;;  %v3402_v25 = vpop.f32.mrf.mxu1 }
 0x214   : > { %v6911_v53 = vadd.f32 %v4920_v46, %v6800_v35 }
 0x215   : > { %v2612_v44 = vpop.f32.mrf.mxu0  ;;  %v3404_v10 = vpop.f32.mrf.mxu1 }
 0x216   : > { %v6914_v6 = vadd.f32 %v2612_v44, %v6792_v15 }
 0x217   : > { %v4921_v26 = vpop.f32.mrf.mxu0  ;;  %v3405_v32 = vpop.f32.mrf.mxu1 }
 0x218   : > { %v6917_v63 = vadd.f32 %v4921_v26, %v6804_v36 }
 0x219   : > { %v2615_v13 = vpop.f32.mrf.mxu0  ;;  %v3407_v7 = vpop.f32.mrf.mxu1 }
 0x21a   : > { %v6920_v17 = vadd.f32 %v2615_v13, %v6795_v52 }
 0x21b   : > { %v4924_v8 = vpop.f32.mrf.mxu0  ;;  %v3410_v22 = vpop.f32.mrf.mxu1 }
 0x21c   : > { %v6923_v35 = vadd.f32 %v4924_v8, %v6814_v11 }
 0x21d   : > { %v2628_v3 = vpop.f32.mrf.mxu0  ;;  %v3412_v54 = vpop.f32.mrf.mxu1 }
 0x21e   : > { %v6926_v15 = vadd.f32 %v2628_v3, %v6807_v28 }
 0x21f   : > { %v4925_v19 = vpop.f32.mrf.mxu0  ;;  %v6931_v41 = vpop.f32.mrf.mxu1 }
 0x220   : > { %v6929_v36 = vadd.f32 %v4925_v19, %v6820_v24 }
 0x221   : > { %v2631_v29 = vpop.f32.mrf.mxu0  ;;  %v3415_v57 = vpop.f32.mrf.mxu1 }
 0x222   : > { %v6934_v52 = vadd.f32 %v2631_v29, %v6810_v37 }
 0x223   : > { %v4928_v51 = vpop.f32.mrf.mxu0  ;;  %v3418_v14 = vpop.f32.mrf.mxu1 }
 0x224   : > { %v6937_v11 = vadd.f32 %v4928_v51, %v6848_v21 }
 0x225   : > { %v2644_v1 = vpop.f32.mrf.mxu0  ;;  %v3420_v12 = vpop.f32.mrf.mxu1 }
 0x226   : > { %v6940_v28 = vadd.f32 %v2644_v1, %v6830_v38 }
 0x227   : > { %v4929_v40 = vpop.f32.mrf.mxu0  ;;  %v3421_v5 = vpop.f32.mrf.mxu1 }
 0x228   : > { %v6943_v24 = vadd.f32 %v4929_v40, %v6858_v62 }
 0x229   : > { %v2647_v46 = vpop.f32.mrf.mxu0  ;;  %v3423_v26 = vpop.f32.mrf.mxu1 }
 0x22a   : > { %v6946_v37 = vadd.f32 %v2647_v46, %v6838_v9 }
 0x22b   : > { %v4932_v44 = vpop.f32.mrf.mxu0  ;;  %v6950_v13 = vpop.f32.mrf.mxu1 }
 0x22c   : > { %v6948_v10 = vadd.f32 %v4932_v44, %v2492_v58 }
 0x22d   : > { %v2660_v21 = vpop.f32.mrf.mxu0  ;;  %v3428_v7 = vpop.f32.mrf.mxu1 }
 0x22e   : > { %v6953_v38 = vadd.f32 %v2660_v21, %v6868_v56 }
 0x22f   : > { %v4933_v8 = vpop.f32.mrf.mxu0  ;;  %v6957_v19 = vpop.f32.mrf.mxu1 }
 0x230   : > { %v6955_v3 = vadd.f32 %v4933_v8, %v2495_v43 }
 0x231   : > { %v2663_v62 = vpop.f32.mrf.mxu0  ;;  %v3431_v29 = vpop.f32.mrf.mxu1 }
 0x232   : > { %v6960_v9 = vadd.f32 %v2663_v62, %v6878_v27 }
 0x233   : > { %v4952_v54 = vpop.f32.mrf.mxu0  ;;  %v6962_v57 = vpop.f32.mrf.mxu1 }
 0x234   : > { %v3580_v58 = vadd.f32 %v4952_v54, %v3402_v25 }
 0x235   : > { %v3571_v51 = vpop.f32.mrf.mxu0  ;;  %v3436_v56 = vpop.f32.mrf.mxu1 }
 0x236   : > { %v3572_v1 = vadd.f32 %v3571_v51, %v3394_v49  ;;  %v3716_v12 = vadd.f32 %v3580_v58, %v6823_v48 }
 0x237   : > { %v4953_v40 = vpop.f32.mrf.mxu0  ;;  %v6966_v26 = vpop.f32.mrf.mxu1 }
 0x238   : > { %v3583_v43 = vadd.f32 %v4953_v40, %v3405_v32  ;;  %v3714_v46 = vadd.f32 %v3572_v1, %v6826_v60  ;;  %v3754_v7 = vrot.slane %v3716_v12, 2 }
 0x239   : > { %v3574_v44 = vpop.f32.mrf.mxu0  ;;  %v3439_v8 = vpop.f32.mrf.mxu1 }
 0x23a   : > { %v3717_v27 = vadd.f32 %v3583_v43, %v6832_v31  ;;  %v3575_v21 = vadd.f32 %v3574_v44, %v6905_v55  ;;  %v4062_v29 = vmul.f32 %v3714_v46, %v3714_v46 }
 0x23b   : > { %v4956_v25 = vpop.f32.mrf.mxu0  ;;  %v6978_v60 = vpop.f32.mrf.mxu1 }
 0x23c   : > { %v3755_v62 = vrot.slane %v3717_v27, 2  ;;  %v3715_v49 = vadd.f32 %v3575_v21, %v6835_v0  ;;  %v3596_v54 = vadd.f32 %v4956_v25, %v3418_v14 }
 0x23d   : > { %v3587_v48 = vpop.f32.mrf.mxu0  ;;  %v3444_v14 = vpop.f32.mrf.mxu1 }
 0x23e   : > { %v3756_v31 = vsel %vm3050_vm2, %v3754_v7, %v3755_v62  ;;  %v4645_v55 = vpack.c.bf16 %v3715_v49, %v3714_v46  ;;  %v4025_v32 = vadd.f32 %v3715_v49, %v3714_v46  ;;  %v4063_v58 = vmul.f32 %v3715_v49, %v3715_v49 }
 0x23f   : > { %v4064_v51 = vmul.f32 %v3756_v31, %v3756_v31  ;;  %v3588_v1 = vadd.f32 %v3587_v48, %v3410_v22  ;;  %v4957_v0 = vpop.f32.mrf.mxu0  ;;  %v3720_v12 = vadd.f32 %v3596_v54, %v6841_v42  ;;  %v6984_v21 = vpop.f32.mrf.mxu1 }
 0x240   : > { %4646 = vst [vmem:[%s6976_s17] sm:$0xff] %v4645_v55   ;;  %v4026_v40 = vadd.f32 %v4025_v32, %v3756_v31  ;;  %v4094_v56 = vadd.f32 %v4063_v58, %v4062_v29  ;;  %v3599_v43 = vadd.f32 %v4957_v0, %v3421_v5 }
 0x241   : > { %v3718_v44 = vadd.f32 %v3588_v1, %v6846_v39  ;;  %v3590_v27 = vpop.f32.mrf.mxu0  ;;  %v3447_v49 = vpop.f32.mrf.mxu1  ;;  %v3774_v48 = vrot.slane %v3720_v12, 6 }
 0x242   : > { %v4095_v25 = vadd.f32 %v4094_v56, %v4064_v51  ;;  %v3721_v8 = vadd.f32 %v3599_v43, %v6851_v16  ;;  %v3591_v46 = vadd.f32 %v3590_v27, %v6931_v41  ;;  %v3767_v16 = vrot.slane %v3720_v12, 4 }
 0x243   : > { %v3757_v7 = vrot.slane %v3718_v44, 2  ;;  %v4960_v22 = vpop.f32.mrf.mxu0  ;;  %v3450_v39 = vpop.f32.mrf.mxu1  ;;  %v3764_v1 = vrot.slane %v3718_v44, 4 }
 0x244   : > { %v3775_v55 = vrot.slane %v3721_v8, 6  ;;  %v3719_v29 = vadd.f32 %v3591_v46, %v6856_v61 }
 0x245   : > { %v3758_v42 = vsel %vm3050_vm2, %v3755_v62, %v3757_v7  ;;  %v3603_v5 = vpop.f32.mrf.mxu0  ;;  %v3452_v56 = vpop.f32.mrf.mxu1 }
 0x246   : > { %v4650_v54 = vpack.c.bf16 %v3758_v42, %v3756_v31  ;;  %v4027_v32 = vadd.f32 %v4026_v40, %v3758_v42  ;;  %v4065_v58 = vmul.f32 %v3758_v42, %v3758_v42  ;;  %v3776_v51 = vsel %vm507_vm12, %v3774_v48, %v3775_v55 }
 0x247   : > { %v3765_v41 = vrot.slane %v3719_v29, 4  ;;  %v3604_v0 = vadd.f32 %v3603_v5, %v6950_v13  ;;  %v4961_v14 = vpop.f32.mrf.mxu0  ;;  %v3612_v31 = vadd.f32 %v4960_v22, %v6962_v57  ;;  %v3453_v8 = vpop.f32.mrf.mxu1 }
 0x248   : > { %4737 = vst [vmem:[%s6976_s17 + $0x8] sm:$0xff] %v4650_v54   ;;  %v4096_v43 = vadd.f32 %v4095_v25, %v4065_v58  ;;  %v3615_v13 = vadd.f32 %v4961_v14, %v6966_v26  ;;  %v4068_v26 = vmul.f32 %v3776_v51, %v3776_v51 }
 0x249   : > { %v3766_v61 = vsel %vm7157_vm4, %v3764_v1, %v3765_v41  ;;  %v3768_v62 = vsel %vm7158_vm13, %v3765_v41, %v3767_v16  ;;  %v3722_v40 = vadd.f32 %v3604_v0, %v6866_v33  ;;  %v3606_v27 = vpop.f32.mrf.mxu0  ;;  %v3455_v25 = vpop.f32.mrf.mxu1  ;;  %v3724_v33 = vadd.f32 %v3612_v31, %v6861_v59 }
 0x24a   : > { %v4655_v12 = vpack.c.bf16 %v3768_v62, %v3766_v61  ;;  %v4028_v44 = vadd.f32 %v4027_v32, %v3766_v61  ;;  %v4066_v46 = vmul.f32 %v3766_v61, %v3766_v61  ;;  %v3607_v49 = vadd.f32 %v3606_v27, %v6957_v19 }
 0x24b   : > { %v3777_v7 = vrot.slane %v3722_v40, 6  ;;  %v4964_v48 = vpop.f32.mrf.mxu0  ;;  %v4067_v42 = vmul.f32 %v3768_v62, %v3768_v62  ;;  %v3458_v58 = vpop.f32.mrf.mxu1  ;;  %v3725_v0 = vadd.f32 %v3615_v13, %v6871_v45 }
 0x24c   : > { %4738 = vst [vmem:[%s6976_s17 + $0x10] sm:$0xff] %v4655_v12   ;;  %v4029_v29 = vadd.f32 %v4028_v44, %v3768_v62  ;;  %v4097_v5 = vadd.f32 %v4096_v43, %v4066_v46  ;;  %v3628_v54 = vadd.f32 %v4964_v48, %v3450_v39  ;;  %v3723_v22 = vadd.f32 %v3607_v49, %v6876_v20 }
 0x24d   : > { %v3778_v57 = vsel %vm507_vm12, %v3775_v55, %v3777_v7  ;;  %v3619_v32 = vpop.f32.mrf.mxu0  ;;  %v3460_v43 = vpop.f32.mrf.mxu1  ;;  %v4071_v44 = vmul.f32 %v3724_v33, %v3724_v33  ;;  %v3784_v46 = vrot.slane %v3725_v0, 2 }
 0x24e   : > { %v4098_v16 = vadd.f32 %v4097_v5, %v4067_v42  ;;  %v4660_v19 = vpack.c.bf16 %v3778_v57, %v3776_v51  ;;  %v4030_v1 = vadd.f32 %v4029_v29, %v3776_v51  ;;  %v4069_v41 = vmul.f32 %v3778_v57, %v3778_v57 }
 0x24f   : > { %v4665_v14 = vpack.c.bf16 %v3724_v33, %v3723_v22  ;;  %v3620_v39 = vadd.f32 %v3619_v32, %v6978_v60  ;;  %v4965_v56 = vpop.f32.mrf.mxu0  ;;  %v3728_v20 = vadd.f32 %v3628_v54, %v6881_v34  ;;  %v4070_v62 = vmul.f32 %v3723_v22, %v3723_v22  ;;  %v3461_v51 = vpop.f32.mrf.mxu1 }
 0x250   : > { %4739 = vst [vmem:[%s6976_s17 + $0x18] sm:$0xff] %v4660_v19   ;;  %v4031_v59 = vadd.f32 %v4030_v1, %v3778_v57  ;;  %v4099_v55 = vadd.f32 %v4098_v16, %v4068_v26  ;;  %v3631_v61 = vadd.f32 %v4965_v56, %v3453_v8 }
 0x251   : > { %4740 = vst [vmem:[%s6976_s17 + $0x20] sm:$0xff] %v4665_v14   ;;  %v3726_v31 = vadd.f32 %v3620_v39, %v6886_v47  ;;  %v3622_v40 = vpop.f32.mrf.mxu0  ;;  %v3463_v49 = vpop.f32.mrf.mxu1  ;;  %v3794_v8 = vrot.slane %v3728_v20, 4 }
 0x252   : > { %v4032_v27 = vadd.f32 %v4031_v59, %v3723_v22  ;;  %v4100_v12 = vadd.f32 %v4099_v55, %v4069_v41  ;;  %v3729_v45 = vadd.f32 %v3631_v61, %v6889_v4  ;;  %v3623_v60 = vadd.f32 %v3622_v40, %v6984_v21 }
 0x253   : > { %v3785_v7 = vrot.slane %v3726_v31, 2  ;;  %v4968_v13 = vpop.f32.mrf.mxu0  ;;  %v3466_v5 = vpop.f32.mrf.mxu1 }
 0x254   : > { %v4033_v48 = vadd.f32 %v4032_v27, %v3724_v33  ;;  %v4101_v34 = vadd.f32 %v4100_v12, %v4070_v62  ;;  %v3796_v25 = vrot.slane %v3729_v45, 4  ;;  %v3727_v47 = vadd.f32 %v3623_v60, %v6894_v30 }
 0x255   : > { %v3786_v29 = vsel %vm3050_vm2, %v3784_v46, %v3785_v7  ;;  %v3635_v42 = vpop.f32.mrf.mxu0  ;;  %v3468_v16 = vpop.f32.mrf.mxu1  ;;  %v3644_v30 = vadd.f32 %v4968_v13, %v3466_v5  ;;  %v3802_v12 = vrot.slane %v3729_v45, 6 }
 0x256   : > { %v4102_v54 = vadd.f32 %v4101_v34, %v4071_v44  ;;  %v4034_v57 = vadd.f32 %v4033_v48, %v3786_v29  ;;  %v4072_v4 = vmul.f32 %v3786_v29, %v3786_v29  ;;  %v3797_v21 = vsel %vm7159_vm14, %v3794_v8, %v3796_v25 }
 0x257   : > { %v3787_v22 = vrot.slane %v3727_v47, 2  ;;  %v3793_v32 = vrot.slane %v3727_v47, 4  ;;  %v4969_v26 = vpop.f32.mrf.mxu0  ;;  %v3636_v19 = vadd.f32 %v3635_v42, %v3458_v58  ;;  %v3469_v14 = vpop.f32.mrf.mxu1  ;;  %v3732_v60 = vadd.f32 %v3644_v30, %v6897_v2 }
 0x258   : > { %v4103_v33 = vadd.f32 %v4102_v54, %v4072_v4  ;;  %v3647_v20 = vadd.f32 %v4969_v26, %v3469_v14  ;;  %v4075_v49 = vmul.f32 %v3797_v21, %v3797_v21 }
 0x259   : > { %v3788_v1 = vsel %vm3050_vm2, %v3785_v7, %v3787_v22  ;;  %v3795_v41 = vsel %vm7160_vm15, %v3793_v32, %v3794_v8  ;;  %v3638_v0 = vpop.f32.mrf.mxu0  ;;  %v3730_v55 = vadd.f32 %v3636_v19, %v6900_v18  ;;  %v3471_v62 = vpop.f32.mrf.mxu1  ;;  %v4078_v19 = vmul.f32 %v3732_v60, %v3732_v60 }
 0x25a   : > { %v4670_v39 = vpack.c.bf16 %v3788_v1, %v3786_v29  ;;  %v4675_v56 = vpack.c.bf16 %v3797_v21, %v3795_v41  ;;  %v4035_v43 = vadd.f32 %v4034_v57, %v3788_v1  ;;  %v4073_v59 = vmul.f32 %v3788_v1, %v3788_v1 }
 0x25b   : > { %v4972_v61 = vpop.f32.mrf.mxu0  ;;  %v4074_v58 = vmul.f32 %v3795_v41, %v3795_v41  ;;  %v3639_v27 = vadd.f32 %v3638_v0, %v3461_v51  ;;  %v3803_v44 = vrot.slane %v3730_v55, 6  ;;  %v3733_v46 = vadd.f32 %v3647_v20, %v6903_v23  ;;  %v3474_v13 = vpop.f32.mrf.mxu1 }
 0x25c   : > { %4741 = vst [vmem:[%s6976_s17 + $0x28] sm:$0xff] %v4670_v39   ;;  %4742 = vst [vmem:[%s6976_s17 + $0x30] sm:$0xff] %v4675_v56   ;;  %v4036_v31 = vadd.f32 %v4035_v43, %v3795_v41  ;;  %v4104_v40 = vadd.f32 %v4103_v33, %v4073_v59 }
 0x25d   : > { %v3651_v7 = vpop.f32.mrf.mxu0  ;;  %v3731_v34 = vadd.f32 %v3639_v27, %v6908_v50  ;;  %v3804_v8 = vsel %vm507_vm12, %v3802_v12, %v3803_v44  ;;  %v4685_v25 = vpack.c.bf16 %v3733_v46, %v3732_v60  ;;  %v3476_v51 = vpop.f32.mrf.mxu1  ;;  %v4079_v14 = vmul.f32 %v3733_v46, %v3733_v46 }
 0x25e   : > { %v4105_v18 = vadd.f32 %v4104_v40, %v4074_v58  ;;  %v4037_v48 = vadd.f32 %v4036_v31, %v3797_v21  ;;  %v3652_v29 = vadd.f32 %v3651_v7, %v3474_v13  ;;  %v4076_v42 = vmul.f32 %v3804_v8, %v3804_v8 }
 0x25f   : > { %v4973_v47 = vpop.f32.mrf.mxu0  ;;  %v3805_v5 = vrot.slane %v3731_v34, 6  ;;  %4744 = vst [vmem:[%s6976_s17 + $0x40] sm:$0xff] %v4685_v25   ;;  %v3477_v54 = vpop.f32.mrf.mxu1 }
 0x260   : > { %v4038_v45 = vadd.f32 %v4037_v48, %v3804_v8  ;;  %v4106_v2 = vadd.f32 %v4105_v18, %v4075_v49  ;;  %v3734_v26 = vadd.f32 %v3652_v29, %v6914_v6 }
 0x261   : > { %v3654_v23 = vpop.f32.mrf.mxu0  ;;  %v3806_v4 = vsel %vm507_vm12, %v3803_v44, %v3805_v5  ;;  %v3479_v32 = vpop.f32.mrf.mxu1 }
 0x262   : > { %v4107_v57 = vadd.f32 %v4106_v2, %v4076_v42  ;;  %v4680_v21 = vpack.c.bf16 %v3806_v4, %v3804_v8  ;;  %v4039_v22 = vadd.f32 %v4038_v45, %v3806_v4  ;;  %v4077_v50 = vmul.f32 %v3806_v4, %v3806_v4 }
 0x263   : > { %v3655_v16 = vadd.f32 %v3654_v23, %v3477_v54  ;;  %v4976_v33 = vpop.f32.mrf.mxu0  ;;  %v3482_v30 = vpop.f32.mrf.mxu1  ;;  %v3812_v55 = vrot.slane %v3734_v26, 2 }
 0x264   : > { %4743 = vst [vmem:[%s6976_s17 + $0x38] sm:$0xff] %v4680_v21   ;;  %v4040_v1 = vadd.f32 %v4039_v22, %v3732_v60  ;;  %v4108_v41 = vadd.f32 %v4107_v57, %v4077_v50  ;;  %v3660_v56 = vadd.f32 %v4972_v61, %v3482_v30 }
 0x265   : > { %v3735_v0 = vadd.f32 %v3655_v16, %v6920_v17  ;;  %v3484_v59 = vpop.f32.mrf.mxu1  ;;  %v3667_v62 = vpop.f32.mrf.mxu0 }
 0x266   : > { %v4109_v39 = vadd.f32 %v4108_v41, %v4078_v19  ;;  %v4041_v43 = vadd.f32 %v4040_v1, %v3733_v46  ;;  %v3736_v31 = vadd.f32 %v3660_v56, %v6911_v53 }
 0x267   : > { %v3813_v20 = vrot.slane %v3735_v0, 2  ;;  %v3485_v58 = vpop.f32.mrf.mxu1  ;;  %v4977_v7 = vpop.f32.mrf.mxu0 }
 0x268   : > { %v4110_v6 = vadd.f32 %v4109_v39, %v4079_v14  ;;  %v3815_v27 = vrot.slane %v3736_v31, 2  ;;  %v3663_v12 = vadd.f32 %v4973_v47, %v3485_v58  ;;  %v3821_v34 = vrot.slane %v3736_v31, 4 }
 0x269   : > { %v3814_v40 = vsel %vm3050_vm2, %v3812_v55, %v3813_v20  ;;  %v3487_v44 = vpop.f32.mrf.mxu1  ;;  %v3670_v51 = vpop.f32.mrf.mxu0 }
 0x26a   : > { %v4042_v60 = vadd.f32 %v4041_v43, %v3814_v40  ;;  %v4080_v17 = vmul.f32 %v3814_v40, %v3814_v40  ;;  %v3737_v61 = vadd.f32 %v3663_v12, %v6917_v63  ;;  %v3816_v46 = vsel %vm3050_vm2, %v3813_v20, %v3815_v27 }
 0x26b   : > { %v3490_v13 = vpop.f32.mrf.mxu1  ;;  %v4690_v49 = vpack.c.bf16 %v3816_v46, %v3814_v40  ;;  %v4081_v48 = vmul.f32 %v3816_v46, %v3816_v46  ;;  %v4980_v21 = vpop.f32.mrf.mxu0 }
 0x26c   : > { %v4043_v18 = vadd.f32 %v4042_v60, %v3816_v46  ;;  %v4111_v53 = vadd.f32 %v4110_v6, %v4080_v17  ;;  %v3822_v8 = vrot.slane %v3737_v61, 4  ;;  %v3668_v25 = vadd.f32 %v3667_v62, %v3490_v13 }
 0x26d   : > { %v3492_v29 = vpop.f32.mrf.mxu1  ;;  %4745 = vst [vmem:[%s6976_s17 + $0x48] sm:$0xff] %v4690_v49   ;;  %v3683_v14 = vpop.f32.mrf.mxu0 }
 0x26e   : > { %v4112_v47 = vadd.f32 %v4111_v53, %v4081_v48  ;;  %v3823_v45 = vsel %vm7161_vm0, %v3821_v34, %v3822_v8  ;;  %v3738_v42 = vadd.f32 %v3668_v25, %v6926_v15 }
 0x26f   : > { %v3493_v2 = vpop.f32.mrf.mxu1  ;;  %v4082_v63 = vmul.f32 %v3823_v45, %v3823_v45  ;;  %v4044_v5 = vadd.f32 %v4043_v18, %v3823_v45  ;;  %v4981_v6 = vpop.f32.mrf.mxu0 }
 0x270   : > { %v3824_v23 = vrot.slane %v3738_v42, 4  ;;  %v3671_v54 = vadd.f32 %v3670_v51, %v3493_v2  ;;  %v3830_v41 = vrot.slane %v3738_v42, 6 }
 0x271   : > { %v3495_v57 = vpop.f32.mrf.mxu1  ;;  %v4113_v4 = vadd.f32 %v4112_v47, %v4082_v63  ;;  %v3686_v13 = vpop.f32.mrf.mxu0 }
 0x272   : > { %v3825_v22 = vsel %vm7162_vm1, %v3822_v8, %v3824_v23  ;;  %v3739_v50 = vadd.f32 %v3671_v54, %v6934_v52 }
 0x273   : > { %v3498_v32 = vpop.f32.mrf.mxu1  ;;  %v4695_v26 = vpack.c.bf16 %v3825_v22, %v3823_v45  ;;  %v4045_v16 = vadd.f32 %v4044_v5, %v3825_v22  ;;  %v4083_v19 = vmul.f32 %v3825_v22, %v3825_v22  ;;  %v4984_v25 = vpop.f32.mrf.mxu0 }
 0x274   : > { %v3676_v1 = vadd.f32 %v4976_v33, %v3498_v32  ;;  %v3831_v15 = vrot.slane %v3739_v50, 6 }
 0x275   : > { %v3500_v30 = vpop.f32.mrf.mxu1  ;;  %4746 = vst [vmem:[%s6976_s17 + $0x50] sm:$0xff] %v4695_v26   ;;  %v4114_v0 = vadd.f32 %v4113_v4, %v4083_v19  ;;  %v3699_v2 = vpop.f32.mrf.mxu0 }
 0x276   : > { %v3740_v39 = vadd.f32 %v3676_v1, %v6923_v35  ;;  %v3832_v56 = vsel %vm507_vm12, %v3830_v41, %v3831_v15 }
 0x277   : > { %v3501_v43 = vpop.f32.mrf.mxu1  ;;  %v4046_v59 = vadd.f32 %v4045_v16, %v3832_v56  ;;  %v4084_v55 = vmul.f32 %v3832_v56, %v3832_v56  ;;  %v4985_v4 = vpop.f32.mrf.mxu0 }
 0x278   : > { %v3833_v52 = vrot.slane %v3740_v39, 6  ;;  %v3679_v20 = vadd.f32 %v4977_v7, %v3501_v43 }
 0x279   : > { %v3503_v62 = vpop.f32.mrf.mxu1  ;;  %v4115_v31 = vadd.f32 %v4114_v0, %v4084_v55  ;;  %v3702_v41 = vpop.f32.mrf.mxu0 }
 0x27a   : > { %v3741_v33 = vadd.f32 %v3679_v20, %v6929_v36  ;;  %v3834_v58 = vsel %vm507_vm12, %v3831_v15, %v3833_v52 }
 0x27b   : > { %v3506_v40 = vpop.f32.mrf.mxu1  ;;  %v4700_v27 = vpack.c.bf16 %v3834_v58, %v3832_v56  ;;  %v4047_v12 = vadd.f32 %v4046_v59, %v3834_v58  ;;  %v4085_v60 = vmul.f32 %v3834_v58, %v3834_v58 }
 0x27c   : > { %v3684_v35 = vadd.f32 %v3683_v14, %v3506_v40  ;;  %v4086_v17 = vmul.f32 %v3741_v33, %v3741_v33 }
 0x27d   : > { %v3508_v44 = vpop.f32.mrf.mxu1  ;;  %4747 = vst [vmem:[%s6976_s17 + $0x58] sm:$0xff] %v4700_v27   ;;  %v4116_v61 = vadd.f32 %v4115_v31, %v4085_v60  ;;  %v4048_v46 = vadd.f32 %v4047_v12, %v3741_v33 }
 0x27e   : > { %v3742_v7 = vadd.f32 %v3684_v35, %v6940_v28 }
 0x27f   : > { %v3509_v49 = vpop.f32.mrf.mxu1  ;;  %v4117_v18 = vadd.f32 %v4116_v61, %v4086_v17 }
 0x280   : > { %v4705_v48 = vpack.c.bf16 %v3742_v7, %v3741_v33  ;;  %v4049_v36 = vadd.f32 %v4048_v46, %v3742_v7  ;;  %v4087_v53 = vmul.f32 %v3742_v7, %v3742_v7  ;;  %v3687_v34 = vadd.f32 %v3686_v13, %v3509_v49 }
 0x281   : > { %v3511_v8 = vpop.f32.mrf.mxu1 }
 0x282   : > { %4748 = vst [vmem:[%s6976_s17 + $0x60] sm:$0xff] %v4705_v48   ;;  %v4118_v29 = vadd.f32 %v4117_v18, %v4087_v53  ;;  %v3743_v47 = vadd.f32 %v3687_v34, %v6946_v37 }
 0x283   : > { %v3514_v51 = vpop.f32.mrf.mxu1 }
 0x284   : > { %v3692_v45 = vadd.f32 %v4980_v21, %v3514_v51  ;;  %v3840_v5 = vrot.slane %v3743_v47, 2 }
 0x285   : > { %v3516_v42 = vpop.f32.mrf.mxu1 }
 0x286   : > { %v3744_v63 = vadd.f32 %v3692_v45, %v6937_v11 }
 0x287   : > { %v3517_v28 = vpop.f32.mrf.mxu1 }
 0x288   : > { %v3841_v23 = vrot.slane %v3744_v63, 2  ;;  %v3695_v54 = vadd.f32 %v4981_v6, %v3517_v28 }
 0x289   : > { %v3519_v57 = vpop.f32.mrf.mxu1 }
 0x28a   : > { %v3745_v22 = vadd.f32 %v3695_v54, %v6943_v24  ;;  %v3842_v50 = vsel %vm3050_vm2, %v3840_v5, %v3841_v23 }
 0x28b   : > { %v4050_v32 = vadd.f32 %v4049_v36, %v3842_v50  ;;  %v4088_v26 = vmul.f32 %v3842_v50, %v3842_v50  ;;  %v3522_v37 = vpop.f32.mrf.mxu1 }
 0x28c   : > { %v3843_v16 = vrot.slane %v3745_v22, 2  ;;  %v3700_v21 = vadd.f32 %v3699_v2, %v3522_v37  ;;  %v3849_v24 = vrot.slane %v3745_v22, 4 }
 0x28d   : > { %v4119_v19 = vadd.f32 %v4118_v29, %v4088_v26  ;;  %v3524_v1 = vpop.f32.mrf.mxu1 }
 0x28e   : > { %v3844_v11 = vsel %vm3050_vm2, %v3841_v23, %v3843_v16  ;;  %v3746_v15 = vadd.f32 %v3700_v21, %v6953_v38 }
 0x28f   : > { %v4089_v30 = vmul.f32 %v3844_v11, %v3844_v11  ;;  %v4710_v0 = vpack.c.bf16 %v3844_v11, %v3842_v50  ;;  %v4051_v14 = vadd.f32 %v4050_v32, %v3844_v11  ;;  %v3525_v39 = vpop.f32.mrf.mxu1 }
 0x290   : > { %v3850_v56 = vrot.slane %v3746_v15, 4  ;;  %v3703_v43 = vadd.f32 %v3702_v41, %v3525_v39 }
 0x291   : > { %4749 = vst [vmem:[%s6976_s17 + $0x68] sm:$0xff] %v4710_v0   ;;  %v4120_v59 = vadd.f32 %v4119_v19, %v4089_v30  ;;  %v3527_v55 = vpop.f32.mrf.mxu1 }
 0x292   : > { %v3851_v52 = vsel %vm7163_vm3, %v3849_v24, %v3850_v56  ;;  %v3747_v20 = vadd.f32 %v3703_v43, %v6960_v9 }
 0x293   : > { %v4052_v62 = vadd.f32 %v4051_v14, %v3851_v52  ;;  %v4090_v31 = vmul.f32 %v3851_v52, %v3851_v52  ;;  %v3530_v6 = vpop.f32.mrf.mxu1 }
 0x294   : > { %v3852_v33 = vrot.slane %v3747_v20, 4  ;;  %v3708_v38 = vadd.f32 %v4984_v25, %v3530_v6  ;;  %v3858_v61 = vrot.slane %v3747_v20, 6 }
 0x295   : > { %v4121_v58 = vadd.f32 %v4120_v59, %v4090_v31  ;;  %v3532_v40 = vpop.f32.mrf.mxu1 }
 0x296   : > { %v3853_v27 = vsel %vm7164_vm5, %v3850_v56, %v3852_v33  ;;  %v3748_v12 = vadd.f32 %v3708_v38, %v6948_v10 }
 0x297   : > { %v4715_v60 = vpack.c.bf16 %v3853_v27, %v3851_v52  ;;  %v4053_v35 = vadd.f32 %v4052_v62, %v3853_v27  ;;  %v4091_v44 = vmul.f32 %v3853_v27, %v3853_v27  ;;  %v3533_v17 = vpop.f32.mrf.mxu1 }
 0x298   : > { %v3859_v46 = vrot.slane %v3748_v12, 6  ;;  %v3711_v9 = vadd.f32 %v4985_v4, %v3533_v17 }
 0x299   : > { %4750 = vst [vmem:[%s6976_s17 + $0x70] sm:$0xff] %v4715_v60   ;;  %v4122_v13 = vadd.f32 %v4121_v58, %v4091_v44  ;;  %v3535_v7 = vpop.f32.mrf.mxu1 }
 0x29a   : > { %v3860_v49 = vsel %vm507_vm12, %v3858_v61, %v3859_v46  ;;  %v3749_v18 = vadd.f32 %v3711_v9, %v6955_v3 }
 0x29b   : > { %v4054_v48 = vadd.f32 %v4053_v35, %v3860_v49  ;;  %v4092_v36 = vmul.f32 %v3860_v49, %v3860_v49 }
 0x29c   : > { %v3861_v53 = vrot.slane %v3749_v18, 6 }
 0x29d   : > { %v4123_v34 = vadd.f32 %v4122_v13, %v4092_v36 }
 0x29e   : > { %v3862_v10 = vsel %vm507_vm12, %v3859_v46, %v3861_v53 }
 0x29f   : > { %v4720_v8 = vpack.c.bf16 %v3862_v10, %v3860_v49  ;;  %v4055_v25 = vadd.f32 %v4054_v48, %v3862_v10  ;;  %v4093_v29 = vmul.f32 %v3862_v10, %v3862_v10 }
 0x2a1   : > { %4751 = vst [vmem:[%s6976_s17 + $0x78] sm:$0xff] %v4720_v8   ;;  %v4056_v47 = vrot.slane %v4055_v25, 4  ;;  %v4124_v51 = vadd.f32 %v4123_v34, %v4093_v29 }
 0x2a3   : > { %v4057_v45 = vadd.f32 %v4056_v47, %v4055_v25  ;;  %v4125_v42 = vrot.slane %v4124_v51, 4 }
 0x2a5   : > { %v4058_v2 = vrot.slane %v4057_v45, 2  ;;  %v4126_v63 = vadd.f32 %v4125_v42, %v4124_v51 }
 0x2a7   : > { %v4059_v5 = vadd.f32 %v4058_v2, %v4057_v45  ;;  %v4127_v28 = vrot.slane %v4126_v63, 2 }
 0x2a9   : > { %v4060_v3 = vrot.slane %v4059_v5, 1  ;;  %v4128_v23 = vadd.f32 %v4127_v28, %v4126_v63 }
 0x2ab   : > { %v4129_v54 = vrot.slane %v4128_v23, 1  ;;  %v4061_v57 = vadd.f32 %v4060_v3, %v4059_v5 }
 0x2ad   : > { %v4130_v4 = vadd.f32 %v4129_v54, %v4128_v23 }
 0x2af   : > { %v4132_v22 = vsel %vm7165_vm6, %v4061_v57, %v4130_v4 }
 0x2b0   : > { %4133 = vst [vmem:[%s235_s23] sm:$0x3] %v4132_v22 }
 0x2b1 PF: > { %s16_s18 = sadd.s32 1, %s5157_s18  }
 0x2b2   : > { %p13_p4 = scmp.ge.s32.totalorder %s16_s18, 4  }
 0x2b4   :  { %15 = sbr.rel (!%p13_p4) target bundleno = 1 (0x1), region = 80 }

</bundles_post_ra>
